<compile_context>
chip_gen: v5e
topology: v5e:2x2
jax: 0.10.0
libtpu: 0.0.40
codegen_flags: <defaults>
</compile_context>

<pallas_src>
import functools

import jax
import jax.numpy as jnp
from jax import lax
from jax.experimental import pallas as pl
from jax.experimental.pallas import tpu as pltpu

LANE = 128
SUBLANE = 8


def _round_up(x, m):
    return -(-x // m) * m


# ----------------------------------------------------------------------------
# Kernel: two stacked LSTM layers, chunked over time.
# ----------------------------------------------------------------------------
def _lstm2_kernel(x_ref, w1_ref, b1_ref, w2_ref, b2_ref,
                  seq_ref, h1_last_ref,
                  h1_scr, c1_scr, h2_scr, c2_scr,
                  *, seq_len, chunk, mask_tail):
    c_idx = pl.program_id(1)          # time-chunk index (sequential axis)
    n_chunks = pl.num_programs(1)
    B_blk, Hp = h1_scr.shape

    @pl.when(c_idx == 0)
    def _():
        h1_scr[...] = jnp.zeros_like(h1_scr)
        c1_scr[...] = jnp.zeros_like(c1_scr)
        h2_scr[...] = jnp.zeros_like(h2_scr)
        c2_scr[...] = jnp.zeros_like(c2_scr)

    cdt = w1_ref.dtype                 # MXU compute dtype (f32 or bf16)
    w1 = w1_ref[...]                   # (Dp + Hp, 4Hp)
    w2 = w2_ref[...]                   # (2Hp,     4Hp)
    # Hoist the bias broadcasts out of the time loop (JAX does not CSE broadcasts).
    b1 = jnp.broadcast_to(b1_ref[...].astype(jnp.float32), (B_blk, 4 * Hp))
    b2 = jnp.broadcast_to(b2_ref[...].astype(jnp.float32), (B_blk, 4 * Hp))

    def cell(x_in, h_prev, c_prev, w, b):
        # One fused MXU pass: [x | h_prev] @ [W_ih; W_hh], f32 accumulation.
        xh = jnp.concatenate([x_in.astype(cdt), h_prev.astype(cdt)], axis=-1)
        gates = jnp.dot(xh, w, preferred_element_type=jnp.float32) + b
        # Gate order matches PyTorch: [i, f, g, o]; slices are 128-lane aligned.
        i_g = jax.nn.sigmoid(gates[:, 0 * Hp:1 * Hp])
        f_g = jax.nn.sigmoid(gates[:, 1 * Hp:2 * Hp])
        g_g = jnp.tanh(gates[:, 2 * Hp:3 * Hp])
        o_g = jax.nn.sigmoid(gates[:, 3 * Hp:4 * Hp])
        c_new = f_g * c_prev + i_g * g_g
        h_new = o_g * jnp.tanh(c_new)
        return h_new, c_new

    def step(t, carry):
        h1, c1, h2, c2 = carry
        x_t = x_ref[t]                                     # (B_blk, Dp)
        h1n, c1n = cell(x_t, h1, c1, w1, b1)               # layer 1
        h2n, c2n = cell(h1n, h2, c2, w2, b2)               # layer 2
        if mask_tail:  # only traced when T % chunk != 0 (padded tail timesteps)
            valid = (c_idx * chunk + t) < seq_len
            h1n = jnp.where(valid, h1n, h1)
            c1n = jnp.where(valid, c1n, c1)
            h2n = jnp.where(valid, h2n, h2)
            c2n = jnp.where(valid, c2n, c2)
        seq_ref[t] = h2n.astype(seq_ref.dtype)             # lane-dense (B_blk, Hp) store
        return h1n, c1n, h2n, c2n

    carry = (h1_scr[...], c1_scr[...], h2_scr[...], c2_scr[...])
    h1, c1, h2, c2 = lax.fori_loop(0, chunk, step, carry, unroll=True)
    h1_scr[...] = h1
    c1_scr[...] = c1
    h2_scr[...] = h2
    c2_scr[...] = c2

    @pl.when(c_idx == n_chunks - 1)
    def _():
        h1_last_ref[...] = h1_scr[...]                     # layer-1 final hidden


# ----------------------------------------------------------------------------
# Wrapper
# ----------------------------------------------------------------------------
def simple_lstm_forward(x, kernel_params, hidden_dim, *, chunk=None, batch_block=None):
    """Equivalent of SimpleLSTM.forward.

    x: (T, B, input_dim), seq-major (PyTorch nn.LSTM default).
    kernel_params: output of prepare_kernel_params (fused/padded weights).
    Returns (h_n, full_seq): h_n (num_layers=2, B, H), full_seq (T, B, H).
    """
    assert len(kernel_params) == 2, "kernel fuses exactly 2 LSTM layers"
    # TODO(synk): generalize the in-kernel layer fusion beyond num_layers=2.
    T, B, D = x.shape
    H = hidden_dim
    (w1, b1), (w2, b2) = kernel_params
    Hp = b1.shape[1] // 4
    Dp = w1.shape[0] - Hp
    cdt = w1.dtype

    if chunk is None:
        chunk = T if T <= 32 else 16
    Tp = _round_up(T, chunk)
    num_chunks = Tp // chunk

    Bp = _round_up(max(B, SUBLANE), SUBLANE)
    if batch_block is None:
        batch_block = Bp
    assert batch_block % SUBLANE == 0 and Bp % batch_block == 0
    num_b_blocks = Bp // batch_block

    # Pad to lane-dense TPU layout (zeros keep padded hidden lanes exactly zero).
    xp = jnp.zeros((Tp, Bp, Dp), cdt).at[:T, :B, :D].set(x.astype(cdt))

    kernel = functools.partial(_lstm2_kernel, seq_len=T, chunk=chunk,
                               mask_tail=(Tp != T))

    seq_pad, h1_last = pl.pallas_call(
        kernel,
        out_shape=(
            jax.ShapeDtypeStruct((Tp, Bp, Hp), jnp.float32),   # layer-2 hidden sequence
            jax.ShapeDtypeStruct((Bp, Hp), jnp.float32),       # layer-1 final hidden
        ),
        grid_spec=pltpu.PrefetchScalarGridSpec(
            num_scalar_prefetch=0,
            grid=(num_b_blocks, num_chunks),
            in_specs=[
                pl.BlockSpec((chunk, batch_block, Dp), lambda b, c: (c, b, 0)),
                pl.BlockSpec((Dp + Hp, 4 * Hp), lambda b, c: (0, 0)),
                pl.BlockSpec((1, 4 * Hp), lambda b, c: (0, 0)),
                pl.BlockSpec((2 * Hp, 4 * Hp), lambda b, c: (0, 0)),
                pl.BlockSpec((1, 4 * Hp), lambda b, c: (0, 0)),
            ],
            out_specs=[
                pl.BlockSpec((chunk, batch_block, Hp), lambda b, c: (c, b, 0)),
                pl.BlockSpec((batch_block, Hp), lambda b, c: (b, 0)),
            ],
            scratch_shapes=[pltpu.VMEM((batch_block, Hp), jnp.float32)] * 4,
        ),
        compiler_params=pltpu.CompilerParams(
            dimension_semantics=("parallel", "arbitrary")),
    )(xp, w1, b1, w2, b2)

    full_seq = seq_pad[:T, :B, :H]
    h_n = jnp.stack([h1_last[:B, :H], full_seq[-1]], axis=0)
    return h_n, full_seq


# ----------------------------------------------------------------------------
# Parameter helpers
# ----------------------------------------------------------------------------
def init_torch_params(key, input_dim, hidden_dim, num_layers, dtype=jnp.float32):
    """Deterministic synthetic params matching nn.LSTM tensor layout & init scale."""
    params = []
    scale = 1.0 / (hidden_dim ** 0.5)
    for layer in range(num_layers):
        in_dim = input_dim if layer == 0 else hidden_dim
        key, k1, k2, k3, k4 = jax.random.split(key, 5)
        w_ih = jax.random.uniform(k1, (4 * hidden_dim, in_dim), dtype, -scale, scale)
        w_hh = jax.random.uniform(k2, (4 * hidden_dim, hidden_dim), dtype, -scale, scale)
        b_ih = jax.random.uniform(k3, (4 * hidden_dim,), dtype, -scale, scale)
        b_hh = jax.random.uniform(k4, (4 * hidden_dim,), dtype, -scale, scale)
        params.append((w_ih, w_hh, b_ih, b_hh))
    return params


def prepare_kernel_params(torch_params, input_dim, hidden_dim, compute_dtype=jnp.float32):
    """Fuse and pad PyTorch-layout LSTM params for the kernel.

    Returns [(W_k, b_k)]: W_k = [W_ih; W_hh]^T padded to (in_pad + H_pad, 4*H_pad)
    (gate order i,f,g,o, each gate padded to H_pad lanes); b_k = fused bias (1, 4*H_pad)
    in float32. Zero padding keeps padded hidden lanes exactly zero through the recurrence.
    """
    H = hidden_dim
    Hp = _round_up(H, LANE)

    def pad_gates_last(a):  # (..., 4H) -> (..., 4Hp), per-gate zero pad
        lead = a.shape[:-1]
        a = a.reshape(lead + (4, H))
        a = jnp.pad(a, [(0, 0)] * len(lead) + [(0, 0), (0, Hp - H)])
        return a.reshape(lead + (4 * Hp,))

    out = []
    for layer, (w_ih, w_hh, b_ih, b_hh) in enumerate(torch_params):
        in_dim = input_dim if layer == 0 else hidden_dim
        in_pad = _round_up(in_dim, LANE)
        w_x = jnp.pad(w_ih.T, ((0, in_pad - in_dim), (0, 0)))    # (in_pad, 4H)
        w_h = jnp.pad(w_hh.T, ((0, Hp - H), (0, 0)))             # (Hp,     4H)
        w = pad_gates_last(jnp.concatenate([w_x, w_h], axis=0))  # (in_pad+Hp, 4Hp)
        b = pad_gates_last((b_ih + b_hh)[None, :])               # (1, 4Hp)
        out.append((w.astype(compute_dtype), b.astype(jnp.float32)))
    return out


# ----------------------------------------------------------------------------
# Pure-JAX reference (PyTorch-layout params)
# ----------------------------------------------------------------------------
def _reference_lstm(x, torch_params):
    seq = x
    last = []
    for (w_ih, w_hh, b_ih, b_hh) in torch_params:
        T, B, _ = seq.shape
        H = w_hh.shape[1]
        h = jnp.zeros((B, H), jnp.float32)
        c = jnp.zeros((B, H), jnp.float32)
        outs = []
        for t in range(T):
            gates = seq[t] @ w_ih.T + h @ w_hh.T + b_ih + b_hh
            i = jax.nn.sigmoid(gates[:, 0 * H:1 * H])
            f = jax.nn.sigmoid(gates[:, 1 * H:2 * H])
            g = jnp.tanh(gates[:, 2 * H:3 * H])
            o = jax.nn.sigmoid(gates[:, 3 * H:4 * H])
            c = f * c + i * g
            h = o * jnp.tanh(c)
            outs.append(h)
        seq = jnp.stack(outs, axis=0)
        last.append(h)
    return jnp.stack(last, axis=0), seq


if __name__ == "__main__":
    SEQ, BATCH, INPUT_DIM, HIDDEN_DIM, NUM_LAYERS = 8, 2, 32, 32, 2

    key = jax.random.PRNGKey(0)
    key, xkey = jax.random.split(key)
    x = jax.random.normal(xkey, (SEQ, BATCH, INPUT_DIM), jnp.float32)
    torch_params = init_torch_params(key, INPUT_DIM, HIDDEN_DIM, NUM_LAYERS)

    h_ref, seq_ref_ = _reference_lstm(x, torch_params)

    fwd = jax.jit(functools.partial(simple_lstm_forward, hidden_dim=HIDDEN_DIM))

    # float32 weights on the MXU (exact check; v5e-friendly path).
    kp_f32 = prepare_kernel_params(torch_params, INPUT_DIM, HIDDEN_DIM, jnp.float32)
    h_n, full_seq = fwd(x, kp_f32)
    jax.block_until_ready((h_n, full_seq))
    assert h_n.shape == (NUM_LAYERS, BATCH, HIDDEN_DIM)
    assert full_seq.shape == (SEQ, BATCH, HIDDEN_DIM)
    assert jnp.allclose(h_n, h_ref, atol=1e-5, rtol=1e-5)
    assert jnp.allclose(full_seq, seq_ref_, atol=1e-5, rtol=1e-5)

    # bfloat16 weights/activations on the MXU (v6e/v7x path); states/gates stay f32.
    kp_bf16 = prepare_kernel_params(torch_params, INPUT_DIM, HIDDEN_DIM, jnp.bfloat16)
    h_n16, full_seq16 = fwd(x, kp_bf16)
    jax.block_until_ready((h_n16, full_seq16))
    assert jnp.allclose(h_n16, h_ref, atol=1e-1, rtol=1e-1)
    assert jnp.allclose(full_seq16, seq_ref_, atol=1e-1, rtol=1e-1)

    print("KERNEL_OK")
</pallas_src>

<mosaic_0001>
module attributes {stable_mosaic.version = 11 : i64} {
  func.func @_lstm2_kernel(%arg0: i32, %arg1: i32, %arg2: memref<8x8x128xf32, #tpu.memory_space<vmem>>, %arg3: memref<256x512xf32, #tpu.memory_space<vmem>>, %arg4: memref<1x512xf32, #tpu.memory_space<vmem>>, %arg5: memref<256x512xf32, #tpu.memory_space<vmem>>, %arg6: memref<1x512xf32, #tpu.memory_space<vmem>>, %arg7: memref<8x8x128xf32, #tpu.memory_space<vmem>>, %arg8: memref<8x128xf32, #tpu.memory_space<vmem>>, %arg9: memref<8x128xf32, #tpu.memory_space<vmem>>, %arg10: memref<8x128xf32, #tpu.memory_space<vmem>>, %arg11: memref<8x128xf32, #tpu.memory_space<vmem>>, %arg12: memref<8x128xf32, #tpu.memory_space<vmem>>) attributes {dimension_semantics = [#tpu.dimension_semantics<parallel>, #tpu.dimension_semantics<arbitrary>], iteration_bounds = array<i64: 1, 1>, scalar_prefetch = 0 : i64, scratch_operands = 4 : i64, tpu.core_type = #tpu.core_type<tc>, window_params = [{transform_indices = @transform_0, window_bounds = array<i64: 8, 8, 128>}, {pipeline_mode = #tpu.pipeline_mode<synchronous>, transform_indices = @transform_1, window_bounds = array<i64: 256, 512>}, {pipeline_mode = #tpu.pipeline_mode<synchronous>, transform_indices = @transform_2, window_bounds = array<i64: 1, 512>}, {pipeline_mode = #tpu.pipeline_mode<synchronous>, transform_indices = @transform_3, window_bounds = array<i64: 256, 512>}, {pipeline_mode = #tpu.pipeline_mode<synchronous>, transform_indices = @transform_4, window_bounds = array<i64: 1, 512>}, {transform_indices = @transform_5, window_bounds = array<i64: 8, 8, 128>}, {transform_indices = @transform_6, window_bounds = array<i64: 8, 128>}]} {
    %c0_i32 = arith.constant 0 : i32
    %0 = arith.cmpi eq, %arg1, %c0_i32 : i32
    %1 = arith.extui %0 : i1 to i32
    %c0_i32_0 = arith.constant 0 : i32
    %2 = arith.cmpi ne, %1, %c0_i32_0 : i32
    scf.if %2 {
      %cst_122 = arith.constant 0.000000e+00 : f32
      %526 = vector.broadcast %cst_122 : f32 to vector<8x128xf32>
      %c0_123 = arith.constant 0 : index
      %c0_124 = arith.constant 0 : index
      %527 = vector.load %arg9[%c0_123, %c0_124] : memref<8x128xf32, #tpu.memory_space<vmem>>, vector<8x128xf32>
      tpu.vector_store %arg9[%c0_123, %c0_124], %526 {strides = array<i32>} : memref<8x128xf32, #tpu.memory_space<vmem>>, vector<8x128xf32>,
      %cst_125 = arith.constant 0.000000e+00 : f32
      %528 = vector.broadcast %cst_125 : f32 to vector<8x128xf32>
      %c0_126 = arith.constant 0 : index
      %c0_127 = arith.constant 0 : index
      %529 = vector.load %arg10[%c0_126, %c0_127] : memref<8x128xf32, #tpu.memory_space<vmem>>, vector<8x128xf32>
      tpu.vector_store %arg10[%c0_126, %c0_127], %528 {strides = array<i32>} : memref<8x128xf32, #tpu.memory_space<vmem>>, vector<8x128xf32>,
      %cst_128 = arith.constant 0.000000e+00 : f32
      %530 = vector.broadcast %cst_128 : f32 to vector<8x128xf32>
      %c0_129 = arith.constant 0 : index
      %c0_130 = arith.constant 0 : index
      %531 = vector.load %arg11[%c0_129, %c0_130] : memref<8x128xf32, #tpu.memory_space<vmem>>, vector<8x128xf32>
      tpu.vector_store %arg11[%c0_129, %c0_130], %530 {strides = array<i32>} : memref<8x128xf32, #tpu.memory_space<vmem>>, vector<8x128xf32>,
      %cst_131 = arith.constant 0.000000e+00 : f32
      %532 = vector.broadcast %cst_131 : f32 to vector<8x128xf32>
      %c0_132 = arith.constant 0 : index
      %c0_133 = arith.constant 0 : index
      %533 = vector.load %arg12[%c0_132, %c0_133] : memref<8x128xf32, #tpu.memory_space<vmem>>, vector<8x128xf32>
      tpu.vector_store %arg12[%c0_132, %c0_133], %532 {strides = array<i32>} : memref<8x128xf32, #tpu.memory_space<vmem>>, vector<8x128xf32>,
    } else {
    }
    %c0 = arith.constant 0 : index
    %c0_1 = arith.constant 0 : index
    %3 = vector.load %arg3[%c0, %c0_1] : memref<256x512xf32, #tpu.memory_space<vmem>>, vector<256x512xf32>
    %c0_2 = arith.constant 0 : index
    %c0_3 = arith.constant 0 : index
    %4 = vector.load %arg5[%c0_2, %c0_3] : memref<256x512xf32, #tpu.memory_space<vmem>>, vector<256x512xf32>
    %c0_4 = arith.constant 0 : index
    %c0_5 = arith.constant 0 : index
    %5 = vector.load %arg4[%c0_4, %c0_5] : memref<1x512xf32, #tpu.memory_space<vmem>>, vector<1x512xf32>
    %6 = vector.shape_cast %5 : vector<1x512xf32> to vector<1x512xf32>
    %7 = vector.broadcast %6 : vector<1x512xf32> to vector<8x512xf32>
    %c0_6 = arith.constant 0 : index
    %c0_7 = arith.constant 0 : index
    %8 = vector.load %arg6[%c0_6, %c0_7] : memref<1x512xf32, #tpu.memory_space<vmem>>, vector<1x512xf32>
    %9 = vector.shape_cast %8 : vector<1x512xf32> to vector<1x512xf32>
    %10 = vector.broadcast %9 : vector<1x512xf32> to vector<8x512xf32>
    %c0_8 = arith.constant 0 : index
    %c0_9 = arith.constant 0 : index
    %11 = vector.load %arg9[%c0_8, %c0_9] : memref<8x128xf32, #tpu.memory_space<vmem>>, vector<8x128xf32>
    %c0_10 = arith.constant 0 : index
    %c0_11 = arith.constant 0 : index
    %12 = vector.load %arg10[%c0_10, %c0_11] : memref<8x128xf32, #tpu.memory_space<vmem>>, vector<8x128xf32>
    %c0_12 = arith.constant 0 : index
    %c0_13 = arith.constant 0 : index
    %13 = vector.load %arg11[%c0_12, %c0_13] : memref<8x128xf32, #tpu.memory_space<vmem>>, vector<8x128xf32>
    %c0_14 = arith.constant 0 : index
    %c0_15 = arith.constant 0 : index
    %14 = vector.load %arg12[%c0_14, %c0_15] : memref<8x128xf32, #tpu.memory_space<vmem>>, vector<8x128xf32>
    %c0_i32_16 = arith.constant 0 : i32
    %15 = arith.index_cast %c0_i32_16 : i32 to index
    %c0_17 = arith.constant 0 : index
    %c0_18 = arith.constant 0 : index
    %16 = vector.load %arg2[%15, %c0_17, %c0_18] : memref<8x8x128xf32, #tpu.memory_space<vmem>>, vector<1x8x128xf32>
    %17 = vector.shape_cast %16 : vector<1x8x128xf32> to vector<8x128xf32>
    %18 = tpu.concatenate %17, %11 in 1 : vector<8x128xf32>, vector<8x128xf32> -> vector<8x256xf32>
    %cst = arith.constant dense<0.000000e+00> : vector<8x512xf32>
    %19 = tpu.matmul %18, %3, %cst {dimension_numbers = #tpu.dot_dimension_numbers<[1], [0], [0], [1], [0, 0, 1, 1], [], []>} : vector<8x256xf32>, vector<256x512xf32>, vector<8x512xf32> -> vector<8x512xf32>
    %20 = arith.addf %19, %7 : vector<8x512xf32>
    %21 = vector.extract_strided_slice %20 {offsets = [0, 0], sizes = [8, 128], strides = [1, 1]} : vector<8x512xf32> to vector<8x128xf32>
    %22 = arith.negf %21 : vector<8x128xf32>
    %23 = math.exp %22 : vector<8x128xf32>
    %cst_19 = arith.constant 1.000000e+00 : f32
    %24 = vector.broadcast %cst_19 : f32 to vector<8x128xf32>
    %25 = arith.addf %24, %23 : vector<8x128xf32>
    %26 = arith.divf %24, %25 : vector<8x128xf32>
    %27 = vector.extract_strided_slice %20 {offsets = [0, 128], sizes = [8, 128], strides = [1, 1]} : vector<8x512xf32> to vector<8x128xf32>
    %28 = arith.negf %27 : vector<8x128xf32>
    %29 = math.exp %28 : vector<8x128xf32>
    %cst_20 = arith.constant 1.000000e+00 : f32
    %30 = vector.broadcast %cst_20 : f32 to vector<8x128xf32>
    %31 = arith.addf %30, %29 : vector<8x128xf32>
    %32 = arith.divf %30, %31 : vector<8x128xf32>
    %33 = vector.extract_strided_slice %20 {offsets = [0, 256], sizes = [8, 128], strides = [1, 1]} : vector<8x512xf32> to vector<8x128xf32>
    %34 = math.tanh %33 : vector<8x128xf32>
    %35 = vector.extract_strided_slice %20 {offsets = [0, 384], sizes = [8, 128], strides = [1, 1]} : vector<8x512xf32> to vector<8x128xf32>
    %36 = arith.negf %35 : vector<8x128xf32>
    %37 = math.exp %36 : vector<8x128xf32>
    %cst_21 = arith.constant 1.000000e+00 : f32
    %38 = vector.broadcast %cst_21 : f32 to vector<8x128xf32>
    %39 = arith.addf %38, %37 : vector<8x128xf32>
    %40 = arith.divf %38, %39 : vector<8x128xf32>
    %41 = arith.mulf %32, %12 : vector<8x128xf32>
    %42 = arith.mulf %26, %34 : vector<8x128xf32>
    %43 = arith.addf %41, %42 : vector<8x128xf32>
    %44 = math.tanh %43 : vector<8x128xf32>
    %45 = arith.mulf %40, %44 : vector<8x128xf32>
    %46 = tpu.concatenate %45, %13 in 1 : vector<8x128xf32>, vector<8x128xf32> -> vector<8x256xf32>
    %cst_22 = arith.constant dense<0.000000e+00> : vector<8x512xf32>
    %47 = tpu.matmul %46, %4, %cst_22 {dimension_numbers = #tpu.dot_dimension_numbers<[1], [0], [0], [1], [0, 0, 1, 1], [], []>} : vector<8x256xf32>, vector<256x512xf32>, vector<8x512xf32> -> vector<8x512xf32>
    %48 = arith.addf %47, %10 : vector<8x512xf32>
    %49 = vector.extract_strided_slice %48 {offsets = [0, 0], sizes = [8, 128], strides = [1, 1]} : vector<8x512xf32> to vector<8x128xf32>
    %50 = arith.negf %49 : vector<8x128xf32>
    %51 = math.exp %50 : vector<8x128xf32>
    %cst_23 = arith.constant 1.000000e+00 : f32
    %52 = vector.broadcast %cst_23 : f32 to vector<8x128xf32>
    %53 = arith.addf %52, %51 : vector<8x128xf32>
    %54 = arith.divf %52, %53 : vector<8x128xf32>
    %55 = vector.extract_strided_slice %48 {offsets = [0, 128], sizes = [8, 128], strides = [1, 1]} : vector<8x512xf32> to vector<8x128xf32>
    %56 = arith.negf %55 : vector<8x128xf32>
    %57 = math.exp %56 : vector<8x128xf32>
    %cst_24 = arith.constant 1.000000e+00 : f32
    %58 = vector.broadcast %cst_24 : f32 to vector<8x128xf32>
    %59 = arith.addf %58, %57 : vector<8x128xf32>
    %60 = arith.divf %58, %59 : vector<8x128xf32>
    %61 = vector.extract_strided_slice %48 {offsets = [0, 256], sizes = [8, 128], strides = [1, 1]} : vector<8x512xf32> to vector<8x128xf32>
    %62 = math.tanh %61 : vector<8x128xf32>
    %63 = vector.extract_strided_slice %48 {offsets = [0, 384], sizes = [8, 128], strides = [1, 1]} : vector<8x512xf32> to vector<8x128xf32>
    %64 = arith.negf %63 : vector<8x128xf32>
    %65 = math.exp %64 : vector<8x128xf32>
    %cst_25 = arith.constant 1.000000e+00 : f32
    %66 = vector.broadcast %cst_25 : f32 to vector<8x128xf32>
    %67 = arith.addf %66, %65 : vector<8x128xf32>
    %68 = arith.divf %66, %67 : vector<8x128xf32>
    %69 = arith.mulf %60, %14 : vector<8x128xf32>
    %70 = arith.mulf %54, %62 : vector<8x128xf32>
    %71 = arith.addf %69, %70 : vector<8x128xf32>
    %72 = math.tanh %71 : vector<8x128xf32>
    %73 = arith.mulf %68, %72 : vector<8x128xf32>
    %74 = arith.index_cast %c0_i32_16 : i32 to index
    %c0_26 = arith.constant 0 : index
    %c0_27 = arith.constant 0 : index
    %75 = vector.load %arg7[%74, %c0_26, %c0_27] : memref<8x8x128xf32, #tpu.memory_space<vmem>>, vector<1x8x128xf32>
    %76 = vector.shape_cast %75 : vector<1x8x128xf32> to vector<8x128xf32>
    %77 = vector.shape_cast %73 : vector<8x128xf32> to vector<1x8x128xf32>
    tpu.vector_store %arg7[%74, %c0_26, %c0_27], %77 {strides = array<i32>} : memref<8x8x128xf32, #tpu.memory_space<vmem>>, vector<1x8x128xf32>,
    %c1_i32 = arith.constant 1 : i32
    %78 = arith.index_cast %c1_i32 : i32 to index
    %c0_28 = arith.constant 0 : index
    %c0_29 = arith.constant 0 : index
    %79 = vector.load %arg2[%78, %c0_28, %c0_29] : memref<8x8x128xf32, #tpu.memory_space<vmem>>, vector<1x8x128xf32>
    %80 = vector.shape_cast %79 : vector<1x8x128xf32> to vector<8x128xf32>
    %81 = tpu.concatenate %80, %45 in 1 : vector<8x128xf32>, vector<8x128xf32> -> vector<8x256xf32>
    %cst_30 = arith.constant dense<0.000000e+00> : vector<8x512xf32>
    %82 = tpu.matmul %81, %3, %cst_30 {dimension_numbers = #tpu.dot_dimension_numbers<[1], [0], [0], [1], [0, 0, 1, 1], [], []>} : vector<8x256xf32>, vector<256x512xf32>, vector<8x512xf32> -> vector<8x512xf32>
    %83 = arith.addf %82, %7 : vector<8x512xf32>
    %84 = vector.extract_strided_slice %83 {offsets = [0, 0], sizes = [8, 128], strides = [1, 1]} : vector<8x512xf32> to vector<8x128xf32>
    %85 = arith.negf %84 : vector<8x128xf32>
    %86 = math.exp %85 : vector<8x128xf32>
    %cst_31 = arith.constant 1.000000e+00 : f32
    %87 = vector.broadcast %cst_31 : f32 to vector<8x128xf32>
    %88 = arith.addf %87, %86 : vector<8x128xf32>
    %89 = arith.divf %87, %88 : vector<8x128xf32>
    %90 = vector.extract_strided_slice %83 {offsets = [0, 128], sizes = [8, 128], strides = [1, 1]} : vector<8x512xf32> to vector<8x128xf32>
    %91 = arith.negf %90 : vector<8x128xf32>
    %92 = math.exp %91 : vector<8x128xf32>
    %cst_32 = arith.constant 1.000000e+00 : f32
    %93 = vector.broadcast %cst_32 : f32 to vector<8x128xf32>
    %94 = arith.addf %93, %92 : vector<8x128xf32>
    %95 = arith.divf %93, %94 : vector<8x128xf32>
    %96 = vector.extract_strided_slice %83 {offsets = [0, 256], sizes = [8, 128], strides = [1, 1]} : vector<8x512xf32> to vector<8x128xf32>
    %97 = math.tanh %96 : vector<8x128xf32>
    %98 = vector.extract_strided_slice %83 {offsets = [0, 384], sizes = [8, 128], strides = [1, 1]} : vector<8x512xf32> to vector<8x128xf32>
    %99 = arith.negf %98 : vector<8x128xf32>
    %100 = math.exp %99 : vector<8x128xf32>
    %cst_33 = arith.constant 1.000000e+00 : f32
    %101 = vector.broadcast %cst_33 : f32 to vector<8x128xf32>
    %102 = arith.addf %101, %100 : vector<8x128xf32>
    %103 = arith.divf %101, %102 : vector<8x128xf32>
    %104 = arith.mulf %95, %43 : vector<8x128xf32>
    %105 = arith.mulf %89, %97 : vector<8x128xf32>
    %106 = arith.addf %104, %105 : vector<8x128xf32>
    %107 = math.tanh %106 : vector<8x128xf32>
    %108 = arith.mulf %103, %107 : vector<8x128xf32>
    %109 = tpu.concatenate %108, %73 in 1 : vector<8x128xf32>, vector<8x128xf32> -> vector<8x256xf32>
    %cst_34 = arith.constant dense<0.000000e+00> : vector<8x512xf32>
    %110 = tpu.matmul %109, %4, %cst_34 {dimension_numbers = #tpu.dot_dimension_numbers<[1], [0], [0], [1], [0, 0, 1, 1], [], []>} : vector<8x256xf32>, vector<256x512xf32>, vector<8x512xf32> -> vector<8x512xf32>
    %111 = arith.addf %110, %10 : vector<8x512xf32>
    %112 = vector.extract_strided_slice %111 {offsets = [0, 0], sizes = [8, 128], strides = [1, 1]} : vector<8x512xf32> to vector<8x128xf32>
    %113 = arith.negf %112 : vector<8x128xf32>
    %114 = math.exp %113 : vector<8x128xf32>
    %cst_35 = arith.constant 1.000000e+00 : f32
    %115 = vector.broadcast %cst_35 : f32 to vector<8x128xf32>
    %116 = arith.addf %115, %114 : vector<8x128xf32>
    %117 = arith.divf %115, %116 : vector<8x128xf32>
    %118 = vector.extract_strided_slice %111 {offsets = [0, 128], sizes = [8, 128], strides = [1, 1]} : vector<8x512xf32> to vector<8x128xf32>
    %119 = arith.negf %118 : vector<8x128xf32>
    %120 = math.exp %119 : vector<8x128xf32>
    %cst_36 = arith.constant 1.000000e+00 : f32
    %121 = vector.broadcast %cst_36 : f32 to vector<8x128xf32>
    %122 = arith.addf %121, %120 : vector<8x128xf32>
    %123 = arith.divf %121, %122 : vector<8x128xf32>
    %124 = vector.extract_strided_slice %111 {offsets = [0, 256], sizes = [8, 128], strides = [1, 1]} : vector<8x512xf32> to vector<8x128xf32>
    %125 = math.tanh %124 : vector<8x128xf32>
    %126 = vector.extract_strided_slice %111 {offsets = [0, 384], sizes = [8, 128], strides = [1, 1]} : vector<8x512xf32> to vector<8x128xf32>
    %127 = arith.negf %126 : vector<8x128xf32>
    %128 = math.exp %127 : vector<8x128xf32>
    %cst_37 = arith.constant 1.000000e+00 : f32
    %129 = vector.broadcast %cst_37 : f32 to vector<8x128xf32>
    %130 = arith.addf %129, %128 : vector<8x128xf32>
    %131 = arith.divf %129, %130 : vector<8x128xf32>
    %132 = arith.mulf %123, %71 : vector<8x128xf32>
    %133 = arith.mulf %117, %125 : vector<8x128xf32>
    %134 = arith.addf %132, %133 : vector<8x128xf32>
    %135 = math.tanh %134 : vector<8x128xf32>
    %136 = arith.mulf %131, %135 : vector<8x128xf32>
    %137 = arith.index_cast %c1_i32 : i32 to index
    %c0_38 = arith.constant 0 : index
    %c0_39 = arith.constant 0 : index
    %138 = vector.load %arg7[%137, %c0_38, %c0_39] : memref<8x8x128xf32, #tpu.memory_space<vmem>>, vector<1x8x128xf32>
    %139 = vector.shape_cast %138 : vector<1x8x128xf32> to vector<8x128xf32>
    %140 = vector.shape_cast %136 : vector<8x128xf32> to vector<1x8x128xf32>
    tpu.vector_store %arg7[%137, %c0_38, %c0_39], %140 {strides = array<i32>} : memref<8x8x128xf32, #tpu.memory_space<vmem>>, vector<1x8x128xf32>,
    %c2_i32 = arith.constant 2 : i32
    %141 = arith.index_cast %c2_i32 : i32 to index
    %c0_40 = arith.constant 0 : index
    %c0_41 = arith.constant 0 : index
    %142 = vector.load %arg2[%141, %c0_40, %c0_41] : memref<8x8x128xf32, #tpu.memory_space<vmem>>, vector<1x8x128xf32>
    %143 = vector.shape_cast %142 : vector<1x8x128xf32> to vector<8x128xf32>
    %144 = tpu.concatenate %143, %108 in 1 : vector<8x128xf32>, vector<8x128xf32> -> vector<8x256xf32>
    %cst_42 = arith.constant dense<0.000000e+00> : vector<8x512xf32>
    %145 = tpu.matmul %144, %3, %cst_42 {dimension_numbers = #tpu.dot_dimension_numbers<[1], [0], [0], [1], [0, 0, 1, 1], [], []>} : vector<8x256xf32>, vector<256x512xf32>, vector<8x512xf32> -> vector<8x512xf32>
    %146 = arith.addf %145, %7 : vector<8x512xf32>
    %147 = vector.extract_strided_slice %146 {offsets = [0, 0], sizes = [8, 128], strides = [1, 1]} : vector<8x512xf32> to vector<8x128xf32>
    %148 = arith.negf %147 : vector<8x128xf32>
    %149 = math.exp %148 : vector<8x128xf32>
    %cst_43 = arith.constant 1.000000e+00 : f32
    %150 = vector.broadcast %cst_43 : f32 to vector<8x128xf32>
    %151 = arith.addf %150, %149 : vector<8x128xf32>
    %152 = arith.divf %150, %151 : vector<8x128xf32>
    %153 = vector.extract_strided_slice %146 {offsets = [0, 128], sizes = [8, 128], strides = [1, 1]} : vector<8x512xf32> to vector<8x128xf32>
    %154 = arith.negf %153 : vector<8x128xf32>
    %155 = math.exp %154 : vector<8x128xf32>
    %cst_44 = arith.constant 1.000000e+00 : f32
    %156 = vector.broadcast %cst_44 : f32 to vector<8x128xf32>
    %157 = arith.addf %156, %155 : vector<8x128xf32>
    %158 = arith.divf %156, %157 : vector<8x128xf32>
    %159 = vector.extract_strided_slice %146 {offsets = [0, 256], sizes = [8, 128], strides = [1, 1]} : vector<8x512xf32> to vector<8x128xf32>
    %160 = math.tanh %159 : vector<8x128xf32>
    %161 = vector.extract_strided_slice %146 {offsets = [0, 384], sizes = [8, 128], strides = [1, 1]} : vector<8x512xf32> to vector<8x128xf32>
    %162 = arith.negf %161 : vector<8x128xf32>
    %163 = math.exp %162 : vector<8x128xf32>
    %cst_45 = arith.constant 1.000000e+00 : f32
    %164 = vector.broadcast %cst_45 : f32 to vector<8x128xf32>
    %165 = arith.addf %164, %163 : vector<8x128xf32>
    %166 = arith.divf %164, %165 : vector<8x128xf32>
    %167 = arith.mulf %158, %106 : vector<8x128xf32>
    %168 = arith.mulf %152, %160 : vector<8x128xf32>
    %169 = arith.addf %167, %168 : vector<8x128xf32>
    %170 = math.tanh %169 : vector<8x128xf32>
    %171 = arith.mulf %166, %170 : vector<8x128xf32>
    %172 = tpu.concatenate %171, %136 in 1 : vector<8x128xf32>, vector<8x128xf32> -> vector<8x256xf32>
    %cst_46 = arith.constant dense<0.000000e+00> : vector<8x512xf32>
    %173 = tpu.matmul %172, %4, %cst_46 {dimension_numbers = #tpu.dot_dimension_numbers<[1], [0], [0], [1], [0, 0, 1, 1], [], []>} : vector<8x256xf32>, vector<256x512xf32>, vector<8x512xf32> -> vector<8x512xf32>
    %174 = arith.addf %173, %10 : vector<8x512xf32>
    %175 = vector.extract_strided_slice %174 {offsets = [0, 0], sizes = [8, 128], strides = [1, 1]} : vector<8x512xf32> to vector<8x128xf32>
    %176 = arith.negf %175 : vector<8x128xf32>
    %177 = math.exp %176 : vector<8x128xf32>
    %cst_47 = arith.constant 1.000000e+00 : f32
    %178 = vector.broadcast %cst_47 : f32 to vector<8x128xf32>
    %179 = arith.addf %178, %177 : vector<8x128xf32>
    %180 = arith.divf %178, %179 : vector<8x128xf32>
    %181 = vector.extract_strided_slice %174 {offsets = [0, 128], sizes = [8, 128], strides = [1, 1]} : vector<8x512xf32> to vector<8x128xf32>
    %182 = arith.negf %181 : vector<8x128xf32>
    %183 = math.exp %182 : vector<8x128xf32>
    %cst_48 = arith.constant 1.000000e+00 : f32
    %184 = vector.broadcast %cst_48 : f32 to vector<8x128xf32>
    %185 = arith.addf %184, %183 : vector<8x128xf32>
    %186 = arith.divf %184, %185 : vector<8x128xf32>
    %187 = vector.extract_strided_slice %174 {offsets = [0, 256], sizes = [8, 128], strides = [1, 1]} : vector<8x512xf32> to vector<8x128xf32>
    %188 = math.tanh %187 : vector<8x128xf32>
    %189 = vector.extract_strided_slice %174 {offsets = [0, 384], sizes = [8, 128], strides = [1, 1]} : vector<8x512xf32> to vector<8x128xf32>
    %190 = arith.negf %189 : vector<8x128xf32>
    %191 = math.exp %190 : vector<8x128xf32>
    %cst_49 = arith.constant 1.000000e+00 : f32
    %192 = vector.broadcast %cst_49 : f32 to vector<8x128xf32>
    %193 = arith.addf %192, %191 : vector<8x128xf32>
    %194 = arith.divf %192, %193 : vector<8x128xf32>
    %195 = arith.mulf %186, %134 : vector<8x128xf32>
    %196 = arith.mulf %180, %188 : vector<8x128xf32>
    %197 = arith.addf %195, %196 : vector<8x128xf32>
    %198 = math.tanh %197 : vector<8x128xf32>
    %199 = arith.mulf %194, %198 : vector<8x128xf32>
    %200 = arith.index_cast %c2_i32 : i32 to index
    %c0_50 = arith.constant 0 : index
    %c0_51 = arith.constant 0 : index
    %201 = vector.load %arg7[%200, %c0_50, %c0_51] : memref<8x8x128xf32, #tpu.memory_space<vmem>>, vector<1x8x128xf32>
    %202 = vector.shape_cast %201 : vector<1x8x128xf32> to vector<8x128xf32>
    %203 = vector.shape_cast %199 : vector<8x128xf32> to vector<1x8x128xf32>
    tpu.vector_store %arg7[%200, %c0_50, %c0_51], %203 {strides = array<i32>} : memref<8x8x128xf32, #tpu.memory_space<vmem>>, vector<1x8x128xf32>,
    %c3_i32 = arith.constant 3 : i32
    %204 = arith.index_cast %c3_i32 : i32 to index
    %c0_52 = arith.constant 0 : index
    %c0_53 = arith.constant 0 : index
    %205 = vector.load %arg2[%204, %c0_52, %c0_53] : memref<8x8x128xf32, #tpu.memory_space<vmem>>, vector<1x8x128xf32>
    %206 = vector.shape_cast %205 : vector<1x8x128xf32> to vector<8x128xf32>
    %207 = tpu.concatenate %206, %171 in 1 : vector<8x128xf32>, vector<8x128xf32> -> vector<8x256xf32>
    %cst_54 = arith.constant dense<0.000000e+00> : vector<8x512xf32>
    %208 = tpu.matmul %207, %3, %cst_54 {dimension_numbers = #tpu.dot_dimension_numbers<[1], [0], [0], [1], [0, 0, 1, 1], [], []>} : vector<8x256xf32>, vector<256x512xf32>, vector<8x512xf32> -> vector<8x512xf32>
    %209 = arith.addf %208, %7 : vector<8x512xf32>
    %210 = vector.extract_strided_slice %209 {offsets = [0, 0], sizes = [8, 128], strides = [1, 1]} : vector<8x512xf32> to vector<8x128xf32>
    %211 = arith.negf %210 : vector<8x128xf32>
    %212 = math.exp %211 : vector<8x128xf32>
    %cst_55 = arith.constant 1.000000e+00 : f32
    %213 = vector.broadcast %cst_55 : f32 to vector<8x128xf32>
    %214 = arith.addf %213, %212 : vector<8x128xf32>
    %215 = arith.divf %213, %214 : vector<8x128xf32>
    %216 = vector.extract_strided_slice %209 {offsets = [0, 128], sizes = [8, 128], strides = [1, 1]} : vector<8x512xf32> to vector<8x128xf32>
    %217 = arith.negf %216 : vector<8x128xf32>
    %218 = math.exp %217 : vector<8x128xf32>
    %cst_56 = arith.constant 1.000000e+00 : f32
    %219 = vector.broadcast %cst_56 : f32 to vector<8x128xf32>
    %220 = arith.addf %219, %218 : vector<8x128xf32>
    %221 = arith.divf %219, %220 : vector<8x128xf32>
    %222 = vector.extract_strided_slice %209 {offsets = [0, 256], sizes = [8, 128], strides = [1, 1]} : vector<8x512xf32> to vector<8x128xf32>
    %223 = math.tanh %222 : vector<8x128xf32>
    %224 = vector.extract_strided_slice %209 {offsets = [0, 384], sizes = [8, 128], strides = [1, 1]} : vector<8x512xf32> to vector<8x128xf32>
    %225 = arith.negf %224 : vector<8x128xf32>
    %226 = math.exp %225 : vector<8x128xf32>
    %cst_57 = arith.constant 1.000000e+00 : f32
    %227 = vector.broadcast %cst_57 : f32 to vector<8x128xf32>
    %228 = arith.addf %227, %226 : vector<8x128xf32>
    %229 = arith.divf %227, %228 : vector<8x128xf32>
    %230 = arith.mulf %221, %169 : vector<8x128xf32>
    %231 = arith.mulf %215, %223 : vector<8x128xf32>
    %232 = arith.addf %230, %231 : vector<8x128xf32>
    %233 = math.tanh %232 : vector<8x128xf32>
    %234 = arith.mulf %229, %233 : vector<8x128xf32>
    %235 = tpu.concatenate %234, %199 in 1 : vector<8x128xf32>, vector<8x128xf32> -> vector<8x256xf32>
    %cst_58 = arith.constant dense<0.000000e+00> : vector<8x512xf32>
    %236 = tpu.matmul %235, %4, %cst_58 {dimension_numbers = #tpu.dot_dimension_numbers<[1], [0], [0], [1], [0, 0, 1, 1], [], []>} : vector<8x256xf32>, vector<256x512xf32>, vector<8x512xf32> -> vector<8x512xf32>
    %237 = arith.addf %236, %10 : vector<8x512xf32>
    %238 = vector.extract_strided_slice %237 {offsets = [0, 0], sizes = [8, 128], strides = [1, 1]} : vector<8x512xf32> to vector<8x128xf32>
    %239 = arith.negf %238 : vector<8x128xf32>
    %240 = math.exp %239 : vector<8x128xf32>
    %cst_59 = arith.constant 1.000000e+00 : f32
    %241 = vector.broadcast %cst_59 : f32 to vector<8x128xf32>
    %242 = arith.addf %241, %240 : vector<8x128xf32>
    %243 = arith.divf %241, %242 : vector<8x128xf32>
    %244 = vector.extract_strided_slice %237 {offsets = [0, 128], sizes = [8, 128], strides = [1, 1]} : vector<8x512xf32> to vector<8x128xf32>
    %245 = arith.negf %244 : vector<8x128xf32>
    %246 = math.exp %245 : vector<8x128xf32>
    %cst_60 = arith.constant 1.000000e+00 : f32
    %247 = vector.broadcast %cst_60 : f32 to vector<8x128xf32>
    %248 = arith.addf %247, %246 : vector<8x128xf32>
    %249 = arith.divf %247, %248 : vector<8x128xf32>
    %250 = vector.extract_strided_slice %237 {offsets = [0, 256], sizes = [8, 128], strides = [1, 1]} : vector<8x512xf32> to vector<8x128xf32>
    %251 = math.tanh %250 : vector<8x128xf32>
    %252 = vector.extract_strided_slice %237 {offsets = [0, 384], sizes = [8, 128], strides = [1, 1]} : vector<8x512xf32> to vector<8x128xf32>
    %253 = arith.negf %252 : vector<8x128xf32>
    %254 = math.exp %253 : vector<8x128xf32>
    %cst_61 = arith.constant 1.000000e+00 : f32
    %255 = vector.broadcast %cst_61 : f32 to vector<8x128xf32>
    %256 = arith.addf %255, %254 : vector<8x128xf32>
    %257 = arith.divf %255, %256 : vector<8x128xf32>
    %258 = arith.mulf %249, %197 : vector<8x128xf32>
    %259 = arith.mulf %243, %251 : vector<8x128xf32>
    %260 = arith.addf %258, %259 : vector<8x128xf32>
    %261 = math.tanh %260 : vector<8x128xf32>
    %262 = arith.mulf %257, %261 : vector<8x128xf32>
    %263 = arith.index_cast %c3_i32 : i32 to index
    %c0_62 = arith.constant 0 : index
    %c0_63 = arith.constant 0 : index
    %264 = vector.load %arg7[%263, %c0_62, %c0_63] : memref<8x8x128xf32, #tpu.memory_space<vmem>>, vector<1x8x128xf32>
    %265 = vector.shape_cast %264 : vector<1x8x128xf32> to vector<8x128xf32>
    %266 = vector.shape_cast %262 : vector<8x128xf32> to vector<1x8x128xf32>
    tpu.vector_store %arg7[%263, %c0_62, %c0_63], %266 {strides = array<i32>} : memref<8x8x128xf32, #tpu.memory_space<vmem>>, vector<1x8x128xf32>,
    %c4_i32 = arith.constant 4 : i32
    %267 = arith.index_cast %c4_i32 : i32 to index
    %c0_64 = arith.constant 0 : index
    %c0_65 = arith.constant 0 : index
    %268 = vector.load %arg2[%267, %c0_64, %c0_65] : memref<8x8x128xf32, #tpu.memory_space<vmem>>, vector<1x8x128xf32>
    %269 = vector.shape_cast %268 : vector<1x8x128xf32> to vector<8x128xf32>
    %270 = tpu.concatenate %269, %234 in 1 : vector<8x128xf32>, vector<8x128xf32> -> vector<8x256xf32>
    %cst_66 = arith.constant dense<0.000000e+00> : vector<8x512xf32>
    %271 = tpu.matmul %270, %3, %cst_66 {dimension_numbers = #tpu.dot_dimension_numbers<[1], [0], [0], [1], [0, 0, 1, 1], [], []>} : vector<8x256xf32>, vector<256x512xf32>, vector<8x512xf32> -> vector<8x512xf32>
    %272 = arith.addf %271, %7 : vector<8x512xf32>
    %273 = vector.extract_strided_slice %272 {offsets = [0, 0], sizes = [8, 128], strides = [1, 1]} : vector<8x512xf32> to vector<8x128xf32>
    %274 = arith.negf %273 : vector<8x128xf32>
    %275 = math.exp %274 : vector<8x128xf32>
    %cst_67 = arith.constant 1.000000e+00 : f32
    %276 = vector.broadcast %cst_67 : f32 to vector<8x128xf32>
    %277 = arith.addf %276, %275 : vector<8x128xf32>
    %278 = arith.divf %276, %277 : vector<8x128xf32>
    %279 = vector.extract_strided_slice %272 {offsets = [0, 128], sizes = [8, 128], strides = [1, 1]} : vector<8x512xf32> to vector<8x128xf32>
    %280 = arith.negf %279 : vector<8x128xf32>
    %281 = math.exp %280 : vector<8x128xf32>
    %cst_68 = arith.constant 1.000000e+00 : f32
    %282 = vector.broadcast %cst_68 : f32 to vector<8x128xf32>
    %283 = arith.addf %282, %281 : vector<8x128xf32>
    %284 = arith.divf %282, %283 : vector<8x128xf32>
    %285 = vector.extract_strided_slice %272 {offsets = [0, 256], sizes = [8, 128], strides = [1, 1]} : vector<8x512xf32> to vector<8x128xf32>
    %286 = math.tanh %285 : vector<8x128xf32>
    %287 = vector.extract_strided_slice %272 {offsets = [0, 384], sizes = [8, 128], strides = [1, 1]} : vector<8x512xf32> to vector<8x128xf32>
    %288 = arith.negf %287 : vector<8x128xf32>
    %289 = math.exp %288 : vector<8x128xf32>
    %cst_69 = arith.constant 1.000000e+00 : f32
    %290 = vector.broadcast %cst_69 : f32 to vector<8x128xf32>
    %291 = arith.addf %290, %289 : vector<8x128xf32>
    %292 = arith.divf %290, %291 : vector<8x128xf32>
    %293 = arith.mulf %284, %232 : vector<8x128xf32>
    %294 = arith.mulf %278, %286 : vector<8x128xf32>
    %295 = arith.addf %293, %294 : vector<8x128xf32>
    %296 = math.tanh %295 : vector<8x128xf32>
    %297 = arith.mulf %292, %296 : vector<8x128xf32>
    %298 = tpu.concatenate %297, %262 in 1 : vector<8x128xf32>, vector<8x128xf32> -> vector<8x256xf32>
    %cst_70 = arith.constant dense<0.000000e+00> : vector<8x512xf32>
    %299 = tpu.matmul %298, %4, %cst_70 {dimension_numbers = #tpu.dot_dimension_numbers<[1], [0], [0], [1], [0, 0, 1, 1], [], []>} : vector<8x256xf32>, vector<256x512xf32>, vector<8x512xf32> -> vector<8x512xf32>
    %300 = arith.addf %299, %10 : vector<8x512xf32>
    %301 = vector.extract_strided_slice %300 {offsets = [0, 0], sizes = [8, 128], strides = [1, 1]} : vector<8x512xf32> to vector<8x128xf32>
    %302 = arith.negf %301 : vector<8x128xf32>
    %303 = math.exp %302 : vector<8x128xf32>
    %cst_71 = arith.constant 1.000000e+00 : f32
    %304 = vector.broadcast %cst_71 : f32 to vector<8x128xf32>
    %305 = arith.addf %304, %303 : vector<8x128xf32>
    %306 = arith.divf %304, %305 : vector<8x128xf32>
    %307 = vector.extract_strided_slice %300 {offsets = [0, 128], sizes = [8, 128], strides = [1, 1]} : vector<8x512xf32> to vector<8x128xf32>
    %308 = arith.negf %307 : vector<8x128xf32>
    %309 = math.exp %308 : vector<8x128xf32>
    %cst_72 = arith.constant 1.000000e+00 : f32
    %310 = vector.broadcast %cst_72 : f32 to vector<8x128xf32>
    %311 = arith.addf %310, %309 : vector<8x128xf32>
    %312 = arith.divf %310, %311 : vector<8x128xf32>
    %313 = vector.extract_strided_slice %300 {offsets = [0, 256], sizes = [8, 128], strides = [1, 1]} : vector<8x512xf32> to vector<8x128xf32>
    %314 = math.tanh %313 : vector<8x128xf32>
    %315 = vector.extract_strided_slice %300 {offsets = [0, 384], sizes = [8, 128], strides = [1, 1]} : vector<8x512xf32> to vector<8x128xf32>
    %316 = arith.negf %315 : vector<8x128xf32>
    %317 = math.exp %316 : vector<8x128xf32>
    %cst_73 = arith.constant 1.000000e+00 : f32
    %318 = vector.broadcast %cst_73 : f32 to vector<8x128xf32>
    %319 = arith.addf %318, %317 : vector<8x128xf32>
    %320 = arith.divf %318, %319 : vector<8x128xf32>
    %321 = arith.mulf %312, %260 : vector<8x128xf32>
    %322 = arith.mulf %306, %314 : vector<8x128xf32>
    %323 = arith.addf %321, %322 : vector<8x128xf32>
    %324 = math.tanh %323 : vector<8x128xf32>
    %325 = arith.mulf %320, %324 : vector<8x128xf32>
    %326 = arith.index_cast %c4_i32 : i32 to index
    %c0_74 = arith.constant 0 : index
    %c0_75 = arith.constant 0 : index
    %327 = vector.load %arg7[%326, %c0_74, %c0_75] : memref<8x8x128xf32, #tpu.memory_space<vmem>>, vector<1x8x128xf32>
    %328 = vector.shape_cast %327 : vector<1x8x128xf32> to vector<8x128xf32>
    %329 = vector.shape_cast %325 : vector<8x128xf32> to vector<1x8x128xf32>
    tpu.vector_store %arg7[%326, %c0_74, %c0_75], %329 {strides = array<i32>} : memref<8x8x128xf32, #tpu.memory_space<vmem>>, vector<1x8x128xf32>,
    %c5_i32 = arith.constant 5 : i32
    %330 = arith.index_cast %c5_i32 : i32 to index
    %c0_76 = arith.constant 0 : index
    %c0_77 = arith.constant 0 : index
    %331 = vector.load %arg2[%330, %c0_76, %c0_77] : memref<8x8x128xf32, #tpu.memory_space<vmem>>, vector<1x8x128xf32>
    %332 = vector.shape_cast %331 : vector<1x8x128xf32> to vector<8x128xf32>
    %333 = tpu.concatenate %332, %297 in 1 : vector<8x128xf32>, vector<8x128xf32> -> vector<8x256xf32>
    %cst_78 = arith.constant dense<0.000000e+00> : vector<8x512xf32>
    %334 = tpu.matmul %333, %3, %cst_78 {dimension_numbers = #tpu.dot_dimension_numbers<[1], [0], [0], [1], [0, 0, 1, 1], [], []>} : vector<8x256xf32>, vector<256x512xf32>, vector<8x512xf32> -> vector<8x512xf32>
    %335 = arith.addf %334, %7 : vector<8x512xf32>
    %336 = vector.extract_strided_slice %335 {offsets = [0, 0], sizes = [8, 128], strides = [1, 1]} : vector<8x512xf32> to vector<8x128xf32>
    %337 = arith.negf %336 : vector<8x128xf32>
    %338 = math.exp %337 : vector<8x128xf32>
    %cst_79 = arith.constant 1.000000e+00 : f32
    %339 = vector.broadcast %cst_79 : f32 to vector<8x128xf32>
    %340 = arith.addf %339, %338 : vector<8x128xf32>
    %341 = arith.divf %339, %340 : vector<8x128xf32>
    %342 = vector.extract_strided_slice %335 {offsets = [0, 128], sizes = [8, 128], strides = [1, 1]} : vector<8x512xf32> to vector<8x128xf32>
    %343 = arith.negf %342 : vector<8x128xf32>
    %344 = math.exp %343 : vector<8x128xf32>
    %cst_80 = arith.constant 1.000000e+00 : f32
    %345 = vector.broadcast %cst_80 : f32 to vector<8x128xf32>
    %346 = arith.addf %345, %344 : vector<8x128xf32>
    %347 = arith.divf %345, %346 : vector<8x128xf32>
    %348 = vector.extract_strided_slice %335 {offsets = [0, 256], sizes = [8, 128], strides = [1, 1]} : vector<8x512xf32> to vector<8x128xf32>
    %349 = math.tanh %348 : vector<8x128xf32>
    %350 = vector.extract_strided_slice %335 {offsets = [0, 384], sizes = [8, 128], strides = [1, 1]} : vector<8x512xf32> to vector<8x128xf32>
    %351 = arith.negf %350 : vector<8x128xf32>
    %352 = math.exp %351 : vector<8x128xf32>
    %cst_81 = arith.constant 1.000000e+00 : f32
    %353 = vector.broadcast %cst_81 : f32 to vector<8x128xf32>
    %354 = arith.addf %353, %352 : vector<8x128xf32>
    %355 = arith.divf %353, %354 : vector<8x128xf32>
    %356 = arith.mulf %347, %295 : vector<8x128xf32>
    %357 = arith.mulf %341, %349 : vector<8x128xf32>
    %358 = arith.addf %356, %357 : vector<8x128xf32>
    %359 = math.tanh %358 : vector<8x128xf32>
    %360 = arith.mulf %355, %359 : vector<8x128xf32>
    %361 = tpu.concatenate %360, %325 in 1 : vector<8x128xf32>, vector<8x128xf32> -> vector<8x256xf32>
    %cst_82 = arith.constant dense<0.000000e+00> : vector<8x512xf32>
    %362 = tpu.matmul %361, %4, %cst_82 {dimension_numbers = #tpu.dot_dimension_numbers<[1], [0], [0], [1], [0, 0, 1, 1], [], []>} : vector<8x256xf32>, vector<256x512xf32>, vector<8x512xf32> -> vector<8x512xf32>
    %363 = arith.addf %362, %10 : vector<8x512xf32>
    %364 = vector.extract_strided_slice %363 {offsets = [0, 0], sizes = [8, 128], strides = [1, 1]} : vector<8x512xf32> to vector<8x128xf32>
    %365 = arith.negf %364 : vector<8x128xf32>
    %366 = math.exp %365 : vector<8x128xf32>
    %cst_83 = arith.constant 1.000000e+00 : f32
    %367 = vector.broadcast %cst_83 : f32 to vector<8x128xf32>
    %368 = arith.addf %367, %366 : vector<8x128xf32>
    %369 = arith.divf %367, %368 : vector<8x128xf32>
    %370 = vector.extract_strided_slice %363 {offsets = [0, 128], sizes = [8, 128], strides = [1, 1]} : vector<8x512xf32> to vector<8x128xf32>
    %371 = arith.negf %370 : vector<8x128xf32>
    %372 = math.exp %371 : vector<8x128xf32>
    %cst_84 = arith.constant 1.000000e+00 : f32
    %373 = vector.broadcast %cst_84 : f32 to vector<8x128xf32>
    %374 = arith.addf %373, %372 : vector<8x128xf32>
    %375 = arith.divf %373, %374 : vector<8x128xf32>
    %376 = vector.extract_strided_slice %363 {offsets = [0, 256], sizes = [8, 128], strides = [1, 1]} : vector<8x512xf32> to vector<8x128xf32>
    %377 = math.tanh %376 : vector<8x128xf32>
    %378 = vector.extract_strided_slice %363 {offsets = [0, 384], sizes = [8, 128], strides = [1, 1]} : vector<8x512xf32> to vector<8x128xf32>
    %379 = arith.negf %378 : vector<8x128xf32>
    %380 = math.exp %379 : vector<8x128xf32>
    %cst_85 = arith.constant 1.000000e+00 : f32
    %381 = vector.broadcast %cst_85 : f32 to vector<8x128xf32>
    %382 = arith.addf %381, %380 : vector<8x128xf32>
    %383 = arith.divf %381, %382 : vector<8x128xf32>
    %384 = arith.mulf %375, %323 : vector<8x128xf32>
    %385 = arith.mulf %369, %377 : vector<8x128xf32>
    %386 = arith.addf %384, %385 : vector<8x128xf32>
    %387 = math.tanh %386 : vector<8x128xf32>
    %388 = arith.mulf %383, %387 : vector<8x128xf32>
    %389 = arith.index_cast %c5_i32 : i32 to index
    %c0_86 = arith.constant 0 : index
    %c0_87 = arith.constant 0 : index
    %390 = vector.load %arg7[%389, %c0_86, %c0_87] : memref<8x8x128xf32, #tpu.memory_space<vmem>>, vector<1x8x128xf32>
    %391 = vector.shape_cast %390 : vector<1x8x128xf32> to vector<8x128xf32>
    %392 = vector.shape_cast %388 : vector<8x128xf32> to vector<1x8x128xf32>
    tpu.vector_store %arg7[%389, %c0_86, %c0_87], %392 {strides = array<i32>} : memref<8x8x128xf32, #tpu.memory_space<vmem>>, vector<1x8x128xf32>,
    %c6_i32 = arith.constant 6 : i32
    %393 = arith.index_cast %c6_i32 : i32 to index
    %c0_88 = arith.constant 0 : index
    %c0_89 = arith.constant 0 : index
    %394 = vector.load %arg2[%393, %c0_88, %c0_89] : memref<8x8x128xf32, #tpu.memory_space<vmem>>, vector<1x8x128xf32>
    %395 = vector.shape_cast %394 : vector<1x8x128xf32> to vector<8x128xf32>
    %396 = tpu.concatenate %395, %360 in 1 : vector<8x128xf32>, vector<8x128xf32> -> vector<8x256xf32>
    %cst_90 = arith.constant dense<0.000000e+00> : vector<8x512xf32>
    %397 = tpu.matmul %396, %3, %cst_90 {dimension_numbers = #tpu.dot_dimension_numbers<[1], [0], [0], [1], [0, 0, 1, 1], [], []>} : vector<8x256xf32>, vector<256x512xf32>, vector<8x512xf32> -> vector<8x512xf32>
    %398 = arith.addf %397, %7 : vector<8x512xf32>
    %399 = vector.extract_strided_slice %398 {offsets = [0, 0], sizes = [8, 128], strides = [1, 1]} : vector<8x512xf32> to vector<8x128xf32>
    %400 = arith.negf %399 : vector<8x128xf32>
    %401 = math.exp %400 : vector<8x128xf32>
    %cst_91 = arith.constant 1.000000e+00 : f32
    %402 = vector.broadcast %cst_91 : f32 to vector<8x128xf32>
    %403 = arith.addf %402, %401 : vector<8x128xf32>
    %404 = arith.divf %402, %403 : vector<8x128xf32>
    %405 = vector.extract_strided_slice %398 {offsets = [0, 128], sizes = [8, 128], strides = [1, 1]} : vector<8x512xf32> to vector<8x128xf32>
    %406 = arith.negf %405 : vector<8x128xf32>
    %407 = math.exp %406 : vector<8x128xf32>
    %cst_92 = arith.constant 1.000000e+00 : f32
    %408 = vector.broadcast %cst_92 : f32 to vector<8x128xf32>
    %409 = arith.addf %408, %407 : vector<8x128xf32>
    %410 = arith.divf %408, %409 : vector<8x128xf32>
    %411 = vector.extract_strided_slice %398 {offsets = [0, 256], sizes = [8, 128], strides = [1, 1]} : vector<8x512xf32> to vector<8x128xf32>
    %412 = math.tanh %411 : vector<8x128xf32>
    %413 = vector.extract_strided_slice %398 {offsets = [0, 384], sizes = [8, 128], strides = [1, 1]} : vector<8x512xf32> to vector<8x128xf32>
    %414 = arith.negf %413 : vector<8x128xf32>
    %415 = math.exp %414 : vector<8x128xf32>
    %cst_93 = arith.constant 1.000000e+00 : f32
    %416 = vector.broadcast %cst_93 : f32 to vector<8x128xf32>
    %417 = arith.addf %416, %415 : vector<8x128xf32>
    %418 = arith.divf %416, %417 : vector<8x128xf32>
    %419 = arith.mulf %410, %358 : vector<8x128xf32>
    %420 = arith.mulf %404, %412 : vector<8x128xf32>
    %421 = arith.addf %419, %420 : vector<8x128xf32>
    %422 = math.tanh %421 : vector<8x128xf32>
    %423 = arith.mulf %418, %422 : vector<8x128xf32>
    %424 = tpu.concatenate %423, %388 in 1 : vector<8x128xf32>, vector<8x128xf32> -> vector<8x256xf32>
    %cst_94 = arith.constant dense<0.000000e+00> : vector<8x512xf32>
    %425 = tpu.matmul %424, %4, %cst_94 {dimension_numbers = #tpu.dot_dimension_numbers<[1], [0], [0], [1], [0, 0, 1, 1], [], []>} : vector<8x256xf32>, vector<256x512xf32>, vector<8x512xf32> -> vector<8x512xf32>
    %426 = arith.addf %425, %10 : vector<8x512xf32>
    %427 = vector.extract_strided_slice %426 {offsets = [0, 0], sizes = [8, 128], strides = [1, 1]} : vector<8x512xf32> to vector<8x128xf32>
    %428 = arith.negf %427 : vector<8x128xf32>
    %429 = math.exp %428 : vector<8x128xf32>
    %cst_95 = arith.constant 1.000000e+00 : f32
    %430 = vector.broadcast %cst_95 : f32 to vector<8x128xf32>
    %431 = arith.addf %430, %429 : vector<8x128xf32>
    %432 = arith.divf %430, %431 : vector<8x128xf32>
    %433 = vector.extract_strided_slice %426 {offsets = [0, 128], sizes = [8, 128], strides = [1, 1]} : vector<8x512xf32> to vector<8x128xf32>
    %434 = arith.negf %433 : vector<8x128xf32>
    %435 = math.exp %434 : vector<8x128xf32>
    %cst_96 = arith.constant 1.000000e+00 : f32
    %436 = vector.broadcast %cst_96 : f32 to vector<8x128xf32>
    %437 = arith.addf %436, %435 : vector<8x128xf32>
    %438 = arith.divf %436, %437 : vector<8x128xf32>
    %439 = vector.extract_strided_slice %426 {offsets = [0, 256], sizes = [8, 128], strides = [1, 1]} : vector<8x512xf32> to vector<8x128xf32>
    %440 = math.tanh %439 : vector<8x128xf32>
    %441 = vector.extract_strided_slice %426 {offsets = [0, 384], sizes = [8, 128], strides = [1, 1]} : vector<8x512xf32> to vector<8x128xf32>
    %442 = arith.negf %441 : vector<8x128xf32>
    %443 = math.exp %442 : vector<8x128xf32>
    %cst_97 = arith.constant 1.000000e+00 : f32
    %444 = vector.broadcast %cst_97 : f32 to vector<8x128xf32>
    %445 = arith.addf %444, %443 : vector<8x128xf32>
    %446 = arith.divf %444, %445 : vector<8x128xf32>
    %447 = arith.mulf %438, %386 : vector<8x128xf32>
    %448 = arith.mulf %432, %440 : vector<8x128xf32>
    %449 = arith.addf %447, %448 : vector<8x128xf32>
    %450 = math.tanh %449 : vector<8x128xf32>
    %451 = arith.mulf %446, %450 : vector<8x128xf32>
    %452 = arith.index_cast %c6_i32 : i32 to index
    %c0_98 = arith.constant 0 : index
    %c0_99 = arith.constant 0 : index
    %453 = vector.load %arg7[%452, %c0_98, %c0_99] : memref<8x8x128xf32, #tpu.memory_space<vmem>>, vector<1x8x128xf32>
    %454 = vector.shape_cast %453 : vector<1x8x128xf32> to vector<8x128xf32>
    %455 = vector.shape_cast %451 : vector<8x128xf32> to vector<1x8x128xf32>
    tpu.vector_store %arg7[%452, %c0_98, %c0_99], %455 {strides = array<i32>} : memref<8x8x128xf32, #tpu.memory_space<vmem>>, vector<1x8x128xf32>,
    %c7_i32 = arith.constant 7 : i32
    %456 = arith.index_cast %c7_i32 : i32 to index
    %c0_100 = arith.constant 0 : index
    %c0_101 = arith.constant 0 : index
    %457 = vector.load %arg2[%456, %c0_100, %c0_101] : memref<8x8x128xf32, #tpu.memory_space<vmem>>, vector<1x8x128xf32>
    %458 = vector.shape_cast %457 : vector<1x8x128xf32> to vector<8x128xf32>
    %459 = tpu.concatenate %458, %423 in 1 : vector<8x128xf32>, vector<8x128xf32> -> vector<8x256xf32>
    %cst_102 = arith.constant dense<0.000000e+00> : vector<8x512xf32>
    %460 = tpu.matmul %459, %3, %cst_102 {dimension_numbers = #tpu.dot_dimension_numbers<[1], [0], [0], [1], [0, 0, 1, 1], [], []>} : vector<8x256xf32>, vector<256x512xf32>, vector<8x512xf32> -> vector<8x512xf32>
    %461 = arith.addf %460, %7 : vector<8x512xf32>
    %462 = vector.extract_strided_slice %461 {offsets = [0, 0], sizes = [8, 128], strides = [1, 1]} : vector<8x512xf32> to vector<8x128xf32>
    %463 = arith.negf %462 : vector<8x128xf32>
    %464 = math.exp %463 : vector<8x128xf32>
    %cst_103 = arith.constant 1.000000e+00 : f32
    %465 = vector.broadcast %cst_103 : f32 to vector<8x128xf32>
    %466 = arith.addf %465, %464 : vector<8x128xf32>
    %467 = arith.divf %465, %466 : vector<8x128xf32>
    %468 = vector.extract_strided_slice %461 {offsets = [0, 128], sizes = [8, 128], strides = [1, 1]} : vector<8x512xf32> to vector<8x128xf32>
    %469 = arith.negf %468 : vector<8x128xf32>
    %470 = math.exp %469 : vector<8x128xf32>
    %cst_104 = arith.constant 1.000000e+00 : f32
    %471 = vector.broadcast %cst_104 : f32 to vector<8x128xf32>
    %472 = arith.addf %471, %470 : vector<8x128xf32>
    %473 = arith.divf %471, %472 : vector<8x128xf32>
    %474 = vector.extract_strided_slice %461 {offsets = [0, 256], sizes = [8, 128], strides = [1, 1]} : vector<8x512xf32> to vector<8x128xf32>
    %475 = math.tanh %474 : vector<8x128xf32>
    %476 = vector.extract_strided_slice %461 {offsets = [0, 384], sizes = [8, 128], strides = [1, 1]} : vector<8x512xf32> to vector<8x128xf32>
    %477 = arith.negf %476 : vector<8x128xf32>
    %478 = math.exp %477 : vector<8x128xf32>
    %cst_105 = arith.constant 1.000000e+00 : f32
    %479 = vector.broadcast %cst_105 : f32 to vector<8x128xf32>
    %480 = arith.addf %479, %478 : vector<8x128xf32>
    %481 = arith.divf %479, %480 : vector<8x128xf32>
    %482 = arith.mulf %473, %421 : vector<8x128xf32>
    %483 = arith.mulf %467, %475 : vector<8x128xf32>
    %484 = arith.addf %482, %483 : vector<8x128xf32>
    %485 = math.tanh %484 : vector<8x128xf32>
    %486 = arith.mulf %481, %485 : vector<8x128xf32>
    %487 = tpu.concatenate %486, %451 in 1 : vector<8x128xf32>, vector<8x128xf32> -> vector<8x256xf32>
    %cst_106 = arith.constant dense<0.000000e+00> : vector<8x512xf32>
    %488 = tpu.matmul %487, %4, %cst_106 {dimension_numbers = #tpu.dot_dimension_numbers<[1], [0], [0], [1], [0, 0, 1, 1], [], []>} : vector<8x256xf32>, vector<256x512xf32>, vector<8x512xf32> -> vector<8x512xf32>
    %489 = arith.addf %488, %10 : vector<8x512xf32>
    %490 = vector.extract_strided_slice %489 {offsets = [0, 0], sizes = [8, 128], strides = [1, 1]} : vector<8x512xf32> to vector<8x128xf32>
    %491 = arith.negf %490 : vector<8x128xf32>
    %492 = math.exp %491 : vector<8x128xf32>
    %cst_107 = arith.constant 1.000000e+00 : f32
    %493 = vector.broadcast %cst_107 : f32 to vector<8x128xf32>
    %494 = arith.addf %493, %492 : vector<8x128xf32>
    %495 = arith.divf %493, %494 : vector<8x128xf32>
    %496 = vector.extract_strided_slice %489 {offsets = [0, 128], sizes = [8, 128], strides = [1, 1]} : vector<8x512xf32> to vector<8x128xf32>
    %497 = arith.negf %496 : vector<8x128xf32>
    %498 = math.exp %497 : vector<8x128xf32>
    %cst_108 = arith.constant 1.000000e+00 : f32
    %499 = vector.broadcast %cst_108 : f32 to vector<8x128xf32>
    %500 = arith.addf %499, %498 : vector<8x128xf32>
    %501 = arith.divf %499, %500 : vector<8x128xf32>
    %502 = vector.extract_strided_slice %489 {offsets = [0, 256], sizes = [8, 128], strides = [1, 1]} : vector<8x512xf32> to vector<8x128xf32>
    %503 = math.tanh %502 : vector<8x128xf32>
    %504 = vector.extract_strided_slice %489 {offsets = [0, 384], sizes = [8, 128], strides = [1, 1]} : vector<8x512xf32> to vector<8x128xf32>
    %505 = arith.negf %504 : vector<8x128xf32>
    %506 = math.exp %505 : vector<8x128xf32>
    %cst_109 = arith.constant 1.000000e+00 : f32
    %507 = vector.broadcast %cst_109 : f32 to vector<8x128xf32>
    %508 = arith.addf %507, %506 : vector<8x128xf32>
    %509 = arith.divf %507, %508 : vector<8x128xf32>
    %510 = arith.mulf %501, %449 : vector<8x128xf32>
    %511 = arith.mulf %495, %503 : vector<8x128xf32>
    %512 = arith.addf %510, %511 : vector<8x128xf32>
    %513 = math.tanh %512 : vector<8x128xf32>
    %514 = arith.mulf %509, %513 : vector<8x128xf32>
    %515 = arith.index_cast %c7_i32 : i32 to index
    %c0_110 = arith.constant 0 : index
    %c0_111 = arith.constant 0 : index
    %516 = vector.load %arg7[%515, %c0_110, %c0_111] : memref<8x8x128xf32, #tpu.memory_space<vmem>>, vector<1x8x128xf32>
    %517 = vector.shape_cast %516 : vector<1x8x128xf32> to vector<8x128xf32>
    %518 = vector.shape_cast %514 : vector<8x128xf32> to vector<1x8x128xf32>
    tpu.vector_store %arg7[%515, %c0_110, %c0_111], %518 {strides = array<i32>} : memref<8x8x128xf32, #tpu.memory_space<vmem>>, vector<1x8x128xf32>,
    %c8_i32 = arith.constant 8 : i32
    %c0_112 = arith.constant 0 : index
    %c0_113 = arith.constant 0 : index
    %519 = vector.load %arg9[%c0_112, %c0_113] : memref<8x128xf32, #tpu.memory_space<vmem>>, vector<8x128xf32>
    tpu.vector_store %arg9[%c0_112, %c0_113], %486 {strides = array<i32>} : memref<8x128xf32, #tpu.memory_space<vmem>>, vector<8x128xf32>,
    %c0_114 = arith.constant 0 : index
    %c0_115 = arith.constant 0 : index
    %520 = vector.load %arg10[%c0_114, %c0_115] : memref<8x128xf32, #tpu.memory_space<vmem>>, vector<8x128xf32>
    tpu.vector_store %arg10[%c0_114, %c0_115], %484 {strides = array<i32>} : memref<8x128xf32, #tpu.memory_space<vmem>>, vector<8x128xf32>,
    %c0_116 = arith.constant 0 : index
    %c0_117 = arith.constant 0 : index
    %521 = vector.load %arg11[%c0_116, %c0_117] : memref<8x128xf32, #tpu.memory_space<vmem>>, vector<8x128xf32>
    tpu.vector_store %arg11[%c0_116, %c0_117], %514 {strides = array<i32>} : memref<8x128xf32, #tpu.memory_space<vmem>>, vector<8x128xf32>,
    %c0_118 = arith.constant 0 : index
    %c0_119 = arith.constant 0 : index
    %522 = vector.load %arg12[%c0_118, %c0_119] : memref<8x128xf32, #tpu.memory_space<vmem>>, vector<8x128xf32>
    tpu.vector_store %arg12[%c0_118, %c0_119], %512 {strides = array<i32>} : memref<8x128xf32, #tpu.memory_space<vmem>>, vector<8x128xf32>,
    %c0_i32_120 = arith.constant 0 : i32
    %523 = arith.cmpi eq, %arg1, %c0_i32_120 : i32
    %524 = arith.extui %523 : i1 to i32
    %c0_i32_121 = arith.constant 0 : i32
    %525 = arith.cmpi ne, %524, %c0_i32_121 : i32
    scf.if %525 {
      %c0_122 = arith.constant 0 : index
      %c0_123 = arith.constant 0 : index
      %526 = vector.load %arg9[%c0_122, %c0_123] : memref<8x128xf32, #tpu.memory_space<vmem>>, vector<8x128xf32>
      %c0_124 = arith.constant 0 : index
      %c0_125 = arith.constant 0 : index
      %527 = vector.load %arg8[%c0_124, %c0_125] : memref<8x128xf32, #tpu.memory_space<vmem>>, vector<8x128xf32>
      tpu.vector_store %arg8[%c0_124, %c0_125], %526 {strides = array<i32>} : memref<8x128xf32, #tpu.memory_space<vmem>>, vector<8x128xf32>,
    } else {
    }
    return
  }
  func.func @transform_0(%arg0: i32, %arg1: i32) -> (i32, i32, i32) {
    %c0_i32 = arith.constant 0 : i32
    %c0_i32_0 = arith.constant 0 : i32
    return %arg1, %arg0, %c0_i32 : i32, i32, i32
  }
  func.func @transform_1(%arg0: i32, %arg1: i32) -> (i32, i32) {
    %c0_i32 = arith.constant 0 : i32
    %c0_i32_0 = arith.constant 0 : i32
    %c0_i32_1 = arith.constant 0 : i32
    return %c0_i32, %c0_i32_0 : i32, i32
  }
  func.func @transform_2(%arg0: i32, %arg1: i32) -> (i32, i32) {
    %c0_i32 = arith.constant 0 : i32
    %c0_i32_0 = arith.constant 0 : i32
    %c0_i32_1 = arith.constant 0 : i32
    return %c0_i32, %c0_i32_0 : i32, i32
  }
  func.func @transform_3(%arg0: i32, %arg1: i32) -> (i32, i32) {
    %c0_i32 = arith.constant 0 : i32
    %c0_i32_0 = arith.constant 0 : i32
    %c0_i32_1 = arith.constant 0 : i32
    return %c0_i32, %c0_i32_0 : i32, i32
  }
  func.func @transform_4(%arg0: i32, %arg1: i32) -> (i32, i32) {
    %c0_i32 = arith.constant 0 : i32
    %c0_i32_0 = arith.constant 0 : i32
    %c0_i32_1 = arith.constant 0 : i32
    return %c0_i32, %c0_i32_0 : i32, i32
  }
  func.func @transform_5(%arg0: i32, %arg1: i32) -> (i32, i32, i32) {
    %c0_i32 = arith.constant 0 : i32
    %c0_i32_0 = arith.constant 0 : i32
    return %arg1, %arg0, %c0_i32 : i32, i32, i32
  }
  func.func @transform_6(%arg0: i32, %arg1: i32) -> (i32, i32) {
    %c0_i32 = arith.constant 0 : i32
    %c0_i32_0 = arith.constant 0 : i32
    return %arg0, %c0_i32 : i32, i32
  }
}

</mosaic_0001>

<bundles_post_ra>
// kernel: simple_lstm_forward.1
= control target key start
LH: loop header
LB: loop body
LE: loop exit
PB: predicated region body
PF: predicated region fallthrough
CT: control target
= control target key end

     0   :  { %12 = vsyncpa [#allocation7], 0  ;;  %s9601_s0 = inlined_call_operand.vmem [shape: f32[8,8,128], index: 0, kind: input, shape index: {}]   ;;  %s9602_s1 = inlined_call_operand.hbm [shape: f32[256,512], index: 1, kind: input, shape index: {}]   ;;  %s9603_s2 = inlined_call_operand.vmem [shape: f32[1,512], index: 2, kind: input, shape index: {}]   ;;  %s9604_s3 = inlined_call_operand.hbm [shape: f32[256,512], index: 3, kind: input, shape index: {}]   ;;  %s9605_s4 = inlined_call_operand.vmem [shape: f32[1,512], index: 4, kind: input, shape index: {}]   ;;  %s9606_s5 = inlined_call_operand.vmem [shape: f32[8,8,128], index: 5, kind: output, shape index: {0}]   ;;  %s9607_s6 = inlined_call_operand.vmem [shape: f32[8,128], index: 6, kind: output, shape index: {1}]  }
   0x1   :  { %s20_s23 = sshll.u32 %s9602_s1, 4  ;;  %s21_s23 = int_to_ptr.hbm [resolvable:$true] %s20_s23 }
   0x2   :  { %13 = vsyncpa [#allocation9], 0  ;;  %s5166_s24 = smov [#allocation6]   ;;  %s35_s28 = sshll.u32 %s9604_s3, 4  ;;  %s36_s28 = int_to_ptr.hbm [resolvable:$true] %s35_s28 }
   0x3   :  { %s22_s25 = sshll.u32 %s5166_s24, 4  ;;  %s5167_s29 = smov 512   ;;  %s23_s25 = int_to_ptr.vmem [resolvable:$true] %s22_s25 }
   0x4   :  { %s5168_s30 = smov 32   ;;  %s5169_s7 = smov [#allocation8]  }
   0x5   :  { %28 = dma.hbm_to_vmem [thread:$0]  %s21_s23, 16384, %s23_s25, [#allocation7], %s5167_s29, %s5167_s29, %s5168_s30  }
   0x6   :  { %s37_s8 = sshll.u32 %s5169_s7, 4  ;;  %s38_s8 = int_to_ptr.vmem [resolvable:$true] %s37_s8 }
   0x7   :  { %43 = dma.hbm_to_vmem [thread:$0]  %s36_s28, 16384, %s38_s8, [#allocation9], %s5167_s29, %s5167_s29, %s5168_s30  }
   0x8   :  { %5162 = dma.done.wait [#allocation7], 16384  }
   0x9   :  { %5163 = vsyncadd [#allocation7], 4294950912 }
   0xa   :  { %5164 = dma.done.wait [#allocation9], 16384  }
   0xb   :  { %5165 = vsyncadd [#allocation9], 4294950912  ;;  %v123_v0 = vld [vmem:[#allocation6 + $0x1e8] sm:$0xff]  ;;  %v122_v3 = vld [vmem:[#allocation6 + $0x1e0] sm:$0xff] }
   0xc   :  { %v119_v1 = vld [vmem:[#allocation6 + $0x1c8] sm:$0xff]  ;;  %383 = vmatpush.msra.mxu2 %v123_v0  ;;  %343 = vmatpush.msra.mxu0 %v122_v3  ;;  %v118_v6 = vld [vmem:[#allocation6 + $0x1c0] sm:$0xff]  ;;  %v125_v61 = vld [vmem:[#allocation6 + $0x1f8] sm:$0xff] }
   0xd   :  { %v5212_v2 = vld [vmem:[#allocation6 + $0x3e8] sm:$0xff]  ;;  %v5217_v7 = vld [vmem:[#allocation6 + $0x3e0] sm:$0xff]  ;;  %v5303_v0 = vld [vmem:[#allocation6 + $0x3f8] sm:$0xff] }
   0xe   :  { %403 = vmatpush.msra.mxu3 %v5212_v2  ;;  %v5215_v4 = vld [vmem:[#allocation6 + $0x3c8] sm:$0xff]  ;;  %384 = vmatpush.msra.mxu2 %v119_v1  ;;  %v114_v9 = vld [vmem:[#allocation6 + $0x1a0] sm:$0xff]  ;;  %v121_v1 = vld [vmem:[#allocation6 + $0x1d8] sm:$0xff] }
   0xf   :  { %v115_v5 = vld [vmem:[#allocation6 + $0x1a8] sm:$0xff]  ;;  %v5222_v10 = vld [vmem:[#allocation6 + $0x3c0] sm:$0xff]  ;;  %344 = vmatpush.msra.mxu0 %v118_v6  ;;  %363 = vmatpush.msra.mxu1 %v5217_v7  ;;  %v124_v3 = vld [vmem:[#allocation6 + $0x1f0] sm:$0xff] }
  0x10   :  { %404 = vmatpush.msra.mxu3 %v5215_v4  ;;  %v5220_v8 = vld [vmem:[#allocation6 + $0x3a8] sm:$0xff]  ;;  %385 = vmatpush.msra.mxu2 %v115_v5  ;;  %v110_v13 = vld [vmem:[#allocation6 + $0x180] sm:$0xff]  ;;  %v5308_v6 = vld [vmem:[#allocation6 + $0x3d8] sm:$0xff] }
  0x11   :  { %v111_v11 = vld [vmem:[#allocation6 + $0x188] sm:$0xff]  ;;  %v5228_v14 = vld [vmem:[#allocation6 + $0x3a0] sm:$0xff]  ;;  %345 = vmatpush.msra.mxu0 %v114_v9  ;;  %364 = vmatpush.msra.mxu1 %v5222_v10  ;;  %v117_v9 = vld [vmem:[#allocation6 + $0x1b8] sm:$0xff] }
  0x12   :  { %v5225_v12 = vld [vmem:[#allocation6 + $0x388] sm:$0xff]  ;;  %405 = vmatpush.msra.mxu3 %v5220_v8  ;;  %386 = vmatpush.msra.mxu2 %v111_v11  ;;  %v106_v17 = vld [vmem:[#allocation6 + $0x160] sm:$0xff]  ;;  %v120_v11 = vld [vmem:[#allocation6 + $0x1d0] sm:$0xff] }
  0x13   :  { %v107_v15 = vld [vmem:[#allocation6 + $0x168] sm:$0xff]  ;;  %v5234_v18 = vld [vmem:[#allocation6 + $0x380] sm:$0xff]  ;;  %346 = vmatpush.msra.mxu0 %v110_v13  ;;  %365 = vmatpush.msra.mxu1 %v5228_v14  ;;  %v5312_v13 = vld [vmem:[#allocation6 + $0x3f0] sm:$0xff] }
  0x14   :  { %v5231_v16 = vld [vmem:[#allocation6 + $0x368] sm:$0xff]  ;;  %406 = vmatpush.msra.mxu3 %v5225_v12  ;;  %387 = vmatpush.msra.mxu2 %v107_v15  ;;  %v102_v21 = vld [vmem:[#allocation6 + $0x140] sm:$0xff]  ;;  %v5314_v15 = vld [vmem:[#allocation6 + $0x3b8] sm:$0xff] }
  0x15   :  { %v103_v19 = vld [vmem:[#allocation6 + $0x148] sm:$0xff]  ;;  %v5240_v22 = vld [vmem:[#allocation6 + $0x360] sm:$0xff]  ;;  %347 = vmatpush.msra.mxu0 %v106_v17  ;;  %366 = vmatpush.msra.mxu1 %v5234_v18  ;;  %v113_v17 = vld [vmem:[#allocation6 + $0x198] sm:$0xff] }
  0x16   :  { %v5237_v20 = vld [vmem:[#allocation6 + $0x348] sm:$0xff]  ;;  %407 = vmatpush.msra.mxu3 %v5231_v16  ;;  %388 = vmatpush.msra.mxu2 %v103_v19  ;;  %v98_v25 = vld [vmem:[#allocation6 + $0x120] sm:$0xff]  ;;  %v116_v19 = vld [vmem:[#allocation6 + $0x1b0] sm:$0xff] }
  0x17   :  { %v99_v23 = vld [vmem:[#allocation6 + $0x128] sm:$0xff]  ;;  %v5246_v26 = vld [vmem:[#allocation6 + $0x340] sm:$0xff]  ;;  %348 = vmatpush.msra.mxu0 %v102_v21  ;;  %367 = vmatpush.msra.mxu1 %v5240_v22 }
  0x18   :  { %v5243_v24 = vld [vmem:[#allocation6 + $0x328] sm:$0xff]  ;;  %408 = vmatpush.msra.mxu3 %v5237_v20  ;;  %389 = vmatpush.msra.mxu2 %v99_v23  ;;  %v94_v29 = vld [vmem:[#allocation6 + $0x100] sm:$0xff]  ;;  %v5323_v23 = vld [vmem:[#allocation6 + $0x3d0] sm:$0xff] }
  0x19   :  { %v95_v27 = vld [vmem:[#allocation6 + $0x108] sm:$0xff]  ;;  %v5252_v30 = vld [vmem:[#allocation6 + $0x320] sm:$0xff]  ;;  %349 = vmatpush.msra.mxu0 %v98_v25  ;;  %368 = vmatpush.msra.mxu1 %v5246_v26  ;;  %v109_v25 = vld [vmem:[#allocation6 + $0x178] sm:$0xff] }
  0x1a   :  { %v5249_v28 = vld [vmem:[#allocation6 + $0x308] sm:$0xff]  ;;  %409 = vmatpush.msra.mxu3 %v5243_v24  ;;  %390 = vmatpush.msra.mxu2 %v95_v27  ;;  %v90_v33 = vld [vmem:[#allocation6 + $0xe0] sm:$0xff]  ;;  %v5327_v27 = vld [vmem:[#allocation6 + $0x398] sm:$0xff] }
  0x1b   :  { %v91_v31 = vld [vmem:[#allocation6 + $0xe8] sm:$0xff]  ;;  %v5258_v34 = vld [vmem:[#allocation6 + $0x300] sm:$0xff]  ;;  %350 = vmatpush.msra.mxu0 %v94_v29  ;;  %369 = vmatpush.msra.mxu1 %v5252_v30  ;;  %v112_v29 = vld [vmem:[#allocation6 + $0x190] sm:$0xff] }
  0x1c   :  { %v5255_v32 = vld [vmem:[#allocation6 + $0x2e8] sm:$0xff]  ;;  %410 = vmatpush.msra.mxu3 %v5249_v28  ;;  %391 = vmatpush.msra.mxu2 %v91_v31  ;;  %v86_v37 = vld [vmem:[#allocation6 + $0xc0] sm:$0xff]  ;;  %v5331_v31 = vld [vmem:[#allocation6 + $0x3b0] sm:$0xff] }
  0x1d   :  { %v87_v35 = vld [vmem:[#allocation6 + $0xc8] sm:$0xff]  ;;  %v5264_v38 = vld [vmem:[#allocation6 + $0x2e0] sm:$0xff]  ;;  %351 = vmatpush.msra.mxu0 %v90_v33  ;;  %370 = vmatpush.msra.mxu1 %v5258_v34  ;;  %v105_v33 = vld [vmem:[#allocation6 + $0x158] sm:$0xff] }
  0x1e   :  { %v5261_v36 = vld [vmem:[#allocation6 + $0x2c8] sm:$0xff]  ;;  %411 = vmatpush.msra.mxu3 %v5255_v32  ;;  %392 = vmatpush.msra.mxu2 %v87_v35  ;;  %v82_v41 = vld [vmem:[#allocation6 + $0xa0] sm:$0xff]  ;;  %v5334_v35 = vld [vmem:[#allocation6 + $0x378] sm:$0xff] }
  0x1f   :  { %v83_v39 = vld [vmem:[#allocation6 + $0xa8] sm:$0xff]  ;;  %v5270_v42 = vld [vmem:[#allocation6 + $0x2c0] sm:$0xff]  ;;  %352 = vmatpush.msra.mxu0 %v86_v37  ;;  %371 = vmatpush.msra.mxu1 %v5264_v38  ;;  %v108_v37 = vld [vmem:[#allocation6 + $0x170] sm:$0xff] }
  0x20   :  { %v5267_v40 = vld [vmem:[#allocation6 + $0x2a8] sm:$0xff]  ;;  %412 = vmatpush.msra.mxu3 %v5261_v36  ;;  %393 = vmatpush.msra.mxu2 %v83_v39  ;;  %v78_v45 = vld [vmem:[#allocation6 + $0x80] sm:$0xff]  ;;  %v9608_v39 = vmov 0.0  }
  0x21   :  { %v79_v43 = vld [vmem:[#allocation6 + $0x88] sm:$0xff]  ;;  %v5276_v46 = vld [vmem:[#allocation6 + $0x2a0] sm:$0xff]  ;;  %353 = vmatpush.msra.mxu0 %v82_v41  ;;  %372 = vmatpush.msra.mxu1 %v5270_v42  ;;  %v5337_v41 = vld [vmem:[#allocation6 + $0x390] sm:$0xff] }
  0x22   :  { %v5273_v44 = vld [vmem:[#allocation6 + $0x288] sm:$0xff]  ;;  %413 = vmatpush.msra.mxu3 %v5267_v40  ;;  %394 = vmatpush.msra.mxu2 %v79_v43  ;;  %v74_v49 = vld [vmem:[#allocation6 + $0x60] sm:$0xff]  ;;  %v101_v43 = vld [vmem:[#allocation6 + $0x138] sm:$0xff] }
  0x23   :  { %v75_v47 = vld [vmem:[#allocation6 + $0x68] sm:$0xff]  ;;  %v5282_v50 = vld [vmem:[#allocation6 + $0x280] sm:$0xff]  ;;  %354 = vmatpush.msra.mxu0 %v78_v45  ;;  %373 = vmatpush.msra.mxu1 %v5276_v46  ;;  %v5340_v45 = vld [vmem:[#allocation6 + $0x358] sm:$0xff] }
  0x24   :  { %v5279_v48 = vld [vmem:[#allocation6 + $0x268] sm:$0xff]  ;;  %414 = vmatpush.msra.mxu3 %v5273_v44  ;;  %395 = vmatpush.msra.mxu2 %v75_v47  ;;  %v70_v53 = vld [vmem:[#allocation6 + $0x40] sm:$0xff]  ;;  %v104_v47 = vld [vmem:[#allocation6 + $0x150] sm:$0xff] }
  0x25   :  { %v71_v51 = vld [vmem:[#allocation6 + $0x48] sm:$0xff]  ;;  %v5288_v54 = vld [vmem:[#allocation6 + $0x260] sm:$0xff]  ;;  %355 = vmatpush.msra.mxu0 %v74_v49  ;;  %374 = vmatpush.msra.mxu1 %v5282_v50  ;;  %v5343_v49 = vld [vmem:[#allocation6 + $0x370] sm:$0xff] }
  0x26   :  { %v5285_v52 = vld [vmem:[#allocation6 + $0x248] sm:$0xff]  ;;  %415 = vmatpush.msra.mxu3 %v5279_v48  ;;  %396 = vmatpush.msra.mxu2 %v71_v51  ;;  %v66_v57 = vld [vmem:[#allocation6 + $0x20] sm:$0xff]  ;;  %v97_v51 = vld [vmem:[#allocation6 + $0x118] sm:$0xff] }
  0x27   :  { %v67_v55 = vld [vmem:[#allocation6 + $0x28] sm:$0xff]  ;;  %v5294_v58 = vld [vmem:[#allocation6 + $0x240] sm:$0xff]  ;;  %356 = vmatpush.msra.mxu0 %v70_v53  ;;  %375 = vmatpush.msra.mxu1 %v5288_v54  ;;  %v5346_v53 = vld [vmem:[#allocation6 + $0x338] sm:$0xff] }
  0x28   :  { %v5291_v56 = vld [vmem:[#allocation6 + $0x228] sm:$0xff]  ;;  %416 = vmatpush.msra.mxu3 %v5285_v52  ;;  %397 = vmatpush.msra.mxu2 %v67_v55  ;;  %v62_v62 = vld [vmem:[#allocation6] sm:$0xff]  ;;  %v100_v55 = vld [vmem:[#allocation6 + $0x130] sm:$0xff] }
  0x29   :  { %v63_v59 = vld [vmem:[#allocation6 + $0x8] sm:$0xff]  ;;  %357 = vmatpush.msra.mxu0 %v66_v57  ;;  %376 = vmatpush.msra.mxu1 %v5294_v58  ;;  %v5301_v63 = vld [vmem:[#allocation6 + $0x220] sm:$0xff]  ;;  %v5351_v57 = vld [vmem:[#allocation6 + $0x350] sm:$0xff] }
  0x2a   :  { %v5297_v60 = vld [vmem:[#allocation6 + $0x208] sm:$0xff]  ;;  %417 = vmatpush.msra.mxu3 %v5291_v56  ;;  %398 = vmatpush.msra.mxu2 %v63_v59  ;;  %v5306_v5 = vld [vmem:[#allocation6 + $0x200] sm:$0xff]  ;;  %v93_v59 = vld [vmem:[#allocation6 + $0xf8] sm:$0xff] }
  0x2b   :  { %358 = vmatpush.msra.mxu0 %v62_v62  ;;  %377 = vmatpush.msra.mxu1 %v5301_v63  ;;  %v5321_v21 = vld [vmem:[%s9601_s0] sm:$0xff]  ;;  %v96_v62 = vld [vmem:[#allocation6 + $0x110] sm:$0xff] }
  0x2c   :  { %418 = vmatpush.msra.mxu3 %v5297_v60  ;;  %463 = vmatpush.msrb.mxu2 %v125_v61  ;;  %v5354_v61 = vld [vmem:[#allocation6 + $0x318] sm:$0xff] }
  0x2d   :  { %423 = vmatpush.msrb.mxu0 %v124_v3  ;;  %378 = vmatpush.msra.mxu1 %v5306_v5  ;;  %v89_v3 = vld [vmem:[#allocation6 + $0xd8] sm:$0xff] }
  0x2e   :  { %483 = vmatpush.msrb.mxu3 %v5303_v0  ;;  %464 = vmatpush.msrb.mxu2 %v121_v1  ;;  %v5357_v1 = vld [vmem:[#allocation6 + $0x330] sm:$0xff] }
  0x2f   :  { %424 = vmatpush.msrb.mxu0 %v120_v11  ;;  %443 = vmatpush.msrb.mxu1 %v5312_v13  ;;  %v92_v11 = vld [vmem:[#allocation6 + $0xf0] sm:$0xff] }
  0x30   :  { %484 = vmatpush.msrb.mxu3 %v5308_v6  ;;  %465 = vmatpush.msrb.mxu2 %v117_v9  ;;  %v5360_v9 = vld [vmem:[#allocation6 + $0x2f8] sm:$0xff] }
  0x31   :  { %425 = vmatpush.msrb.mxu0 %v116_v19  ;;  %399 = vmatmul.f32.vlgmr.msra.gmra.mxu2 %v5321_v21  ;;  %v85_v19 = vld [vmem:[#allocation6 + $0xb8] sm:$0xff] }
  0x32   :  { %485 = vmatpush.msrb.mxu3 %v5314_v15  ;;  %466 = vmatpush.msrb.mxu2 %v113_v17  ;;  %v5363_v17 = vld [vmem:[#allocation6 + $0x310] sm:$0xff] }
  0x33   :  { %444 = vmatpush.msrb.mxu1 %v5323_v23  ;;  %419 = vmatmul.f32.vlgmr.msra.gmra.mxu3 %v9608_v39 }
  0x34   :  { %467 = vmatpush.msrb.mxu2 %v109_v25  ;;  %486 = vmatpush.msrb.mxu3 %v5327_v27  ;;  %v5366_v25 = vld [vmem:[#allocation6 + $0x2d8] sm:$0xff] }
  0x35   :  { %426 = vmatpush.msrb.mxu0 %v112_v29  ;;  %445 = vmatpush.msrb.mxu1 %v5331_v31  ;;  %10308 = vst [vmem:[#allocation12_spill] sm:$0xff] %v5366_v25  ;;  %v88_v29 = vld [vmem:[#allocation6 + $0xd0] sm:$0xff] }
  0x36   :  { %468 = vmatpush.msrb.mxu2 %v105_v33  ;;  %487 = vmatpush.msrb.mxu3 %v5334_v35  ;;  %v5369_v33 = vld [vmem:[#allocation6 + $0x2f0] sm:$0xff] }
  0x37   :  { %427 = vmatpush.msrb.mxu0 %v108_v37  ;;  %446 = vmatpush.msrb.mxu1 %v5337_v41  ;;  %v81_v37 = vld [vmem:[#allocation6 + $0x98] sm:$0xff] }
  0x38   :  { %469 = vmatpush.msrb.mxu2 %v101_v43  ;;  %488 = vmatpush.msrb.mxu3 %v5340_v45  ;;  %v5372_v43 = vld [vmem:[#allocation6 + $0x2b8] sm:$0xff] }
  0x39   :  { %359 = vmatmul.f32.vlgmr.msra.gmra.mxu0 %v5321_v21  ;;  %447 = vmatpush.msrb.mxu1 %v5343_v49  ;;  %10309 = vst [vmem:[#allocation13_spill] sm:$0xff] %v5372_v43 }
  0x3a   :  { %428 = vmatpush.msrb.mxu0 %v104_v47  ;;  %470 = vmatpush.msrb.mxu2 %v97_v51  ;;  %v84_v47 = vld [vmem:[#allocation6 + $0xb0] sm:$0xff] }
  0x3b   :  { %489 = vmatpush.msrb.mxu3 %v5346_v53  ;;  %379 = vmatmul.f32.vlgmr.msra.gmra.mxu1 %v9608_v39  ;;  %v5375_v51 = vld [vmem:[#allocation6 + $0x2d0] sm:$0xff] }
  0x3c   :  { %429 = vmatpush.msrb.mxu0 %v100_v55  ;;  %448 = vmatpush.msrb.mxu1 %v5351_v57  ;;  %v77_v55 = vld [vmem:[#allocation6 + $0x78] sm:$0xff]  ;;  %v5387_v39 = vld [vmem:[#allocation6 + $0x290] sm:$0xff] }
  0x3d   :  { %471 = vmatpush.msrb.mxu2 %v93_v59  ;;  %490 = vmatpush.msrb.mxu3 %v5354_v61  ;;  %v5378_v59 = vld [vmem:[#allocation6 + $0x298] sm:$0xff] }
  0x3e   :  { %430 = vmatpush.msrb.mxu0 %v96_v62  ;;  %449 = vmatpush.msrb.mxu1 %v5357_v1  ;;  %10310 = vst [vmem:[#allocation14_spill] sm:$0xff] %v5378_v59  ;;  %v80_v62 = vld [vmem:[#allocation6 + $0x90] sm:$0xff] }
  0x3f   :  { %472 = vmatpush.msrb.mxu2 %v89_v3  ;;  %491 = vmatpush.msrb.mxu3 %v5360_v9  ;;  %v5381_v3 = vld [vmem:[#allocation6 + $0x2b0] sm:$0xff] }
  0x40   :  { %431 = vmatpush.msrb.mxu0 %v92_v11  ;;  %450 = vmatpush.msrb.mxu1 %v5363_v17  ;;  %10311 = vst [vmem:[#allocation15_spill] sm:$0xff] %v5381_v3  ;;  %v73_v11 = vld [vmem:[#allocation6 + $0x58] sm:$0xff] }
  0x41   :  { %473 = vmatpush.msrb.mxu2 %v85_v19  ;;  %492 = vmatpush.msrb.mxu3 %v5366_v25  ;;  %v5384_v19 = vld [vmem:[#allocation6 + $0x278] sm:$0xff]  ;;  %v5393_v25 = vld [vmem:[#allocation6 + $0x270] sm:$0xff] }
  0x42   :  { %432 = vmatpush.msrb.mxu0 %v88_v29  ;;  %451 = vmatpush.msrb.mxu1 %v5369_v33  ;;  %10312 = vst [vmem:[#allocation16_spill] sm:$0xff] %v5384_v19  ;;  %v76_v29 = vld [vmem:[#allocation6 + $0x70] sm:$0xff] }
  0x43   :  { %474 = vmatpush.msrb.mxu2 %v81_v37  ;;  %493 = vmatpush.msrb.mxu3 %v5372_v43  ;;  %v69_v37 = vld [vmem:[#allocation6 + $0x38] sm:$0xff] }
  0x44   :  { %433 = vmatpush.msrb.mxu0 %v84_v47  ;;  %452 = vmatpush.msrb.mxu1 %v5375_v51  ;;  %v5390_v43 = vld [vmem:[#allocation6 + $0x258] sm:$0xff]  ;;  %v72_v47 = vld [vmem:[#allocation6 + $0x50] sm:$0xff] }
  0x45   :  { %475 = vmatpush.msrb.mxu2 %v77_v55  ;;  %494 = vmatpush.msrb.mxu3 %v5378_v59  ;;  %10313 = vst [vmem:[#allocation17_spill] sm:$0xff] %v5390_v43  ;;  %v65_v55 = vld [vmem:[#allocation6 + $0x18] sm:$0xff] }
  0x46   :  { %434 = vmatpush.msrb.mxu0 %v80_v62  ;;  %453 = vmatpush.msrb.mxu1 %v5381_v3  ;;  %v5396_v59 = vld [vmem:[#allocation6 + $0x238] sm:$0xff]  ;;  %v68_v62 = vld [vmem:[#allocation6 + $0x30] sm:$0xff] }
  0x47   :  { %476 = vmatpush.msrb.mxu2 %v73_v11  ;;  %495 = vmatpush.msrb.mxu3 %v5384_v19  ;;  %10314 = vst [vmem:[#allocation18_spill] sm:$0xff] %v5396_v59  ;;  %v5399_v3 = vld [vmem:[#allocation6 + $0x250] sm:$0xff]  ;;  %v5402_v11 = vld [vmem:[#allocation6 + $0x218] sm:$0xff] }
  0x48   :  { %435 = vmatpush.msrb.mxu0 %v76_v29  ;;  %454 = vmatpush.msrb.mxu1 %v5387_v39  ;;  %10315 = vst [vmem:[#allocation19_spill] sm:$0xff] %v5399_v3  ;;  %v64_v29 = vld [vmem:[#allocation6 + $0x10] sm:$0xff] }
  0x49   :  { %477 = vmatpush.msrb.mxu2 %v69_v37  ;;  %496 = vmatpush.msrb.mxu3 %v5390_v43  ;;  %10316 = vst [vmem:[#allocation20_spill] sm:$0xff] %v5402_v11  ;;  %v5405_v19 = vld [vmem:[#allocation6 + $0x230] sm:$0xff]  ;;  %v5409_v37 = vld [vmem:[#allocation8 + $0x3e8] sm:$0xff] }
  0x4a   :  { %436 = vmatpush.msrb.mxu0 %v72_v47  ;;  %455 = vmatpush.msrb.mxu1 %v5393_v25  ;;  %10317 = vst [vmem:[#allocation21_spill] sm:$0xff] %v5405_v19  ;;  %v5412_v47 = vld [vmem:[#allocation6 + $0x210] sm:$0xff]  ;;  %v5416_v43 = vld [vmem:[#allocation8 + $0x3c8] sm:$0xff] }
  0x4b   :  { %478 = vmatpush.msrb.mxu2 %v65_v55  ;;  %497 = vmatpush.msrb.mxu3 %v5396_v59  ;;  %10318 = vst [vmem:[#allocation22_spill] sm:$0xff] %v5409_v37  ;;  %v10320_v55 = vmov 0.0   ;;  %v5423_v59 = vld [vmem:[#allocation8 + $0x3a8] sm:$0xff] }
  0x4c   :  { %437 = vmatpush.msrb.mxu0 %v68_v62  ;;  %456 = vmatpush.msrb.mxu1 %v5399_v3  ;;  %10319 = vst [vmem:[#allocation23_spill] sm:$0xff] %v5412_v47  ;;  %v5419_v62 = vld [vmem:[#allocation8 + $0x3e0] sm:$0xff]  ;;  %v5497_v3 = vld [vmem:[#allocation8 + $0x1e8] sm:$0xff] }
  0x4d   :  { %479 = vmatmul.f32.vlgmr.msrb.gmra.mxu2 %v5321_v21  ;;  %498 = vmatpush.msrb.mxu3 %v5402_v11  ;;  %10321 = vst [vmem:[#allocation24_spill] sm:$0xff] %v5416_v43  ;;  %v5430_v11 = vld [vmem:[#allocation8 + $0x388] sm:$0xff] }
  0x4e   :  { %438 = vmatpush.msrb.mxu0 %v64_v29  ;;  %457 = vmatpush.msrb.mxu1 %v5405_v19  ;;  %10322 = vst [vmem:[#allocation25_spill] sm:$0xff] %v5419_v62  ;;  %v5426_v29 = vld [vmem:[#allocation8 + $0x3c0] sm:$0xff] }
  0x4f   :  { %499 = vmatmul.f32.vlgmr.msrb.gmra.mxu3 %v10320_v55  ;;  %439 = vmatmul.f32.vlgmr.msrb.gmra.mxu0 %v5321_v21  ;;  %10323 = vst [vmem:[#allocation26_spill] sm:$0xff] %v5423_v59  ;;  %v5432_v19 = vld [vmem:[#allocation8 + $0x3a0] sm:$0xff]  ;;  %v5436_v21 = vld [vmem:[#allocation8 + $0x368] sm:$0xff] }
  0x50   :  { %626 = vmatpush.msra.mxu3 %v5409_v37  ;;  %458 = vmatpush.msrb.mxu1 %v5412_v47  ;;  %10324 = vst [vmem:[#allocation27_spill] sm:$0xff] %v5426_v29  ;;  %v5438_v37 = vld [vmem:[#allocation8 + $0x380] sm:$0xff]  ;;  %v5442_v47 = vld [vmem:[#allocation8 + $0x348] sm:$0xff] }
  0x51   :  { %459 = vmatmul.f32.vlgmr.msrb.gmra.mxu1 %v10320_v55  ;;  %10325 = vst [vmem:[#allocation28_spill] sm:$0xff] %v5430_v11  ;;  %606 = vmatpush.msra.mxu2 %v5497_v3 }
  0x52   :  { %627 = vmatpush.msra.mxu3 %v5416_v43  ;;  %586 = vmatpush.msra.mxu1 %v5419_v62  ;;  %10326 = vst [vmem:[#allocation29_spill] sm:$0xff] %v5432_v19  ;;  %v5444_v43 = vld [vmem:[#allocation8 + $0x360] sm:$0xff]  ;;  %v5448_v62 = vld [vmem:[#allocation8 + $0x328] sm:$0xff] }
  0x53   :  { %10327 = vst [vmem:[#allocation30_spill] sm:$0xff] %v5436_v21 }
  0x54   :  { %628 = vmatpush.msra.mxu3 %v5423_v59  ;;  %587 = vmatpush.msra.mxu1 %v5426_v29  ;;  %10328 = vst [vmem:[#allocation31_spill] sm:$0xff] %v5438_v37  ;;  %v5450_v59 = vld [vmem:[#allocation8 + $0x340] sm:$0xff]  ;;  %v5454_v29 = vld [vmem:[#allocation8 + $0x308] sm:$0xff] }
  0x55   :  { %10329 = vst [vmem:[#allocation32_spill] sm:$0xff] %v5442_v47 }
  0x56   :  { %629 = vmatpush.msra.mxu3 %v5430_v11  ;;  %588 = vmatpush.msra.mxu1 %v5432_v19  ;;  %10330 = vst [vmem:[#allocation33_spill] sm:$0xff] %v5444_v43  ;;  %v5456_v11 = vld [vmem:[#allocation8 + $0x320] sm:$0xff]  ;;  %v5460_v19 = vld [vmem:[#allocation8 + $0x2e8] sm:$0xff] }
  0x57   :  { %10331 = vst [vmem:[#allocation34_spill] sm:$0xff] %v5448_v62 }
  0x58   :  { %630 = vmatpush.msra.mxu3 %v5436_v21  ;;  %589 = vmatpush.msra.mxu1 %v5438_v37  ;;  %10332 = vst [vmem:[#allocation35_spill] sm:$0xff] %v5450_v59  ;;  %v5462_v21 = vld [vmem:[#allocation8 + $0x300] sm:$0xff]  ;;  %v5466_v37 = vld [vmem:[#allocation8 + $0x2c8] sm:$0xff] }
  0x59   :  { %10333 = vst [vmem:[#allocation36_spill] sm:$0xff] %v5454_v29 }
  0x5a   :  { %631 = vmatpush.msra.mxu3 %v5442_v47  ;;  %590 = vmatpush.msra.mxu1 %v5444_v43  ;;  %10334 = vst [vmem:[#allocation37_spill] sm:$0xff] %v5456_v11  ;;  %v5468_v47 = vld [vmem:[#allocation8 + $0x2e0] sm:$0xff]  ;;  %v5472_v43 = vld [vmem:[#allocation8 + $0x2a8] sm:$0xff] }
  0x5b   :  { %10335 = vst [vmem:[#allocation38_spill] sm:$0xff] %v5460_v19 }
  0x5c   :  { %632 = vmatpush.msra.mxu3 %v5448_v62  ;;  %591 = vmatpush.msra.mxu1 %v5450_v59  ;;  %10336 = vst [vmem:[#allocation39_spill] sm:$0xff] %v5462_v21  ;;  %v5474_v62 = vld [vmem:[#allocation8 + $0x2c0] sm:$0xff]  ;;  %v5478_v59 = vld [vmem:[#allocation8 + $0x288] sm:$0xff] }
  0x5d   :  { %10337 = vst [vmem:[#allocation40_spill] sm:$0xff] %v5466_v37 }
  0x5e   :  { %633 = vmatpush.msra.mxu3 %v5454_v29  ;;  %592 = vmatpush.msra.mxu1 %v5456_v11  ;;  %10338 = vst [vmem:[#allocation41_spill] sm:$0xff] %v5468_v47  ;;  %v5480_v29 = vld [vmem:[#allocation8 + $0x2a0] sm:$0xff]  ;;  %v5484_v11 = vld [vmem:[#allocation8 + $0x268] sm:$0xff] }
  0x5f   :  { %10339 = vst [vmem:[#allocation42_spill] sm:$0xff] %v5472_v43 }
  0x60   :  { %634 = vmatpush.msra.mxu3 %v5460_v19  ;;  %593 = vmatpush.msra.mxu1 %v5462_v21  ;;  %10340 = vst [vmem:[#allocation43_spill] sm:$0xff] %v5474_v62  ;;  %v5486_v19 = vld [vmem:[#allocation8 + $0x280] sm:$0xff]  ;;  %v5490_v21 = vld [vmem:[#allocation8 + $0x248] sm:$0xff] }
  0x61   :  { %10341 = vst [vmem:[#allocation44_spill] sm:$0xff] %v5478_v59 }
  0x62   :  { %635 = vmatpush.msra.mxu3 %v5466_v37  ;;  %594 = vmatpush.msra.mxu1 %v5468_v47  ;;  %10342 = vst [vmem:[#allocation45_spill] sm:$0xff] %v5480_v29  ;;  %v5492_v37 = vld [vmem:[#allocation8 + $0x260] sm:$0xff] }
  0x63   :  { %10343 = vst [vmem:[#allocation46_spill] sm:$0xff] %v5484_v11  ;;  %v5495_v47 = vld [vmem:[#allocation8 + $0x1e0] sm:$0xff] }
  0x64   :  { %636 = vmatpush.msra.mxu3 %v5472_v43  ;;  %595 = vmatpush.msra.mxu1 %v5474_v62  ;;  %10344 = vst [vmem:[#allocation47_spill] sm:$0xff] %v5486_v19  ;;  %v5500_v43 = vld [vmem:[#allocation8 + $0x228] sm:$0xff]  ;;  %v5503_v62 = vld [vmem:[#allocation8 + $0x240] sm:$0xff] }
  0x65   :  { %10345 = vst [vmem:[#allocation48_spill] sm:$0xff] %v5490_v21  ;;  %566 = vmatpush.msra.mxu0 %v5495_v47 }
  0x66   :  { %637 = vmatpush.msra.mxu3 %v5478_v59  ;;  %596 = vmatpush.msra.mxu1 %v5480_v29  ;;  %10346 = vst [vmem:[#allocation49_spill] sm:$0xff] %v5492_v37  ;;  %v5507_v59 = vld [vmem:[#allocation8 + $0x1c0] sm:$0xff]  ;;  %v5509_v29 = vld [vmem:[#allocation8 + $0x1c8] sm:$0xff] }
  0x67   :  { %10347 = vst [vmem:[#allocation50_spill] sm:$0xff] %v5495_v47  ;;  %567 = vmatpush.msra.mxu0 %v5507_v59  ;;  %v5518_v47 = vld [vmem:[#allocation8 + $0x3f8] sm:$0xff]  ;;  %607 = vmatpush.msra.mxu2 %v5509_v29 }
  0x68   :  { %638 = vmatpush.msra.mxu3 %v5484_v11  ;;  %10348 = vst [vmem:[#allocation51_spill] sm:$0xff] %v5497_v3  ;;  %597 = vmatpush.msra.mxu1 %v5486_v19  ;;  %v5512_v11 = vld [vmem:[#allocation8 + $0x208] sm:$0xff]  ;;  %v5515_v19 = vld [vmem:[#allocation8 + $0x220] sm:$0xff] }
  0x69   :  { %10349 = vst [vmem:[#allocation52_spill] sm:$0xff] %v5500_v43  ;;  %v5522_v3 = vld [vmem:[#allocation8 + $0x200] sm:$0xff] }
  0x6a   :  { %639 = vmatpush.msra.mxu3 %v5490_v21  ;;  %10350 = vst [vmem:[#allocation53_spill] sm:$0xff] %v5507_v59  ;;  %598 = vmatpush.msra.mxu1 %v5492_v37  ;;  %v5525_v21 = vld [vmem:[#allocation8 + $0x3d8] sm:$0xff]  ;;  %v5528_v37 = vld [vmem:[#allocation8 + $0x3f0] sm:$0xff] }
  0x6b   :  { %10351 = vst [vmem:[#allocation54_spill] sm:$0xff] %v5509_v29  ;;  %v5531_v59 = vld [vmem:[#allocation8 + $0x3b8] sm:$0xff]  ;;  %v5535_v29 = vld [vmem:[#allocation8 + $0x3d0] sm:$0xff] }
  0x6c   :  { %10352 = vst [vmem:[#allocation55_spill] sm:$0xff] %v5512_v11  ;;  %640 = vmatpush.msra.mxu3 %v5500_v43  ;;  %599 = vmatpush.msra.mxu1 %v5503_v62  ;;  %v5541_v43 = vld [vmem:[#allocation8 + $0x3b0] sm:$0xff] }
  0x6d   :  { %10353 = vst [vmem:[#allocation56_spill] sm:$0xff] %v5515_v19 }
  0x6e   :  { %10354 = vst [vmem:[#allocation57_spill] sm:$0xff] %v5518_v47  ;;  %641 = vmatpush.msra.mxu3 %v5512_v11  ;;  %600 = vmatpush.msra.mxu1 %v5515_v19  ;;  %v5539_v11 = vld [vmem:[#allocation8 + $0x398] sm:$0xff]  ;;  %v5548_v19 = vld [vmem:[#allocation8 + $0x390] sm:$0xff] }
  0x6f   :  { %10355 = vst [vmem:[#allocation58_spill] sm:$0xff] %v5522_v3  ;;  %642 = vmatmul.f32.vlgmr.msra.gmra.mxu3 %v10320_v55 }
  0x70   :  { %10356 = vst [vmem:[#allocation59_spill] sm:$0xff] %v5525_v21  ;;  %706 = vmatpush.msrb.mxu3 %v5518_v47  ;;  %601 = vmatpush.msra.mxu1 %v5522_v3  ;;  %v5546_v47 = vld [vmem:[#allocation8 + $0x378] sm:$0xff]  ;;  %v5560_v3 = vld [vmem:[#allocation8 + $0x350] sm:$0xff] }
  0x71   :  { %10357 = vst [vmem:[#allocation60_spill] sm:$0xff] %v5528_v37  ;;  %602 = vmatmul.f32.vlgmr.msra.gmra.mxu1 %v10320_v55 }
  0x72   :  { %10358 = vst [vmem:[#allocation61_spill] sm:$0xff] %v5531_v59  ;;  %707 = vmatpush.msrb.mxu3 %v5525_v21  ;;  %666 = vmatpush.msrb.mxu1 %v5528_v37  ;;  %v5552_v21 = vld [vmem:[#allocation8 + $0x358] sm:$0xff]  ;;  %v5554_v37 = vld [vmem:[#allocation8 + $0x370] sm:$0xff] }
  0x73   :  { %10359 = vst [vmem:[#allocation62_spill] sm:$0xff] %v5535_v29 }
  0x74   :  { %10360 = vst [vmem:[#allocation63_spill] sm:$0xff] %v5539_v11  ;;  %708 = vmatpush.msrb.mxu3 %v5531_v59  ;;  %667 = vmatpush.msrb.mxu1 %v5535_v29  ;;  %v5558_v59 = vld [vmem:[#allocation8 + $0x338] sm:$0xff] }
  0x75   :  { %10361 = vst [vmem:[#allocation64_spill] sm:$0xff] %v5541_v43  ;;  %v5564_v29 = vld [vmem:[#allocation8 + $0x318] sm:$0xff] }
  0x76   :  { %10362 = vst [vmem:[#allocation65_spill] sm:$0xff] %v5546_v47  ;;  %709 = vmatpush.msrb.mxu3 %v5539_v11  ;;  %668 = vmatpush.msrb.mxu1 %v5541_v43  ;;  %v5566_v11 = vld [vmem:[#allocation8 + $0x330] sm:$0xff]  ;;  %v5570_v43 = vld [vmem:[#allocation8 + $0x2f8] sm:$0xff] }
  0x77   :  { %10363 = vst [vmem:[#allocation66_spill] sm:$0xff] %v5548_v19 }
  0x78   :  { %10364 = vst [vmem:[#allocation67_spill] sm:$0xff] %v5552_v21  ;;  %710 = vmatpush.msrb.mxu3 %v5546_v47  ;;  %669 = vmatpush.msrb.mxu1 %v5548_v19  ;;  %v5572_v47 = vld [vmem:[#allocation8 + $0x310] sm:$0xff]  ;;  %v5576_v19 = vld [vmem:[#allocation8 + $0x2d8] sm:$0xff] }
  0x79   :  { %10365 = vst [vmem:[#allocation68_spill] sm:$0xff] %v5554_v37 }
  0x7a   :  { %10366 = vst [vmem:[#allocation69_spill] sm:$0xff] %v5558_v59  ;;  %711 = vmatpush.msrb.mxu3 %v5552_v21  ;;  %670 = vmatpush.msrb.mxu1 %v5554_v37  ;;  %v5578_v21 = vld [vmem:[#allocation8 + $0x2f0] sm:$0xff]  ;;  %v5582_v37 = vld [vmem:[#allocation8 + $0x2b8] sm:$0xff] }
  0x7b   :  { %10367 = vst [vmem:[#allocation70_spill] sm:$0xff] %v5560_v3 }
  0x7c   :  { %10368 = vst [vmem:[#allocation71_spill] sm:$0xff] %v5564_v29  ;;  %712 = vmatpush.msrb.mxu3 %v5558_v59  ;;  %671 = vmatpush.msrb.mxu1 %v5560_v3  ;;  %v5584_v59 = vld [vmem:[#allocation8 + $0x2d0] sm:$0xff]  ;;  %v5588_v3 = vld [vmem:[#allocation8 + $0x298] sm:$0xff] }
  0x7d   :  { %10369 = vst [vmem:[#allocation72_spill] sm:$0xff] %v5566_v11 }
  0x7e   :  { %10370 = vst [vmem:[#allocation73_spill] sm:$0xff] %v5570_v43  ;;  %713 = vmatpush.msrb.mxu3 %v5564_v29  ;;  %672 = vmatpush.msrb.mxu1 %v5566_v11  ;;  %v5590_v29 = vld [vmem:[#allocation8 + $0x2b0] sm:$0xff]  ;;  %v5594_v11 = vld [vmem:[#allocation8 + $0x278] sm:$0xff] }
  0x7f   :  { %10371 = vst [vmem:[#allocation74_spill] sm:$0xff] %v5572_v47 }
  0x80   :  { %10372 = vst [vmem:[#allocation75_spill] sm:$0xff] %v5576_v19  ;;  %714 = vmatpush.msrb.mxu3 %v5570_v43  ;;  %673 = vmatpush.msrb.mxu1 %v5572_v47  ;;  %v5596_v43 = vld [vmem:[#allocation8 + $0x290] sm:$0xff] }
  0x81   :  { %10373 = vst [vmem:[#allocation76_spill] sm:$0xff] %v5582_v37  ;;  %v5600_v47 = vld [vmem:[#allocation8 + $0x270] sm:$0xff] }
  0x82   :  { %10374 = vst [vmem:[#allocation77_spill] sm:$0xff] %v5584_v59  ;;  %715 = vmatpush.msrb.mxu3 %v5576_v19  ;;  %674 = vmatpush.msrb.mxu1 %v5578_v21  ;;  %v5605_v19 = vld [vmem:[#allocation8 + $0x250] sm:$0xff] }
  0x83   :  { %10375 = vst [vmem:[#allocation78_spill] sm:$0xff] %v5588_v3 }
  0x84   :  { %10376 = vst [vmem:[#allocation79_spill] sm:$0xff] %v5590_v29  ;;  %716 = vmatpush.msrb.mxu3 %v5582_v37  ;;  %675 = vmatpush.msrb.mxu1 %v5584_v59  ;;  %v5607_v37 = vld [vmem:[#allocation8 + $0x258] sm:$0xff]  ;;  %v5609_v59 = vld [vmem:[#allocation8 + $0x1a0] sm:$0xff] }
  0x85   :  { %10377 = vst [vmem:[#allocation80_spill] sm:$0xff] %v5594_v11  ;;  %568 = vmatpush.msra.mxu0 %v5609_v59 }
  0x86   :  { %10378 = vst [vmem:[#allocation81_spill] sm:$0xff] %v5596_v43  ;;  %717 = vmatpush.msrb.mxu3 %v5588_v3  ;;  %676 = vmatpush.msrb.mxu1 %v5590_v29  ;;  %v5613_v3 = vld [vmem:[#allocation8 + $0x1a8] sm:$0xff] }
  0x87   :  { %10379 = vst [vmem:[#allocation82_spill] sm:$0xff] %v5600_v47  ;;  %608 = vmatpush.msra.mxu2 %v5613_v3  ;;  %v5625_v29 = vld [vmem:[#allocation8 + $0x188] sm:$0xff] }
  0x88   :  { %718 = vmatpush.msrb.mxu3 %v5594_v11  ;;  %677 = vmatpush.msrb.mxu1 %v5596_v43  ;;  %10380 = vst [vmem:[#allocation83_spill] sm:$0xff] %v5605_v19  ;;  %v5617_v11 = vld [vmem:[#allocation8 + $0x230] sm:$0xff]  ;;  %v5619_v43 = vld [vmem:[#allocation8 + $0x238] sm:$0xff] }
  0x89   :  { %10381 = vst [vmem:[#allocation84_spill] sm:$0xff] %v5607_v37  ;;  %609 = vmatpush.msra.mxu2 %v5625_v29 }
  0x8a   :  { %678 = vmatpush.msrb.mxu1 %v5600_v47  ;;  %719 = vmatpush.msrb.mxu3 %v5607_v37  ;;  %10382 = vst [vmem:[#allocation85_spill] sm:$0xff] %v5613_v3  ;;  %v5623_v47 = vld [vmem:[#allocation8 + $0x180] sm:$0xff]  ;;  %v5629_v37 = vld [vmem:[#allocation8 + $0x210] sm:$0xff] }
  0x8b   :  { %10383 = vst [vmem:[#allocation86_spill] sm:$0xff] %v5617_v11  ;;  %569 = vmatpush.msra.mxu0 %v5623_v47  ;;  %v5635_v3 = vld [vmem:[#allocation8 + $0x160] sm:$0xff] }
  0x8c   :  { %679 = vmatpush.msrb.mxu1 %v5605_v19  ;;  %10384 = vst [vmem:[#allocation87_spill] sm:$0xff] %v5619_v43  ;;  %720 = vmatpush.msrb.mxu3 %v5619_v43  ;;  %v5631_v19 = vld [vmem:[#allocation8 + $0x218] sm:$0xff]  ;;  %v5643_v43 = vld [vmem:[#allocation8 + $0x140] sm:$0xff] }
  0x8d   :  { %10385 = vst [vmem:[#allocation88_spill] sm:$0xff] %v5625_v29  ;;  %570 = vmatpush.msra.mxu0 %v5635_v3  ;;  %v5645_v29 = vld [vmem:[#allocation8 + $0x148] sm:$0xff] }
  0x8e   :  { %680 = vmatpush.msrb.mxu1 %v5617_v11  ;;  %10386 = vst [vmem:[#allocation89_spill] sm:$0xff] %v5629_v37  ;;  %721 = vmatpush.msrb.mxu3 %v5631_v19  ;;  %v5637_v11 = vld [vmem:[#allocation8 + $0x168] sm:$0xff] }
  0x8f   :  { %10387 = vst [vmem:[#allocation90_spill] sm:$0xff] %v5631_v19  ;;  %610 = vmatpush.msra.mxu2 %v5637_v11  ;;  %571 = vmatpush.msra.mxu0 %v5643_v43  ;;  %v5651_v19 = vld [vmem:[#allocation8 + $0x120] sm:$0xff] }
  0x90   :  { %681 = vmatpush.msrb.mxu1 %v5629_v37  ;;  %852 = vmatpush.msra.mxu3 %v5212_v2  ;;  %v5653_v37 = vld [vmem:[#allocation8 + $0x128] sm:$0xff]  ;;  %v5659_v2 = vld [vmem:[#allocation8 + $0x100] sm:$0xff] }
  0x91   :  { %611 = vmatpush.msra.mxu2 %v5645_v29  ;;  %572 = vmatpush.msra.mxu0 %v5651_v19 }
  0x92   :  { %812 = vmatpush.msra.mxu1 %v5217_v7  ;;  %853 = vmatpush.msra.mxu3 %v5215_v4  ;;  %v5661_v7 = vld [vmem:[#allocation8 + $0x108] sm:$0xff]  ;;  %v5667_v4 = vld [vmem:[#allocation8 + $0xe0] sm:$0xff] }
  0x93   :  { %612 = vmatpush.msra.mxu2 %v5653_v37  ;;  %573 = vmatpush.msra.mxu0 %v5659_v2 }
  0x94   :  { %813 = vmatpush.msra.mxu1 %v5222_v10  ;;  %854 = vmatpush.msra.mxu3 %v5220_v8  ;;  %v5669_v10 = vld [vmem:[#allocation8 + $0xe8] sm:$0xff]  ;;  %v5675_v8 = vld [vmem:[#allocation8 + $0xc0] sm:$0xff] }
  0x95   :  { %613 = vmatpush.msra.mxu2 %v5661_v7  ;;  %574 = vmatpush.msra.mxu0 %v5667_v4 }
  0x96   :  { %814 = vmatpush.msra.mxu1 %v5228_v14  ;;  %855 = vmatpush.msra.mxu3 %v5225_v12  ;;  %v5677_v14 = vld [vmem:[#allocation8 + $0xc8] sm:$0xff]  ;;  %v5683_v12 = vld [vmem:[#allocation8 + $0xa0] sm:$0xff] }
  0x97   :  { %614 = vmatpush.msra.mxu2 %v5669_v10  ;;  %575 = vmatpush.msra.mxu0 %v5675_v8 }
  0x98   :  { %815 = vmatpush.msra.mxu1 %v5234_v18  ;;  %856 = vmatpush.msra.mxu3 %v5231_v16  ;;  %v5685_v18 = vld [vmem:[#allocation8 + $0xa8] sm:$0xff]  ;;  %v5691_v16 = vld [vmem:[#allocation8 + $0x80] sm:$0xff] }
  0x99   :  { %615 = vmatpush.msra.mxu2 %v5677_v14  ;;  %576 = vmatpush.msra.mxu0 %v5683_v12 }
  0x9a   :  { %816 = vmatpush.msra.mxu1 %v5240_v22  ;;  %857 = vmatpush.msra.mxu3 %v5237_v20  ;;  %v5693_v22 = vld [vmem:[#allocation8 + $0x88] sm:$0xff]  ;;  %v5699_v20 = vld [vmem:[#allocation8 + $0x60] sm:$0xff] }
  0x9b   :  { %616 = vmatpush.msra.mxu2 %v5685_v18  ;;  %577 = vmatpush.msra.mxu0 %v5691_v16 }
  0x9c   :  { %817 = vmatpush.msra.mxu1 %v5246_v26  ;;  %858 = vmatpush.msra.mxu3 %v5243_v24  ;;  %v5701_v26 = vld [vmem:[#allocation8 + $0x68] sm:$0xff]  ;;  %v5707_v24 = vld [vmem:[#allocation8 + $0x40] sm:$0xff] }
  0x9d   :  { %617 = vmatpush.msra.mxu2 %v5693_v22  ;;  %10388 = vst [vmem:[#allocation91_spill] sm:$0xff] %v5701_v26  ;;  %578 = vmatpush.msra.mxu0 %v5699_v20 }
  0x9e   :  { %818 = vmatpush.msra.mxu1 %v5252_v30  ;;  %859 = vmatpush.msra.mxu3 %v5249_v28  ;;  %10389 = vst [vmem:[#allocation92_spill] sm:$0xff] %v5707_v24  ;;  %v5709_v30 = vld [vmem:[#allocation8 + $0x48] sm:$0xff]  ;;  %v5716_v28 = vld [vmem:[%s9603_s2] sm:$0xf] }
  0x9f   :  { %618 = vmatpush.msra.mxu2 %v5701_v26  ;;  %10390 = vst [vmem:[#allocation93_spill] sm:$0xff] %v5709_v30  ;;  %579 = vmatpush.msra.mxu0 %v5707_v24 }
  0xa0   :  { %819 = vmatpush.msra.mxu1 %v5258_v34  ;;  %860 = vmatpush.msra.mxu3 %v5255_v32  ;;  %v5720_v34 = vld [vmem:[#allocation8 + $0x20] sm:$0xff]  ;;  %v5722_v32 = vld [vmem:[#allocation8 + $0x28] sm:$0xff] }
  0xa1   :  { %619 = vmatpush.msra.mxu2 %v5709_v30  ;;  %10391 = vst [vmem:[#allocation94_spill] sm:$0xff] %v5720_v34  ;;  %580 = vmatpush.msra.mxu0 %v5720_v34  ;;  %v5730_v30 = vld [vmem:[#allocation8 + $0x8] sm:$0xff]  ;;  %v5740_v34 = vld [vmem:[#allocation8 + $0x1f0] sm:$0xff] }
  0xa2   :  { %820 = vmatpush.msra.mxu1 %v5264_v38  ;;  %861 = vmatpush.msra.mxu3 %v5261_v36  ;;  %10392 = vst [vmem:[#allocation95_spill] sm:$0xff] %v5722_v32  ;;  %v5728_v38 = vld [vmem:[#allocation8] sm:$0xff]  ;;  %v5736_v36 = vperm.slane %v5716_v28, 1 }
  0xa3   :  { %620 = vmatpush.msra.mxu2 %v5722_v32  ;;  %10393 = vst [vmem:[#allocation96_spill] sm:$0xff] %v5728_v38  ;;  %581 = vmatpush.msra.mxu0 %v5728_v38  ;;  %v5742_v32 = vld [vmem:[#allocation8 + $0x1f8] sm:$0xff] }
  0xa4   :  { %821 = vmatpush.msra.mxu1 %v5270_v42  ;;  %862 = vmatpush.msra.mxu3 %v5267_v40  ;;  %10394 = vst [vmem:[#allocation97_spill] sm:$0xff] %v5730_v30  ;;  %v5733_v42 = vperm.slane %v5716_v28, 0  ;;  %v5748_v40 = vld [vmem:[#allocation8 + $0x1d0] sm:$0xff] }
  0xa5   :  { %10396 = vst [vmem:[#allocation99_spill] sm:$0xff] %v5736_v36  ;;  %621 = vmatpush.msra.mxu2 %v5730_v30  ;;  %646 = vmatpush.msrb.mxu0 %v5740_v34 }
  0xa6   :  { %822 = vmatpush.msra.mxu1 %v5276_v46  ;;  %10395 = vst [vmem:[#allocation98_spill] sm:$0xff] %v5733_v42  ;;  %863 = vmatpush.msra.mxu3 %v5273_v44  ;;  %v5750_v46 = vld [vmem:[#allocation8 + $0x1d8] sm:$0xff]  ;;  %v5758_v44 = vld [vmem:[#allocation8 + $0x1b0] sm:$0xff] }
  0xa7   :  { %10397 = vst [vmem:[#allocation100_spill] sm:$0xff] %v5740_v34  ;;  %686 = vmatpush.msrb.mxu2 %v5742_v32  ;;  %647 = vmatpush.msrb.mxu0 %v5748_v40 }
  0xa8   :  { %10398 = vst [vmem:[#allocation101_spill] sm:$0xff] %v5742_v32  ;;  %823 = vmatpush.msra.mxu1 %v5282_v50  ;;  %864 = vmatpush.msra.mxu3 %v5279_v48  ;;  %v5760_v32 = vld [vmem:[#allocation8 + $0x1b8] sm:$0xff]  ;;  %v5766_v48 = vld [vmem:[#allocation8 + $0x190] sm:$0xff] }
  0xa9   :  { %687 = vmatpush.msrb.mxu2 %v5750_v46  ;;  %648 = vmatpush.msrb.mxu0 %v5758_v44 }
  0xaa   :  { %824 = vmatpush.msra.mxu1 %v5288_v54  ;;  %865 = vmatpush.msra.mxu3 %v5285_v52  ;;  %v5774_v52 = vld [vmem:[#allocation8 + $0x170] sm:$0xff] }
  0xab   :  { %688 = vmatpush.msrb.mxu2 %v5760_v32  ;;  %649 = vmatpush.msrb.mxu0 %v5766_v48 }
  0xac   :  { %825 = vmatpush.msra.mxu1 %v5294_v58  ;;  %866 = vmatpush.msra.mxu3 %v5291_v56  ;;  %v5776_v58 = vld [vmem:[#allocation8 + $0x178] sm:$0xff]  ;;  %v5782_v56 = vld [vmem:[#allocation8 + $0x150] sm:$0xff] }
  0xad   :  { %650 = vmatpush.msrb.mxu0 %v5774_v52  ;;  %682 = vmatmul.f32.vlgmr.msrb.gmra.mxu1 %v10320_v55 }
  0xae   :  { %826 = vmatpush.msra.mxu1 %v5301_v63  ;;  %867 = vmatpush.msra.mxu3 %v5297_v60  ;;  %v5784_v63 = vld [vmem:[#allocation8 + $0x158] sm:$0xff] }
  0xaf   :  { %722 = vmatmul.f32.vlgmr.msrb.gmra.mxu3 %v10320_v55  ;;  %v5792_v60 = vld [vmem:[#allocation8 + $0x138] sm:$0xff]  ;;  %651 = vmatpush.msrb.mxu0 %v5782_v56 }
  0xb0   :  { %827 = vmatpush.msra.mxu1 %v5306_v5  ;;  %932 = vmatpush.msrb.mxu3 %v5303_v0  ;;  %v5790_v5 = vld [vmem:[#allocation8 + $0x130] sm:$0xff]  ;;  %v5808_v55 = vld [vmem:[#allocation8 + $0xf8] sm:$0xff] }
  0xb1   :  { %652 = vmatpush.msrb.mxu0 %v5790_v5 }
  0xb2   :  { %892 = vmatpush.msrb.mxu1 %v5312_v13  ;;  %933 = vmatpush.msrb.mxu3 %v5308_v6  ;;  %v5806_v13 = vld [vmem:[#allocation8 + $0xf0] sm:$0xff] }
  0xb4   :  { %v400_v38 = vpop.f32.mrf.mxu2  ;;  %893 = vmatpush.msrb.mxu1 %v5323_v23  ;;  %934 = vmatpush.msrb.mxu3 %v5314_v15  ;;  %v5820_v15 = vld [vmem:[#allocation8 + $0xd8] sm:$0xff] }
  0xb5   :  { %v401_v50 = vadd.f32 %v400_v38, %v5736_v36 }
  0xb6   :  { %v360_v24 = vpop.f32.mrf.mxu0  ;;  %v420_v34 = vpop.f32.mrf.mxu3  ;;  %894 = vmatpush.msrb.mxu1 %v5331_v31  ;;  %935 = vmatpush.msrb.mxu3 %v5327_v27  ;;  %v5818_v31 = vld [vmem:[#allocation8 + $0xd0] sm:$0xff] }
  0xb7   :  { %v361_v30 = vadd.f32 %v360_v24, %v5733_v42  ;;  %v421_v26 = vadd.f32 %v420_v34, %v401_v50  ;;  %v5768_v24 = vld [vmem:[#allocation8 + $0x198] sm:$0xff]  ;;  %v5828_v50 = vld [vmem:[#allocation8 + $0xb0] sm:$0xff] }
  0xb8   :  { %v380_v54 = vpop.f32.mrf.mxu1  ;;  %689 = vmatpush.msrb.mxu2 %v5768_v24  ;;  %895 = vmatpush.msrb.mxu1 %v5337_v41  ;;  %10399 = vst [vmem:[#allocation102_spill] sm:$0xff] %v5828_v50  ;;  %v5830_v41 = vld [vmem:[#allocation8 + $0xb8] sm:$0xff]  ;;  %v5836_v27 = vld [vmem:[#allocation8 + $0x90] sm:$0xff] }
  0xb9   :  { %v381_v38 = vadd.f32 %v380_v54, %v361_v30  ;;  %v3960_v36 = vmul.f32 -1.442695, %v421_v26  ;;  %v5798_v26 = vld [vmem:[#allocation8 + $0x110] sm:$0xff]  ;;  %v5800_v30 = vld [vmem:[#allocation8 + $0x118] sm:$0xff]  ;;  %936 = vmatpush.msrb.mxu3 %v5334_v35  ;;  %10400 = vst [vmem:[#allocation103_spill] sm:$0xff] %v5830_v41 }
  0xba   :  { %690 = vmatpush.msrb.mxu2 %v5776_v58  ;;  %653 = vmatpush.msrb.mxu0 %v5798_v26  ;;  %10401 = vst [vmem:[#allocation104_spill] sm:$0xff] %v5836_v27  ;;  %v5838_v54 = vld [vmem:[#allocation8 + $0x98] sm:$0xff]  ;;  %v5844_v35 = vld [vmem:[#allocation8 + $0x70] sm:$0xff] }
  0xbb   :  { %v3959_v34 = vmul.f32 -1.442695, %v381_v38  ;;  %4026 = vpow2.f32 %v3960_v36  ;;  %896 = vmatpush.msrb.mxu1 %v5343_v49  ;;  %937 = vmatpush.msrb.mxu3 %v5340_v45  ;;  %10402 = vst [vmem:[#allocation105_spill] sm:$0xff] %v5838_v54  ;;  %v5846_v49 = vld [vmem:[#allocation8 + $0x78] sm:$0xff] }
  0xbc   :  { %691 = vmatpush.msrb.mxu2 %v5784_v63  ;;  %654 = vmatpush.msrb.mxu0 %v5806_v13  ;;  %10403 = vst [vmem:[#allocation106_spill] sm:$0xff] %v5844_v35 }
  0xbd   :  { %4028 = vpow2.f32 %v3959_v34  ;;  %897 = vmatpush.msrb.mxu1 %v5351_v57  ;;  %938 = vmatpush.msrb.mxu3 %v5346_v53  ;;  %10404 = vst [vmem:[#allocation107_spill] sm:$0xff] %v5846_v49  ;;  %v5857_v34 = vperm.slane %v5716_v28, 2  ;;  %v5860_v53 = vperm.slane %v5716_v28, 3  ;;  %v5874_v28 = vld [vmem:[#allocation8 + $0x30] sm:$0xff] }
  0xbe   :  { %692 = vmatpush.msrb.mxu2 %v5792_v60  ;;  %655 = vmatpush.msrb.mxu0 %v5818_v31 }
  0xbf   :  { %898 = vmatpush.msrb.mxu1 %v5357_v1  ;;  %10405 = vst [vmem:[#allocation108_spill] sm:$0xff] %v5857_v34  ;;  %939 = vmatpush.msrb.mxu3 %v5354_v61  ;;  %v5864_v1 = vld [vmem:[#allocation8 + $0x50] sm:$0xff] }
  0xc0   :  { %693 = vmatpush.msrb.mxu2 %v5800_v30  ;;  %656 = vmatpush.msrb.mxu0 %v5828_v50  ;;  %10406 = vst [vmem:[#allocation109_spill] sm:$0xff] %v5860_v53 }
  0xc1   :  { %v4027_v0 = vpop.eup %4026  ;;  %899 = vmatpush.msrb.mxu1 %v5363_v17  ;;  %940 = vmatpush.msrb.mxu3 %v5360_v9  ;;  %v5876_v17 = vld [vmem:[#allocation8 + $0x38] sm:$0xff]  ;;  %v5884_v9 = vld [vmem:[#allocation8 + $0x10] sm:$0xff] }
  0xc2   :  { %v5810_v36 = vadd.f32 1.0, %v4027_v0  ;;  %694 = vmatpush.msrb.mxu2 %v5808_v55  ;;  %657 = vmatpush.msrb.mxu0 %v5836_v27  ;;  %v5866_v0 = vld [vmem:[#allocation8 + $0x58] sm:$0xff] }
  0xc3   :  { %v4029_v23 = vpop.eup %4028  ;;  %10407 = vst [vmem:[#allocation110_spill] sm:$0xff] %v5866_v0  ;;  %900 = vmatpush.msrb.mxu1 %v5369_v33  ;;  %v10408_v33 = vld [vmem:[#allocation12_spill] sm:$0xff] }
  0xc4   :  { %v5814_v6 = vadd.f32 1.0, %v4029_v23  ;;  %4030 = vrcp.f32 %v5810_v36  ;;  %695 = vmatpush.msrb.mxu2 %v5820_v15  ;;  %658 = vmatpush.msrb.mxu0 %v5844_v35  ;;  %vm531_vm0 = vweird.f32 %v5810_v36 }
  0xc5   :  { %901 = vmatpush.msrb.mxu1 %v5375_v51  ;;  %941 = vmatpush.msrb.mxu3 %v10408_v33 }
  0xc6   :  { %4032 = vrcp.f32 %v5814_v6  ;;  %696 = vmatpush.msrb.mxu2 %v5830_v41  ;;  %659 = vmatpush.msrb.mxu0 %v5864_v1  ;;  %vm512_vm2 = vweird.f32 %v5814_v6 }
  0xc8   :  { %697 = vmatpush.msrb.mxu2 %v5838_v54  ;;  %660 = vmatpush.msrb.mxu0 %v5874_v28 }
  0xca   :  { %v5848_v38 = vpop.eup %4030  ;;  %698 = vmatpush.msrb.mxu2 %v5846_v49  ;;  %v5886_v49 = vld [vmem:[#allocation8 + $0x18] sm:$0xff]  ;;  %661 = vmatpush.msrb.mxu0 %v5884_v9 }
  0xcb   :  { %v527_v57 = vmul.f32 %v5848_v38, %v5810_v36  ;;  %10409 = vst [vmem:[#allocation12_spill] sm:$0xff] %v5886_v49  ;;  %vm532_vm1 = vweird.f32 %v5848_v38 }
  0xcc   :  { %v5852_v45 = vpop.eup %4032  ;;  %v440_v42 = vpop.f32.mrf.mxu0  ;;  %699 = vmatpush.msrb.mxu2 %v5866_v0  ;;  %v10410_v0 = vld [vmem:[#allocation15_spill] sm:$0xff]  ;;  %vm5911_vm4 = vmor %vm531_vm0, %vm532_vm1 }
  0xcd   :  { %v508_v23 = vmul.f32 %v5852_v45, %v5814_v6  ;;  %v528_v54 = vsub.f32 1.0, %v527_v57  ;;  %v441_v41 = vadd.f32 %v440_v42, %v5857_v34  ;;  %902 = vmatpush.msrb.mxu1 %v10410_v0  ;;  %v10411_v42 = vld [vmem:[#allocation13_spill] sm:$0xff]  ;;  %vm513_vm3 = vweird.f32 %v5852_v45 }
  0xce   :  { %v460_v50 = vpop.f32.mrf.mxu1  ;;  %700 = vmatpush.msrb.mxu2 %v5876_v17  ;;  %942 = vmatpush.msrb.mxu3 %v10411_v42  ;;  %v518_v0 = vand.u32 2147483648, %v5814_v6  ;;  %vm5916_vm5 = vmor %vm512_vm2, %vm513_vm3  ;;  %v10419_v42 = vld [vmem:[#allocation17_spill] sm:$0xff] }
  0xcf   :  { %v509_v61 = vsub.f32 1.0, %v508_v23  ;;  %v461_v33 = vadd.f32 %v460_v50, %v441_v41  ;;  %903 = vmatpush.msrb.mxu1 %v5387_v39  ;;  %v516_v41 = vand.u32 2147483647, %v5814_v6 }
  0xd0   :  { %v480_v27 = vpop.f32.mrf.mxu2  ;;  %701 = vmatpush.msrb.mxu2 %v5886_v49 }
  0xd1   :  { %v481_v35 = vadd.f32 %v480_v27, %v5860_v53  ;;  %v529_v27 = vmul.f32 %v5848_v38, %v528_v54  ;;  %v510_v51 = vmul.f32 %v5852_v45, %v509_v61  ;;  %v537_v54 = vand.u32 2147483648, %v5810_v36  ;;  %904 = vmatpush.msrb.mxu1 %v5393_v25  ;;  %v10413_v61 = vld [vmem:[#allocation16_spill] sm:$0xff]  ;;  %v10418_v25 = vld [vmem:[#allocation19_spill] sm:$0xff] }
  0xd2   :  { %v500_v23 = vpop.f32.mrf.mxu3  ;;  %vm517_vm6 = vcmp.eq.f32.partialorder %v516_v41, 8.507059e+37 }
  0xd3   :  { %v501_v57 = vadd.f32 %v500_v23, %v481_v35  ;;  %v10412_v35 = vld [vmem:[#allocation14_spill] sm:$0xff]  ;;  %v511_v50 = vadd.f32 %v5852_v45, %v510_v51  ;;  %v530_v39 = vadd.f32 %v5848_v38, %v529_v27  ;;  %905 = vmatpush.msrb.mxu1 %v10418_v25  ;;  %v538_v6 = vor.u32 1.1754944e-38, %v537_v54  ;;  %v10420_v27 = vld [vmem:[#allocation21_spill] sm:$0xff]  ;;  %v10422_v25 = vld [vmem:[#allocation23_spill] sm:$0xff] }
  0xd4   :  { %943 = vmatpush.msrb.mxu3 %v10412_v35  ;;  %v519_v51 = vor.u32 1.1754944e-38, %v518_v0  ;;  %v10421_v35 = vld [vmem:[#allocation18_spill] sm:$0xff] }
  0xd5   :  { %v3961_v53 = vmul.f32 -1.442695, %v501_v57  ;;  %v535_v57 = vand.u32 2147483647, %v5810_v36  ;;  %906 = vmatpush.msrb.mxu1 %v10420_v27  ;;  %v534_v36 = vsel %vm5911_vm4, %v5848_v38, %v530_v39 }
  0xd6   :  { %944 = vmatpush.msrb.mxu3 %v10413_v61  ;;  %v515_v61 = vsel %vm5916_vm5, %v5852_v45, %v511_v50 }
  0xd7   :  { %4034 = vpow2.f32 %v3961_v53  ;;  %vm536_vm7 = vcmp.eq.f32.partialorder %v535_v57, 8.507059e+37  ;;  %907 = vmatpush.msrb.mxu1 %v10422_v25  ;;  %v520_v27 = vsel %vm517_vm6, %v519_v51, %v515_v61  ;;  %v5941_v25 = vld [vmem:[#allocation6 + $0x1c0] sm:$0xff] }
  0xd8   :  { %4036 = vtanh.f32 %v461_v33  ;;  %945 = vmatpush.msrb.mxu3 %v10419_v42  ;;  %v10423_v42 = vld [vmem:[#allocation20_spill] sm:$0xff]  ;;  %v539_v34 = vsel %vm536_vm7, %v538_v6, %v534_v36  ;;  %v5938_v36 = vld [vmem:[#allocation6 + $0x1e8] sm:$0xff] }
  0xda   :  { %946 = vmatpush.msrb.mxu3 %v10421_v35  ;;  %v561_v35 = vmul.f32 0.0, %v539_v34 }
  0xdc   :  { %947 = vmatpush.msrb.mxu3 %v10423_v42  ;;  %v10424_v42 = vld [vmem:[#allocation25_spill] sm:$0xff] }
  0xdd   :  { %v4035_v33 = vpop.eup %4034 }
  0xde   :  { %v545_v54 = vadd.f32 1.0, %v4035_v33  ;;  %v4037_v0 = vpop.eup %4036 }
  0xdf   :  { %v562_v49 = vmul.f32 %v4037_v0, %v520_v27  ;;  %v10425_v0 = vld [vmem:[#allocation22_spill] sm:$0xff]  ;;  %v5949_v27 = vld [vmem:[#allocation6 + $0x1a0] sm:$0xff] }
  0xe0   :  { %4038 = vrcp.f32 %v545_v54  ;;  %v557_v38 = vand.u32 2147483648, %v545_v54  ;;  %v555_v23 = vand.u32 2147483647, %v545_v54  ;;  %vm551_vm9 = vweird.f32 %v545_v54 }
  0xe1   :  { %v5932_v45 = vadd.f32 %v562_v49, %v561_v35  ;;  %v5935_v49 = vld [vmem:[#allocation6 + $0x1e0] sm:$0xff]  ;;  %v10426_v35 = vld [vmem:[#allocation27_spill] sm:$0xff] }
  0xe2   :  { %v558_v33 = vor.u32 1.1754944e-38, %v557_v38  ;;  %vm556_vm11 = vcmp.eq.f32.partialorder %v555_v23, 8.507059e+37  ;;  %v10428_v38 = vld [vmem:[#allocation29_spill] sm:$0xff]  ;;  %v5964_v23 = vld [vmem:[#allocation6 + $0x160] sm:$0xff] }
  0xe3   :  { %4040 = vtanh.f32 %v5932_v45 }
  0xe6   :  { %v4039_v53 = vpop.eup %4038 }
  0xe7   :  { %v547_v50 = vmul.f32 %v4039_v53, %v545_v54  ;;  %vm552_vm8 = vweird.f32 %v4039_v53  ;;  %v5945_v54 = vld [vmem:[#allocation6 + $0x1c8] sm:$0xff] }
  0xe8   :  { %vm553_vm10 = vmor %vm551_vm9, %vm552_vm8 }
  0xe9   :  { %v548_v41 = vsub.f32 1.0, %v547_v50  ;;  %v4041_v6 = vpop.eup %4040  ;;  %v10427_v50 = vld [vmem:[#allocation24_spill] sm:$0xff] }
  0xeb   :  { %v549_v39 = vmul.f32 %v4039_v53, %v548_v41  ;;  %v5957_v41 = vld [vmem:[#allocation6 + $0x180] sm:$0xff] }
  0xed   :  { %v550_v57 = vadd.f32 %v4039_v53, %v549_v39  ;;  %v5961_v39 = vld [vmem:[#allocation6 + $0x188] sm:$0xff] }
  0xef   :  { %v554_v51 = vsel %vm553_vm10, %v4039_v53, %v550_v57  ;;  %v5953_v53 = vld [vmem:[#allocation6 + $0x1a8] sm:$0xff] }
  0xf0   :  { %v559_v34 = vsel %vm556_vm11, %v558_v33, %v554_v51  ;;  %v5967_v57 = vld [vmem:[#allocation6 + $0x168] sm:$0xff]  ;;  %v5970_v33 = vld [vmem:[#allocation6 + $0x140] sm:$0xff] }
  0xf1   :  { %v565_v61 = vmul.f32 %v4041_v6, %v559_v34  ;;  %v5973_v51 = vld [vmem:[#allocation6 + $0x148] sm:$0xff]  ;;  %v10429_v6 = vld [vmem:[#allocation26_spill] sm:$0xff]  ;;  %v5977_v34 = vld [vmem:[#allocation6 + $0x120] sm:$0xff] }
  0xf2   :  { %10430 = vst [vmem:[#allocation15_spill] sm:$0xff] %v5977_v34 }
  0xf3   :  { %582 = vmatmul.f32.vlgmr.msra.gmra.mxu0 %v565_v61  ;;  %622 = vmatmul.f32.vlgmr.msra.gmra.mxu2 %v565_v61 }
  0xf4   :  { %792 = vmatpush.msra.mxu0 %v5935_v49  ;;  %828 = vmatmul.f32.vlgmr.msra.gmra.mxu1 %v565_v61 }
  0xf5   :  { %832 = vmatpush.msra.mxu2 %v5938_v36  ;;  %868 = vmatmul.f32.vlgmr.msra.gmra.mxu3 %v565_v61 }
  0xf6   :  { %793 = vmatpush.msra.mxu0 %v5941_v25  ;;  %1035 = vmatpush.msra.mxu1 %v10424_v42  ;;  %v10431_v42 = vld [vmem:[#allocation31_spill] sm:$0xff] }
  0xf7   :  { %833 = vmatpush.msra.mxu2 %v5945_v54  ;;  %1075 = vmatpush.msra.mxu3 %v10425_v0  ;;  %v5981_v0 = vld [vmem:[#allocation6 + $0x128] sm:$0xff] }
  0xf8   :  { %794 = vmatpush.msra.mxu0 %v5949_v27  ;;  %1036 = vmatpush.msra.mxu1 %v10426_v35  ;;  %10432 = vst [vmem:[#allocation13_spill] sm:$0xff] %v5981_v0  ;;  %v5985_v35 = vld [vmem:[#allocation6 + $0x100] sm:$0xff] }
  0xf9   :  { %834 = vmatpush.msra.mxu2 %v5953_v53  ;;  %1076 = vmatpush.msra.mxu3 %v10427_v50  ;;  %10434 = vst [vmem:[#allocation14_spill] sm:$0xff] %v5985_v35  ;;  %v10435_v50 = vld [vmem:[#allocation33_spill] sm:$0xff] }
  0xfa   :  { %795 = vmatpush.msra.mxu0 %v5957_v41  ;;  %1037 = vmatpush.msra.mxu1 %v10428_v38  ;;  %v5989_v38 = vld [vmem:[#allocation6 + $0x108] sm:$0xff] }
  0xfb   :  { %835 = vmatpush.msra.mxu2 %v5961_v39  ;;  %662 = vmatmul.f32.vlgmr.msrb.gmra.mxu0 %v565_v61  ;;  %10436 = vst [vmem:[#allocation16_spill] sm:$0xff] %v5989_v38 }
  0xfc   :  { %702 = vmatmul.f32.vlgmr.msrb.gmra.mxu2 %v565_v61  ;;  %796 = vmatpush.msra.mxu0 %v5964_v23 }
  0xfd   :  { %836 = vmatpush.msra.mxu2 %v5967_v57  ;;  %908 = vmatmul.f32.vlgmr.msrb.gmra.mxu1 %v565_v61 }
  0xfe   :  { %948 = vmatmul.f32.vlgmr.msrb.gmra.mxu3 %v565_v61  ;;  %797 = vmatpush.msra.mxu0 %v5970_v33  ;;  %v10433_v61 = vld [vmem:[#allocation28_spill] sm:$0xff] }
  0xff   :  { %837 = vmatpush.msra.mxu2 %v5973_v51  ;;  %1077 = vmatpush.msra.mxu3 %v10429_v6  ;;  %v10437_v6 = vld [vmem:[#allocation30_spill] sm:$0xff] }
 0x100   :  { %798 = vmatpush.msra.mxu0 %v5977_v34  ;;  %1038 = vmatpush.msra.mxu1 %v10431_v42  ;;  %v5993_v34 = vld [vmem:[#allocation6 + $0xe0] sm:$0xff]  ;;  %v10439_v42 = vld [vmem:[#allocation35_spill] sm:$0xff] }
 0x101   :  { %838 = vmatpush.msra.mxu2 %v5981_v0  ;;  %1078 = vmatpush.msra.mxu3 %v10433_v61  ;;  %10438 = vst [vmem:[#allocation19_spill] sm:$0xff] %v5993_v34  ;;  %v5997_v0 = vld [vmem:[#allocation6 + $0xe8] sm:$0xff]  ;;  %v10441_v61 = vld [vmem:[#allocation32_spill] sm:$0xff] }
 0x102   :  { %799 = vmatpush.msra.mxu0 %v5985_v35  ;;  %1039 = vmatpush.msra.mxu1 %v10435_v50  ;;  %10440 = vst [vmem:[#allocation17_spill] sm:$0xff] %v5997_v0  ;;  %v6001_v35 = vld [vmem:[#allocation6 + $0xc0] sm:$0xff]  ;;  %v10443_v50 = vld [vmem:[#allocation37_spill] sm:$0xff] }
 0x103   :  { %839 = vmatpush.msra.mxu2 %v5989_v38  ;;  %1079 = vmatpush.msra.mxu3 %v10437_v6  ;;  %10442 = vst [vmem:[#allocation21_spill] sm:$0xff] %v6001_v35  ;;  %v6005_v38 = vld [vmem:[#allocation6 + $0xc8] sm:$0xff]  ;;  %v10445_v6 = vld [vmem:[#allocation34_spill] sm:$0xff] }
 0x104   :  { %800 = vmatpush.msra.mxu0 %v5993_v34  ;;  %1040 = vmatpush.msra.mxu1 %v10439_v42  ;;  %10444 = vst [vmem:[#allocation18_spill] sm:$0xff] %v6005_v38  ;;  %v6009_v34 = vld [vmem:[#allocation6 + $0xa0] sm:$0xff]  ;;  %v10447_v42 = vld [vmem:[#allocation39_spill] sm:$0xff] }
 0x105   :  { %840 = vmatpush.msra.mxu2 %v5997_v0  ;;  %1080 = vmatpush.msra.mxu3 %v10441_v61  ;;  %10446 = vst [vmem:[#allocation23_spill] sm:$0xff] %v6009_v34  ;;  %v6013_v0 = vld [vmem:[#allocation6 + $0xa8] sm:$0xff]  ;;  %v10449_v61 = vld [vmem:[#allocation36_spill] sm:$0xff] }
 0x106   :  { %801 = vmatpush.msra.mxu0 %v6001_v35  ;;  %1041 = vmatpush.msra.mxu1 %v10443_v50  ;;  %10448 = vst [vmem:[#allocation20_spill] sm:$0xff] %v6013_v0  ;;  %v6017_v35 = vld [vmem:[#allocation6 + $0x80] sm:$0xff]  ;;  %v10451_v50 = vld [vmem:[#allocation41_spill] sm:$0xff] }
 0x107   :  { %841 = vmatpush.msra.mxu2 %v6005_v38  ;;  %1081 = vmatpush.msra.mxu3 %v10445_v6  ;;  %10450 = vst [vmem:[#allocation25_spill] sm:$0xff] %v6017_v35  ;;  %v6021_v38 = vld [vmem:[#allocation6 + $0x88] sm:$0xff]  ;;  %v10453_v6 = vld [vmem:[#allocation38_spill] sm:$0xff] }
 0x108   :  { %802 = vmatpush.msra.mxu0 %v6009_v34  ;;  %1042 = vmatpush.msra.mxu1 %v10447_v42  ;;  %10452 = vst [vmem:[#allocation22_spill] sm:$0xff] %v6021_v38  ;;  %v6025_v34 = vld [vmem:[#allocation6 + $0x60] sm:$0xff]  ;;  %v10455_v42 = vld [vmem:[#allocation43_spill] sm:$0xff] }
 0x109   :  { %842 = vmatpush.msra.mxu2 %v6013_v0  ;;  %1082 = vmatpush.msra.mxu3 %v10449_v61  ;;  %10454 = vst [vmem:[#allocation27_spill] sm:$0xff] %v6025_v34  ;;  %v6029_v0 = vld [vmem:[#allocation6 + $0x68] sm:$0xff]  ;;  %v10457_v61 = vld [vmem:[#allocation40_spill] sm:$0xff] }
 0x10a   :  { %803 = vmatpush.msra.mxu0 %v6017_v35  ;;  %1043 = vmatpush.msra.mxu1 %v10451_v50  ;;  %10456 = vst [vmem:[#allocation24_spill] sm:$0xff] %v6029_v0  ;;  %v6033_v35 = vld [vmem:[#allocation6 + $0x40] sm:$0xff]  ;;  %v10459_v50 = vld [vmem:[#allocation45_spill] sm:$0xff] }
 0x10b   :  { %843 = vmatpush.msra.mxu2 %v6021_v38  ;;  %1083 = vmatpush.msra.mxu3 %v10453_v6  ;;  %10458 = vst [vmem:[#allocation29_spill] sm:$0xff] %v6033_v35  ;;  %v6037_v38 = vld [vmem:[#allocation6 + $0x48] sm:$0xff]  ;;  %v10461_v6 = vld [vmem:[#allocation42_spill] sm:$0xff] }
 0x10c   :  { %804 = vmatpush.msra.mxu0 %v6025_v34  ;;  %1044 = vmatpush.msra.mxu1 %v10455_v42  ;;  %10460 = vst [vmem:[#allocation26_spill] sm:$0xff] %v6037_v38  ;;  %v6041_v34 = vld [vmem:[#allocation6 + $0x20] sm:$0xff]  ;;  %v6047_v42 = vld [vmem:[%s9601_s0 + $0x8] sm:$0xff] }
 0x10d   :  { %844 = vmatpush.msra.mxu2 %v6029_v0  ;;  %1084 = vmatpush.msra.mxu3 %v10457_v61  ;;  %10462 = vst [vmem:[#allocation31_spill] sm:$0xff] %v6041_v34  ;;  %v10463_v61 = vld [vmem:[#allocation47_spill] sm:$0xff]  ;;  %v6078_v0 = vld [vmem:[#allocation6 + $0x1b0] sm:$0xff] }
 0x10e   :  { %805 = vmatpush.msra.mxu0 %v6033_v35  ;;  %1045 = vmatpush.msra.mxu1 %v10459_v50  ;;  %v6050_v35 = vld [vmem:[#allocation6 + $0x28] sm:$0xff]  ;;  %v10465_v50 = vld [vmem:[#allocation44_spill] sm:$0xff]  ;;  %10475 = vst [vmem:[#allocation39_spill] sm:$0xff] %v6078_v0 }
 0x10f   :  { %845 = vmatpush.msra.mxu2 %v6037_v38  ;;  %1085 = vmatpush.msra.mxu3 %v10461_v6  ;;  %10464 = vst [vmem:[#allocation28_spill] sm:$0xff] %v6050_v35  ;;  %v6054_v38 = vld [vmem:[#allocation6] sm:$0xff]  ;;  %v10467_v6 = vld [vmem:[#allocation49_spill] sm:$0xff] }
 0x110   :  { %806 = vmatpush.msra.mxu0 %v6041_v34  ;;  %1046 = vmatpush.msra.mxu1 %v10463_v61  ;;  %10466 = vst [vmem:[#allocation33_spill] sm:$0xff] %v6054_v38  ;;  %v6058_v34 = vld [vmem:[#allocation6 + $0x8] sm:$0xff]  ;;  %v6063_v61 = vld [vmem:[#allocation6 + $0x1f0] sm:$0xff] }
 0x111   :  { %846 = vmatpush.msra.mxu2 %v6050_v35  ;;  %1086 = vmatpush.msra.mxu3 %v10465_v50  ;;  %10468 = vst [vmem:[#allocation30_spill] sm:$0xff] %v6058_v34  ;;  %v6066_v35 = vld [vmem:[#allocation6 + $0x1f8] sm:$0xff]  ;;  %v10471_v50 = vld [vmem:[#allocation46_spill] sm:$0xff] }
 0x112   :  { %807 = vmatpush.msra.mxu0 %v6054_v38  ;;  %1047 = vmatpush.msra.mxu1 %v10467_v6  ;;  %10469 = vst [vmem:[#allocation35_spill] sm:$0xff] %v6063_v61  ;;  %v6070_v38 = vld [vmem:[#allocation6 + $0x1d0] sm:$0xff]  ;;  %v6074_v6 = vld [vmem:[#allocation6 + $0x1d8] sm:$0xff] }
 0x113   :  { %847 = vmatpush.msra.mxu2 %v6058_v34  ;;  %808 = vmatmul.f32.vlgmr.msra.gmra.mxu0 %v6047_v42  ;;  %10470 = vst [vmem:[#allocation32_spill] sm:$0xff] %v6066_v35  ;;  %v10474_v34 = vld [vmem:[#allocation48_spill] sm:$0xff] }
 0x114   :  { %848 = vmatmul.f32.vlgmr.msra.gmra.mxu2 %v6047_v42  ;;  %872 = vmatpush.msrb.mxu0 %v6063_v61  ;;  %10472 = vst [vmem:[#allocation37_spill] sm:$0xff] %v6070_v38  ;;  %v10476_v61 = vld [vmem:[#allocation56_spill] sm:$0xff] }
 0x115   :  { %912 = vmatpush.msrb.mxu2 %v6066_v35  ;;  %1087 = vmatpush.msra.mxu3 %v10471_v50  ;;  %10473 = vst [vmem:[#allocation34_spill] sm:$0xff] %v6074_v6  ;;  %v6082_v35 = vld [vmem:[#allocation6 + $0x1b8] sm:$0xff]  ;;  %v10478_v50 = vld [vmem:[#allocation52_spill] sm:$0xff] }
 0x116   :  { %873 = vmatpush.msrb.mxu0 %v6070_v38  ;;  %1048 = vmatpush.msra.mxu1 %v5503_v62  ;;  %10477 = vst [vmem:[#allocation36_spill] sm:$0xff] %v6082_v35  ;;  %v6086_v38 = vld [vmem:[#allocation6 + $0x190] sm:$0xff] }
 0x117   :  { %913 = vmatpush.msrb.mxu2 %v6074_v6  ;;  %1088 = vmatpush.msra.mxu3 %v10474_v34  ;;  %10479 = vst [vmem:[#allocation41_spill] sm:$0xff] %v6086_v38  ;;  %v10480_v62 = vld [vmem:[#allocation58_spill] sm:$0xff]  ;;  %v6090_v6 = vld [vmem:[#allocation6 + $0x198] sm:$0xff] }
 0x118   :  { %874 = vmatpush.msrb.mxu0 %v6078_v0  ;;  %1049 = vmatpush.msra.mxu1 %v10476_v61  ;;  %10481 = vst [vmem:[#allocation38_spill] sm:$0xff] %v6090_v6  ;;  %v10482_v34 = vld [vmem:[#allocation55_spill] sm:$0xff]  ;;  %v6094_v0 = vld [vmem:[#allocation6 + $0x170] sm:$0xff]  ;;  %v10484_v61 = vld [vmem:[#allocation60_spill] sm:$0xff] }
 0x119   :  { %914 = vmatpush.msrb.mxu2 %v6082_v35  ;;  %1089 = vmatpush.msra.mxu3 %v10478_v50  ;;  %10483 = vst [vmem:[#allocation43_spill] sm:$0xff] %v6094_v0  ;;  %v6098_v35 = vld [vmem:[#allocation6 + $0x178] sm:$0xff]  ;;  %v10486_v50 = vld [vmem:[#allocation57_spill] sm:$0xff] }
 0x11a   :  { %875 = vmatpush.msrb.mxu0 %v6086_v38  ;;  %1050 = vmatpush.msra.mxu1 %v10480_v62  ;;  %10485 = vst [vmem:[#allocation40_spill] sm:$0xff] %v6098_v35  ;;  %v6102_v38 = vld [vmem:[#allocation6 + $0x150] sm:$0xff] }
 0x11b   :  { %915 = vmatpush.msrb.mxu2 %v6090_v6  ;;  %1090 = vmatpush.msra.mxu3 %v10482_v34  ;;  %10487 = vst [vmem:[#allocation45_spill] sm:$0xff] %v6102_v38  ;;  %v10488_v62 = vld [vmem:[#allocation62_spill] sm:$0xff]  ;;  %v6106_v6 = vld [vmem:[#allocation6 + $0x158] sm:$0xff] }
 0x11c   :  { %876 = vmatpush.msrb.mxu0 %v6094_v0  ;;  %1115 = vmatpush.msrb.mxu1 %v10484_v61  ;;  %10489 = vst [vmem:[#allocation42_spill] sm:$0xff] %v6106_v6  ;;  %v10490_v34 = vld [vmem:[#allocation59_spill] sm:$0xff]  ;;  %v6110_v0 = vld [vmem:[#allocation6 + $0x130] sm:$0xff]  ;;  %v10492_v61 = vld [vmem:[#allocation64_spill] sm:$0xff] }
 0x11d   :  { %916 = vmatpush.msrb.mxu2 %v6098_v35  ;;  %1155 = vmatpush.msrb.mxu3 %v10486_v50  ;;  %10491 = vst [vmem:[#allocation47_spill] sm:$0xff] %v6110_v0  ;;  %v6114_v35 = vld [vmem:[#allocation6 + $0x138] sm:$0xff]  ;;  %v10494_v50 = vld [vmem:[#allocation61_spill] sm:$0xff] }
 0x11e   :  { %877 = vmatpush.msrb.mxu0 %v6102_v38  ;;  %1116 = vmatpush.msrb.mxu1 %v10488_v62  ;;  %10493 = vst [vmem:[#allocation44_spill] sm:$0xff] %v6114_v35  ;;  %v6118_v38 = vld [vmem:[#allocation6 + $0x110] sm:$0xff] }
 0x11f   :  { %917 = vmatpush.msrb.mxu2 %v6106_v6  ;;  %1156 = vmatpush.msrb.mxu3 %v10490_v34  ;;  %10495 = vst [vmem:[#allocation49_spill] sm:$0xff] %v6118_v38  ;;  %v10496_v62 = vld [vmem:[#allocation66_spill] sm:$0xff]  ;;  %v6122_v6 = vld [vmem:[#allocation6 + $0x118] sm:$0xff] }
 0x120   :  { %878 = vmatpush.msrb.mxu0 %v6110_v0  ;;  %1117 = vmatpush.msrb.mxu1 %v10492_v61  ;;  %10497 = vst [vmem:[#allocation46_spill] sm:$0xff] %v6122_v6  ;;  %v10498_v34 = vld [vmem:[#allocation63_spill] sm:$0xff]  ;;  %v6126_v0 = vld [vmem:[#allocation6 + $0xf0] sm:$0xff]  ;;  %v10500_v61 = vld [vmem:[#allocation68_spill] sm:$0xff] }
 0x121   :  { %918 = vmatpush.msrb.mxu2 %v6114_v35  ;;  %1157 = vmatpush.msrb.mxu3 %v10494_v50  ;;  %10499 = vst [vmem:[#allocation48_spill] sm:$0xff] %v6126_v0  ;;  %v6130_v35 = vld [vmem:[#allocation6 + $0xf8] sm:$0xff]  ;;  %v10502_v50 = vld [vmem:[#allocation65_spill] sm:$0xff] }
 0x122   :  { %879 = vmatpush.msrb.mxu0 %v6118_v38  ;;  %1118 = vmatpush.msrb.mxu1 %v10496_v62  ;;  %10501 = vst [vmem:[#allocation56_spill] sm:$0xff] %v6130_v35  ;;  %v6134_v38 = vld [vmem:[#allocation6 + $0xd0] sm:$0xff] }
 0x123   :  { %919 = vmatpush.msrb.mxu2 %v6122_v6  ;;  %1158 = vmatpush.msrb.mxu3 %v10498_v34  ;;  %10503 = vst [vmem:[#allocation52_spill] sm:$0xff] %v6134_v38  ;;  %v10504_v62 = vld [vmem:[#allocation70_spill] sm:$0xff]  ;;  %v6138_v6 = vld [vmem:[#allocation6 + $0xd8] sm:$0xff] }
 0x124   :  { %880 = vmatpush.msrb.mxu0 %v6126_v0  ;;  %1119 = vmatpush.msrb.mxu1 %v10500_v61  ;;  %10505 = vst [vmem:[#allocation58_spill] sm:$0xff] %v6138_v6  ;;  %v10506_v34 = vld [vmem:[#allocation67_spill] sm:$0xff]  ;;  %v6142_v0 = vld [vmem:[#allocation6 + $0xb0] sm:$0xff]  ;;  %v10508_v61 = vld [vmem:[#allocation72_spill] sm:$0xff] }
 0x125   :  { %920 = vmatpush.msrb.mxu2 %v6130_v35  ;;  %1159 = vmatpush.msrb.mxu3 %v10502_v50  ;;  %10507 = vst [vmem:[#allocation55_spill] sm:$0xff] %v6142_v0  ;;  %v6146_v35 = vld [vmem:[#allocation6 + $0xb8] sm:$0xff]  ;;  %v10510_v50 = vld [vmem:[#allocation69_spill] sm:$0xff] }
 0x126   :  { %881 = vmatpush.msrb.mxu0 %v6134_v38  ;;  %1120 = vmatpush.msrb.mxu1 %v10504_v62  ;;  %10509 = vst [vmem:[#allocation60_spill] sm:$0xff] %v6146_v35  ;;  %v6150_v38 = vld [vmem:[#allocation6 + $0x90] sm:$0xff] }
 0x127   :  { %921 = vmatpush.msrb.mxu2 %v6138_v6  ;;  %1160 = vmatpush.msrb.mxu3 %v10506_v34  ;;  %10511 = vst [vmem:[#allocation57_spill] sm:$0xff] %v6150_v38  ;;  %v10512_v62 = vld [vmem:[#allocation74_spill] sm:$0xff]  ;;  %v6154_v6 = vld [vmem:[#allocation6 + $0x98] sm:$0xff] }
 0x128   :  { %882 = vmatpush.msrb.mxu0 %v6142_v0  ;;  %1121 = vmatpush.msrb.mxu1 %v10508_v61  ;;  %10513 = vst [vmem:[#allocation62_spill] sm:$0xff] %v6154_v6  ;;  %v10514_v34 = vld [vmem:[#allocation71_spill] sm:$0xff]  ;;  %v6158_v0 = vld [vmem:[#allocation6 + $0x70] sm:$0xff] }
 0x129   :  { %922 = vmatpush.msrb.mxu2 %v6146_v35  ;;  %1161 = vmatpush.msrb.mxu3 %v10510_v50  ;;  %10515 = vst [vmem:[#allocation59_spill] sm:$0xff] %v6158_v0  ;;  %v6162_v61 = vld [vmem:[#allocation6 + $0x78] sm:$0xff]  ;;  %v10517_v50 = vld [vmem:[#allocation73_spill] sm:$0xff] }
 0x12a   :  { %883 = vmatpush.msrb.mxu0 %v6150_v38  ;;  %1122 = vmatpush.msrb.mxu1 %v10512_v62  ;;  %10516 = vst [vmem:[#allocation64_spill] sm:$0xff] %v6162_v61  ;;  %v6166_v38 = vld [vmem:[#allocation6 + $0x50] sm:$0xff]  ;;  %v10519_v62 = vld [vmem:[#allocation77_spill] sm:$0xff] }
 0x12b   :  { %923 = vmatpush.msrb.mxu2 %v6154_v6  ;;  %1162 = vmatpush.msrb.mxu3 %v10514_v34  ;;  %10518 = vst [vmem:[#allocation61_spill] sm:$0xff] %v6166_v38  ;;  %v6170_v6 = vld [vmem:[#allocation6 + $0x58] sm:$0xff]  ;;  %v10537_v35 = vld [vmem:[#allocation85_spill] sm:$0xff] }
 0x12c   :  { %884 = vmatpush.msrb.mxu0 %v6158_v0  ;;  %1123 = vmatpush.msrb.mxu1 %v5578_v21  ;;  %10520 = vst [vmem:[#allocation66_spill] sm:$0xff] %v6170_v6  ;;  %v10521_v34 = vld [vmem:[#allocation75_spill] sm:$0xff]  ;;  %v6174_v0 = vld [vmem:[#allocation6 + $0x30] sm:$0xff] }
 0x12d   :  { %924 = vmatpush.msrb.mxu2 %v6162_v61  ;;  %1163 = vmatpush.msrb.mxu3 %v10517_v50  ;;  %10522 = vst [vmem:[#allocation63_spill] sm:$0xff] %v6174_v0  ;;  %v10523_v21 = vld [vmem:[#allocation79_spill] sm:$0xff]  ;;  %v10525_v50 = vld [vmem:[#allocation76_spill] sm:$0xff] }
 0x12e   :  { %885 = vmatpush.msrb.mxu0 %v6166_v38  ;;  %1124 = vmatpush.msrb.mxu1 %v10519_v62  ;;  %v6178_v61 = vld [vmem:[#allocation6 + $0x38] sm:$0xff]  ;;  %v6182_v38 = vld [vmem:[#allocation6 + $0x10] sm:$0xff]  ;;  %v10527_v62 = vld [vmem:[#allocation81_spill] sm:$0xff] }
 0x12f   :  { %925 = vmatpush.msrb.mxu2 %v6170_v6  ;;  %1164 = vmatpush.msrb.mxu3 %v10521_v34  ;;  %10524 = vst [vmem:[#allocation68_spill] sm:$0xff] %v6178_v61  ;;  %v6186_v6 = vld [vmem:[#allocation6 + $0x18] sm:$0xff]  ;;  %v10529_v34 = vld [vmem:[#allocation50_spill] sm:$0xff] }
 0x130   :  { %886 = vmatpush.msrb.mxu0 %v6174_v0  ;;  %1125 = vmatpush.msrb.mxu1 %v10523_v21  ;;  %10526 = vst [vmem:[#allocation65_spill] sm:$0xff] %v6182_v38  ;;  %v10530_v21 = vld [vmem:[#allocation51_spill] sm:$0xff]  ;;  %v10533_v0 = vld [vmem:[#allocation82_spill] sm:$0xff] }
 0x131   :  { %926 = vmatpush.msrb.mxu2 %v6178_v61  ;;  %1165 = vmatpush.msrb.mxu3 %v10525_v50  ;;  %10528 = vst [vmem:[#allocation70_spill] sm:$0xff] %v6186_v6  ;;  %v10531_v61 = vld [vmem:[#allocation78_spill] sm:$0xff]  ;;  %v10532_v50 = vld [vmem:[#allocation53_spill] sm:$0xff] }
 0x132   :  { %887 = vmatpush.msrb.mxu0 %v6182_v38  ;;  %1126 = vmatpush.msrb.mxu1 %v10527_v62  ;;  %v10534_v38 = vld [vmem:[#allocation54_spill] sm:$0xff]  ;;  %v10535_v62 = vld [vmem:[#allocation80_spill] sm:$0xff] }
 0x133   :  { %927 = vmatpush.msrb.mxu2 %v6186_v6  ;;  %888 = vmatmul.f32.vlgmr.msrb.gmra.mxu0 %v6047_v42  ;;  %v10536_v6 = vld [vmem:[#allocation83_spill] sm:$0xff] }
 0x134   :  { %928 = vmatmul.f32.vlgmr.msrb.gmra.mxu2 %v6047_v42  ;;  %1015 = vmatpush.msra.mxu0 %v10529_v34  ;;  %v10538_v42 = vld [vmem:[#allocation84_spill] sm:$0xff]  ;;  %v10539_v34 = vld [vmem:[#allocation86_spill] sm:$0xff] }
 0x135   :  { %1055 = vmatpush.msra.mxu2 %v10530_v21  ;;  %1166 = vmatpush.msrb.mxu3 %v10531_v61  ;;  %v10540_v61 = vld [vmem:[#allocation88_spill] sm:$0xff]  ;;  %v10541_v21 = vld [vmem:[#allocation87_spill] sm:$0xff] }
 0x136   :  { %1016 = vmatpush.msra.mxu0 %v10532_v50  ;;  %1127 = vmatpush.msrb.mxu1 %v10533_v0  ;;  %v10542_v0 = vld [vmem:[#allocation89_spill] sm:$0xff] }
 0x137   :  { %1056 = vmatpush.msra.mxu2 %v10534_v38  ;;  %1167 = vmatpush.msrb.mxu3 %v10535_v62 }
 0x138   :  { %1017 = vmatpush.msra.mxu0 %v5609_v59  ;;  %1128 = vmatpush.msrb.mxu1 %v10536_v6  ;;  %v10543_v59 = vld [vmem:[#allocation90_spill] sm:$0xff] }
 0x139   :  { %1057 = vmatpush.msra.mxu2 %v10537_v35  ;;  %1168 = vmatpush.msrb.mxu3 %v10538_v42 }
 0x13a   :  { %1018 = vmatpush.msra.mxu0 %v5623_v47  ;;  %1129 = vmatpush.msrb.mxu1 %v10539_v34  ;;  %v10549_v47 = vld [vmem:[#allocation96_spill] sm:$0xff] }
 0x13b   :  { %1058 = vmatpush.msra.mxu2 %v10540_v61  ;;  %1169 = vmatpush.msrb.mxu3 %v10541_v21 }
 0x13c   :  { %1019 = vmatpush.msra.mxu0 %v5635_v3  ;;  %1130 = vmatpush.msrb.mxu1 %v10542_v0  ;;  %v10545_v3 = vld [vmem:[#allocation92_spill] sm:$0xff] }
 0x13d   :  { %1059 = vmatpush.msra.mxu2 %v5637_v11  ;;  %1170 = vmatpush.msrb.mxu3 %v10543_v59  ;;  %v10547_v11 = vld [vmem:[#allocation94_spill] sm:$0xff] }
 0x13e   :  { %1020 = vmatpush.msra.mxu0 %v5643_v43  ;;  %v10544_v43 = vld [vmem:[#allocation91_spill] sm:$0xff] }
 0x13f   :  { %1060 = vmatpush.msra.mxu2 %v5645_v29  ;;  %v10550_v29 = vld [vmem:[#allocation97_spill] sm:$0xff] }
 0x140   :  { %1021 = vmatpush.msra.mxu0 %v5651_v19  ;;  %v10546_v19 = vld [vmem:[#allocation93_spill] sm:$0xff] }
 0x141   :  { %1061 = vmatpush.msra.mxu2 %v5653_v37  ;;  %v10548_v37 = vld [vmem:[#allocation95_spill] sm:$0xff] }
 0x142   :  { %1022 = vmatpush.msra.mxu0 %v5659_v2  ;;  %v10551_v2 = vld [vmem:[#allocation100_spill] sm:$0xff] }
 0x143   :  { %1062 = vmatpush.msra.mxu2 %v5661_v7  ;;  %v10552_v7 = vld [vmem:[#allocation101_spill] sm:$0xff] }
 0x144   :  { %1023 = vmatpush.msra.mxu0 %v5667_v4  ;;  %v10553_v4 = vld [vmem:[#allocation102_spill] sm:$0xff] }
 0x145   :  { %1063 = vmatpush.msra.mxu2 %v5669_v10  ;;  %v10554_v10 = vld [vmem:[#allocation103_spill] sm:$0xff] }
 0x146   :  { %1024 = vmatpush.msra.mxu0 %v5675_v8  ;;  %v10555_v8 = vld [vmem:[#allocation104_spill] sm:$0xff] }
 0x147   :  { %1064 = vmatpush.msra.mxu2 %v5677_v14  ;;  %v328_v14 = vld [vmem:[%s9605_s4] sm:$0xf] }
 0x148   :  { %1025 = vmatpush.msra.mxu0 %v5683_v12  ;;  %v10556_v12 = vld [vmem:[#allocation105_spill] sm:$0xff] }
 0x149   :  { %1065 = vmatpush.msra.mxu2 %v5685_v18  ;;  %v10557_v18 = vld [vmem:[#allocation106_spill] sm:$0xff] }
 0x14a   :  { %1026 = vmatpush.msra.mxu0 %v5691_v16  ;;  %v10558_v16 = vld [vmem:[#allocation107_spill] sm:$0xff] }
 0x14b   :  { %1066 = vmatpush.msra.mxu2 %v5693_v22  ;;  %v6261_v22 = vperm.slane %v328_v14, 0 }
 0x14c   :  { %1027 = vmatpush.msra.mxu0 %v5699_v20  ;;  %v10560_v20 = vld [vmem:[#allocation110_spill] sm:$0xff] }
 0x14d   :  { %1067 = vmatpush.msra.mxu2 %v10544_v43  ;;  %10559 = vst [vmem:[#allocation67_spill] sm:$0xff] %v6261_v22 }
 0x14e   :  { %1028 = vmatpush.msra.mxu0 %v10545_v3 }
 0x14f   :  { %1068 = vmatpush.msra.mxu2 %v10546_v19 }
 0x150   :  { %1029 = vmatpush.msra.mxu0 %v10547_v11 }
 0x151   :  { %1069 = vmatpush.msra.mxu2 %v10548_v37 }
 0x152   :  { %1030 = vmatpush.msra.mxu0 %v10549_v47 }
 0x153   :  { %1070 = vmatpush.msra.mxu2 %v10550_v29 }
 0x154   :  { %1095 = vmatpush.msrb.mxu0 %v10551_v2 }
 0x155   :  { %1135 = vmatpush.msrb.mxu2 %v10552_v7 }
 0x156   :  { %1096 = vmatpush.msrb.mxu0 %v5748_v40 }
 0x157   :  { %1136 = vmatpush.msrb.mxu2 %v5750_v46  ;;  %v603_v46 = vpop.f32.mrf.mxu1 }
 0x158   :  { %1097 = vmatpush.msrb.mxu0 %v5758_v44  ;;  %v10561_v44 = vld [vmem:[#allocation12_spill] sm:$0xff] }
 0x159   :  { %1137 = vmatpush.msrb.mxu2 %v5760_v32 }
 0x15a   :  { %1098 = vmatpush.msrb.mxu0 %v5766_v48 }
 0x15b   :  { %1138 = vmatpush.msrb.mxu2 %v5768_v24  ;;  %v6270_v24 = vperm.slane %v328_v14, 1 }
 0x15c   :  { %1099 = vmatpush.msrb.mxu0 %v5774_v52 }
 0x15d   :  { %1139 = vmatpush.msrb.mxu2 %v5776_v58  ;;  %10562 = vst [vmem:[#allocation72_spill] sm:$0xff] %v6270_v24 }
 0x15e   :  { %1100 = vmatpush.msrb.mxu0 %v5782_v56 }
 0x15f   :  { %1140 = vmatpush.msrb.mxu2 %v5784_v63  ;;  %v643_v63 = vpop.f32.mrf.mxu3  ;;  %v683_v34 = vpop.f32.mrf.mxu1 }
 0x160   :  { %1101 = vmatpush.msrb.mxu0 %v5790_v5 }
 0x161   :  { %1141 = vmatpush.msrb.mxu2 %v5792_v60 }
 0x162   :  { %1102 = vmatpush.msrb.mxu0 %v5798_v26 }
 0x163   :  { %1142 = vmatpush.msrb.mxu2 %v5800_v30  ;;  %v6273_v30 = vperm.slane %v328_v14, 3 }
 0x164   :  { %1103 = vmatpush.msrb.mxu0 %v5806_v13 }
 0x165   :  { %1143 = vmatpush.msrb.mxu2 %v5808_v55  ;;  %10563 = vst [vmem:[#allocation69_spill] sm:$0xff] %v6273_v30 }
 0x166   :  { %1104 = vmatpush.msrb.mxu0 %v5818_v31 }
 0x167   :  { %1144 = vmatpush.msrb.mxu2 %v5820_v15  ;;  %v723_v15 = vpop.f32.mrf.mxu3 }
 0x168   :  { %1105 = vmatpush.msrb.mxu0 %v10553_v4 }
 0x169   :  { %1145 = vmatpush.msrb.mxu2 %v10554_v10 }
 0x16a   :  { %1106 = vmatpush.msrb.mxu0 %v10555_v8 }
 0x16b   :  { %1146 = vmatpush.msrb.mxu2 %v10556_v12 }
 0x16c   :  { %1107 = vmatpush.msrb.mxu0 %v10557_v18 }
 0x16d   :  { %1147 = vmatpush.msrb.mxu2 %v10558_v16 }
 0x16e   :  { %1108 = vmatpush.msrb.mxu0 %v5864_v1 }
 0x16f   :  { %1148 = vmatpush.msrb.mxu2 %v10560_v20 }
 0x170   :  { %1109 = vmatpush.msrb.mxu0 %v5874_v28  ;;  %v583_v32 = vpop.f32.mrf.mxu0  ;;  %v6276_v28 = vperm.slane %v328_v14, 2  ;;  %v10565_v14 = vld [vmem:[#allocation98_spill] sm:$0xff] }
 0x171   :  { %1149 = vmatpush.msrb.mxu2 %v5876_v17  ;;  %v584_v40 = vadd.f32 %v583_v32, %v6261_v22 }
 0x172   :  { %1110 = vmatpush.msrb.mxu0 %v5884_v9  ;;  %10564 = vst [vmem:[#allocation74_spill] sm:$0xff] %v6276_v28 }
 0x173   :  { %1150 = vmatpush.msrb.mxu2 %v10561_v44  ;;  %v604_v48 = vadd.f32 %v603_v46, %v584_v40  ;;  %v829_v40 = vpop.f32.mrf.mxu1 }
 0x175   :  { %v3962_v52 = vmul.f32 -1.442695, %v604_v48 }
 0x176   :  { %v623_v58 = vpop.f32.mrf.mxu2 }
 0x177   :  { %4042 = vpow2.f32 %v3962_v52  ;;  %v624_v56 = vadd.f32 %v623_v58, %v6270_v24 }
 0x178   :  { %v663_v35 = vpop.f32.mrf.mxu0 }
 0x179   :  { %v644_v5 = vadd.f32 %v643_v63, %v624_v56  ;;  %v664_v62 = vadd.f32 %v663_v35, %v6276_v28 }
 0x17b   :  { %v3963_v60 = vmul.f32 -1.442695, %v644_v5  ;;  %v684_v61 = vadd.f32 %v683_v34, %v664_v62 }
 0x17d   :  { %v4043_v26 = vpop.eup %4042  ;;  %4044 = vpow2.f32 %v3963_v60  ;;  %v10566_v60 = vld [vmem:[#allocation99_spill] sm:$0xff] }
 0x17e   :  { %v729_v13 = vadd.f32 1.0, %v4043_v26 }
 0x17f   :  { %v703_v55 = vpop.f32.mrf.mxu2 }
 0x180   :  { %4046 = vrcp.f32 %v729_v13  ;;  %v704_v31 = vadd.f32 %v703_v55, %v6273_v30  ;;  %v741_v19 = vand.u32 2147483648, %v729_v13  ;;  %vm735_vm13 = vweird.f32 %v729_v13 }
 0x181   :  { %v739_v47 = vand.u32 2147483647, %v729_v13 }
 0x182   :  { %v724_v17 = vadd.f32 %v723_v15, %v704_v31  ;;  %v742_v8 = vor.u32 1.1754944e-38, %v741_v19  ;;  %v6295_v19 = vld [vmem:[#allocation6 + $0x3c0] sm:$0xff] }
 0x183   :  { %v4045_v1 = vpop.eup %4044  ;;  %vm740_vm1 = vcmp.eq.f32.partialorder %v739_v47, 8.507059e+37  ;;  %v6303_v47 = vld [vmem:[#allocation6 + $0x3a0] sm:$0xff] }
 0x184   :  { %v748_v9 = vadd.f32 1.0, %v4045_v1  ;;  %v3964_v38 = vmul.f32 -1.442695, %v724_v17 }
 0x186   :  { %v4047_v6 = vpop.eup %4046  ;;  %4048 = vrcp.f32 %v748_v9  ;;  %v760_v29 = vand.u32 2147483648, %v748_v9  ;;  %v758_v10 = vand.u32 2147483647, %v748_v9  ;;  %vm754_vm0 = vweird.f32 %v748_v9 }
 0x187   :  { %v731_v50 = vmul.f32 %v4047_v6, %v729_v13  ;;  %4050 = vpow2.f32 %v3964_v38  ;;  %vm736_vm12 = vweird.f32 %v4047_v6  ;;  %v869_v13 = vpop.f32.mrf.mxu3 }
 0x188   :  { %4052 = vtanh.f32 %v684_v61  ;;  %vm737_vm14 = vmor %vm735_vm13, %vm736_vm12  ;;  %v761_v16 = vor.u32 1.1754944e-38, %v760_v29  ;;  %vm759_vm3 = vcmp.eq.f32.partialorder %v758_v10, 8.507059e+37  ;;  %v6306_v29 = vld [vmem:[#allocation6 + $0x3a8] sm:$0xff] }
 0x189   :  { %v732_v42 = vsub.f32 1.0, %v731_v50  ;;  %v6320_v10 = vld [vmem:[#allocation6 + $0x368] sm:$0xff] }
 0x18b   :  { %v733_v21 = vmul.f32 %v4047_v6, %v732_v42 }
 0x18c   :  { %v4049_v0 = vpop.eup %4048 }
 0x18d   :  { %v4051_v59 = vpop.eup %4050  ;;  %v750_v43 = vmul.f32 %v4049_v0, %v748_v9  ;;  %v734_v3 = vadd.f32 %v4047_v6, %v733_v21  ;;  %vm755_vm15 = vweird.f32 %v4049_v0 }
 0x18e   :  { %v768_v11 = vadd.f32 1.0, %v4051_v59  ;;  %vm756_vm2 = vmor %vm754_vm0, %vm755_vm15  ;;  %v4053_v32 = vpop.eup %4052  ;;  %v6287_v59 = vld [vmem:[#allocation6 + $0x3e0] sm:$0xff] }
 0x18f   :  { %v751_v37 = vsub.f32 1.0, %v750_v43  ;;  %v738_v4 = vsel %vm737_vm14, %v4047_v6, %v734_v3  ;;  %v6290_v43 = vld [vmem:[#allocation6 + $0x3e8] sm:$0xff] }
 0x190   :  { %4054 = vrcp.f32 %v768_v11  ;;  %v809_v2 = vpop.f32.mrf.mxu0  ;;  %v743_v20 = vsel %vm740_vm1, %v742_v8, %v738_v4  ;;  %v780_v9 = vand.u32 2147483648, %v768_v11  ;;  %v778_v38 = vand.u32 2147483647, %v768_v11  ;;  %v6317_v4 = vld [vmem:[#allocation6 + $0x360] sm:$0xff] }
 0x191   :  { %v752_v7 = vmul.f32 %v4049_v0, %v751_v37  ;;  %v810_v12 = vadd.f32 %v809_v2, %v10565_v14  ;;  %v785_v56 = vmul.f32 %v4053_v32, %v743_v20  ;;  %vm774_vm5 = vweird.f32 %v768_v11  ;;  %v6310_v2 = vld [vmem:[#allocation6 + $0x380] sm:$0xff]  ;;  %v6334_v20 = vld [vmem:[#allocation6 + $0x328] sm:$0xff] }
 0x192   :  { %v781_v62 = vor.u32 1.1754944e-38, %v780_v9  ;;  %vm779_vm7 = vcmp.eq.f32.partialorder %v778_v38, 8.507059e+37  ;;  %v6323_v8 = vld [vmem:[#allocation6 + $0x340] sm:$0xff] }
 0x193   :  { %v753_v18 = vadd.f32 %v4049_v0, %v752_v7  ;;  %v830_v52 = vadd.f32 %v829_v40, %v810_v12  ;;  %v6313_v7 = vld [vmem:[#allocation6 + $0x388] sm:$0xff]  ;;  %v6339_v40 = vld [vmem:[#allocation6 + $0x300] sm:$0xff] }
 0x194   :  { %v6326_v12 = vld [vmem:[#allocation6 + $0x348] sm:$0xff]  ;;  %v6363_v38 = vld [vmem:[#allocation6 + $0x2a0] sm:$0xff] }
 0x195   :  { %v757_v46 = vsel %vm756_vm2, %v4049_v0, %v753_v18  ;;  %v3966_v15 = vmul.f32 -1.442695, %v830_v52 }
 0x196   :  { %v4055_v44 = vpop.eup %4054  ;;  %v762_v48 = vsel %vm759_vm3, %v761_v16, %v757_v46  ;;  %v6331_v16 = vld [vmem:[#allocation6 + $0x320] sm:$0xff]  ;;  %v6342_v46 = vld [vmem:[#allocation6 + $0x308] sm:$0xff] }
 0x197   :  { %v784_v58 = vmul.f32 0.0, %v762_v48  ;;  %v770_v63 = vmul.f32 %v4055_v44, %v768_v11  ;;  %v849_v5 = vpop.f32.mrf.mxu2  ;;  %vm775_vm4 = vweird.f32 %v4055_v44  ;;  %v6298_v11 = vld [vmem:[#allocation6 + $0x3c8] sm:$0xff] }
 0x198   :  { %v850_v26 = vadd.f32 %v849_v5, %v10566_v60  ;;  %vm776_vm6 = vmor %vm774_vm5, %vm775_vm4  ;;  %v6355_v5 = vld [vmem:[#allocation6 + $0x2c0] sm:$0xff] }
 0x199   :  { %v6281_v55 = vadd.f32 %v785_v56, %v784_v58  ;;  %v771_v31 = vsub.f32 1.0, %v770_v63  ;;  %v6349_v58 = vld [vmem:[#allocation6 + $0x2e0] sm:$0xff]  ;;  %v6352_v56 = vld [vmem:[#allocation6 + $0x2e8] sm:$0xff] }
 0x19a   :  { %v870_v1 = vadd.f32 %v869_v13, %v850_v26  ;;  %v6358_v26 = vld [vmem:[#allocation6 + $0x2c8] sm:$0xff]  ;;  %v10567_v13 = vld [vmem:[#allocation108_spill] sm:$0xff] }
 0x19b   :  { %4056 = vtanh.f32 %v6281_v55  ;;  %v772_v17 = vmul.f32 %v4055_v44, %v771_v31 }
 0x19c   :  { %v3967_v35 = vmul.f32 -1.442695, %v870_v1  ;;  %4058 = vpow2.f32 %v3966_v15  ;;  %v10568_v15 = vld [vmem:[#allocation109_spill] sm:$0xff] }
 0x19d   :  { %v773_v6 = vadd.f32 %v4055_v44, %v772_v17  ;;  %v949_v17 = vpop.f32.mrf.mxu3 }
 0x19e   :  { %4060 = vpow2.f32 %v3967_v35 }
 0x19f   :  { %v777_v50 = vsel %vm776_vm6, %v4055_v44, %v773_v6  ;;  %v6366_v6 = vld [vmem:[#allocation6 + $0x2a8] sm:$0xff] }
 0x1a0   :  { %v782_v34 = vsel %vm779_vm7, %v781_v62, %v777_v50  ;;  %v909_v62 = vpop.f32.mrf.mxu1 }
 0x1a1   :  { %v4057_v42 = vpop.eup %4056 }
 0x1a2   :  { %v788_v61 = vmul.f32 %v4057_v42, %v782_v34  ;;  %v4059_v21 = vpop.eup %4058  ;;  %v6369_v42 = vld [vmem:[#allocation6 + $0x280] sm:$0xff]  ;;  %v6372_v34 = vld [vmem:[#allocation6 + $0x288] sm:$0xff] }
 0x1a3   :  { %v6293_v3 = vadd.f32 1.0, %v4059_v21  ;;  %10569 = vst [vmem:[#allocation71_spill] sm:$0xff] %v6369_v42 }
 0x1a4   :  { %789 = vst [vmem:[%s9606_s5] sm:$0xff] %v788_v61  ;;  %1051 = vmatmul.f32.vlgmr.msra.gmra.mxu1 %v788_v61  ;;  %1091 = vmatmul.f32.vlgmr.msra.gmra.mxu3 %v788_v61  ;;  %v4061_v0 = vpop.eup %4060 }
 0x1a5   :  { %1262 = vmatpush.msra.mxu1 %v6287_v59  ;;  %1302 = vmatpush.msra.mxu3 %v6290_v43  ;;  %v6301_v37 = vadd.f32 1.0, %v4061_v0  ;;  %4062 = vrcp.f32 %v6293_v3  ;;  %10570 = vst [vmem:[#allocation73_spill] sm:$0xff] %v6372_v34  ;;  %vm961_vm10 = vweird.f32 %v6293_v3 }
 0x1a7   :  { %1263 = vmatpush.msra.mxu1 %v6295_v19  ;;  %1303 = vmatpush.msra.mxu3 %v6298_v11  ;;  %4064 = vrcp.f32 %v6301_v37  ;;  %vm980_vm11 = vweird.f32 %v6301_v37 }
 0x1a9   :  { %1264 = vmatpush.msra.mxu1 %v6303_v47  ;;  %1304 = vmatpush.msra.mxu3 %v6306_v29 }
 0x1ab   :  { %1265 = vmatpush.msra.mxu1 %v6310_v2  ;;  %1305 = vmatpush.msra.mxu3 %v6313_v7  ;;  %v6329_v18 = vpop.eup %4062 }
 0x1ac   :  { %1131 = vmatmul.f32.vlgmr.msrb.gmra.mxu1 %v788_v61  ;;  %1171 = vmatmul.f32.vlgmr.msrb.gmra.mxu3 %v788_v61  ;;  %v957_v44 = vmul.f32 %v6329_v18, %v6293_v3  ;;  %vm962_vm8 = vweird.f32 %v6329_v18 }
 0x1ad   :  { %1266 = vmatpush.msra.mxu1 %v6317_v4  ;;  %1306 = vmatpush.msra.mxu3 %v6320_v10  ;;  %v6337_v32 = vpop.eup %4064  ;;  %vm6403_vm12 = vmor %vm961_vm10, %vm962_vm8 }
 0x1ae   :  { %v976_v48 = vmul.f32 %v6337_v32, %v6301_v37  ;;  %v958_v9 = vsub.f32 1.0, %v957_v44  ;;  %vm981_vm9 = vweird.f32 %v6337_v32 }
 0x1af   :  { %1267 = vmatpush.msra.mxu1 %v6323_v8  ;;  %1307 = vmatpush.msra.mxu3 %v6326_v12  ;;  %vm6417_vm13 = vmor %vm980_vm11, %vm981_vm9 }
 0x1b0   :  { %v889_v52 = vpop.f32.mrf.mxu0  ;;  %v977_v35 = vsub.f32 1.0, %v976_v48  ;;  %v959_v44 = vmul.f32 %v6329_v18, %v958_v9  ;;  %v6377_v48 = vld [vmem:[#allocation6 + $0x260] sm:$0xff] }
 0x1b1   :  { %1268 = vmatpush.msra.mxu1 %v6331_v16  ;;  %1308 = vmatpush.msra.mxu3 %v6334_v20  ;;  %v890_v31 = vadd.f32 %v889_v52, %v10567_v13  ;;  %10571 = vst [vmem:[#allocation77_spill] sm:$0xff] %v6377_v48  ;;  %v6380_v52 = vld [vmem:[#allocation6 + $0x268] sm:$0xff]  ;;  %v6393_v9 = vld [vmem:[#allocation6 + $0x220] sm:$0xff] }
 0x1b2   :  { %v978_v0 = vmul.f32 %v6337_v32, %v977_v35  ;;  %10572 = vst [vmem:[#allocation75_spill] sm:$0xff] %v6380_v52  ;;  %v6396_v35 = vld [vmem:[#allocation6 + $0x228] sm:$0xff] }
 0x1b3   :  { %1269 = vmatpush.msra.mxu1 %v6339_v40  ;;  %1309 = vmatpush.msra.mxu3 %v6342_v46  ;;  %v910_v61 = vadd.f32 %v909_v62, %v890_v31  ;;  %v960_v31 = vadd.f32 %v6329_v18, %v959_v44  ;;  %10575 = vst [vmem:[#allocation81_spill] sm:$0xff] %v6393_v9  ;;  %v967_v62 = vand.u32 2147483648, %v6293_v3  ;;  %v6409_v44 = vld [vmem:[#allocation6 + $0x200] sm:$0xff] }
 0x1b4   :  { %10576 = vst [vmem:[#allocation50_spill] sm:$0xff] %v6396_v35 }
 0x1b5   :  { %1270 = vmatpush.msra.mxu1 %v6349_v58  ;;  %1310 = vmatpush.msra.mxu3 %v6352_v56  ;;  %10579 = vst [vmem:[#allocation51_spill] sm:$0xff] %v6409_v44 }
 0x1b7   :  { %v929_v63 = vpop.f32.mrf.mxu2  ;;  %1271 = vmatpush.msra.mxu1 %v6355_v5  ;;  %1311 = vmatpush.msra.mxu3 %v6358_v26 }
 0x1b8   :  { %v930_v1 = vadd.f32 %v929_v63, %v10568_v15  ;;  %v6383_v63 = vld [vmem:[#allocation6 + $0x240] sm:$0xff] }
 0x1b9   :  { %1272 = vmatpush.msra.mxu1 %v6363_v38  ;;  %1312 = vmatpush.msra.mxu3 %v6366_v6  ;;  %10573 = vst [vmem:[#allocation79_spill] sm:$0xff] %v6383_v63 }
 0x1ba   :  { %v950_v50 = vadd.f32 %v949_v17, %v930_v1  ;;  %v6386_v1 = vld [vmem:[#allocation6 + $0x248] sm:$0xff]  ;;  %v979_v17 = vadd.f32 %v6337_v32, %v978_v0  ;;  %v984_v0 = vand.u32 2147483647, %v6301_v37 }
 0x1bb   :  { %1273 = vmatpush.msra.mxu1 %v6369_v42  ;;  %1313 = vmatpush.msra.mxu3 %v6372_v34  ;;  %10574 = vst [vmem:[#allocation76_spill] sm:$0xff] %v6386_v1  ;;  %v968_v34 = vor.u32 1.1754944e-38, %v967_v62  ;;  %v6433_v42 = vld [vmem:[#allocation6 + $0x3d0] sm:$0xff] }
 0x1bc   :  { %v3968_v21 = vmul.f32 -1.442695, %v950_v50  ;;  %v986_v50 = vand.u32 2147483648, %v6301_v37  ;;  %v964_v37 = vsel %vm6403_vm12, %v6329_v18, %v960_v31  ;;  %vm985_vm15 = vcmp.eq.f32.partialorder %v984_v0, 8.507059e+37  ;;  %v6463_v0 = vld [vmem:[#allocation6 + $0x358] sm:$0xff] }
 0x1bd   :  { %1274 = vmatpush.msra.mxu1 %v6377_v48  ;;  %1314 = vmatpush.msra.mxu3 %v6380_v52  ;;  %10587 = vst [vmem:[#allocation83_spill] sm:$0xff] %v6463_v0 }
 0x1be   :  { %4066 = vpow2.f32 %v3968_v21  ;;  %v965_v21 = vand.u32 2147483647, %v6293_v3  ;;  %v6424_v3 = vld [vmem:[#allocation6 + $0x3f8] sm:$0xff]  ;;  %v987_v48 = vor.u32 1.1754944e-38, %v986_v50 }
 0x1bf   :  { %1275 = vmatpush.msra.mxu1 %v6383_v63  ;;  %1315 = vmatpush.msra.mxu3 %v6386_v1  ;;  %4068 = vtanh.f32 %v910_v61  ;;  %v6421_v63 = vld [vmem:[#allocation6 + $0x3f0] sm:$0xff] }
 0x1c0   :  { %10583 = vst [vmem:[#allocation53_spill] sm:$0xff] %v6421_v63  ;;  %vm966_vm14 = vcmp.eq.f32.partialorder %v965_v21, 8.507059e+37  ;;  %v6439_v61 = vld [vmem:[#allocation6 + $0x3b0] sm:$0xff] }
 0x1c1   :  { %1276 = vmatpush.msra.mxu1 %v6393_v9  ;;  %1316 = vmatpush.msra.mxu3 %v6396_v35  ;;  %v6412_v35 = vld [vmem:[#allocation6 + $0x208] sm:$0xff]  ;;  %v969_v18 = vsel %vm966_vm14, %v968_v34, %v964_v37  ;;  %v6460_v21 = vld [vmem:[#allocation6 + $0x350] sm:$0xff] }
 0x1c2   :  { %10580 = vst [vmem:[#allocation78_spill] sm:$0xff] %v6412_v35  ;;  %v6466_v37 = vld [vmem:[#allocation6 + $0x330] sm:$0xff] }
 0x1c3   :  { %1277 = vmatpush.msra.mxu1 %v6409_v44  ;;  %1317 = vmatpush.msra.mxu3 %v6412_v35  ;;  %v983_v35 = vsel %vm6417_vm13, %v6337_v32, %v979_v17  ;;  %v6442_v32 = vld [vmem:[#allocation6 + $0x3b8] sm:$0xff]  ;;  %v6445_v17 = vld [vmem:[#allocation6 + $0x390] sm:$0xff]  ;;  %10586 = vst [vmem:[#allocation80_spill] sm:$0xff] %v6460_v21 }
 0x1c4   :  { %v4067_v9 = vpop.eup %4066  ;;  %v988_v31 = vsel %vm985_vm15, %v987_v48, %v983_v35  ;;  %v6452_v48 = vld [vmem:[#allocation6 + $0x370] sm:$0xff]  ;;  %v6455_v35 = vld [vmem:[#allocation6 + $0x378] sm:$0xff]  ;;  %10588 = vst [vmem:[#allocation85_spill] sm:$0xff] %v6466_v37 }
 0x1c5   :  { %1342 = vmatpush.msrb.mxu1 %v6421_v63  ;;  %1382 = vmatpush.msrb.mxu3 %v6424_v3  ;;  %v994_v44 = vadd.f32 1.0, %v4067_v9  ;;  %v4069_v52 = vpop.eup %4068  ;;  %v6436_v63 = vld [vmem:[#allocation6 + $0x3d8] sm:$0xff]  ;;  %v1010_v34 = vmul.f32 %v988_v31, %v5932_v45  ;;  %10584 = vst [vmem:[#allocation82_spill] sm:$0xff] %v6452_v48 }
 0x1c6   :  { %v1011_v1 = vmul.f32 %v4069_v52, %v969_v18  ;;  %v6448_v9 = vld [vmem:[#allocation6 + $0x398] sm:$0xff]  ;;  %10585 = vst [vmem:[#allocation54_spill] sm:$0xff] %v6455_v35 }
 0x1c7   :  { %1343 = vmatpush.msrb.mxu1 %v6433_v42  ;;  %1383 = vmatpush.msrb.mxu3 %v6436_v63  ;;  %4070 = vrcp.f32 %v994_v44  ;;  %v6469_v18 = vld [vmem:[#allocation6 + $0x338] sm:$0xff]  ;;  %v1006_v31 = vand.u32 2147483648, %v994_v44  ;;  %vm1000_vm1 = vweird.f32 %v994_v44 }
 0x1c8   :  { %v6458_v52 = vadd.f32 %v1011_v1, %v1010_v34  ;;  %10589 = vst [vmem:[#allocation84_spill] sm:$0xff] %v6469_v18  ;;  %v1004_v34 = vand.u32 2147483647, %v994_v44 }
 0x1c9   :  { %1344 = vmatpush.msrb.mxu1 %v6439_v61  ;;  %1384 = vmatpush.msrb.mxu3 %v6442_v32 }
 0x1ca   :  { %4072 = vtanh.f32 %v6458_v52  ;;  %vm1005_vm3 = vcmp.eq.f32.partialorder %v1004_v34, 8.507059e+37  ;;  %v10608_v34 = vld [vmem:[#allocation16_spill] sm:$0xff] }
 0x1cb   :  { %1345 = vmatpush.msrb.mxu1 %v6445_v17  ;;  %1385 = vmatpush.msrb.mxu3 %v6448_v9 }
 0x1cd   :  { %1346 = vmatpush.msrb.mxu1 %v6452_v48  ;;  %1386 = vmatpush.msrb.mxu3 %v6455_v35  ;;  %v4071_v50 = vpop.eup %4070  ;;  %v6485_v48 = vld [vmem:[#allocation6 + $0x2d0] sm:$0xff] }
 0x1ce   :  { %v996_v62 = vmul.f32 %v4071_v50, %v994_v44  ;;  %vm1001_vm0 = vweird.f32 %v4071_v50 }
 0x1cf   :  { %1347 = vmatpush.msrb.mxu1 %v6460_v21  ;;  %1387 = vmatpush.msrb.mxu3 %v6463_v0  ;;  %v6473_v21 = vld [vmem:[#allocation6 + $0x310] sm:$0xff]  ;;  %v6476_v0 = vld [vmem:[#allocation6 + $0x318] sm:$0xff]  ;;  %vm1002_vm2 = vmor %vm1000_vm1, %vm1001_vm0 }
 0x1d0   :  { %v997_v45 = vsub.f32 1.0, %v996_v62  ;;  %10590 = vst [vmem:[#allocation86_spill] sm:$0xff] %v6473_v21  ;;  %v4073_v44 = vpop.eup %4072 }
 0x1d1   :  { %1348 = vmatpush.msrb.mxu1 %v6466_v37  ;;  %1388 = vmatpush.msrb.mxu3 %v6469_v18  ;;  %10591 = vst [vmem:[#allocation88_spill] sm:$0xff] %v6476_v0  ;;  %v6479_v37 = vld [vmem:[#allocation6 + $0x2f0] sm:$0xff]  ;;  %v6482_v18 = vld [vmem:[#allocation6 + $0x2f8] sm:$0xff] }
 0x1d2   :  { %v998_v1 = vmul.f32 %v4071_v50, %v997_v45  ;;  %10592 = vst [vmem:[#allocation87_spill] sm:$0xff] %v6479_v37  ;;  %v1007_v45 = vor.u32 1.1754944e-38, %v1006_v31  ;;  %v6508_v31 = vld [vmem:[#allocation6 + $0x270] sm:$0xff] }
 0x1d3   :  { %1349 = vmatpush.msrb.mxu1 %v6473_v21  ;;  %1389 = vmatpush.msrb.mxu3 %v6476_v0  ;;  %10593 = vst [vmem:[#allocation89_spill] sm:$0xff] %v6482_v18  ;;  %v6488_v21 = vld [vmem:[#allocation6 + $0x2d8] sm:$0xff] }
 0x1d4   :  { %v999_v62 = vadd.f32 %v4071_v50, %v998_v1  ;;  %10595 = vst [vmem:[#allocation91_spill] sm:$0xff] %v6508_v31 }
 0x1d5   :  { %1350 = vmatpush.msrb.mxu1 %v6479_v37  ;;  %1390 = vmatpush.msrb.mxu3 %v6482_v18  ;;  %v6491_v37 = vld [vmem:[#allocation6 + $0x2b0] sm:$0xff]  ;;  %v6494_v18 = vld [vmem:[#allocation6 + $0x2b8] sm:$0xff] }
 0x1d6   :  { %v1003_v35 = vsel %vm1002_vm2, %v4071_v50, %v999_v62  ;;  %v6504_v50 = vld [vmem:[#allocation6 + $0x298] sm:$0xff]  ;;  %v6549_v62 = vld [vmem:[#allocation8 + $0x3c0] sm:$0xff] }
 0x1d7   :  { %1351 = vmatpush.msrb.mxu1 %v6485_v48  ;;  %1391 = vmatpush.msrb.mxu3 %v6488_v21  ;;  %v1008_v1 = vsel %vm1005_vm3, %v1007_v45, %v1003_v35  ;;  %v6500_v35 = vld [vmem:[#allocation6 + $0x290] sm:$0xff]  ;;  %10594 = vst [vmem:[#allocation90_spill] sm:$0xff] %v6504_v50  ;;  %v10611_v45 = vld [vmem:[#allocation19_spill] sm:$0xff] }
 0x1d8   :  { %v1014_v0 = vmul.f32 %v4073_v44, %v1008_v1  ;;  %10609 = vst [vmem:[#allocation103_spill] sm:$0xff] %v6549_v62  ;;  %v10612_v44 = vld [vmem:[#allocation17_spill] sm:$0xff]  ;;  %v6557_v1 = vld [vmem:[#allocation8 + $0x3a0] sm:$0xff] }
 0x1d9   :  { %1352 = vmatpush.msrb.mxu1 %v6491_v37  ;;  %1392 = vmatpush.msrb.mxu3 %v6494_v18  ;;  %10613 = vst [vmem:[#allocation105_spill] sm:$0xff] %v6557_v1 }
 0x1da   :  { %1031 = vmatmul.f32.vlgmr.msra.gmra.mxu0 %v1014_v0  ;;  %1071 = vmatmul.f32.vlgmr.msra.gmra.mxu2 %v1014_v0 }
 0x1db   :  { %1242 = vmatpush.msra.mxu0 %v5935_v49  ;;  %1278 = vmatmul.f32.vlgmr.msra.gmra.mxu1 %v1014_v0  ;;  %v6512_v49 = vld [vmem:[#allocation6 + $0x278] sm:$0xff] }
 0x1dc   :  { %1282 = vmatpush.msra.mxu2 %v5938_v36  ;;  %1318 = vmatmul.f32.vlgmr.msra.gmra.mxu3 %v1014_v0  ;;  %10596 = vst [vmem:[#allocation92_spill] sm:$0xff] %v6512_v49  ;;  %v6516_v36 = vld [vmem:[#allocation6 + $0x250] sm:$0xff] }
 0x1dd   :  { %1243 = vmatpush.msra.mxu0 %v5941_v25  ;;  %1353 = vmatpush.msrb.mxu1 %v6500_v35  ;;  %10597 = vst [vmem:[#allocation93_spill] sm:$0xff] %v6516_v36  ;;  %v6520_v25 = vld [vmem:[#allocation6 + $0x258] sm:$0xff] }
 0x1de   :  { %1283 = vmatpush.msra.mxu2 %v5945_v54  ;;  %1393 = vmatpush.msrb.mxu3 %v6504_v50  ;;  %10598 = vst [vmem:[#allocation94_spill] sm:$0xff] %v6520_v25  ;;  %v6525_v54 = vld [vmem:[#allocation6 + $0x230] sm:$0xff] }
 0x1df   :  { %1244 = vmatpush.msra.mxu0 %v5949_v27  ;;  %1354 = vmatpush.msrb.mxu1 %v6508_v31  ;;  %10599 = vst [vmem:[#allocation95_spill] sm:$0xff] %v6525_v54  ;;  %v6528_v27 = vld [vmem:[#allocation6 + $0x238] sm:$0xff] }
 0x1e0   :  { %1284 = vmatpush.msra.mxu2 %v5953_v53  ;;  %1394 = vmatpush.msrb.mxu3 %v6512_v49  ;;  %10600 = vst [vmem:[#allocation96_spill] sm:$0xff] %v6528_v27  ;;  %v6533_v53 = vld [vmem:[#allocation6 + $0x210] sm:$0xff] }
 0x1e1   :  { %1245 = vmatpush.msra.mxu0 %v5957_v41  ;;  %1355 = vmatpush.msrb.mxu1 %v6516_v36  ;;  %10601 = vst [vmem:[#allocation97_spill] sm:$0xff] %v6533_v53  ;;  %v6536_v41 = vld [vmem:[#allocation6 + $0x218] sm:$0xff] }
 0x1e2   :  { %1285 = vmatpush.msra.mxu2 %v5961_v39  ;;  %1395 = vmatpush.msrb.mxu3 %v6520_v25  ;;  %10602 = vst [vmem:[#allocation100_spill] sm:$0xff] %v6536_v41  ;;  %v10603_v39 = vld [vmem:[#allocation15_spill] sm:$0xff] }
 0x1e3   :  { %1111 = vmatmul.f32.vlgmr.msrb.gmra.mxu0 %v1014_v0  ;;  %1151 = vmatmul.f32.vlgmr.msrb.gmra.mxu2 %v1014_v0 }
 0x1e4   :  { %1246 = vmatpush.msra.mxu0 %v5964_v23  ;;  %1286 = vmatpush.msra.mxu2 %v5967_v57  ;;  %v10604_v23 = vld [vmem:[#allocation13_spill] sm:$0xff]  ;;  %v6541_v57 = vld [vmem:[#allocation8 + $0x3e0] sm:$0xff] }
 0x1e5   :  { %1356 = vmatpush.msrb.mxu1 %v6525_v54  ;;  %1396 = vmatpush.msrb.mxu3 %v6528_v27  ;;  %10605 = vst [vmem:[#allocation101_spill] sm:$0xff] %v6541_v57 }
 0x1e6   :  { %1247 = vmatpush.msra.mxu0 %v5970_v33  ;;  %1287 = vmatpush.msra.mxu2 %v5973_v51  ;;  %v6544_v33 = vld [vmem:[#allocation8 + $0x3e8] sm:$0xff]  ;;  %v10607_v51 = vld [vmem:[#allocation14_spill] sm:$0xff] }
 0x1e7   :  { %1357 = vmatpush.msrb.mxu1 %v6533_v53  ;;  %1397 = vmatpush.msrb.mxu3 %v6536_v41  ;;  %10606 = vst [vmem:[#allocation102_spill] sm:$0xff] %v6544_v33 }
 0x1e8   :  { %1358 = vmatmul.f32.vlgmr.msrb.gmra.mxu1 %v1014_v0  ;;  %1398 = vmatmul.f32.vlgmr.msrb.gmra.mxu3 %v1014_v0  ;;  %v6552_v0 = vld [vmem:[#allocation8 + $0x3c8] sm:$0xff] }
 0x1e9   :  { %1248 = vmatpush.msra.mxu0 %v10603_v39  ;;  %1288 = vmatpush.msra.mxu2 %v10604_v23  ;;  %10610 = vst [vmem:[#allocation104_spill] sm:$0xff] %v6552_v0  ;;  %v6560_v39 = vld [vmem:[#allocation8 + $0x3a8] sm:$0xff] }
 0x1ea   :  { %1485 = vmatpush.msra.mxu1 %v6541_v57  ;;  %1525 = vmatpush.msra.mxu3 %v6544_v33  ;;  %10614 = vst [vmem:[#allocation106_spill] sm:$0xff] %v6560_v39  ;;  %v10615_v23 = vld [vmem:[#allocation21_spill] sm:$0xff] }
 0x1eb   :  { %1249 = vmatpush.msra.mxu0 %v10607_v51  ;;  %1289 = vmatpush.msra.mxu2 %v10608_v34  ;;  %v10616_v51 = vld [vmem:[#allocation18_spill] sm:$0xff]  ;;  %v6565_v34 = vld [vmem:[#allocation8 + $0x380] sm:$0xff] }
 0x1ec   :  { %1486 = vmatpush.msra.mxu1 %v6549_v62  ;;  %1526 = vmatpush.msra.mxu3 %v6552_v0  ;;  %10617 = vst [vmem:[#allocation107_spill] sm:$0xff] %v6565_v34  ;;  %v6568_v0 = vld [vmem:[#allocation8 + $0x388] sm:$0xff] }
 0x1ed   :  { %1250 = vmatpush.msra.mxu0 %v10611_v45  ;;  %1290 = vmatpush.msra.mxu2 %v10612_v44  ;;  %10618 = vst [vmem:[#allocation110_spill] sm:$0xff] %v6568_v0  ;;  %v10619_v45 = vld [vmem:[#allocation23_spill] sm:$0xff]  ;;  %v10620_v44 = vld [vmem:[#allocation20_spill] sm:$0xff]  ;;  %v6633_v62 = vld [vmem:[#allocation8 + $0x2a8] sm:$0xff] }
 0x1ee   :  { %1487 = vmatpush.msra.mxu1 %v6557_v1  ;;  %1527 = vmatpush.msra.mxu3 %v6560_v39  ;;  %v6573_v1 = vld [vmem:[#allocation8 + $0x360] sm:$0xff]  ;;  %v6576_v39 = vld [vmem:[#allocation8 + $0x368] sm:$0xff] }
 0x1ef   :  { %1251 = vmatpush.msra.mxu0 %v10615_v23  ;;  %1291 = vmatpush.msra.mxu2 %v10616_v51  ;;  %10621 = vst [vmem:[#allocation12_spill] sm:$0xff] %v6573_v1  ;;  %v10623_v23 = vld [vmem:[#allocation25_spill] sm:$0xff]  ;;  %v10624_v51 = vld [vmem:[#allocation22_spill] sm:$0xff] }
 0x1f0   :  { %1488 = vmatpush.msra.mxu1 %v6565_v34  ;;  %1528 = vmatpush.msra.mxu3 %v6568_v0  ;;  %10622 = vst [vmem:[#allocation98_spill] sm:$0xff] %v6576_v39  ;;  %v6581_v34 = vld [vmem:[#allocation8 + $0x340] sm:$0xff]  ;;  %v6584_v0 = vld [vmem:[#allocation8 + $0x348] sm:$0xff] }
 0x1f1   :  { %1252 = vmatpush.msra.mxu0 %v10619_v45  ;;  %1292 = vmatpush.msra.mxu2 %v10620_v44  ;;  %10625 = vst [vmem:[#allocation99_spill] sm:$0xff] %v6581_v34  ;;  %v10627_v45 = vld [vmem:[#allocation27_spill] sm:$0xff]  ;;  %v10628_v44 = vld [vmem:[#allocation24_spill] sm:$0xff] }
 0x1f2   :  { %1489 = vmatpush.msra.mxu1 %v6573_v1  ;;  %1529 = vmatpush.msra.mxu3 %v6576_v39  ;;  %10626 = vst [vmem:[#allocation15_spill] sm:$0xff] %v6584_v0  ;;  %v6589_v1 = vld [vmem:[#allocation8 + $0x320] sm:$0xff]  ;;  %v6592_v39 = vld [vmem:[#allocation8 + $0x328] sm:$0xff] }
 0x1f3   :  { %1253 = vmatpush.msra.mxu0 %v10623_v23  ;;  %1293 = vmatpush.msra.mxu2 %v10624_v51  ;;  %10629 = vst [vmem:[#allocation13_spill] sm:$0xff] %v6589_v1  ;;  %v10631_v23 = vld [vmem:[#allocation29_spill] sm:$0xff]  ;;  %v10632_v51 = vld [vmem:[#allocation26_spill] sm:$0xff] }
 0x1f4   :  { %1490 = vmatpush.msra.mxu1 %v6581_v34  ;;  %1530 = vmatpush.msra.mxu3 %v6584_v0  ;;  %10630 = vst [vmem:[#allocation14_spill] sm:$0xff] %v6592_v39  ;;  %v6597_v34 = vld [vmem:[#allocation8 + $0x300] sm:$0xff]  ;;  %v6600_v0 = vld [vmem:[#allocation8 + $0x308] sm:$0xff] }
 0x1f5   :  { %1254 = vmatpush.msra.mxu0 %v10627_v45  ;;  %1294 = vmatpush.msra.mxu2 %v10628_v44  ;;  %10633 = vst [vmem:[#allocation16_spill] sm:$0xff] %v6597_v34  ;;  %v10635_v45 = vld [vmem:[#allocation31_spill] sm:$0xff]  ;;  %v10636_v44 = vld [vmem:[#allocation28_spill] sm:$0xff] }
 0x1f6   :  { %1491 = vmatpush.msra.mxu1 %v6589_v1  ;;  %1531 = vmatpush.msra.mxu3 %v6592_v39  ;;  %10634 = vst [vmem:[#allocation19_spill] sm:$0xff] %v6600_v0  ;;  %v6608_v39 = vld [vmem:[%s9601_s0 + $0x10] sm:$0xff]  ;;  %v6622_v1 = vld [vmem:[#allocation8 + $0x2c0] sm:$0xff] }
 0x1f7   :  { %1255 = vmatpush.msra.mxu0 %v10631_v23  ;;  %1295 = vmatpush.msra.mxu2 %v10632_v51  ;;  %v6610_v23 = vld [vmem:[#allocation8 + $0x2e0] sm:$0xff]  ;;  %v6613_v51 = vld [vmem:[#allocation8 + $0x2e8] sm:$0xff]  ;;  %10643 = vst [vmem:[#allocation18_spill] sm:$0xff] %v6622_v1 }
 0x1f8   :  { %1492 = vmatpush.msra.mxu1 %v6597_v34  ;;  %1532 = vmatpush.msra.mxu3 %v6600_v0  ;;  %10637 = vst [vmem:[#allocation17_spill] sm:$0xff] %v6610_v23  ;;  %v10639_v34 = vld [vmem:[#allocation33_spill] sm:$0xff]  ;;  %v10640_v0 = vld [vmem:[#allocation30_spill] sm:$0xff] }
 0x1f9   :  { %1256 = vmatpush.msra.mxu0 %v10635_v45  ;;  %1296 = vmatpush.msra.mxu2 %v10636_v44  ;;  %10638 = vst [vmem:[#allocation21_spill] sm:$0xff] %v6613_v51  ;;  %v10641_v45 = vld [vmem:[#allocation35_spill] sm:$0xff]  ;;  %v10642_v44 = vld [vmem:[#allocation32_spill] sm:$0xff] }
 0x1fa   :  { %1493 = vmatpush.msra.mxu1 %v6610_v23  ;;  %1533 = vmatpush.msra.mxu3 %v6613_v51  ;;  %v6625_v23 = vld [vmem:[#allocation8 + $0x2c8] sm:$0xff]  ;;  %10648 = vst [vmem:[#allocation25_spill] sm:$0xff] %v6633_v62 }
 0x1fb   :  { %1257 = vmatpush.msra.mxu0 %v10639_v34  ;;  %1297 = vmatpush.msra.mxu2 %v10640_v0  ;;  %10644 = vst [vmem:[#allocation23_spill] sm:$0xff] %v6625_v23  ;;  %v10645_v51 = vld [vmem:[#allocation37_spill] sm:$0xff]  ;;  %v10646_v34 = vld [vmem:[#allocation34_spill] sm:$0xff]  ;;  %v6630_v0 = vld [vmem:[#allocation8 + $0x2a0] sm:$0xff] }
 0x1fc   :  { %1258 = vmatmul.f32.vlgmr.msra.gmra.mxu0 %v6608_v39  ;;  %1298 = vmatmul.f32.vlgmr.msra.gmra.mxu2 %v6608_v39  ;;  %10647 = vst [vmem:[#allocation20_spill] sm:$0xff] %v6630_v0 }
 0x1fd   :  { %1322 = vmatpush.msrb.mxu0 %v10641_v45  ;;  %1362 = vmatpush.msrb.mxu2 %v10642_v44  ;;  %v10649_v45 = vld [vmem:[#allocation39_spill] sm:$0xff]  ;;  %v10650_v44 = vld [vmem:[#allocation36_spill] sm:$0xff] }
 0x1fe   :  { %1494 = vmatpush.msra.mxu1 %v6622_v1  ;;  %1534 = vmatpush.msra.mxu3 %v6625_v23  ;;  %v6638_v1 = vld [vmem:[#allocation8 + $0x280] sm:$0xff]  ;;  %v6641_v23 = vld [vmem:[#allocation8 + $0x288] sm:$0xff] }
 0x1ff   :  { %1323 = vmatpush.msrb.mxu0 %v10645_v51  ;;  %1363 = vmatpush.msrb.mxu2 %v10646_v34  ;;  %10651 = vst [vmem:[#allocation22_spill] sm:$0xff] %v6638_v1  ;;  %v10653_v51 = vld [vmem:[#allocation41_spill] sm:$0xff]  ;;  %v10654_v34 = vld [vmem:[#allocation38_spill] sm:$0xff] }
 0x200   :  { %1495 = vmatpush.msra.mxu1 %v6630_v0  ;;  %1535 = vmatpush.msra.mxu3 %v6633_v62  ;;  %10652 = vst [vmem:[#allocation27_spill] sm:$0xff] %v6641_v23  ;;  %v6646_v0 = vld [vmem:[#allocation8 + $0x260] sm:$0xff]  ;;  %v6649_v62 = vld [vmem:[#allocation8 + $0x268] sm:$0xff] }
 0x201   :  { %1324 = vmatpush.msrb.mxu0 %v10649_v45  ;;  %1364 = vmatpush.msrb.mxu2 %v10650_v44  ;;  %10655 = vst [vmem:[#allocation24_spill] sm:$0xff] %v6646_v0  ;;  %v10657_v45 = vld [vmem:[#allocation43_spill] sm:$0xff]  ;;  %v10658_v44 = vld [vmem:[#allocation40_spill] sm:$0xff] }
 0x202   :  { %1496 = vmatpush.msra.mxu1 %v6638_v1  ;;  %1536 = vmatpush.msra.mxu3 %v6641_v23  ;;  %10656 = vst [vmem:[#allocation29_spill] sm:$0xff] %v6649_v62  ;;  %v6654_v1 = vld [vmem:[#allocation8 + $0x240] sm:$0xff]  ;;  %v6657_v23 = vld [vmem:[#allocation8 + $0x248] sm:$0xff] }
 0x203   :  { %1325 = vmatpush.msrb.mxu0 %v10653_v51  ;;  %1365 = vmatpush.msrb.mxu2 %v10654_v34  ;;  %10659 = vst [vmem:[#allocation26_spill] sm:$0xff] %v6654_v1  ;;  %v10661_v51 = vld [vmem:[#allocation45_spill] sm:$0xff]  ;;  %v10662_v34 = vld [vmem:[#allocation42_spill] sm:$0xff] }
 0x204   :  { %1497 = vmatpush.msra.mxu1 %v6646_v0  ;;  %1537 = vmatpush.msra.mxu3 %v6649_v62  ;;  %10660 = vst [vmem:[#allocation31_spill] sm:$0xff] %v6657_v23  ;;  %v6662_v0 = vld [vmem:[#allocation8 + $0x220] sm:$0xff]  ;;  %v6665_v62 = vld [vmem:[#allocation8 + $0x228] sm:$0xff] }
 0x205   :  { %1326 = vmatpush.msrb.mxu0 %v10657_v45  ;;  %1366 = vmatpush.msrb.mxu2 %v10658_v44  ;;  %10663 = vst [vmem:[#allocation28_spill] sm:$0xff] %v6662_v0  ;;  %v10665_v45 = vld [vmem:[#allocation47_spill] sm:$0xff]  ;;  %v10666_v44 = vld [vmem:[#allocation44_spill] sm:$0xff] }
 0x206   :  { %1498 = vmatpush.msra.mxu1 %v6654_v1  ;;  %1538 = vmatpush.msra.mxu3 %v6657_v23  ;;  %10664 = vst [vmem:[#allocation33_spill] sm:$0xff] %v6665_v62  ;;  %v6670_v1 = vld [vmem:[#allocation8 + $0x200] sm:$0xff]  ;;  %v6673_v23 = vld [vmem:[#allocation8 + $0x208] sm:$0xff] }
 0x207   :  { %1327 = vmatpush.msrb.mxu0 %v10661_v51  ;;  %1367 = vmatpush.msrb.mxu2 %v10662_v34  ;;  %10667 = vst [vmem:[#allocation30_spill] sm:$0xff] %v6670_v1  ;;  %v10669_v51 = vld [vmem:[#allocation49_spill] sm:$0xff]  ;;  %v10670_v34 = vld [vmem:[#allocation46_spill] sm:$0xff] }
 0x208   :  { %1499 = vmatpush.msra.mxu1 %v6662_v0  ;;  %1539 = vmatpush.msra.mxu3 %v6665_v62  ;;  %10668 = vst [vmem:[#allocation35_spill] sm:$0xff] %v6673_v23  ;;  %v6678_v0 = vld [vmem:[#allocation8 + $0x3f0] sm:$0xff]  ;;  %v6681_v62 = vld [vmem:[#allocation8 + $0x3f8] sm:$0xff] }
 0x209   :  { %1328 = vmatpush.msrb.mxu0 %v10665_v45  ;;  %1368 = vmatpush.msrb.mxu2 %v10666_v44  ;;  %10671 = vst [vmem:[#allocation32_spill] sm:$0xff] %v6678_v0  ;;  %v10673_v45 = vld [vmem:[#allocation48_spill] sm:$0xff] }
 0x20a   :  { %1500 = vmatpush.msra.mxu1 %v6670_v1  ;;  %1540 = vmatpush.msra.mxu3 %v6673_v23  ;;  %10672 = vst [vmem:[#allocation37_spill] sm:$0xff] %v6681_v62  ;;  %v10674_v44 = vld [vmem:[#allocation56_spill] sm:$0xff]  ;;  %v6686_v1 = vld [vmem:[#allocation8 + $0x3d0] sm:$0xff]  ;;  %v6689_v23 = vld [vmem:[#allocation8 + $0x3d8] sm:$0xff] }
 0x20b   :  { %1329 = vmatpush.msrb.mxu0 %v10669_v51  ;;  %1369 = vmatpush.msrb.mxu2 %v10670_v34  ;;  %10675 = vst [vmem:[#allocation34_spill] sm:$0xff] %v6686_v1  ;;  %v10677_v51 = vld [vmem:[#allocation52_spill] sm:$0xff]  ;;  %v10678_v34 = vld [vmem:[#allocation58_spill] sm:$0xff] }
 0x20c   :  { %1565 = vmatpush.msrb.mxu1 %v6678_v0  ;;  %1605 = vmatpush.msrb.mxu3 %v6681_v62  ;;  %10676 = vst [vmem:[#allocation39_spill] sm:$0xff] %v6689_v23  ;;  %v6694_v0 = vld [vmem:[#allocation8 + $0x3b0] sm:$0xff]  ;;  %v6697_v62 = vld [vmem:[#allocation8 + $0x3b8] sm:$0xff] }
 0x20d   :  { %1330 = vmatpush.msrb.mxu0 %v10673_v45  ;;  %1370 = vmatpush.msrb.mxu2 %v10674_v44  ;;  %10679 = vst [vmem:[#allocation36_spill] sm:$0xff] %v6694_v0  ;;  %v10681_v45 = vld [vmem:[#allocation55_spill] sm:$0xff]  ;;  %v10682_v44 = vld [vmem:[#allocation60_spill] sm:$0xff] }
 0x20e   :  { %1566 = vmatpush.msrb.mxu1 %v6686_v1  ;;  %1606 = vmatpush.msrb.mxu3 %v6689_v23  ;;  %10680 = vst [vmem:[#allocation41_spill] sm:$0xff] %v6697_v62  ;;  %v6702_v1 = vld [vmem:[#allocation8 + $0x390] sm:$0xff]  ;;  %v6705_v23 = vld [vmem:[#allocation8 + $0x398] sm:$0xff] }
 0x20f   :  { %1331 = vmatpush.msrb.mxu0 %v10677_v51  ;;  %1371 = vmatpush.msrb.mxu2 %v10678_v34  ;;  %10683 = vst [vmem:[#allocation38_spill] sm:$0xff] %v6702_v1  ;;  %v10685_v51 = vld [vmem:[#allocation57_spill] sm:$0xff]  ;;  %v10686_v34 = vld [vmem:[#allocation62_spill] sm:$0xff] }
 0x210   :  { %1567 = vmatpush.msrb.mxu1 %v6694_v0  ;;  %1607 = vmatpush.msrb.mxu3 %v6697_v62  ;;  %10684 = vst [vmem:[#allocation43_spill] sm:$0xff] %v6705_v23  ;;  %v6710_v0 = vld [vmem:[#allocation8 + $0x370] sm:$0xff]  ;;  %v6713_v62 = vld [vmem:[#allocation8 + $0x378] sm:$0xff] }
 0x211   :  { %1332 = vmatpush.msrb.mxu0 %v10681_v45  ;;  %1372 = vmatpush.msrb.mxu2 %v10682_v44  ;;  %10687 = vst [vmem:[#allocation40_spill] sm:$0xff] %v6710_v0  ;;  %v10689_v45 = vld [vmem:[#allocation59_spill] sm:$0xff]  ;;  %v10690_v44 = vld [vmem:[#allocation64_spill] sm:$0xff] }
 0x212   :  { %1568 = vmatpush.msrb.mxu1 %v6702_v1  ;;  %1608 = vmatpush.msrb.mxu3 %v6705_v23  ;;  %10688 = vst [vmem:[#allocation45_spill] sm:$0xff] %v6713_v62  ;;  %v6718_v1 = vld [vmem:[#allocation8 + $0x350] sm:$0xff]  ;;  %v6721_v23 = vld [vmem:[#allocation8 + $0x358] sm:$0xff] }
 0x213   :  { %1333 = vmatpush.msrb.mxu0 %v10685_v51  ;;  %1373 = vmatpush.msrb.mxu2 %v10686_v34  ;;  %10691 = vst [vmem:[#allocation42_spill] sm:$0xff] %v6718_v1  ;;  %v10693_v51 = vld [vmem:[#allocation61_spill] sm:$0xff]  ;;  %v10694_v34 = vld [vmem:[#allocation66_spill] sm:$0xff] }
 0x214   :  { %1569 = vmatpush.msrb.mxu1 %v6710_v0  ;;  %1609 = vmatpush.msrb.mxu3 %v6713_v62  ;;  %10692 = vst [vmem:[#allocation47_spill] sm:$0xff] %v6721_v23  ;;  %v6726_v0 = vld [vmem:[#allocation8 + $0x330] sm:$0xff]  ;;  %v6729_v62 = vld [vmem:[#allocation8 + $0x338] sm:$0xff] }
 0x215   :  { %1334 = vmatpush.msrb.mxu0 %v10689_v45  ;;  %1374 = vmatpush.msrb.mxu2 %v10690_v44  ;;  %10695 = vst [vmem:[#allocation44_spill] sm:$0xff] %v6726_v0  ;;  %v10697_v45 = vld [vmem:[#allocation63_spill] sm:$0xff]  ;;  %v10698_v44 = vld [vmem:[#allocation68_spill] sm:$0xff] }
 0x216   :  { %1570 = vmatpush.msrb.mxu1 %v6718_v1  ;;  %1610 = vmatpush.msrb.mxu3 %v6721_v23  ;;  %10696 = vst [vmem:[#allocation49_spill] sm:$0xff] %v6729_v62  ;;  %v6734_v1 = vld [vmem:[#allocation8 + $0x310] sm:$0xff]  ;;  %v6737_v23 = vld [vmem:[#allocation8 + $0x318] sm:$0xff] }
 0x217   :  { %1335 = vmatpush.msrb.mxu0 %v10693_v51  ;;  %1375 = vmatpush.msrb.mxu2 %v10694_v34  ;;  %10699 = vst [vmem:[#allocation46_spill] sm:$0xff] %v6734_v1  ;;  %v10701_v51 = vld [vmem:[#allocation65_spill] sm:$0xff]  ;;  %v10702_v34 = vld [vmem:[#allocation70_spill] sm:$0xff] }
 0x218   :  { %1571 = vmatpush.msrb.mxu1 %v6726_v0  ;;  %1611 = vmatpush.msrb.mxu3 %v6729_v62  ;;  %10700 = vst [vmem:[#allocation48_spill] sm:$0xff] %v6737_v23  ;;  %v6744_v62 = vld [vmem:[#allocation8 + $0x2f0] sm:$0xff] }
 0x219   :  { %1336 = vmatpush.msrb.mxu0 %v10697_v45  ;;  %1376 = vmatpush.msrb.mxu2 %v10698_v44  ;;  %10703 = vst [vmem:[#allocation56_spill] sm:$0xff] %v6744_v62  ;;  %v6747_v45 = vld [vmem:[#allocation8 + $0x2f8] sm:$0xff]  ;;  %v6750_v44 = vld [vmem:[#allocation8 + $0x1e0] sm:$0xff]  ;;  %v6979_v0 = vld [vmem:[#allocation8 + $0x10] sm:$0xff] }
 0x21a   :  { %1572 = vmatpush.msrb.mxu1 %v6734_v1  ;;  %1612 = vmatpush.msrb.mxu3 %v6737_v23  ;;  %10704 = vst [vmem:[#allocation52_spill] sm:$0xff] %v6747_v45  ;;  %v6753_v23 = vld [vmem:[#allocation8 + $0x1e8] sm:$0xff]  ;;  %v6973_v1 = vld [vmem:[#allocation8 + $0x30] sm:$0xff] }
 0x21b   :  { %1337 = vmatpush.msrb.mxu0 %v10701_v51  ;;  %1377 = vmatpush.msrb.mxu2 %v10702_v34  ;;  %10705 = vst [vmem:[#allocation58_spill] sm:$0xff] %v6750_v44  ;;  %v6756_v51 = vld [vmem:[#allocation8 + $0x2d0] sm:$0xff]  ;;  %v6762_v34 = vld [vmem:[#allocation8 + $0x1c0] sm:$0xff] }
 0x21c   :  { %1338 = vmatmul.f32.vlgmr.msrb.gmra.mxu0 %v6608_v39  ;;  %1378 = vmatmul.f32.vlgmr.msrb.gmra.mxu2 %v6608_v39  ;;  %10706 = vst [vmem:[#allocation55_spill] sm:$0xff] %v6753_v23  ;;  %v6759_v39 = vld [vmem:[#allocation8 + $0x2d8] sm:$0xff] }
 0x21d   :  { %1573 = vmatpush.msrb.mxu1 %v6744_v62  ;;  %1613 = vmatpush.msrb.mxu3 %v6747_v45  ;;  %10707 = vst [vmem:[#allocation60_spill] sm:$0xff] %v6756_v51  ;;  %v6765_v45 = vld [vmem:[#allocation8 + $0x1c8] sm:$0xff]  ;;  %v6966_v62 = vld [vmem:[#allocation8 + $0x50] sm:$0xff] }
 0x21e   :  { %1465 = vmatpush.msra.mxu0 %v6750_v44  ;;  %1505 = vmatpush.msra.mxu2 %v6753_v23  ;;  %10708 = vst [vmem:[#allocation57_spill] sm:$0xff] %v6759_v39  ;;  %v6768_v44 = vld [vmem:[#allocation8 + $0x2b0] sm:$0xff]  ;;  %v6771_v23 = vld [vmem:[#allocation8 + $0x2b8] sm:$0xff] }
 0x21f   :  { %1574 = vmatpush.msrb.mxu1 %v6756_v51  ;;  %1614 = vmatpush.msrb.mxu3 %v6759_v39  ;;  %10709 = vst [vmem:[#allocation62_spill] sm:$0xff] %v6762_v34  ;;  %v6774_v51 = vld [vmem:[#allocation8 + $0x1a0] sm:$0xff]  ;;  %v6777_v39 = vld [vmem:[#allocation8 + $0x1a8] sm:$0xff] }
 0x220   :  { %1466 = vmatpush.msra.mxu0 %v6762_v34  ;;  %10710 = vst [vmem:[#allocation59_spill] sm:$0xff] %v6765_v45  ;;  %1506 = vmatpush.msra.mxu2 %v6765_v45  ;;  %v6780_v34 = vld [vmem:[#allocation8 + $0x290] sm:$0xff]  ;;  %v6783_v45 = vld [vmem:[#allocation8 + $0x298] sm:$0xff] }
 0x221   :  { %10711 = vst [vmem:[#allocation64_spill] sm:$0xff] %v6768_v44  ;;  %1575 = vmatpush.msrb.mxu1 %v6768_v44  ;;  %1615 = vmatpush.msrb.mxu3 %v6771_v23  ;;  %v6786_v44 = vld [vmem:[#allocation8 + $0x180] sm:$0xff] }
 0x222   :  { %10712 = vst [vmem:[#allocation61_spill] sm:$0xff] %v6771_v23  ;;  %1467 = vmatpush.msra.mxu0 %v6774_v51  ;;  %1507 = vmatpush.msra.mxu2 %v6777_v39  ;;  %v6789_v23 = vld [vmem:[#allocation8 + $0x188] sm:$0xff] }
 0x223   :  { %10713 = vst [vmem:[#allocation66_spill] sm:$0xff] %v6774_v51  ;;  %1576 = vmatpush.msrb.mxu1 %v6780_v34  ;;  %1616 = vmatpush.msrb.mxu3 %v6783_v45  ;;  %v6792_v51 = vld [vmem:[#allocation8 + $0x270] sm:$0xff] }
 0x224   :  { %10714 = vst [vmem:[#allocation63_spill] sm:$0xff] %v6777_v39  ;;  %1468 = vmatpush.msra.mxu0 %v6786_v44  ;;  %1508 = vmatpush.msra.mxu2 %v6789_v23  ;;  %v6795_v39 = vld [vmem:[#allocation8 + $0x278] sm:$0xff] }
 0x225   :  { %10715 = vst [vmem:[#allocation68_spill] sm:$0xff] %v6780_v34  ;;  %1577 = vmatpush.msrb.mxu1 %v6792_v51  ;;  %1617 = vmatpush.msrb.mxu3 %v6795_v39  ;;  %v6798_v34 = vld [vmem:[#allocation8 + $0x160] sm:$0xff] }
 0x226   :  { %10716 = vst [vmem:[#allocation65_spill] sm:$0xff] %v6783_v45  ;;  %1469 = vmatpush.msra.mxu0 %v6798_v34  ;;  %v6801_v45 = vld [vmem:[#allocation8 + $0x168] sm:$0xff] }
 0x227   :  { %10717 = vst [vmem:[#allocation70_spill] sm:$0xff] %v6786_v44  ;;  %1509 = vmatpush.msra.mxu2 %v6801_v45  ;;  %v6804_v44 = vld [vmem:[#allocation8 + $0x250] sm:$0xff]  ;;  %v1092_v33 = vpop.f32.mrf.mxu3 }
 0x228   :  { %10718 = vst [vmem:[#allocation111_spill] sm:$0xff] %v6789_v23  ;;  %1578 = vmatpush.msrb.mxu1 %v6804_v44  ;;  %v6807_v23 = vld [vmem:[#allocation8 + $0x258] sm:$0xff] }
 0x229   :  { %10719 = vst [vmem:[#allocation112_spill] sm:$0xff] %v6792_v51  ;;  %1618 = vmatpush.msrb.mxu3 %v6807_v23  ;;  %v6810_v51 = vld [vmem:[#allocation8 + $0x140] sm:$0xff] }
 0x22a   :  { %10720 = vst [vmem:[#allocation113_spill] sm:$0xff] %v6795_v39  ;;  %1470 = vmatpush.msra.mxu0 %v6810_v51  ;;  %v6813_v39 = vld [vmem:[#allocation8 + $0x148] sm:$0xff] }
 0x22b   :  { %10721 = vst [vmem:[#allocation114_spill] sm:$0xff] %v6798_v34  ;;  %1510 = vmatpush.msra.mxu2 %v6813_v39  ;;  %v6816_v34 = vld [vmem:[#allocation8 + $0x230] sm:$0xff] }
 0x22c   :  { %10722 = vst [vmem:[#allocation115_spill] sm:$0xff] %v6801_v45  ;;  %1579 = vmatpush.msrb.mxu1 %v6816_v34  ;;  %v6819_v45 = vld [vmem:[#allocation8 + $0x238] sm:$0xff] }
 0x22d   :  { %10723 = vst [vmem:[#allocation116_spill] sm:$0xff] %v6804_v44  ;;  %1619 = vmatpush.msrb.mxu3 %v6819_v45  ;;  %v6822_v44 = vld [vmem:[#allocation8 + $0x120] sm:$0xff] }
 0x22e   :  { %10724 = vst [vmem:[#allocation117_spill] sm:$0xff] %v6807_v23  ;;  %1471 = vmatpush.msra.mxu0 %v6822_v44  ;;  %v6825_v23 = vld [vmem:[#allocation8 + $0x128] sm:$0xff] }
 0x22f   :  { %10725 = vst [vmem:[#allocation118_spill] sm:$0xff] %v6810_v51  ;;  %1511 = vmatpush.msra.mxu2 %v6825_v23  ;;  %v6828_v51 = vld [vmem:[#allocation8 + $0x210] sm:$0xff] }
 0x230   :  { %10726 = vst [vmem:[#allocation119_spill] sm:$0xff] %v6813_v39  ;;  %1580 = vmatpush.msrb.mxu1 %v6828_v51  ;;  %v6831_v39 = vld [vmem:[#allocation8 + $0x218] sm:$0xff] }
 0x231   :  { %10727 = vst [vmem:[#allocation120_spill] sm:$0xff] %v6816_v34  ;;  %1620 = vmatpush.msrb.mxu3 %v6831_v39  ;;  %v6834_v34 = vld [vmem:[#allocation8 + $0x100] sm:$0xff] }
 0x232   :  { %10728 = vst [vmem:[#allocation121_spill] sm:$0xff] %v6819_v45  ;;  %1472 = vmatpush.msra.mxu0 %v6834_v34  ;;  %v6837_v45 = vld [vmem:[#allocation8 + $0x108] sm:$0xff] }
 0x233   :  { %10729 = vst [vmem:[#allocation122_spill] sm:$0xff] %v6822_v44  ;;  %1512 = vmatpush.msra.mxu2 %v6837_v45  ;;  %v6840_v44 = vld [vmem:[#allocation8 + $0xe0] sm:$0xff] }
 0x234   :  { %10730 = vst [vmem:[#allocation123_spill] sm:$0xff] %v6825_v23  ;;  %1473 = vmatpush.msra.mxu0 %v6840_v44  ;;  %v6843_v23 = vld [vmem:[#allocation8 + $0xe8] sm:$0xff] }
 0x235   :  { %10731 = vst [vmem:[#allocation124_spill] sm:$0xff] %v6828_v51  ;;  %1513 = vmatpush.msra.mxu2 %v6843_v23  ;;  %v6846_v51 = vld [vmem:[#allocation8 + $0xc0] sm:$0xff] }
 0x236   :  { %10732 = vst [vmem:[#allocation125_spill] sm:$0xff] %v6831_v39  ;;  %1474 = vmatpush.msra.mxu0 %v6846_v51  ;;  %v6849_v39 = vld [vmem:[#allocation8 + $0xc8] sm:$0xff] }
 0x237   :  { %10733 = vst [vmem:[#allocation126_spill] sm:$0xff] %v6834_v34  ;;  %1514 = vmatpush.msra.mxu2 %v6849_v39  ;;  %v6852_v34 = vld [vmem:[#allocation8 + $0xa0] sm:$0xff] }
 0x238   :  { %10734 = vst [vmem:[#allocation127_spill] sm:$0xff] %v6837_v45  ;;  %1475 = vmatpush.msra.mxu0 %v6852_v34  ;;  %v6855_v45 = vld [vmem:[#allocation8 + $0xa8] sm:$0xff] }
 0x239   :  { %10735 = vst [vmem:[#allocation128_spill] sm:$0xff] %v6840_v44  ;;  %1515 = vmatpush.msra.mxu2 %v6855_v45  ;;  %v6858_v44 = vld [vmem:[#allocation8 + $0x80] sm:$0xff] }
 0x23a   :  { %10736 = vst [vmem:[#allocation129_spill] sm:$0xff] %v6843_v23  ;;  %1476 = vmatpush.msra.mxu0 %v6858_v44  ;;  %v6861_v23 = vld [vmem:[#allocation8 + $0x88] sm:$0xff] }
 0x23b   :  { %10737 = vst [vmem:[#allocation130_spill] sm:$0xff] %v6846_v51  ;;  %1516 = vmatpush.msra.mxu2 %v6861_v23  ;;  %v6864_v51 = vld [vmem:[#allocation8 + $0x60] sm:$0xff] }
 0x23c   :  { %10738 = vst [vmem:[#allocation131_spill] sm:$0xff] %v6849_v39  ;;  %1477 = vmatpush.msra.mxu0 %v6864_v51  ;;  %v6867_v39 = vld [vmem:[#allocation8 + $0x68] sm:$0xff] }
 0x23d   :  { %10739 = vst [vmem:[#allocation132_spill] sm:$0xff] %v6852_v34  ;;  %1517 = vmatpush.msra.mxu2 %v6867_v39  ;;  %v6870_v34 = vld [vmem:[#allocation8 + $0x40] sm:$0xff] }
 0x23e   :  { %10740 = vst [vmem:[#allocation133_spill] sm:$0xff] %v6855_v45  ;;  %1478 = vmatpush.msra.mxu0 %v6870_v34  ;;  %v6873_v45 = vld [vmem:[#allocation8 + $0x48] sm:$0xff] }
 0x23f   :  { %10741 = vst [vmem:[#allocation134_spill] sm:$0xff] %v6858_v44  ;;  %1518 = vmatpush.msra.mxu2 %v6873_v45  ;;  %v6876_v44 = vld [vmem:[#allocation8 + $0x20] sm:$0xff] }
 0x240   :  { %10742 = vst [vmem:[#allocation135_spill] sm:$0xff] %v6861_v23  ;;  %1479 = vmatpush.msra.mxu0 %v6876_v44  ;;  %v6879_v23 = vld [vmem:[#allocation8 + $0x28] sm:$0xff] }
 0x241   :  { %10743 = vst [vmem:[#allocation136_spill] sm:$0xff] %v6864_v51  ;;  %1519 = vmatpush.msra.mxu2 %v6879_v23  ;;  %v6882_v51 = vld [vmem:[#allocation8] sm:$0xff] }
 0x242   :  { %10744 = vst [vmem:[#allocation137_spill] sm:$0xff] %v6867_v39  ;;  %1480 = vmatpush.msra.mxu0 %v6882_v51  ;;  %v6885_v39 = vld [vmem:[#allocation8 + $0x8] sm:$0xff] }
 0x243   :  { %10745 = vst [vmem:[#allocation138_spill] sm:$0xff] %v6870_v34  ;;  %1520 = vmatpush.msra.mxu2 %v6885_v39  ;;  %v6888_v34 = vld [vmem:[#allocation8 + $0x1f0] sm:$0xff] }
 0x244   :  { %10746 = vst [vmem:[#allocation139_spill] sm:$0xff] %v6873_v45  ;;  %1545 = vmatpush.msrb.mxu0 %v6888_v34  ;;  %v6891_v45 = vld [vmem:[#allocation8 + $0x1f8] sm:$0xff] }
 0x245   :  { %10747 = vst [vmem:[#allocation140_spill] sm:$0xff] %v6876_v44  ;;  %1585 = vmatpush.msrb.mxu2 %v6891_v45  ;;  %v6894_v44 = vld [vmem:[#allocation8 + $0x1d0] sm:$0xff] }
 0x246   :  { %10748 = vst [vmem:[#allocation141_spill] sm:$0xff] %v6879_v23  ;;  %1546 = vmatpush.msrb.mxu0 %v6894_v44  ;;  %v6897_v23 = vld [vmem:[#allocation8 + $0x1d8] sm:$0xff] }
 0x247   :  { %10749 = vst [vmem:[#allocation142_spill] sm:$0xff] %v6882_v51  ;;  %1586 = vmatpush.msrb.mxu2 %v6897_v23  ;;  %v6900_v51 = vld [vmem:[#allocation8 + $0x1b0] sm:$0xff] }
 0x248   :  { %10750 = vst [vmem:[#allocation143_spill] sm:$0xff] %v6885_v39  ;;  %1547 = vmatpush.msrb.mxu0 %v6900_v51  ;;  %v6903_v39 = vld [vmem:[#allocation8 + $0x1b8] sm:$0xff] }
 0x249   :  { %10751 = vst [vmem:[#allocation144_spill] sm:$0xff] %v6888_v34  ;;  %1587 = vmatpush.msrb.mxu2 %v6903_v39  ;;  %v6906_v34 = vld [vmem:[#allocation8 + $0x190] sm:$0xff] }
 0x24a   :  { %10752 = vst [vmem:[#allocation145_spill] sm:$0xff] %v6891_v45  ;;  %1548 = vmatpush.msrb.mxu0 %v6906_v34  ;;  %v6909_v45 = vld [vmem:[#allocation8 + $0x198] sm:$0xff] }
 0x24b   :  { %10753 = vst [vmem:[#allocation146_spill] sm:$0xff] %v6894_v44  ;;  %1588 = vmatpush.msrb.mxu2 %v6909_v45  ;;  %v6912_v44 = vld [vmem:[#allocation8 + $0x170] sm:$0xff] }
 0x24c   :  { %10754 = vst [vmem:[#allocation147_spill] sm:$0xff] %v6897_v23  ;;  %1549 = vmatpush.msrb.mxu0 %v6912_v44  ;;  %v6915_v23 = vld [vmem:[#allocation8 + $0x178] sm:$0xff] }
 0x24d   :  { %10755 = vst [vmem:[#allocation148_spill] sm:$0xff] %v6900_v51  ;;  %1589 = vmatpush.msrb.mxu2 %v6915_v23  ;;  %v6918_v51 = vld [vmem:[#allocation8 + $0x150] sm:$0xff] }
 0x24e   :  { %10756 = vst [vmem:[#allocation149_spill] sm:$0xff] %v6903_v39  ;;  %1550 = vmatpush.msrb.mxu0 %v6918_v51  ;;  %v6921_v39 = vld [vmem:[#allocation8 + $0x158] sm:$0xff] }
 0x24f   :  { %10757 = vst [vmem:[#allocation150_spill] sm:$0xff] %v6906_v34  ;;  %1590 = vmatpush.msrb.mxu2 %v6921_v39  ;;  %v6924_v34 = vld [vmem:[#allocation8 + $0x130] sm:$0xff] }
 0x250   :  { %10758 = vst [vmem:[#allocation151_spill] sm:$0xff] %v6909_v45  ;;  %1551 = vmatpush.msrb.mxu0 %v6924_v34  ;;  %v6927_v45 = vld [vmem:[#allocation8 + $0x138] sm:$0xff] }
 0x251   :  { %10759 = vst [vmem:[#allocation152_spill] sm:$0xff] %v6912_v44  ;;  %1591 = vmatpush.msrb.mxu2 %v6927_v45  ;;  %v6930_v44 = vld [vmem:[#allocation8 + $0x110] sm:$0xff] }
 0x252   :  { %10760 = vst [vmem:[#allocation153_spill] sm:$0xff] %v6915_v23  ;;  %1552 = vmatpush.msrb.mxu0 %v6930_v44  ;;  %v6933_v23 = vld [vmem:[#allocation8 + $0x118] sm:$0xff] }
 0x253   :  { %10761 = vst [vmem:[#allocation154_spill] sm:$0xff] %v6918_v51  ;;  %1592 = vmatpush.msrb.mxu2 %v6933_v23  ;;  %v6936_v51 = vld [vmem:[#allocation8 + $0xf0] sm:$0xff] }
 0x254   :  { %10762 = vst [vmem:[#allocation155_spill] sm:$0xff] %v6921_v39  ;;  %1553 = vmatpush.msrb.mxu0 %v6936_v51  ;;  %v6939_v39 = vld [vmem:[#allocation8 + $0xf8] sm:$0xff] }
 0x255   :  { %10763 = vst [vmem:[#allocation156_spill] sm:$0xff] %v6924_v34  ;;  %1593 = vmatpush.msrb.mxu2 %v6939_v39  ;;  %v6942_v34 = vld [vmem:[#allocation8 + $0xd0] sm:$0xff] }
 0x256   :  { %10764 = vst [vmem:[#allocation157_spill] sm:$0xff] %v6927_v45  ;;  %1554 = vmatpush.msrb.mxu0 %v6942_v34  ;;  %v6945_v45 = vld [vmem:[#allocation8 + $0xd8] sm:$0xff] }
 0x257   :  { %10765 = vst [vmem:[#allocation158_spill] sm:$0xff] %v6930_v44  ;;  %1594 = vmatpush.msrb.mxu2 %v6945_v45  ;;  %v6948_v44 = vld [vmem:[#allocation8 + $0xb0] sm:$0xff] }
 0x258   :  { %10766 = vst [vmem:[#allocation159_spill] sm:$0xff] %v6933_v23  ;;  %1555 = vmatpush.msrb.mxu0 %v6948_v44  ;;  %v6951_v23 = vld [vmem:[#allocation8 + $0xb8] sm:$0xff] }
 0x259   :  { %10767 = vst [vmem:[#allocation160_spill] sm:$0xff] %v6936_v51  ;;  %1595 = vmatpush.msrb.mxu2 %v6951_v23  ;;  %v6954_v51 = vld [vmem:[#allocation8 + $0x90] sm:$0xff] }
 0x25a   :  { %10768 = vst [vmem:[#allocation161_spill] sm:$0xff] %v6939_v39  ;;  %1556 = vmatpush.msrb.mxu0 %v6954_v51  ;;  %v6957_v39 = vld [vmem:[#allocation8 + $0x98] sm:$0xff] }
 0x25b   :  { %10769 = vst [vmem:[#allocation162_spill] sm:$0xff] %v6942_v34  ;;  %1596 = vmatpush.msrb.mxu2 %v6957_v39  ;;  %v6960_v34 = vld [vmem:[#allocation8 + $0x70] sm:$0xff] }
 0x25c   :  { %10770 = vst [vmem:[#allocation163_spill] sm:$0xff] %v6945_v45  ;;  %1557 = vmatpush.msrb.mxu0 %v6960_v34  ;;  %v6963_v45 = vld [vmem:[#allocation8 + $0x78] sm:$0xff] }
 0x25d   :  { %10771 = vst [vmem:[#allocation164_spill] sm:$0xff] %v6948_v44  ;;  %1597 = vmatpush.msrb.mxu2 %v6963_v45  ;;  %v1032_v44 = vpop.f32.mrf.mxu0 }
 0x25e   :  { %10772 = vst [vmem:[#allocation165_spill] sm:$0xff] %v6951_v23  ;;  %1558 = vmatpush.msrb.mxu0 %v6966_v62  ;;  %v6969_v23 = vld [vmem:[#allocation8 + $0x58] sm:$0xff] }
 0x25f   :  { %10773 = vst [vmem:[#allocation166_spill] sm:$0xff] %v6954_v51  ;;  %1598 = vmatpush.msrb.mxu2 %v6969_v23  ;;  %v1033_v51 = vadd.f32 %v1032_v44, %v6261_v22  ;;  %v1072_v44 = vpop.f32.mrf.mxu2 }
 0x260   :  { %10774 = vst [vmem:[#allocation167_spill] sm:$0xff] %v6957_v39  ;;  %v1052_v39 = vpop.f32.mrf.mxu1  ;;  %1559 = vmatpush.msrb.mxu0 %v6973_v1  ;;  %v1073_v22 = vadd.f32 %v1072_v44, %v6270_v24 }
 0x261   :  { %10775 = vst [vmem:[#allocation168_spill] sm:$0xff] %v6960_v34  ;;  %v6976_v34 = vld [vmem:[#allocation8 + $0x38] sm:$0xff] }
 0x262   :  { %10776 = vst [vmem:[#allocation169_spill] sm:$0xff] %v6963_v45  ;;  %1599 = vmatpush.msrb.mxu2 %v6976_v34  ;;  %v1053_v45 = vadd.f32 %v1052_v39, %v1033_v51  ;;  %1560 = vmatpush.msrb.mxu0 %v6979_v0 }
 0x263   :  { %10777 = vst [vmem:[#allocation170_spill] sm:$0xff] %v6966_v62  ;;  %v6982_v62 = vld [vmem:[#allocation8 + $0x18] sm:$0xff] }
 0x264   :  { %10778 = vst [vmem:[#allocation171_spill] sm:$0xff] %v6969_v23  ;;  %1600 = vmatpush.msrb.mxu2 %v6982_v62  ;;  %v3969_v23 = vmul.f32 -1.442695, %v1053_v45 }
 0x265   :  { %10779 = vst [vmem:[#allocation172_spill] sm:$0xff] %v6973_v1  ;;  %v1093_v1 = vadd.f32 %v1092_v33, %v1073_v22 }
 0x266   :  { %10780 = vst [vmem:[#allocation173_spill] sm:$0xff] %v6976_v34  ;;  %4074 = vpow2.f32 %v3969_v23 }
 0x267   :  { %10781 = vst [vmem:[#allocation174_spill] sm:$0xff] %v6979_v0  ;;  %v3970_v57 = vmul.f32 -1.442695, %v1093_v1  ;;  %v1152_v51 = vpop.f32.mrf.mxu2  ;;  %v1172_v0 = vpop.f32.mrf.mxu3 }
 0x268   :  { %10782 = vst [vmem:[#allocation175_spill] sm:$0xff] %v6982_v62  ;;  %v1153_v39 = vadd.f32 %v1152_v51, %v6273_v30  ;;  %v1112_v62 = vpop.f32.mrf.mxu0  ;;  %v1132_v33 = vpop.f32.mrf.mxu1 }
 0x269   :  { %4076 = vpow2.f32 %v3970_v57  ;;  %v1113_v44 = vadd.f32 %v1112_v62, %v6276_v28 }
 0x26a   :  { %v1173_v27 = vadd.f32 %v1172_v0, %v1153_v39 }
 0x26b   :  { %v1133_v57 = vadd.f32 %v1132_v33, %v1113_v44 }
 0x26c   :  { %v4075_v41 = vpop.eup %4074  ;;  %v3971_v45 = vmul.f32 -1.442695, %v1173_v27 }
 0x26d   :  { %v1178_v34 = vadd.f32 1.0, %v4075_v41 }
 0x26f   :  { %4078 = vrcp.f32 %v1178_v34  ;;  %v4077_v53 = vpop.eup %4076  ;;  %v1190_v30 = vand.u32 2147483648, %v1178_v34  ;;  %vm1184_vm5 = vweird.f32 %v1178_v34  ;;  %v1188_v27 = vand.u32 2147483647, %v1178_v34 }
 0x270   :  { %v1197_v54 = vadd.f32 1.0, %v4077_v53 }
 0x271   :  { %v1191_v44 = vor.u32 1.1754944e-38, %v1190_v30  ;;  %vm1189_vm9 = vcmp.eq.f32.partialorder %v1188_v27, 8.507059e+37 }
 0x272   :  { %4080 = vrcp.f32 %v1197_v54  ;;  %v1209_v39 = vand.u32 2147483648, %v1197_v54  ;;  %vm1203_vm8 = vweird.f32 %v1197_v54 }
 0x273   :  { %4082 = vpow2.f32 %v3971_v45 }
 0x274   :  { %4084 = vtanh.f32 %v1133_v57 }
 0x275   :  { %v4079_v25 = vpop.eup %4078 }
 0x276   :  { %v1180_v23 = vmul.f32 %v4079_v25, %v1178_v34  ;;  %vm1185_vm4 = vweird.f32 %v4079_v25  ;;  %v1279_v34 = vpop.f32.mrf.mxu1 }
 0x277   :  { %vm1186_vm6 = vmor %vm1184_vm5, %vm1185_vm4 }
 0x278   :  { %v1181_v22 = vsub.f32 1.0, %v1180_v23  ;;  %v4081_v1 = vpop.eup %4080  ;;  %v1207_v23 = vand.u32 2147483647, %v1197_v54 }
 0x279   :  { %v4083_v24 = vpop.eup %4082  ;;  %v1199_v36 = vmul.f32 %v4081_v1, %v1197_v54  ;;  %vm1204_vm7 = vweird.f32 %v4081_v1 }
 0x27a   :  { %v1182_v41 = vmul.f32 %v4079_v25, %v1181_v22  ;;  %v1217_v0 = vadd.f32 1.0, %v4083_v24  ;;  %v1259_v22 = vpop.f32.mrf.mxu0  ;;  %vm1205_vm10 = vmor %vm1203_vm8, %vm1204_vm7  ;;  %v1210_v24 = vor.u32 1.1754944e-38, %v1209_v39  ;;  %v4085_v28 = vpop.eup %4084  ;;  %vm1208_vm11 = vcmp.eq.f32.partialorder %v1207_v23, 8.507059e+37 }
 0x27b   :  { %v1200_v53 = vsub.f32 1.0, %v1199_v36 }
 0x27c   :  { %v1183_v51 = vadd.f32 %v4079_v25, %v1182_v41  ;;  %4086 = vrcp.f32 %v1217_v0  ;;  %v1260_v41 = vadd.f32 %v1259_v22, %v10565_v14  ;;  %v1319_v22 = vpop.f32.mrf.mxu3  ;;  %vm1223_vm13 = vweird.f32 %v1217_v0 }
 0x27d   :  { %v1201_v62 = vmul.f32 %v4081_v1, %v1200_v53 }
 0x27e   :  { %v1187_v45 = vsel %vm1186_vm6, %v4079_v25, %v1183_v51  ;;  %v1280_v53 = vadd.f32 %v1279_v34, %v1260_v41 }
 0x27f   :  { %v1202_v33 = vadd.f32 %v4081_v1, %v1201_v62  ;;  %v1192_v36 = vsel %vm1189_vm9, %v1191_v44, %v1187_v45  ;;  %v1299_v50 = vpop.f32.mrf.mxu2  ;;  %v1229_v45 = vand.u32 2147483648, %v1217_v0  ;;  %v1227_v44 = vand.u32 2147483647, %v1217_v0 }
 0x280   :  { %v1234_v51 = vmul.f32 %v4085_v28, %v1192_v36  ;;  %v1300_v62 = vadd.f32 %v1299_v50, %v10566_v60  ;;  %v3974_v39 = vmul.f32 -1.442695, %v1280_v53  ;;  %v10789_v53 = vld [vmem:[#allocation81_spill] sm:$0xff] }
 0x281   :  { %v1206_v57 = vsel %vm1205_vm10, %v4081_v1, %v1202_v33  ;;  %vm1228_vm15 = vcmp.eq.f32.partialorder %v1227_v44, 8.507059e+37  ;;  %v10795_v44 = vld [vmem:[#allocation53_spill] sm:$0xff] }
 0x282   :  { %v4087_v49 = vpop.eup %4086  ;;  %v1211_v31 = vsel %vm1208_vm11, %v1210_v24, %v1206_v57  ;;  %v1320_v23 = vadd.f32 %v1319_v22, %v1300_v62  ;;  %v10788_v57 = vld [vmem:[#allocation76_spill] sm:$0xff]  ;;  %v10791_v22 = vld [vmem:[#allocation51_spill] sm:$0xff] }
 0x283   :  { %v1233_v25 = vmul.f32 %v1211_v31, %v6281_v55  ;;  %v1219_v30 = vmul.f32 %v4087_v49, %v1217_v0  ;;  %vm1224_vm12 = vweird.f32 %v4087_v49  ;;  %v1230_v55 = vor.u32 1.1754944e-38, %v1229_v45  ;;  %v10816_v45 = vld [vmem:[#allocation100_spill] sm:$0xff] }
 0x284   :  { %v3975_v33 = vmul.f32 -1.442695, %v1320_v23  ;;  %vm1225_vm14 = vmor %vm1223_vm13, %vm1224_vm12 }
 0x285   :  { %v6990_v54 = vadd.f32 %v1234_v51, %v1233_v25  ;;  %v1220_v27 = vsub.f32 1.0, %v1219_v30  ;;  %v10790_v25 = vld [vmem:[#allocation50_spill] sm:$0xff] }
 0x287   :  { %4088 = vtanh.f32 %v6990_v54  ;;  %v1221_v1 = vmul.f32 %v4087_v49, %v1220_v27 }
 0x288   :  { %4090 = vpow2.f32 %v3974_v39  ;;  %v10792_v39 = vld [vmem:[#allocation78_spill] sm:$0xff] }
 0x289   :  { %v1222_v41 = vadd.f32 %v4087_v49, %v1221_v1  ;;  %4092 = vpow2.f32 %v3975_v33 }
 0x28b   :  { %v1226_v28 = vsel %vm1225_vm14, %v4087_v49, %v1222_v41  ;;  %v7153_v41 = vld [vmem:[#allocation6 + $0x100] sm:$0xff] }
 0x28c   :  { %v1231_v50 = vsel %vm1228_vm15, %v1230_v55, %v1226_v28 }
 0x28d   :  { %v4089_v31 = vpop.eup %4088 }
 0x28e   :  { %v1237_v24 = vmul.f32 %v4089_v31, %v1231_v50  ;;  %v4091_v36 = vpop.eup %4090 }
 0x28f   :  { %v4093_v0 = vpop.eup %4092  ;;  %v7001_v49 = vadd.f32 1.0, %v4091_v36 }
 0x290   :  { %3972 = vst [vmem:[%s9606_s5 + $0x8] sm:$0xff] %v1237_v24  ;;  %1501 = vmatmul.f32.vlgmr.msra.gmra.mxu1 %v1237_v24  ;;  %1541 = vmatmul.f32.vlgmr.msra.gmra.mxu3 %v1237_v24  ;;  %v7003_v34 = vadd.f32 1.0, %v4093_v0 }
 0x291   :  { %1712 = vmatpush.msra.mxu1 %v6287_v59  ;;  %1752 = vmatpush.msra.mxu3 %v6290_v43  ;;  %4094 = vrcp.f32 %v7001_v49  ;;  %vm1411_vm2 = vweird.f32 %v7001_v49  ;;  %v1417_v62 = vand.u32 2147483648, %v7001_v49  ;;  %v1415_v1 = vand.u32 2147483647, %v7001_v49 }
 0x292   :  { %4096 = vrcp.f32 %v7003_v34  ;;  %v1436_v27 = vand.u32 2147483648, %v7003_v34  ;;  %vm1430_vm3 = vweird.f32 %v7003_v34  ;;  %v1434_v23 = vand.u32 2147483647, %v7003_v34 }
 0x293   :  { %1713 = vmatpush.msra.mxu1 %v6295_v19  ;;  %1753 = vmatpush.msra.mxu3 %v6298_v11  ;;  %vm1416_vm6 = vcmp.eq.f32.partialorder %v1415_v1, 8.507059e+37  ;;  %v7145_v1 = vld [vmem:[#allocation6 + $0x120] sm:$0xff] }
 0x294   :  { %v1437_v50 = vor.u32 1.1754944e-38, %v1436_v27  ;;  %vm1435_vm7 = vcmp.eq.f32.partialorder %v1434_v23, 8.507059e+37  ;;  %v10814_v27 = vld [vmem:[#allocation96_spill] sm:$0xff]  ;;  %v7148_v23 = vld [vmem:[#allocation6 + $0x128] sm:$0xff] }
 0x295   :  { %1714 = vmatpush.msra.mxu1 %v6303_v47  ;;  %1754 = vmatpush.msra.mxu3 %v6306_v29 }
 0x297   :  { %1715 = vmatpush.msra.mxu1 %v6310_v2  ;;  %1755 = vmatpush.msra.mxu3 %v6313_v7  ;;  %v7017_v59 = vpop.eup %4094 }
 0x298   :  { %1581 = vmatmul.f32.vlgmr.msrb.gmra.mxu1 %v1237_v24  ;;  %1621 = vmatmul.f32.vlgmr.msrb.gmra.mxu3 %v1237_v24  ;;  %v7019_v43 = vpop.eup %4096  ;;  %v1407_v19 = vmul.f32 %v7017_v59, %v7001_v49  ;;  %vm1412_vm0 = vweird.f32 %v7017_v59  ;;  %v1418_v24 = vor.u32 1.1754944e-38, %v1417_v62  ;;  %v7137_v62 = vld [vmem:[#allocation6 + $0x140] sm:$0xff] }
 0x299   :  { %1716 = vmatpush.msra.mxu1 %v6317_v4  ;;  %1756 = vmatpush.msra.mxu3 %v6320_v10  ;;  %v1426_v11 = vmul.f32 %v7019_v43, %v7003_v34  ;;  %v1339_v47 = vpop.f32.mrf.mxu0  ;;  %v1399_v4 = vpop.f32.mrf.mxu3  ;;  %vm1431_vm1 = vweird.f32 %v7019_v43  ;;  %vm7055_vm4 = vmor %vm1411_vm2, %vm1412_vm0  ;;  %v10799_v34 = vld [vmem:[#allocation54_spill] sm:$0xff] }
 0x29a   :  { %v1340_v2 = vadd.f32 %v1339_v47, %v10567_v13  ;;  %v1408_v10 = vsub.f32 1.0, %v1407_v19  ;;  %vm7065_vm5 = vmor %vm1430_vm3, %vm1431_vm1  ;;  %v10800_v19 = vld [vmem:[#allocation80_spill] sm:$0xff] }
 0x29b   :  { %1717 = vmatpush.msra.mxu1 %v6323_v8  ;;  %1757 = vmatpush.msra.mxu3 %v6326_v12  ;;  %v1427_v8 = vsub.f32 1.0, %v1426_v11  ;;  %v10802_v11 = vld [vmem:[#allocation85_spill] sm:$0xff]  ;;  %v10803_v47 = vld [vmem:[#allocation84_spill] sm:$0xff] }
 0x29d   :  { %1718 = vmatpush.msra.mxu1 %v6331_v16  ;;  %1758 = vmatpush.msra.mxu3 %v6334_v20  ;;  %v10783_v16 = vld [vmem:[#allocation71_spill] sm:$0xff]  ;;  %v10784_v20 = vld [vmem:[#allocation73_spill] sm:$0xff] }
 0x29f   :  { %1719 = vmatpush.msra.mxu1 %v6339_v40  ;;  %1759 = vmatpush.msra.mxu3 %v6342_v46  ;;  %v1379_v29 = vpop.f32.mrf.mxu2  ;;  %v1359_v40 = vpop.f32.mrf.mxu1 }
 0x2a0   :  { %v1380_v7 = vadd.f32 %v1379_v29, %v10568_v15  ;;  %v1360_v46 = vadd.f32 %v1359_v40, %v1340_v2  ;;  %v10805_v29 = vld [vmem:[#allocation88_spill] sm:$0xff] }
 0x2a1   :  { %1720 = vmatpush.msra.mxu1 %v6349_v58  ;;  %1760 = vmatpush.msra.mxu3 %v6352_v56  ;;  %v10785_v56 = vld [vmem:[#allocation77_spill] sm:$0xff] }
 0x2a2   :  { %v1400_v12 = vadd.f32 %v1399_v4, %v1380_v7  ;;  %v10806_v4 = vld [vmem:[#allocation87_spill] sm:$0xff] }
 0x2a3   :  { %1721 = vmatpush.msra.mxu1 %v6355_v5  ;;  %1761 = vmatpush.msra.mxu3 %v6358_v26  ;;  %v10786_v5 = vld [vmem:[#allocation75_spill] sm:$0xff]  ;;  %v1428_v26 = vmul.f32 %v7019_v43, %v1427_v8 }
 0x2a4   :  { %v3976_v58 = vmul.f32 -1.442695, %v1400_v12 }
 0x2a5   :  { %1722 = vmatpush.msra.mxu1 %v6363_v38  ;;  %1762 = vmatpush.msra.mxu3 %v6366_v6  ;;  %v1409_v38 = vmul.f32 %v7017_v59, %v1408_v10  ;;  %v10787_v6 = vld [vmem:[#allocation79_spill] sm:$0xff]  ;;  %v1429_v30 = vadd.f32 %v7019_v43, %v1428_v26  ;;  %v10807_v10 = vld [vmem:[#allocation89_spill] sm:$0xff] }
 0x2a6   :  { %4098 = vpow2.f32 %v3976_v58  ;;  %v10808_v58 = vld [vmem:[#allocation90_spill] sm:$0xff]  ;;  %v10811_v26 = vld [vmem:[#allocation93_spill] sm:$0xff] }
 0x2a7   :  { %1723 = vmatpush.msra.mxu1 %v10783_v16  ;;  %1763 = vmatpush.msra.mxu3 %v10784_v20  ;;  %4100 = vtanh.f32 %v1360_v46  ;;  %v1410_v51 = vadd.f32 %v7017_v59, %v1409_v38  ;;  %v1433_v55 = vsel %vm7065_vm5, %v7019_v43, %v1429_v30  ;;  %v7119_v38 = vld [vmem:[#allocation6 + $0x1a8] sm:$0xff] }
 0x2a8   :  { %v1438_v0 = vsel %vm1435_vm7, %v1437_v50, %v1433_v55  ;;  %v7133_v30 = vld [vmem:[#allocation6 + $0x168] sm:$0xff]  ;;  %v10819_v55 = vld [vmem:[#allocation103_spill] sm:$0xff] }
 0x2a9   :  { %1724 = vmatpush.msra.mxu1 %v10785_v56  ;;  %1764 = vmatpush.msra.mxu3 %v10786_v5  ;;  %v1414_v28 = vsel %vm7055_vm4, %v7017_v59, %v1410_v51  ;;  %v7101_v56 = vld [vmem:[#allocation6 + $0x1e0] sm:$0xff]  ;;  %v7164_v50 = vld [vmem:[#allocation6 + $0xe8] sm:$0xff] }
 0x2aa   :  { %v1419_v36 = vsel %vm1416_vm6, %v1418_v24, %v1414_v28  ;;  %v7115_v5 = vld [vmem:[#allocation6 + $0x1a0] sm:$0xff]  ;;  %v7156_v28 = vld [vmem:[#allocation6 + $0x108] sm:$0xff] }
 0x2ab   :  { %1725 = vmatpush.msra.mxu1 %v10787_v6  ;;  %1765 = vmatpush.msra.mxu3 %v10788_v57  ;;  %v10812_v6 = vld [vmem:[#allocation94_spill] sm:$0xff]  ;;  %v7123_v57 = vld [vmem:[#allocation6 + $0x180] sm:$0xff]  ;;  %v10821_v24 = vld [vmem:[#allocation105_spill] sm:$0xff] }
 0x2ac   :  { %v4099_v33 = vpop.eup %4098  ;;  %v7130_v51 = vld [vmem:[#allocation6 + $0x160] sm:$0xff] }
 0x2ad   :  { %1726 = vmatpush.msra.mxu1 %v10789_v53  ;;  %1766 = vmatpush.msra.mxu3 %v10790_v25  ;;  %v1444_v31 = vadd.f32 1.0, %v4099_v33  ;;  %v10813_v53 = vld [vmem:[#allocation95_spill] sm:$0xff]  ;;  %v7127_v25 = vld [vmem:[#allocation6 + $0x188] sm:$0xff]  ;;  %v10818_v33 = vld [vmem:[#allocation102_spill] sm:$0xff] }
 0x2af   :  { %1727 = vmatpush.msra.mxu1 %v10791_v22  ;;  %1767 = vmatpush.msra.mxu3 %v10792_v39  ;;  %4102 = vrcp.f32 %v1444_v31  ;;  %v1454_v7 = vand.u32 2147483647, %v1444_v31  ;;  %vm1450_vm9 = vweird.f32 %v1444_v31  ;;  %v10815_v22 = vld [vmem:[#allocation97_spill] sm:$0xff] }
 0x2b0   :  { %v7141_v39 = vld [vmem:[#allocation6 + $0x148] sm:$0xff] }
 0x2b1   :  { %1792 = vmatpush.msrb.mxu1 %v10795_v44  ;;  %1832 = vmatpush.msrb.mxu3 %v6424_v3  ;;  %v4101_v3 = vpop.eup %4100  ;;  %vm1455_vm11 = vcmp.eq.f32.partialorder %v1454_v7, 8.507059e+37  ;;  %v10817_v44 = vld [vmem:[#allocation101_spill] sm:$0xff]  ;;  %v7201_v7 = vld [vmem:[#allocation6 + $0x40] sm:$0xff] }
 0x2b2   :  { %v1461_v49 = vmul.f32 %v4101_v3, %v1419_v36  ;;  %v7161_v3 = vld [vmem:[#allocation6 + $0xe0] sm:$0xff]  ;;  %v10822_v36 = vld [vmem:[#allocation106_spill] sm:$0xff] }
 0x2b3   :  { %1793 = vmatpush.msrb.mxu1 %v6433_v42  ;;  %1833 = vmatpush.msrb.mxu3 %v6436_v63  ;;  %v1460_v42 = vmul.f32 %v1438_v0, %v6458_v52  ;;  %v10798_v63 = vld [vmem:[#allocation82_spill] sm:$0xff]  ;;  %v7169_v0 = vld [vmem:[#allocation6 + $0xc0] sm:$0xff] }
 0x2b4   :  { %v10804_v52 = vld [vmem:[#allocation86_spill] sm:$0xff] }
 0x2b5   :  { %1794 = vmatpush.msrb.mxu1 %v6439_v61  ;;  %1834 = vmatpush.msrb.mxu3 %v6442_v32  ;;  %v4103_v59 = vpop.eup %4102  ;;  %v7084_v43 = vadd.f32 %v1461_v49, %v1460_v42  ;;  %v10801_v61 = vld [vmem:[#allocation83_spill] sm:$0xff]  ;;  %v7172_v49 = vld [vmem:[#allocation6 + $0xc8] sm:$0xff] }
 0x2b6   :  { %v1446_v32 = vmul.f32 %v4103_v59, %v1444_v31  ;;  %vm1451_vm8 = vweird.f32 %v4103_v59  ;;  %v10823_v42 = vld [vmem:[#allocation107_spill] sm:$0xff] }
 0x2b7   :  { %1795 = vmatpush.msrb.mxu1 %v6445_v17  ;;  %1835 = vmatpush.msrb.mxu3 %v6448_v9  ;;  %4104 = vtanh.f32 %v7084_v43  ;;  %v1456_v9 = vand.u32 2147483648, %v1444_v31  ;;  %vm1452_vm10 = vmor %vm1450_vm9, %vm1451_vm8  ;;  %v10820_v31 = vld [vmem:[#allocation104_spill] sm:$0xff] }
 0x2b8   :  { %v1447_v17 = vsub.f32 1.0, %v1446_v32  ;;  %v7185_v32 = vld [vmem:[#allocation6 + $0x80] sm:$0xff] }
 0x2b9   :  { %1796 = vmatpush.msrb.mxu1 %v10798_v63  ;;  %1836 = vmatpush.msrb.mxu3 %v10799_v34  ;;  %v1457_v12 = vor.u32 1.1754944e-38, %v1456_v9  ;;  %v10824_v63 = vld [vmem:[#allocation110_spill] sm:$0xff]  ;;  %v7177_v34 = vld [vmem:[#allocation6 + $0xa0] sm:$0xff] }
 0x2ba   :  { %v1448_v2 = vmul.f32 %v4103_v59, %v1447_v17  ;;  %v10828_v17 = vld [vmem:[#allocation15_spill] sm:$0xff]  ;;  %v7193_v9 = vld [vmem:[#allocation6 + $0x60] sm:$0xff] }
 0x2bb   :  { %1797 = vmatpush.msrb.mxu1 %v10800_v19  ;;  %1837 = vmatpush.msrb.mxu3 %v10801_v61  ;;  %v10825_v19 = vld [vmem:[#allocation12_spill] sm:$0xff]  ;;  %v10826_v61 = vld [vmem:[#allocation98_spill] sm:$0xff] }
 0x2bc   :  { %v1449_v8 = vadd.f32 %v4103_v59, %v1448_v2  ;;  %v10830_v2 = vld [vmem:[#allocation14_spill] sm:$0xff] }
 0x2bd   :  { %1798 = vmatpush.msrb.mxu1 %v10802_v11  ;;  %1838 = vmatpush.msrb.mxu3 %v10803_v47  ;;  %v4105_v20 = vpop.eup %4104  ;;  %v7188_v11 = vld [vmem:[#allocation6 + $0x88] sm:$0xff]  ;;  %v10827_v47 = vld [vmem:[#allocation99_spill] sm:$0xff] }
 0x2be   :  { %v1453_v16 = vsel %vm1452_vm10, %v4103_v59, %v1449_v8  ;;  %v7180_v59 = vld [vmem:[#allocation6 + $0xa8] sm:$0xff]  ;;  %v10832_v8 = vld [vmem:[#allocation19_spill] sm:$0xff] }
 0x2bf   :  { %1799 = vmatpush.msrb.mxu1 %v10804_v52  ;;  %1839 = vmatpush.msrb.mxu3 %v10805_v29  ;;  %v1458_v40 = vsel %vm1455_vm11, %v1457_v12, %v1453_v16  ;;  %v7196_v52 = vld [vmem:[#allocation6 + $0x68] sm:$0xff]  ;;  %v7209_v12 = vld [vmem:[#allocation6 + $0x20] sm:$0xff] }
 0x2c0   :  { %v1464_v46 = vmul.f32 %v4105_v20, %v1458_v40  ;;  %v10829_v29 = vld [vmem:[#allocation13_spill] sm:$0xff]  ;;  %v7218_v20 = vld [vmem:[%s9601_s0 + $0x18] sm:$0xff] }
 0x2c1   :  { %1800 = vmatpush.msrb.mxu1 %v10806_v4  ;;  %1840 = vmatpush.msrb.mxu3 %v10807_v10  ;;  %v7204_v4 = vld [vmem:[#allocation6 + $0x48] sm:$0xff]  ;;  %v10831_v10 = vld [vmem:[#allocation16_spill] sm:$0xff] }
 0x2c2   :  { %1481 = vmatmul.f32.vlgmr.msra.gmra.mxu0 %v1464_v46  ;;  %1521 = vmatmul.f32.vlgmr.msra.gmra.mxu2 %v1464_v46  ;;  %v7212_v16 = vld [vmem:[#allocation6 + $0x28] sm:$0xff] }
 0x2c3   :  { %1801 = vmatpush.msrb.mxu1 %v6485_v48  ;;  %1841 = vmatpush.msrb.mxu3 %v6488_v21  ;;  %v7104_v48 = vld [vmem:[#allocation6 + $0x1e8] sm:$0xff]  ;;  %v7107_v21 = vld [vmem:[#allocation6 + $0x1c0] sm:$0xff] }
 0x2c4   :  { %1692 = vmatpush.msra.mxu0 %v7101_v56  ;;  %1728 = vmatmul.f32.vlgmr.msra.gmra.mxu1 %v1464_v46  ;;  %v10833_v40 = vld [vmem:[#allocation17_spill] sm:$0xff] }
 0x2c5   :  { %1802 = vmatpush.msrb.mxu1 %v6491_v37  ;;  %1842 = vmatpush.msrb.mxu3 %v6494_v18  ;;  %v10809_v37 = vld [vmem:[#allocation91_spill] sm:$0xff]  ;;  %v7111_v18 = vld [vmem:[#allocation6 + $0x1c8] sm:$0xff] }
 0x2c6   :  { %1732 = vmatpush.msra.mxu2 %v7104_v48  ;;  %1768 = vmatmul.f32.vlgmr.msra.gmra.mxu3 %v1464_v46 }
 0x2c7   :  { %1803 = vmatpush.msrb.mxu1 %v6500_v35  ;;  %1843 = vmatpush.msrb.mxu3 %v10808_v58  ;;  %v10810_v35 = vld [vmem:[#allocation92_spill] sm:$0xff] }
 0x2c8   :  { %1693 = vmatpush.msra.mxu0 %v7107_v21  ;;  %1733 = vmatpush.msra.mxu2 %v7111_v18  ;;  %v7222_v58 = vld [vmem:[#allocation6] sm:$0xff] }
 0x2c9   :  { %1804 = vmatpush.msrb.mxu1 %v10809_v37  ;;  %1844 = vmatpush.msrb.mxu3 %v10810_v35  ;;  %v7225_v37 = vld [vmem:[#allocation6 + $0x8] sm:$0xff]  ;;  %v7230_v35 = vld [vmem:[#allocation6 + $0x1f0] sm:$0xff] }
 0x2ca   :  { %1694 = vmatpush.msra.mxu0 %v7115_v5  ;;  %1734 = vmatpush.msra.mxu2 %v7119_v38 }
 0x2cb   :  { %1805 = vmatpush.msrb.mxu1 %v10811_v26  ;;  %1845 = vmatpush.msrb.mxu3 %v10812_v6  ;;  %v7233_v26 = vld [vmem:[#allocation6 + $0x1f8] sm:$0xff]  ;;  %v10835_v6 = vld [vmem:[#allocation18_spill] sm:$0xff] }
 0x2cc   :  { %1695 = vmatpush.msra.mxu0 %v7123_v57  ;;  %1735 = vmatpush.msra.mxu2 %v7127_v25 }
 0x2cd   :  { %1806 = vmatpush.msrb.mxu1 %v10813_v53  ;;  %1561 = vmatmul.f32.vlgmr.msrb.gmra.mxu0 %v1464_v46  ;;  %v10836_v53 = vld [vmem:[#allocation23_spill] sm:$0xff] }
 0x2ce   :  { %1601 = vmatmul.f32.vlgmr.msrb.gmra.mxu2 %v1464_v46  ;;  %1696 = vmatpush.msra.mxu0 %v7130_v51 }
 0x2cf   :  { %1736 = vmatpush.msra.mxu2 %v7133_v30  ;;  %1846 = vmatpush.msrb.mxu3 %v10814_v27  ;;  %v7238_v27 = vld [vmem:[#allocation6 + $0x1d0] sm:$0xff] }
 0x2d0   :  { %1697 = vmatpush.msra.mxu0 %v7137_v62  ;;  %1807 = vmatpush.msrb.mxu1 %v10815_v22  ;;  %10837 = vst [vmem:[#allocation71_spill] sm:$0xff] %v7238_v27  ;;  %v7241_v22 = vld [vmem:[#allocation6 + $0x1d8] sm:$0xff] }
 0x2d1   :  { %1737 = vmatpush.msra.mxu2 %v7141_v39  ;;  %1847 = vmatpush.msrb.mxu3 %v10816_v45  ;;  %10838 = vst [vmem:[#allocation73_spill] sm:$0xff] %v7241_v22  ;;  %v10839_v45 = vld [vmem:[#allocation20_spill] sm:$0xff] }
 0x2d2   :  { %1808 = vmatmul.f32.vlgmr.msrb.gmra.mxu1 %v1464_v46  ;;  %1848 = vmatmul.f32.vlgmr.msrb.gmra.mxu3 %v1464_v46  ;;  %v10834_v46 = vld [vmem:[#allocation21_spill] sm:$0xff] }
 0x2d3   :  { %1698 = vmatpush.msra.mxu0 %v7145_v1  ;;  %1738 = vmatpush.msra.mxu2 %v7148_v23 }
 0x2d4   :  { %1935 = vmatpush.msra.mxu1 %v10817_v44  ;;  %1975 = vmatpush.msra.mxu3 %v10818_v33  ;;  %v10840_v44 = vld [vmem:[#allocation25_spill] sm:$0xff]  ;;  %v7246_v33 = vld [vmem:[#allocation6 + $0x1b0] sm:$0xff] }
 0x2d5   :  { %1699 = vmatpush.msra.mxu0 %v7153_v41  ;;  %1739 = vmatpush.msra.mxu2 %v7156_v28  ;;  %10841 = vst [vmem:[#allocation77_spill] sm:$0xff] %v7246_v33 }
 0x2d6   :  { %1936 = vmatpush.msra.mxu1 %v10819_v55  ;;  %1976 = vmatpush.msra.mxu3 %v10820_v31  ;;  %v7249_v55 = vld [vmem:[#allocation6 + $0x1b8] sm:$0xff]  ;;  %v10843_v31 = vld [vmem:[#allocation22_spill] sm:$0xff] }
 0x2d7   :  { %1700 = vmatpush.msra.mxu0 %v7161_v3  ;;  %1740 = vmatpush.msra.mxu2 %v7164_v50  ;;  %10842 = vst [vmem:[#allocation75_spill] sm:$0xff] %v7249_v55 }
 0x2d8   :  { %1937 = vmatpush.msra.mxu1 %v10821_v24  ;;  %1977 = vmatpush.msra.mxu3 %v10822_v36  ;;  %v10844_v24 = vld [vmem:[#allocation27_spill] sm:$0xff]  ;;  %v7254_v36 = vld [vmem:[#allocation6 + $0x190] sm:$0xff] }
 0x2d9   :  { %1701 = vmatpush.msra.mxu0 %v7169_v0  ;;  %1741 = vmatpush.msra.mxu2 %v7172_v49  ;;  %10845 = vst [vmem:[#allocation79_spill] sm:$0xff] %v7254_v36 }
 0x2da   :  { %1938 = vmatpush.msra.mxu1 %v10823_v42  ;;  %1978 = vmatpush.msra.mxu3 %v10824_v63  ;;  %v7257_v42 = vld [vmem:[#allocation6 + $0x198] sm:$0xff]  ;;  %v10847_v63 = vld [vmem:[#allocation24_spill] sm:$0xff] }
 0x2db   :  { %1702 = vmatpush.msra.mxu0 %v7177_v34  ;;  %1742 = vmatpush.msra.mxu2 %v7180_v59  ;;  %10846 = vst [vmem:[#allocation76_spill] sm:$0xff] %v7257_v42 }
 0x2dc   :  { %1939 = vmatpush.msra.mxu1 %v10825_v19  ;;  %1979 = vmatpush.msra.mxu3 %v10826_v61  ;;  %v10848_v19 = vld [vmem:[#allocation29_spill] sm:$0xff]  ;;  %v7262_v61 = vld [vmem:[#allocation6 + $0x170] sm:$0xff] }
 0x2dd   :  { %1703 = vmatpush.msra.mxu0 %v7185_v32  ;;  %1743 = vmatpush.msra.mxu2 %v7188_v11  ;;  %10849 = vst [vmem:[#allocation81_spill] sm:$0xff] %v7262_v61 }
 0x2de   :  { %1940 = vmatpush.msra.mxu1 %v10827_v47  ;;  %1980 = vmatpush.msra.mxu3 %v10828_v17  ;;  %v7265_v47 = vld [vmem:[#allocation6 + $0x178] sm:$0xff]  ;;  %v10851_v17 = vld [vmem:[#allocation26_spill] sm:$0xff] }
 0x2df   :  { %1704 = vmatpush.msra.mxu0 %v7193_v9  ;;  %1744 = vmatpush.msra.mxu2 %v7196_v52  ;;  %10850 = vst [vmem:[#allocation50_spill] sm:$0xff] %v7265_v47 }
 0x2e0   :  { %1941 = vmatpush.msra.mxu1 %v10829_v29  ;;  %1981 = vmatpush.msra.mxu3 %v10830_v2  ;;  %v10852_v29 = vld [vmem:[#allocation31_spill] sm:$0xff]  ;;  %v7270_v2 = vld [vmem:[#allocation6 + $0x150] sm:$0xff] }
 0x2e1   :  { %1705 = vmatpush.msra.mxu0 %v7201_v7  ;;  %1745 = vmatpush.msra.mxu2 %v7204_v4  ;;  %10853 = vst [vmem:[#allocation51_spill] sm:$0xff] %v7270_v2 }
 0x2e2   :  { %1942 = vmatpush.msra.mxu1 %v10831_v10  ;;  %1982 = vmatpush.msra.mxu3 %v10832_v8  ;;  %v7273_v10 = vld [vmem:[#allocation6 + $0x158] sm:$0xff]  ;;  %v10855_v8 = vld [vmem:[#allocation28_spill] sm:$0xff] }
 0x2e3   :  { %1706 = vmatpush.msra.mxu0 %v7209_v12  ;;  %1746 = vmatpush.msra.mxu2 %v7212_v16  ;;  %10854 = vst [vmem:[#allocation78_spill] sm:$0xff] %v7273_v10 }
 0x2e4   :  { %1943 = vmatpush.msra.mxu1 %v10833_v40  ;;  %1983 = vmatpush.msra.mxu3 %v10834_v46  ;;  %v10856_v40 = vld [vmem:[#allocation33_spill] sm:$0xff]  ;;  %v7278_v46 = vld [vmem:[#allocation6 + $0x130] sm:$0xff] }
 0x2e5   :  { %1707 = vmatpush.msra.mxu0 %v7222_v58  ;;  %1747 = vmatpush.msra.mxu2 %v7225_v37  ;;  %10857 = vst [vmem:[#allocation53_spill] sm:$0xff] %v7278_v46 }
 0x2e6   :  { %1708 = vmatmul.f32.vlgmr.msra.gmra.mxu0 %v7218_v20  ;;  %1748 = vmatmul.f32.vlgmr.msra.gmra.mxu2 %v7218_v20 }
 0x2e7   :  { %1772 = vmatpush.msrb.mxu0 %v7230_v35  ;;  %1812 = vmatpush.msrb.mxu2 %v7233_v26 }
 0x2e8   :  { %1944 = vmatpush.msra.mxu1 %v10835_v6  ;;  %1984 = vmatpush.msra.mxu3 %v10836_v53  ;;  %v7281_v6 = vld [vmem:[#allocation6 + $0x138] sm:$0xff]  ;;  %v10859_v53 = vld [vmem:[#allocation30_spill] sm:$0xff] }
 0x2e9   :  { %1773 = vmatpush.msrb.mxu0 %v7238_v27  ;;  %1813 = vmatpush.msrb.mxu2 %v7241_v22  ;;  %10858 = vst [vmem:[#allocation82_spill] sm:$0xff] %v7281_v6 }
 0x2ea   :  { %1945 = vmatpush.msra.mxu1 %v10839_v45  ;;  %1985 = vmatpush.msra.mxu3 %v10840_v44  ;;  %v10860_v45 = vld [vmem:[#allocation35_spill] sm:$0xff]  ;;  %v7286_v44 = vld [vmem:[#allocation6 + $0x110] sm:$0xff] }
 0x2eb   :  { %1774 = vmatpush.msrb.mxu0 %v7246_v33  ;;  %1814 = vmatpush.msrb.mxu2 %v7249_v55  ;;  %10861 = vst [vmem:[#allocation54_spill] sm:$0xff] %v7286_v44 }
 0x2ec   :  { %1946 = vmatpush.msra.mxu1 %v10843_v31  ;;  %1986 = vmatpush.msra.mxu3 %v10844_v24  ;;  %v7289_v31 = vld [vmem:[#allocation6 + $0x118] sm:$0xff]  ;;  %v10863_v24 = vld [vmem:[#allocation32_spill] sm:$0xff] }
 0x2ed   :  { %1775 = vmatpush.msrb.mxu0 %v7254_v36  ;;  %1815 = vmatpush.msrb.mxu2 %v7257_v42  ;;  %10862 = vst [vmem:[#allocation80_spill] sm:$0xff] %v7289_v31 }
 0x2ee   :  { %1947 = vmatpush.msra.mxu1 %v10847_v63  ;;  %1987 = vmatpush.msra.mxu3 %v10848_v19  ;;  %v10864_v63 = vld [vmem:[#allocation37_spill] sm:$0xff]  ;;  %v7294_v19 = vld [vmem:[#allocation6 + $0xf0] sm:$0xff] }
 0x2ef   :  { %1776 = vmatpush.msrb.mxu0 %v7262_v61  ;;  %1816 = vmatpush.msrb.mxu2 %v7265_v47  ;;  %10865 = vst [vmem:[#allocation83_spill] sm:$0xff] %v7294_v19 }
 0x2f0   :  { %1948 = vmatpush.msra.mxu1 %v10851_v17  ;;  %1988 = vmatpush.msra.mxu3 %v10852_v29  ;;  %v7297_v17 = vld [vmem:[#allocation6 + $0xf8] sm:$0xff]  ;;  %v10867_v29 = vld [vmem:[#allocation34_spill] sm:$0xff] }
 0x2f1   :  { %1777 = vmatpush.msrb.mxu0 %v7270_v2  ;;  %1817 = vmatpush.msrb.mxu2 %v7273_v10  ;;  %10866 = vst [vmem:[#allocation85_spill] sm:$0xff] %v7297_v17 }
 0x2f2   :  { %1949 = vmatpush.msra.mxu1 %v10855_v8  ;;  %1989 = vmatpush.msra.mxu3 %v10856_v40  ;;  %v10868_v8 = vld [vmem:[#allocation39_spill] sm:$0xff]  ;;  %v7302_v40 = vld [vmem:[#allocation6 + $0xd0] sm:$0xff] }
 0x2f3   :  { %1778 = vmatpush.msrb.mxu0 %v7278_v46  ;;  %1818 = vmatpush.msrb.mxu2 %v7281_v6  ;;  %10869 = vst [vmem:[#allocation84_spill] sm:$0xff] %v7302_v40 }
 0x2f4   :  { %1950 = vmatpush.msra.mxu1 %v10859_v53  ;;  %1990 = vmatpush.msra.mxu3 %v10860_v45  ;;  %v7305_v53 = vld [vmem:[#allocation6 + $0xd8] sm:$0xff]  ;;  %v10871_v45 = vld [vmem:[#allocation36_spill] sm:$0xff] }
 0x2f5   :  { %1779 = vmatpush.msrb.mxu0 %v7286_v44  ;;  %1819 = vmatpush.msrb.mxu2 %v7289_v31  ;;  %10870 = vst [vmem:[#allocation86_spill] sm:$0xff] %v7305_v53  ;;  %v10904_v31 = vld [vmem:[#allocation61_spill] sm:$0xff] }
 0x2f6   :  { %2015 = vmatpush.msrb.mxu1 %v10863_v24  ;;  %2055 = vmatpush.msrb.mxu3 %v10864_v63  ;;  %v10872_v24 = vld [vmem:[#allocation41_spill] sm:$0xff]  ;;  %v7310_v63 = vld [vmem:[#allocation6 + $0xb0] sm:$0xff] }
 0x2f7   :  { %1780 = vmatpush.msrb.mxu0 %v7294_v19  ;;  %1820 = vmatpush.msrb.mxu2 %v7297_v17  ;;  %10873 = vst [vmem:[#allocation88_spill] sm:$0xff] %v7310_v63  ;;  %v7313_v17 = vld [vmem:[#allocation6 + $0xb8] sm:$0xff] }
 0x2f8   :  { %2016 = vmatpush.msrb.mxu1 %v10867_v29  ;;  %2056 = vmatpush.msrb.mxu3 %v10868_v8  ;;  %10874 = vst [vmem:[#allocation87_spill] sm:$0xff] %v7313_v17  ;;  %v10875_v29 = vld [vmem:[#allocation38_spill] sm:$0xff]  ;;  %v10876_v8 = vld [vmem:[#allocation43_spill] sm:$0xff] }
 0x2f9   :  { %1781 = vmatpush.msrb.mxu0 %v7302_v40  ;;  %1821 = vmatpush.msrb.mxu2 %v7305_v53  ;;  %v7318_v40 = vld [vmem:[#allocation6 + $0x90] sm:$0xff]  ;;  %v7321_v53 = vld [vmem:[#allocation6 + $0x98] sm:$0xff] }
 0x2fa   :  { %2017 = vmatpush.msrb.mxu1 %v10871_v45  ;;  %2057 = vmatpush.msrb.mxu3 %v10872_v24  ;;  %10877 = vst [vmem:[#allocation89_spill] sm:$0xff] %v7318_v40  ;;  %v10879_v45 = vld [vmem:[#allocation40_spill] sm:$0xff]  ;;  %v10880_v24 = vld [vmem:[#allocation45_spill] sm:$0xff]  ;;  %v10902_v19 = vld [vmem:[#allocation59_spill] sm:$0xff] }
 0x2fb   :  { %1782 = vmatpush.msrb.mxu0 %v7310_v63  ;;  %1822 = vmatpush.msrb.mxu2 %v7313_v17  ;;  %10878 = vst [vmem:[#allocation90_spill] sm:$0xff] %v7321_v53  ;;  %v7326_v63 = vld [vmem:[#allocation6 + $0x70] sm:$0xff]  ;;  %v7329_v17 = vld [vmem:[#allocation6 + $0x78] sm:$0xff] }
 0x2fc   :  { %2018 = vmatpush.msrb.mxu1 %v10875_v29  ;;  %2058 = vmatpush.msrb.mxu3 %v10876_v8  ;;  %10881 = vst [vmem:[#allocation91_spill] sm:$0xff] %v7326_v63  ;;  %v10883_v29 = vld [vmem:[#allocation42_spill] sm:$0xff]  ;;  %v10884_v8 = vld [vmem:[#allocation47_spill] sm:$0xff] }
 0x2fd   :  { %1783 = vmatpush.msrb.mxu0 %v7318_v40  ;;  %1823 = vmatpush.msrb.mxu2 %v7321_v53  ;;  %10882 = vst [vmem:[#allocation92_spill] sm:$0xff] %v7329_v17  ;;  %v7334_v40 = vld [vmem:[#allocation6 + $0x50] sm:$0xff]  ;;  %v7337_v53 = vld [vmem:[#allocation6 + $0x58] sm:$0xff] }
 0x2fe   :  { %2019 = vmatpush.msrb.mxu1 %v10879_v45  ;;  %2059 = vmatpush.msrb.mxu3 %v10880_v24  ;;  %10885 = vst [vmem:[#allocation93_spill] sm:$0xff] %v7334_v40  ;;  %v10887_v45 = vld [vmem:[#allocation44_spill] sm:$0xff]  ;;  %v10888_v24 = vld [vmem:[#allocation49_spill] sm:$0xff] }
 0x2ff   :  { %1784 = vmatpush.msrb.mxu0 %v7326_v63  ;;  %1824 = vmatpush.msrb.mxu2 %v7329_v17  ;;  %10886 = vst [vmem:[#allocation94_spill] sm:$0xff] %v7337_v53  ;;  %v7342_v63 = vld [vmem:[#allocation6 + $0x30] sm:$0xff]  ;;  %v7345_v17 = vld [vmem:[#allocation6 + $0x38] sm:$0xff] }
 0x300   :  { %2020 = vmatpush.msrb.mxu1 %v10883_v29  ;;  %2060 = vmatpush.msrb.mxu3 %v10884_v8  ;;  %10889 = vst [vmem:[#allocation95_spill] sm:$0xff] %v7342_v63  ;;  %v10891_v29 = vld [vmem:[#allocation46_spill] sm:$0xff]  ;;  %v10892_v8 = vld [vmem:[#allocation48_spill] sm:$0xff] }
 0x301   :  { %1785 = vmatpush.msrb.mxu0 %v7334_v40  ;;  %1825 = vmatpush.msrb.mxu2 %v7337_v53  ;;  %10890 = vst [vmem:[#allocation96_spill] sm:$0xff] %v7345_v17  ;;  %v7350_v40 = vld [vmem:[#allocation6 + $0x10] sm:$0xff]  ;;  %v7353_v53 = vld [vmem:[#allocation6 + $0x18] sm:$0xff] }
 0x302   :  { %2021 = vmatpush.msrb.mxu1 %v10887_v45  ;;  %2061 = vmatpush.msrb.mxu3 %v10888_v24  ;;  %10893 = vst [vmem:[#allocation97_spill] sm:$0xff] %v7350_v40  ;;  %v10895_v45 = vld [vmem:[#allocation56_spill] sm:$0xff] }
 0x303   :  { %1786 = vmatpush.msrb.mxu0 %v7342_v63  ;;  %1826 = vmatpush.msrb.mxu2 %v7345_v17  ;;  %10894 = vst [vmem:[#allocation100_spill] sm:$0xff] %v7353_v53  ;;  %v10896_v24 = vld [vmem:[#allocation52_spill] sm:$0xff]  ;;  %v10897_v17 = vld [vmem:[#allocation58_spill] sm:$0xff]  ;;  %v10900_v63 = vld [vmem:[#allocation57_spill] sm:$0xff] }
 0x304   :  { %2022 = vmatpush.msrb.mxu1 %v10891_v29  ;;  %2062 = vmatpush.msrb.mxu3 %v10892_v8  ;;  %v10898_v29 = vld [vmem:[#allocation55_spill] sm:$0xff]  ;;  %v10899_v8 = vld [vmem:[#allocation60_spill] sm:$0xff] }
 0x305   :  { %1787 = vmatpush.msrb.mxu0 %v7350_v40  ;;  %1827 = vmatpush.msrb.mxu2 %v7353_v53  ;;  %v10901_v40 = vld [vmem:[#allocation62_spill] sm:$0xff]  ;;  %v10903_v53 = vld [vmem:[#allocation64_spill] sm:$0xff] }
 0x306   :  { %1788 = vmatmul.f32.vlgmr.msrb.gmra.mxu0 %v7218_v20  ;;  %1828 = vmatmul.f32.vlgmr.msrb.gmra.mxu2 %v7218_v20  ;;  %v10905_v20 = vld [vmem:[#allocation66_spill] sm:$0xff] }
 0x307   :  { %2023 = vmatpush.msrb.mxu1 %v10895_v45  ;;  %2063 = vmatpush.msrb.mxu3 %v10896_v24  ;;  %v10906_v45 = vld [vmem:[#allocation63_spill] sm:$0xff]  ;;  %v10907_v24 = vld [vmem:[#allocation68_spill] sm:$0xff] }
 0x308   :  { %1915 = vmatpush.msra.mxu0 %v10897_v17  ;;  %1955 = vmatpush.msra.mxu2 %v10898_v29  ;;  %v10908_v17 = vld [vmem:[#allocation65_spill] sm:$0xff]  ;;  %v10909_v29 = vld [vmem:[#allocation70_spill] sm:$0xff] }
 0x309   :  { %2024 = vmatpush.msrb.mxu1 %v10899_v8  ;;  %2064 = vmatpush.msrb.mxu3 %v10900_v63  ;;  %v10910_v8 = vld [vmem:[#allocation111_spill] sm:$0xff]  ;;  %v10911_v63 = vld [vmem:[#allocation112_spill] sm:$0xff] }
 0x30a   :  { %1916 = vmatpush.msra.mxu0 %v10901_v40  ;;  %1956 = vmatpush.msra.mxu2 %v10902_v19  ;;  %v10912_v40 = vld [vmem:[#allocation113_spill] sm:$0xff]  ;;  %v10913_v19 = vld [vmem:[#allocation114_spill] sm:$0xff] }
 0x30b   :  { %2025 = vmatpush.msrb.mxu1 %v10903_v53  ;;  %2065 = vmatpush.msrb.mxu3 %v10904_v31  ;;  %v10914_v53 = vld [vmem:[#allocation115_spill] sm:$0xff]  ;;  %v10915_v31 = vld [vmem:[#allocation116_spill] sm:$0xff] }
 0x30c   :  { %1917 = vmatpush.msra.mxu0 %v10905_v20  ;;  %1957 = vmatpush.msra.mxu2 %v10906_v45  ;;  %v10916_v20 = vld [vmem:[#allocation117_spill] sm:$0xff]  ;;  %v10917_v45 = vld [vmem:[#allocation118_spill] sm:$0xff] }
 0x30d   :  { %2026 = vmatpush.msrb.mxu1 %v10907_v24  ;;  %2066 = vmatpush.msrb.mxu3 %v10908_v17  ;;  %v10918_v24 = vld [vmem:[#allocation119_spill] sm:$0xff]  ;;  %v10919_v17 = vld [vmem:[#allocation120_spill] sm:$0xff] }
 0x30e   :  { %1918 = vmatpush.msra.mxu0 %v10909_v29  ;;  %1958 = vmatpush.msra.mxu2 %v10910_v8  ;;  %v10920_v29 = vld [vmem:[#allocation121_spill] sm:$0xff]  ;;  %v10921_v8 = vld [vmem:[#allocation122_spill] sm:$0xff] }
 0x30f   :  { %2027 = vmatpush.msrb.mxu1 %v10911_v63  ;;  %2067 = vmatpush.msrb.mxu3 %v10912_v40  ;;  %v10922_v63 = vld [vmem:[#allocation123_spill] sm:$0xff]  ;;  %v10923_v40 = vld [vmem:[#allocation124_spill] sm:$0xff] }
 0x310   :  { %1919 = vmatpush.msra.mxu0 %v10913_v19  ;;  %1959 = vmatpush.msra.mxu2 %v10914_v53  ;;  %v10924_v19 = vld [vmem:[#allocation125_spill] sm:$0xff]  ;;  %v10925_v53 = vld [vmem:[#allocation126_spill] sm:$0xff] }
 0x311   :  { %2028 = vmatpush.msrb.mxu1 %v10915_v31  ;;  %2068 = vmatpush.msrb.mxu3 %v10916_v20  ;;  %v10926_v31 = vld [vmem:[#allocation127_spill] sm:$0xff]  ;;  %v10927_v20 = vld [vmem:[#allocation128_spill] sm:$0xff] }
 0x312   :  { %1920 = vmatpush.msra.mxu0 %v10917_v45  ;;  %1960 = vmatpush.msra.mxu2 %v10918_v24  ;;  %v10928_v45 = vld [vmem:[#allocation129_spill] sm:$0xff]  ;;  %v10929_v24 = vld [vmem:[#allocation130_spill] sm:$0xff] }
 0x313   :  { %2029 = vmatpush.msrb.mxu1 %v10919_v17  ;;  %2069 = vmatpush.msrb.mxu3 %v10920_v29  ;;  %v10930_v17 = vld [vmem:[#allocation131_spill] sm:$0xff]  ;;  %v10931_v29 = vld [vmem:[#allocation132_spill] sm:$0xff]  ;;  %v1542_v10 = vpop.f32.mrf.mxu3 }
 0x314   :  { %1921 = vmatpush.msra.mxu0 %v10921_v8  ;;  %1961 = vmatpush.msra.mxu2 %v10922_v63  ;;  %v10932_v8 = vld [vmem:[#allocation133_spill] sm:$0xff]  ;;  %v10933_v63 = vld [vmem:[#allocation134_spill] sm:$0xff] }
 0x315   :  { %2030 = vmatpush.msrb.mxu1 %v10923_v40  ;;  %2070 = vmatpush.msrb.mxu3 %v10924_v19  ;;  %v10934_v40 = vld [vmem:[#allocation135_spill] sm:$0xff]  ;;  %v10935_v19 = vld [vmem:[#allocation136_spill] sm:$0xff] }
 0x316   :  { %1922 = vmatpush.msra.mxu0 %v10925_v53  ;;  %1962 = vmatpush.msra.mxu2 %v10926_v31  ;;  %v10936_v53 = vld [vmem:[#allocation137_spill] sm:$0xff]  ;;  %v10937_v31 = vld [vmem:[#allocation138_spill] sm:$0xff] }
 0x318   :  { %1923 = vmatpush.msra.mxu0 %v10927_v20  ;;  %1963 = vmatpush.msra.mxu2 %v10928_v45  ;;  %v10938_v20 = vld [vmem:[#allocation139_spill] sm:$0xff]  ;;  %v10939_v45 = vld [vmem:[#allocation140_spill] sm:$0xff] }
 0x31a   :  { %1924 = vmatpush.msra.mxu0 %v10929_v24  ;;  %1964 = vmatpush.msra.mxu2 %v10930_v17  ;;  %v10940_v24 = vld [vmem:[#allocation141_spill] sm:$0xff]  ;;  %v10941_v17 = vld [vmem:[#allocation142_spill] sm:$0xff] }
 0x31c   :  { %1925 = vmatpush.msra.mxu0 %v10931_v29  ;;  %1965 = vmatpush.msra.mxu2 %v10932_v8  ;;  %v10942_v29 = vld [vmem:[#allocation143_spill] sm:$0xff]  ;;  %v10943_v8 = vld [vmem:[#allocation144_spill] sm:$0xff] }
 0x31e   :  { %1926 = vmatpush.msra.mxu0 %v10933_v63  ;;  %1966 = vmatpush.msra.mxu2 %v10934_v40  ;;  %v10944_v63 = vld [vmem:[#allocation145_spill] sm:$0xff]  ;;  %v10945_v40 = vld [vmem:[#allocation146_spill] sm:$0xff] }
 0x320   :  { %1927 = vmatpush.msra.mxu0 %v10935_v19  ;;  %1967 = vmatpush.msra.mxu2 %v10936_v53  ;;  %v10946_v19 = vld [vmem:[#allocation147_spill] sm:$0xff]  ;;  %v10947_v53 = vld [vmem:[#allocation148_spill] sm:$0xff] }
 0x322   :  { %1928 = vmatpush.msra.mxu0 %v10937_v31  ;;  %1968 = vmatpush.msra.mxu2 %v10938_v20  ;;  %v10948_v31 = vld [vmem:[#allocation149_spill] sm:$0xff]  ;;  %v10949_v20 = vld [vmem:[#allocation150_spill] sm:$0xff] }
 0x324   :  { %1929 = vmatpush.msra.mxu0 %v10939_v45  ;;  %1969 = vmatpush.msra.mxu2 %v10940_v24  ;;  %v10950_v45 = vld [vmem:[#allocation151_spill] sm:$0xff]  ;;  %v10951_v24 = vld [vmem:[#allocation152_spill] sm:$0xff] }
 0x326   :  { %1930 = vmatpush.msra.mxu0 %v10941_v17  ;;  %1970 = vmatpush.msra.mxu2 %v10942_v29  ;;  %v10952_v17 = vld [vmem:[#allocation153_spill] sm:$0xff]  ;;  %v10953_v29 = vld [vmem:[#allocation154_spill] sm:$0xff] }
 0x328   :  { %1995 = vmatpush.msrb.mxu0 %v10943_v8  ;;  %2035 = vmatpush.msrb.mxu2 %v10944_v63  ;;  %v10954_v8 = vld [vmem:[#allocation155_spill] sm:$0xff]  ;;  %v10955_v63 = vld [vmem:[#allocation156_spill] sm:$0xff] }
 0x32a   :  { %1996 = vmatpush.msrb.mxu0 %v10945_v40  ;;  %2036 = vmatpush.msrb.mxu2 %v10946_v19  ;;  %v10956_v40 = vld [vmem:[#allocation157_spill] sm:$0xff]  ;;  %v10957_v19 = vld [vmem:[#allocation158_spill] sm:$0xff] }
 0x32c   :  { %1997 = vmatpush.msrb.mxu0 %v10947_v53  ;;  %2037 = vmatpush.msrb.mxu2 %v10948_v31  ;;  %v10958_v53 = vld [vmem:[#allocation159_spill] sm:$0xff]  ;;  %v10959_v31 = vld [vmem:[#allocation160_spill] sm:$0xff] }
 0x32e   :  { %1998 = vmatpush.msrb.mxu0 %v10949_v20  ;;  %2038 = vmatpush.msrb.mxu2 %v10950_v45  ;;  %v10960_v20 = vld [vmem:[#allocation161_spill] sm:$0xff]  ;;  %v10961_v45 = vld [vmem:[#allocation162_spill] sm:$0xff] }
 0x330   :  { %1999 = vmatpush.msrb.mxu0 %v10951_v24  ;;  %2039 = vmatpush.msrb.mxu2 %v10952_v17  ;;  %v10962_v24 = vld [vmem:[#allocation163_spill] sm:$0xff]  ;;  %v10963_v17 = vld [vmem:[#allocation164_spill] sm:$0xff] }
 0x332   :  { %2000 = vmatpush.msrb.mxu0 %v10953_v29  ;;  %2040 = vmatpush.msrb.mxu2 %v10954_v8  ;;  %v10964_v29 = vld [vmem:[#allocation165_spill] sm:$0xff]  ;;  %v10965_v8 = vld [vmem:[#allocation166_spill] sm:$0xff] }
 0x334   :  { %2001 = vmatpush.msrb.mxu0 %v10955_v63  ;;  %2041 = vmatpush.msrb.mxu2 %v10956_v40  ;;  %v10966_v63 = vld [vmem:[#allocation167_spill] sm:$0xff]  ;;  %v10967_v40 = vld [vmem:[#allocation168_spill] sm:$0xff] }
 0x336   :  { %2002 = vmatpush.msrb.mxu0 %v10957_v19  ;;  %2042 = vmatpush.msrb.mxu2 %v10958_v53  ;;  %v10968_v19 = vld [vmem:[#allocation169_spill] sm:$0xff]  ;;  %v10969_v53 = vld [vmem:[#allocation170_spill] sm:$0xff] }
 0x338   :  { %2003 = vmatpush.msrb.mxu0 %v10959_v31  ;;  %2043 = vmatpush.msrb.mxu2 %v10960_v20  ;;  %v10970_v31 = vld [vmem:[#allocation171_spill] sm:$0xff] }
 0x33a   :  { %2004 = vmatpush.msrb.mxu0 %v10961_v45  ;;  %2044 = vmatpush.msrb.mxu2 %v10962_v24  ;;  %v10971_v45 = vld [vmem:[#allocation67_spill] sm:$0xff]  ;;  %v10972_v24 = vld [vmem:[#allocation172_spill] sm:$0xff] }
 0x33c   :  { %2005 = vmatpush.msrb.mxu0 %v10963_v17  ;;  %2045 = vmatpush.msrb.mxu2 %v10964_v29  ;;  %v10973_v17 = vld [vmem:[#allocation173_spill] sm:$0xff]  ;;  %v1502_v29 = vpop.f32.mrf.mxu1 }
 0x33e   :  { %2006 = vmatpush.msrb.mxu0 %v10965_v8  ;;  %2046 = vmatpush.msrb.mxu2 %v10966_v63  ;;  %v10974_v8 = vld [vmem:[#allocation174_spill] sm:$0xff]  ;;  %v10975_v63 = vld [vmem:[#allocation175_spill] sm:$0xff] }
 0x33f   :  { %v1482_v20 = vpop.f32.mrf.mxu0 }
 0x340   :  { %2007 = vmatpush.msrb.mxu0 %v10967_v40  ;;  %2047 = vmatpush.msrb.mxu2 %v10968_v19  ;;  %v1483_v44 = vadd.f32 %v1482_v20, %v10971_v45  ;;  %v10976_v19 = vld [vmem:[#allocation72_spill] sm:$0xff] }
 0x342   :  { %2008 = vmatpush.msrb.mxu0 %v10969_v53  ;;  %2048 = vmatpush.msrb.mxu2 %v10970_v31  ;;  %v1503_v6 = vadd.f32 %v1502_v29, %v1483_v44  ;;  %v1622_v44 = vpop.f32.mrf.mxu3 }
 0x344   :  { %2009 = vmatpush.msrb.mxu0 %v10972_v24  ;;  %2049 = vmatpush.msrb.mxu2 %v10973_v17  ;;  %v3977_v40 = vmul.f32 -1.442695, %v1503_v6  ;;  %v10977_v17 = vld [vmem:[#allocation69_spill] sm:$0xff] }
 0x345   :  { %v1522_v46 = vpop.f32.mrf.mxu2 }
 0x346   :  { %2010 = vmatpush.msrb.mxu0 %v10974_v8  ;;  %2050 = vmatpush.msrb.mxu2 %v10975_v63  ;;  %4106 = vpow2.f32 %v3977_v40  ;;  %v1523_v53 = vadd.f32 %v1522_v46, %v10976_v19  ;;  %v10978_v46 = vld [vmem:[#allocation74_spill] sm:$0xff] }
 0x348   :  { %v1543_v31 = vadd.f32 %v1542_v10, %v1523_v53  ;;  %v1582_v53 = vpop.f32.mrf.mxu1 }
 0x34a   :  { %v3978_v2 = vmul.f32 -1.442695, %v1543_v31  ;;  %v1562_v63 = vpop.f32.mrf.mxu0 }
 0x34b   :  { %v1563_v19 = vadd.f32 %v1562_v63, %v10978_v46 }
 0x34c   :  { %v4107_v47 = vpop.eup %4106  ;;  %4108 = vpow2.f32 %v3978_v2 }
 0x34d   :  { %v1628_v20 = vadd.f32 1.0, %v4107_v47  ;;  %v1583_v2 = vadd.f32 %v1582_v53, %v1563_v19 }
 0x34f   :  { %4110 = vrcp.f32 %v1628_v20  ;;  %vm1634_vm13 = vweird.f32 %v1628_v20 }
 0x351   :  { %v1602_v24 = vpop.f32.mrf.mxu2 }
 0x352   :  { %v1603_v45 = vadd.f32 %v1602_v24, %v10977_v17  ;;  %v4109_v29 = vpop.eup %4108  ;;  %v1640_v17 = vand.u32 2147483648, %v1628_v20 }
 0x353   :  { %v1647_v61 = vadd.f32 1.0, %v4109_v29  ;;  %v1638_v29 = vand.u32 2147483647, %v1628_v20 }
 0x354   :  { %v1623_v8 = vadd.f32 %v1622_v44, %v1603_v45 }
 0x355   :  { %v4111_v42 = vpop.eup %4110  ;;  %4112 = vrcp.f32 %v1647_v61  ;;  %vm1653_vm0 = vweird.f32 %v1647_v61  ;;  %vm1639_vm1 = vcmp.eq.f32.partialorder %v1638_v29, 8.507059e+37 }
 0x356   :  { %v3979_v6 = vmul.f32 -1.442695, %v1623_v8  ;;  %v1630_v40 = vmul.f32 %v4111_v42, %v1628_v20  ;;  %vm1635_vm12 = vweird.f32 %v4111_v42  ;;  %v1659_v8 = vand.u32 2147483648, %v1647_v61  ;;  %v1729_v20 = vpop.f32.mrf.mxu1 }
 0x357   :  { %vm1636_vm14 = vmor %vm1634_vm13, %vm1635_vm12 }
 0x358   :  { %4114 = vpow2.f32 %v3979_v6  ;;  %v1631_v10 = vsub.f32 1.0, %v1630_v40  ;;  %v1657_v40 = vand.u32 2147483647, %v1647_v61 }
 0x359   :  { %4116 = vtanh.f32 %v1583_v2 }
 0x35a   :  { %v1632_v47 = vmul.f32 %v4111_v42, %v1631_v10  ;;  %v1641_v10 = vor.u32 1.1754944e-38, %v1640_v17  ;;  %vm1658_vm3 = vcmp.eq.f32.partialorder %v1657_v40, 8.507059e+37 }
 0x35b   :  { %v4113_v31 = vpop.eup %4112 }
 0x35c   :  { %v1649_v55 = vmul.f32 %v4113_v31, %v1647_v61  ;;  %v1633_v24 = vadd.f32 %v4111_v42, %v1632_v47  ;;  %vm1654_vm15 = vweird.f32 %v4113_v31  ;;  %v1769_v61 = vpop.f32.mrf.mxu3 }
 0x35d   :  { %vm1655_vm2 = vmor %vm1653_vm0, %vm1654_vm15 }
 0x35e   :  { %v4115_v36 = vpop.eup %4114  ;;  %v1650_v44 = vsub.f32 1.0, %v1649_v55  ;;  %v1637_v6 = vsel %vm1636_vm14, %v4111_v42, %v1633_v24 }
 0x35f   :  { %v1667_v45 = vadd.f32 1.0, %v4115_v36  ;;  %v1660_v36 = vor.u32 1.1754944e-38, %v1659_v8  ;;  %v1642_v55 = vsel %vm1639_vm1, %v1641_v10, %v1637_v6  ;;  %v4117_v46 = vpop.eup %4116 }
 0x360   :  { %v1651_v63 = vmul.f32 %v4113_v31, %v1650_v44  ;;  %v1684_v24 = vmul.f32 %v4117_v46, %v1642_v55 }
 0x361   :  { %4118 = vrcp.f32 %v1667_v45  ;;  %v1679_v40 = vand.u32 2147483648, %v1667_v45  ;;  %vm1673_vm5 = vweird.f32 %v1667_v45 }
 0x362   :  { %v1652_v47 = vadd.f32 %v4113_v31, %v1651_v63 }
 0x363   :  { %v1709_v19 = vpop.f32.mrf.mxu0  ;;  %v1680_v46 = vor.u32 1.1754944e-38, %v1679_v40  ;;  %v7490_v40 = vld [vmem:[#allocation6 + $0x348] sm:$0xff] }
 0x364   :  { %v1710_v53 = vadd.f32 %v1709_v19, %v10565_v14  ;;  %v1656_v2 = vsel %vm1655_vm2, %v4113_v31, %v1652_v47  ;;  %10985 = vst [vmem:[#allocation107_spill] sm:$0xff] %v7490_v40 }
 0x365   :  { %v1661_v22 = vsel %vm1658_vm3, %v1660_v36, %v1656_v2  ;;  %v7451_v2 = vld [vmem:[#allocation6 + $0x3e0] sm:$0xff] }
 0x366   :  { %v1730_v44 = vadd.f32 %v1729_v20, %v1710_v53  ;;  %v1683_v42 = vmul.f32 %v1661_v22, %v6990_v54  ;;  %v1677_v53 = vand.u32 2147483647, %v1667_v45 }
 0x367   :  { %v4119_v33 = vpop.eup %4118 }
 0x368   :  { %v1669_v27 = vmul.f32 %v4119_v33, %v1667_v45  ;;  %v7445_v29 = vadd.f32 %v1684_v24, %v1683_v42  ;;  %v3982_v8 = vmul.f32 -1.442695, %v1730_v44  ;;  %vm1674_vm4 = vweird.f32 %v4119_v33  ;;  %v7454_v45 = vld [vmem:[#allocation6 + $0x3e8] sm:$0xff]  ;;  %v7459_v44 = vld [vmem:[#allocation6 + $0x3c0] sm:$0xff] }
 0x369   :  { %v1749_v17 = vpop.f32.mrf.mxu2  ;;  %vm1675_vm6 = vmor %vm1673_vm5, %vm1674_vm4  ;;  %vm1678_vm7 = vcmp.eq.f32.partialorder %v1677_v53, 8.507059e+37  ;;  %v7462_v42 = vld [vmem:[#allocation6 + $0x3c8] sm:$0xff]  ;;  %v7495_v53 = vld [vmem:[#allocation6 + $0x320] sm:$0xff] }
 0x36a   :  { %v1750_v19 = vadd.f32 %v1749_v17, %v10566_v60  ;;  %v1670_v63 = vsub.f32 1.0, %v1669_v27  ;;  %4120 = vtanh.f32 %v7445_v29  ;;  %v7467_v17 = vld [vmem:[#allocation6 + $0x3a0] sm:$0xff]  ;;  %10986 = vst [vmem:[#allocation110_spill] sm:$0xff] %v7495_v53 }
 0x36b   :  { %4122 = vpow2.f32 %v3982_v8  ;;  %v7481_v8 = vld [vmem:[#allocation6 + $0x360] sm:$0xff] }
 0x36c   :  { %v1770_v6 = vadd.f32 %v1769_v61, %v1750_v19  ;;  %v1671_v31 = vmul.f32 %v4119_v33, %v1670_v63  ;;  %v7470_v19 = vld [vmem:[#allocation6 + $0x3a8] sm:$0xff]  ;;  %v7474_v61 = vld [vmem:[#allocation6 + $0x380] sm:$0xff]  ;;  %10982 = vst [vmem:[#allocation104_spill] sm:$0xff] %v7481_v8 }
 0x36d   :  { %10979 = vst [vmem:[#allocation101_spill] sm:$0xff] %v7470_v19  ;;  %v7477_v63 = vld [vmem:[#allocation6 + $0x388] sm:$0xff] }
 0x36e   :  { %v3983_v10 = vmul.f32 -1.442695, %v1770_v6  ;;  %v1672_v54 = vadd.f32 %v4119_v33, %v1671_v31  ;;  %10980 = vst [vmem:[#allocation102_spill] sm:$0xff] %v7474_v61  ;;  %v7484_v6 = vld [vmem:[#allocation6 + $0x368] sm:$0xff]  ;;  %v7487_v31 = vld [vmem:[#allocation6 + $0x340] sm:$0xff] }
 0x36f   :  { %10981 = vst [vmem:[#allocation103_spill] sm:$0xff] %v7477_v63 }
 0x370   :  { %4124 = vpow2.f32 %v3983_v10  ;;  %v1676_v22 = vsel %vm1675_vm6, %v4119_v33, %v1672_v54  ;;  %v4121_v47 = vpop.eup %4120  ;;  %10983 = vst [vmem:[#allocation105_spill] sm:$0xff] %v7484_v6  ;;  %v7498_v54 = vld [vmem:[#allocation6 + $0x328] sm:$0xff] }
 0x371   :  { %v1681_v36 = vsel %vm1678_vm7, %v1680_v46, %v1676_v22  ;;  %v4123_v55 = vpop.eup %4122  ;;  %10984 = vst [vmem:[#allocation106_spill] sm:$0xff] %v7487_v31  ;;  %v7503_v46 = vld [vmem:[#allocation6 + $0x300] sm:$0xff] }
 0x372   :  { %v1687_v27 = vmul.f32 %v4121_v47, %v1681_v36  ;;  %v7457_v33 = vadd.f32 1.0, %v4123_v55  ;;  %10987 = vst [vmem:[#allocation12_spill] sm:$0xff] %v7498_v54  ;;  %v7506_v47 = vld [vmem:[#allocation6 + $0x308] sm:$0xff] }
 0x373   :  { %10988 = vst [vmem:[#allocation98_spill] sm:$0xff] %v7503_v46 }
 0x374   :  { %3980 = vst [vmem:[%s9606_s5 + $0x10] sm:$0xff] %v1687_v27  ;;  %1951 = vmatmul.f32.vlgmr.msra.gmra.mxu1 %v1687_v27  ;;  %1991 = vmatmul.f32.vlgmr.msra.gmra.mxu3 %v1687_v27  ;;  %4126 = vrcp.f32 %v7457_v33  ;;  %vm1861_vm10 = vweird.f32 %v7457_v33 }
 0x375   :  { %2162 = vmatpush.msra.mxu1 %v7451_v2  ;;  %2202 = vmatpush.msra.mxu3 %v7454_v45  ;;  %10989 = vst [vmem:[#allocation99_spill] sm:$0xff] %v7506_v47 }
 0x376   :  { %v4125_v20 = vpop.eup %4124 }
 0x377   :  { %2163 = vmatpush.msra.mxu1 %v7459_v44  ;;  %2203 = vmatpush.msra.mxu3 %v7462_v42  ;;  %v7465_v24 = vadd.f32 1.0, %v4125_v20  ;;  %v7513_v20 = vld [vmem:[#allocation6 + $0x2e0] sm:$0xff] }
 0x378   :  { %10990 = vst [vmem:[#allocation15_spill] sm:$0xff] %v7513_v20 }
 0x379   :  { %2164 = vmatpush.msra.mxu1 %v7467_v17  ;;  %2204 = vmatpush.msra.mxu3 %v7470_v19  ;;  %4128 = vrcp.f32 %v7465_v24  ;;  %v7533_v19 = vld [vmem:[#allocation6 + $0x280] sm:$0xff]  ;;  %vm1880_vm11 = vweird.f32 %v7465_v24 }
 0x37a   :  { %v7493_v10 = vpop.eup %4126  ;;  %10995 = vst [vmem:[#allocation17_spill] sm:$0xff] %v7533_v19 }
 0x37b   :  { %2165 = vmatpush.msra.mxu1 %v7474_v61  ;;  %2205 = vmatpush.msra.mxu3 %v7477_v63  ;;  %v1857_v36 = vmul.f32 %v7493_v10, %v7457_v33  ;;  %v7527_v63 = vld [vmem:[#allocation6 + $0x2a0] sm:$0xff]  ;;  %v1809_v61 = vpop.f32.mrf.mxu1  ;;  %vm1862_vm8 = vweird.f32 %v7493_v10 }
 0x37c   :  { %2031 = vmatmul.f32.vlgmr.msrb.gmra.mxu1 %v1687_v27  ;;  %2071 = vmatmul.f32.vlgmr.msrb.gmra.mxu3 %v1687_v27  ;;  %10993 = vst [vmem:[#allocation16_spill] sm:$0xff] %v7527_v63  ;;  %vm7567_vm12 = vmor %vm1861_vm10, %vm1862_vm8 }
 0x37d   :  { %2166 = vmatpush.msra.mxu1 %v7481_v8  ;;  %2206 = vmatpush.msra.mxu3 %v7484_v6  ;;  %v1849_v6 = vpop.f32.mrf.mxu3  ;;  %v1858_v8 = vsub.f32 1.0, %v1857_v36 }
 0x37f   :  { %2167 = vmatpush.msra.mxu1 %v7487_v31  ;;  %2207 = vmatpush.msra.mxu3 %v7490_v40  ;;  %v7501_v22 = vpop.eup %4128 }
 0x380   :  { %v1876_v27 = vmul.f32 %v7501_v22, %v7465_v24  ;;  %vm1881_vm9 = vweird.f32 %v7501_v22 }
 0x381   :  { %2168 = vmatpush.msra.mxu1 %v7495_v53  ;;  %2208 = vmatpush.msra.mxu3 %v7498_v54  ;;  %v7516_v54 = vld [vmem:[#allocation6 + $0x2e8] sm:$0xff]  ;;  %v7519_v53 = vld [vmem:[#allocation6 + $0x2c0] sm:$0xff]  ;;  %vm7581_vm13 = vmor %vm1880_vm11, %vm1881_vm9 }
 0x382   :  { %10991 = vst [vmem:[#allocation13_spill] sm:$0xff] %v7516_v54 }
 0x383   :  { %2169 = vmatpush.msra.mxu1 %v7503_v46  ;;  %2209 = vmatpush.msra.mxu3 %v7506_v47  ;;  %v1789_v55 = vpop.f32.mrf.mxu0  ;;  %10992 = vst [vmem:[#allocation14_spill] sm:$0xff] %v7519_v53  ;;  %v7522_v47 = vld [vmem:[#allocation6 + $0x2c8] sm:$0xff] }
 0x384   :  { %v1790_v40 = vadd.f32 %v1789_v55, %v10567_v13  ;;  %v7536_v55 = vld [vmem:[#allocation6 + $0x288] sm:$0xff]  ;;  %v7597_v13 = vld [vmem:[#allocation6 + $0x3d0] sm:$0xff] }
 0x385   :  { %2170 = vmatpush.msra.mxu1 %v7513_v20  ;;  %2210 = vmatpush.msra.mxu3 %v7516_v54  ;;  %v1877_v20 = vsub.f32 1.0, %v1876_v27  ;;  %v7530_v54 = vld [vmem:[#allocation6 + $0x2a8] sm:$0xff]  ;;  %10996 = vst [vmem:[#allocation21_spill] sm:$0xff] %v7536_v55 }
 0x386   :  { %10994 = vst [vmem:[#allocation19_spill] sm:$0xff] %v7530_v54 }
 0x387   :  { %2171 = vmatpush.msra.mxu1 %v7519_v53  ;;  %2211 = vmatpush.msra.mxu3 %v7522_v47  ;;  %v1878_v27 = vmul.f32 %v7501_v22, %v1877_v20  ;;  %v1886_v20 = vand.u32 2147483648, %v7465_v24 }
 0x389   :  { %v1829_v46 = vpop.f32.mrf.mxu2  ;;  %2172 = vmatpush.msra.mxu1 %v7527_v63  ;;  %2212 = vmatpush.msra.mxu3 %v7530_v54  ;;  %v1859_v63 = vmul.f32 %v7493_v10, %v1858_v8  ;;  %v1879_v8 = vadd.f32 %v7501_v22, %v1878_v27  ;;  %v1884_v27 = vand.u32 2147483647, %v7465_v24 }
 0x38a   :  { %v1830_v31 = vadd.f32 %v1829_v46, %v10568_v15  ;;  %v1810_v46 = vadd.f32 %v1809_v61, %v1790_v40  ;;  %v7541_v15 = vld [vmem:[#allocation6 + $0x260] sm:$0xff] }
 0x38b   :  { %2173 = vmatpush.msra.mxu1 %v7533_v19  ;;  %2213 = vmatpush.msra.mxu3 %v7536_v55  ;;  %10997 = vst [vmem:[#allocation18_spill] sm:$0xff] %v7541_v15  ;;  %v7550_v55 = vld [vmem:[#allocation6 + $0x248] sm:$0xff]  ;;  %v1860_v61 = vadd.f32 %v7493_v10, %v1859_v63  ;;  %v7557_v40 = vld [vmem:[#allocation6 + $0x220] sm:$0xff]  ;;  %v1887_v19 = vor.u32 1.1754944e-38, %v1886_v20  ;;  %vm1885_vm15 = vcmp.eq.f32.partialorder %v1884_v27, 8.507059e+37  ;;  %v7603_v63 = vld [vmem:[#allocation6 + $0x3b0] sm:$0xff] }
 0x38c   :  { %v1850_v53 = vadd.f32 %v1849_v6, %v1830_v31  ;;  %v7544_v6 = vld [vmem:[#allocation6 + $0x268] sm:$0xff]  ;;  %v7547_v31 = vld [vmem:[#allocation6 + $0x240] sm:$0xff]  ;;  %11000 = vst [vmem:[#allocation25_spill] sm:$0xff] %v7550_v55  ;;  %v7627_v27 = vld [vmem:[#allocation6 + $0x358] sm:$0xff] }
 0x38d   :  { %2174 = vmatpush.msra.mxu1 %v7541_v15  ;;  %10998 = vst [vmem:[#allocation23_spill] sm:$0xff] %v7544_v6  ;;  %2214 = vmatpush.msra.mxu3 %v7544_v6  ;;  %v7585_v6 = vld [vmem:[#allocation6 + $0x3f0] sm:$0xff]  ;;  %v1864_v24 = vsel %vm7567_vm12, %v7493_v10, %v1860_v61 }
 0x38e   :  { %v3984_v36 = vmul.f32 -1.442695, %v1850_v53  ;;  %10999 = vst [vmem:[#allocation20_spill] sm:$0xff] %v7547_v31  ;;  %v7560_v53 = vld [vmem:[#allocation6 + $0x228] sm:$0xff] }
 0x38f   :  { %2175 = vmatpush.msra.mxu1 %v7547_v31  ;;  %2215 = vmatpush.msra.mxu3 %v7550_v55  ;;  %11001 = vst [vmem:[#allocation22_spill] sm:$0xff] %v7557_v40  ;;  %v7609_v31 = vld [vmem:[#allocation6 + $0x390] sm:$0xff] }
 0x390   :  { %4130 = vpow2.f32 %v3984_v36  ;;  %11002 = vst [vmem:[#allocation27_spill] sm:$0xff] %v7560_v53  ;;  %v1865_v36 = vand.u32 2147483647, %v7457_v33 }
 0x391   :  { %4132 = vtanh.f32 %v1810_v46  ;;  %2176 = vmatpush.msra.mxu1 %v7557_v40  ;;  %2216 = vmatpush.msra.mxu3 %v7560_v53  ;;  %v1867_v46 = vand.u32 2147483648, %v7457_v33  ;;  %v7573_v40 = vld [vmem:[#allocation6 + $0x200] sm:$0xff]  ;;  %v7576_v53 = vld [vmem:[#allocation6 + $0x208] sm:$0xff]  ;;  %11009 = vst [vmem:[#allocation26_spill] sm:$0xff] %v7585_v6  ;;  %v7588_v33 = vld [vmem:[#allocation6 + $0x3f8] sm:$0xff] }
 0x392   :  { %11005 = vst [vmem:[#allocation24_spill] sm:$0xff] %v7573_v40  ;;  %vm1866_vm14 = vcmp.eq.f32.partialorder %v1865_v36, 8.507059e+37  ;;  %v7624_v36 = vld [vmem:[#allocation6 + $0x350] sm:$0xff] }
 0x393   :  { %2177 = vmatpush.msra.mxu1 %v7573_v40  ;;  %11006 = vst [vmem:[#allocation29_spill] sm:$0xff] %v7576_v53  ;;  %2217 = vmatpush.msra.mxu3 %v7576_v53  ;;  %v1883_v53 = vsel %vm7581_vm13, %v7501_v22, %v1879_v8  ;;  %v1868_v54 = vor.u32 1.1754944e-38, %v1867_v46  ;;  %v7606_v22 = vld [vmem:[#allocation6 + $0x3b8] sm:$0xff] }
 0x394   :  { %v1888_v61 = vsel %vm1885_vm15, %v1887_v19, %v1883_v53  ;;  %v7612_v8 = vld [vmem:[#allocation6 + $0x398] sm:$0xff]  ;;  %v7616_v19 = vld [vmem:[#allocation6 + $0x370] sm:$0xff]  ;;  %11012 = vst [vmem:[#allocation33_spill] sm:$0xff] %v7624_v36 }
 0x395   :  { %2242 = vmatpush.msrb.mxu1 %v7585_v6  ;;  %2282 = vmatpush.msrb.mxu3 %v7588_v33  ;;  %v7600_v6 = vld [vmem:[#allocation6 + $0x3d8] sm:$0xff]  ;;  %v1869_v10 = vsel %vm1866_vm14, %v1868_v54, %v1864_v24  ;;  %v1910_v54 = vmul.f32 %v1888_v61, %v7084_v43  ;;  %11010 = vst [vmem:[#allocation31_spill] sm:$0xff] %v7616_v19  ;;  %v7630_v24 = vld [vmem:[#allocation6 + $0x330] sm:$0xff] }
 0x396   :  { %v4131_v55 = vpop.eup %4130  ;;  %v7619_v53 = vld [vmem:[#allocation6 + $0x378] sm:$0xff]  ;;  %11013 = vst [vmem:[#allocation30_spill] sm:$0xff] %v7627_v27 }
 0x397   :  { %v1894_v40 = vadd.f32 1.0, %v4131_v55  ;;  %v4133_v15 = vpop.eup %4132  ;;  %2243 = vmatpush.msrb.mxu1 %v7597_v13  ;;  %2283 = vmatpush.msrb.mxu3 %v7600_v6  ;;  %11011 = vst [vmem:[#allocation28_spill] sm:$0xff] %v7619_v53 }
 0x398   :  { %v1911_v55 = vmul.f32 %v4133_v15, %v1869_v10  ;;  %11014 = vst [vmem:[#allocation35_spill] sm:$0xff] %v7630_v24  ;;  %v7633_v10 = vld [vmem:[#allocation6 + $0x338] sm:$0xff] }
 0x399   :  { %4134 = vrcp.f32 %v1894_v40  ;;  %2244 = vmatpush.msrb.mxu1 %v7603_v63  ;;  %2284 = vmatpush.msrb.mxu3 %v7606_v22  ;;  %11015 = vst [vmem:[#allocation32_spill] sm:$0xff] %v7633_v10  ;;  %v1906_v61 = vand.u32 2147483648, %v1894_v40  ;;  %vm1900_vm1 = vweird.f32 %v1894_v40 }
 0x39a   :  { %v7622_v15 = vadd.f32 %v1911_v55, %v1910_v54  ;;  %v1904_v54 = vand.u32 2147483647, %v1894_v40 }
 0x39b   :  { %2245 = vmatpush.msrb.mxu1 %v7609_v31  ;;  %2285 = vmatpush.msrb.mxu3 %v7612_v8 }
 0x39c   :  { %4136 = vtanh.f32 %v7622_v15  ;;  %vm1905_vm3 = vcmp.eq.f32.partialorder %v1904_v54, 8.507059e+37  ;;  %v7805_v54 = vld [vmem:[#allocation8 + $0x288] sm:$0xff] }
 0x39d   :  { %2246 = vmatpush.msrb.mxu1 %v7616_v19  ;;  %2286 = vmatpush.msrb.mxu3 %v7619_v53  ;;  %v7649_v19 = vld [vmem:[#allocation6 + $0x2d0] sm:$0xff]  ;;  %11038 = vst [vmem:[#allocation55_spill] sm:$0xff] %v7805_v54 }
 0x39f   :  { %v4135_v20 = vpop.eup %4134  ;;  %2247 = vmatpush.msrb.mxu1 %v7624_v36  ;;  %2287 = vmatpush.msrb.mxu3 %v7627_v27  ;;  %v7637_v36 = vld [vmem:[#allocation6 + $0x310] sm:$0xff]  ;;  %v7640_v27 = vld [vmem:[#allocation6 + $0x318] sm:$0xff] }
 0x3a0   :  { %v1896_v46 = vmul.f32 %v4135_v20, %v1894_v40  ;;  %vm1901_vm0 = vweird.f32 %v4135_v20  ;;  %11016 = vst [vmem:[#allocation37_spill] sm:$0xff] %v7637_v36 }
 0x3a1   :  { %2248 = vmatpush.msrb.mxu1 %v7630_v24  ;;  %2288 = vmatpush.msrb.mxu3 %v7633_v10  ;;  %11017 = vst [vmem:[#allocation34_spill] sm:$0xff] %v7640_v27  ;;  %v7643_v24 = vld [vmem:[#allocation6 + $0x2f0] sm:$0xff]  ;;  %v7646_v10 = vld [vmem:[#allocation6 + $0x2f8] sm:$0xff]  ;;  %vm1902_vm2 = vmor %vm1900_vm1, %vm1901_vm0 }
 0x3a2   :  { %v1897_v43 = vsub.f32 1.0, %v1896_v46  ;;  %11018 = vst [vmem:[#allocation39_spill] sm:$0xff] %v7643_v24  ;;  %v4137_v40 = vpop.eup %4136 }
 0x3a3   :  { %2249 = vmatpush.msrb.mxu1 %v7637_v36  ;;  %2289 = vmatpush.msrb.mxu3 %v7640_v27  ;;  %11019 = vst [vmem:[#allocation36_spill] sm:$0xff] %v7646_v10  ;;  %v7652_v36 = vld [vmem:[#allocation6 + $0x2d8] sm:$0xff] }
 0x3a4   :  { %v1898_v55 = vmul.f32 %v4135_v20, %v1897_v43  ;;  %v1907_v43 = vor.u32 1.1754944e-38, %v1906_v61  ;;  %v7672_v61 = vld [vmem:[#allocation6 + $0x270] sm:$0xff] }
 0x3a5   :  { %2250 = vmatpush.msrb.mxu1 %v7643_v24  ;;  %2290 = vmatpush.msrb.mxu3 %v7646_v10  ;;  %v7655_v24 = vld [vmem:[#allocation6 + $0x2b0] sm:$0xff]  ;;  %v7658_v10 = vld [vmem:[#allocation6 + $0x2b8] sm:$0xff] }
 0x3a6   :  { %v1899_v46 = vadd.f32 %v4135_v20, %v1898_v55 }
 0x3a7   :  { %2251 = vmatpush.msrb.mxu1 %v7649_v19  ;;  %2291 = vmatpush.msrb.mxu3 %v7652_v36 }
 0x3a8   :  { %v1903_v53 = vsel %vm1902_vm2, %v4135_v20, %v1899_v46  ;;  %v7668_v20 = vld [vmem:[#allocation6 + $0x298] sm:$0xff] }
 0x3a9   :  { %v1908_v55 = vsel %vm1905_vm3, %v1907_v43, %v1903_v53  ;;  %2252 = vmatpush.msrb.mxu1 %v7655_v24  ;;  %2292 = vmatpush.msrb.mxu3 %v7658_v10  ;;  %v7664_v53 = vld [vmem:[#allocation6 + $0x290] sm:$0xff]  ;;  %v11039_v46 = vld [vmem:[#allocation79_spill] sm:$0xff]  ;;  %v11040_v43 = vld [vmem:[#allocation76_spill] sm:$0xff] }
 0x3aa   :  { %v1914_v27 = vmul.f32 %v4137_v40, %v1908_v55  ;;  %v7810_v40 = vld [vmem:[#allocation8 + $0x260] sm:$0xff]  ;;  %v7813_v55 = vld [vmem:[#allocation8 + $0x268] sm:$0xff] }
 0x3ab   :  { %2253 = vmatpush.msrb.mxu1 %v7664_v53  ;;  %2293 = vmatpush.msrb.mxu3 %v7668_v20  ;;  %11041 = vst [vmem:[#allocation60_spill] sm:$0xff] %v7810_v40 }
 0x3ac   :  { %1931 = vmatmul.f32.vlgmr.msra.gmra.mxu0 %v1914_v27  ;;  %1971 = vmatmul.f32.vlgmr.msra.gmra.mxu2 %v1914_v27  ;;  %11042 = vst [vmem:[#allocation57_spill] sm:$0xff] %v7813_v55 }
 0x3ad   :  { %2142 = vmatpush.msra.mxu0 %v7101_v56  ;;  %2178 = vmatmul.f32.vlgmr.msra.gmra.mxu1 %v1914_v27  ;;  %v7676_v56 = vld [vmem:[#allocation6 + $0x278] sm:$0xff] }
 0x3ae   :  { %2182 = vmatpush.msra.mxu2 %v7104_v48  ;;  %2218 = vmatmul.f32.vlgmr.msra.gmra.mxu3 %v1914_v27  ;;  %v7680_v48 = vld [vmem:[#allocation6 + $0x250] sm:$0xff] }
 0x3af   :  { %2143 = vmatpush.msra.mxu0 %v7107_v21  ;;  %2254 = vmatpush.msrb.mxu1 %v7672_v61  ;;  %v7684_v21 = vld [vmem:[#allocation6 + $0x258] sm:$0xff] }
 0x3b0   :  { %2183 = vmatpush.msra.mxu2 %v7111_v18  ;;  %2294 = vmatpush.msrb.mxu3 %v7676_v56  ;;  %v7689_v18 = vld [vmem:[#allocation6 + $0x230] sm:$0xff] }
 0x3b1   :  { %2144 = vmatpush.msra.mxu0 %v7115_v5  ;;  %2255 = vmatpush.msrb.mxu1 %v7680_v48  ;;  %v7692_v5 = vld [vmem:[#allocation6 + $0x238] sm:$0xff] }
 0x3b2   :  { %2184 = vmatpush.msra.mxu2 %v7119_v38  ;;  %2295 = vmatpush.msrb.mxu3 %v7684_v21  ;;  %v7697_v38 = vld [vmem:[#allocation6 + $0x210] sm:$0xff] }
 0x3b3   :  { %2145 = vmatpush.msra.mxu0 %v7123_v57  ;;  %2256 = vmatpush.msrb.mxu1 %v7689_v18  ;;  %v7700_v57 = vld [vmem:[#allocation6 + $0x218] sm:$0xff] }
 0x3b4   :  { %2185 = vmatpush.msra.mxu2 %v7127_v25  ;;  %2011 = vmatmul.f32.vlgmr.msrb.gmra.mxu0 %v1914_v27  ;;  %v7705_v25 = vld [vmem:[#allocation8 + $0x3e0] sm:$0xff] }
 0x3b5   :  { %2051 = vmatmul.f32.vlgmr.msrb.gmra.mxu2 %v1914_v27  ;;  %2146 = vmatpush.msra.mxu0 %v7130_v51  ;;  %v7708_v51 = vld [vmem:[#allocation8 + $0x3e8] sm:$0xff] }
 0x3b6   :  { %2186 = vmatpush.msra.mxu2 %v7133_v30  ;;  %2296 = vmatpush.msrb.mxu3 %v7692_v5  ;;  %v7713_v30 = vld [vmem:[#allocation8 + $0x3c0] sm:$0xff] }
 0x3b7   :  { %2147 = vmatpush.msra.mxu0 %v7137_v62  ;;  %2257 = vmatpush.msrb.mxu1 %v7697_v38  ;;  %v7716_v62 = vld [vmem:[#allocation8 + $0x3c8] sm:$0xff] }
 0x3b8   :  { %2187 = vmatpush.msra.mxu2 %v7141_v39  ;;  %2297 = vmatpush.msrb.mxu3 %v7700_v57  ;;  %v7721_v39 = vld [vmem:[#allocation8 + $0x3a0] sm:$0xff] }
 0x3b9   :  { %2258 = vmatmul.f32.vlgmr.msrb.gmra.mxu1 %v1914_v27  ;;  %2298 = vmatmul.f32.vlgmr.msrb.gmra.mxu3 %v1914_v27  ;;  %v7802_v27 = vld [vmem:[#allocation8 + $0x280] sm:$0xff] }
 0x3ba   :  { %2148 = vmatpush.msra.mxu0 %v7145_v1  ;;  %2188 = vmatpush.msra.mxu2 %v7148_v23  ;;  %v7724_v1 = vld [vmem:[#allocation8 + $0x3a8] sm:$0xff]  ;;  %v7729_v23 = vld [vmem:[#allocation8 + $0x380] sm:$0xff]  ;;  %11037 = vst [vmem:[#allocation58_spill] sm:$0xff] %v7802_v27 }
 0x3bb   :  { %2385 = vmatpush.msra.mxu1 %v7705_v25  ;;  %2425 = vmatpush.msra.mxu3 %v7708_v51 }
 0x3bc   :  { %2149 = vmatpush.msra.mxu0 %v7153_v41  ;;  %2189 = vmatpush.msra.mxu2 %v7156_v28  ;;  %v7732_v41 = vld [vmem:[#allocation8 + $0x388] sm:$0xff]  ;;  %v7737_v28 = vld [vmem:[#allocation8 + $0x360] sm:$0xff] }
 0x3bd   :  { %2386 = vmatpush.msra.mxu1 %v7713_v30  ;;  %2426 = vmatpush.msra.mxu3 %v7716_v62 }
 0x3be   :  { %2150 = vmatpush.msra.mxu0 %v7161_v3  ;;  %2190 = vmatpush.msra.mxu2 %v7164_v50  ;;  %v7740_v3 = vld [vmem:[#allocation8 + $0x368] sm:$0xff]  ;;  %v7745_v50 = vld [vmem:[#allocation8 + $0x340] sm:$0xff] }
 0x3bf   :  { %2387 = vmatpush.msra.mxu1 %v7721_v39  ;;  %2427 = vmatpush.msra.mxu3 %v7724_v1  ;;  %11020 = vst [vmem:[#allocation41_spill] sm:$0xff] %v7740_v3 }
 0x3c0   :  { %2151 = vmatpush.msra.mxu0 %v7169_v0  ;;  %2191 = vmatpush.msra.mxu2 %v7172_v49  ;;  %11021 = vst [vmem:[#allocation38_spill] sm:$0xff] %v7745_v50  ;;  %v7748_v0 = vld [vmem:[#allocation8 + $0x348] sm:$0xff]  ;;  %v7753_v49 = vld [vmem:[#allocation8 + $0x320] sm:$0xff] }
 0x3c1   :  { %2388 = vmatpush.msra.mxu1 %v7729_v23  ;;  %2428 = vmatpush.msra.mxu3 %v7732_v41  ;;  %11022 = vst [vmem:[#allocation43_spill] sm:$0xff] %v7748_v0 }
 0x3c2   :  { %2152 = vmatpush.msra.mxu0 %v7177_v34  ;;  %2192 = vmatpush.msra.mxu2 %v7180_v59  ;;  %11023 = vst [vmem:[#allocation40_spill] sm:$0xff] %v7753_v49  ;;  %v7756_v34 = vld [vmem:[#allocation8 + $0x328] sm:$0xff]  ;;  %v7761_v59 = vld [vmem:[#allocation8 + $0x300] sm:$0xff] }
 0x3c3   :  { %2389 = vmatpush.msra.mxu1 %v7737_v28  ;;  %2429 = vmatpush.msra.mxu3 %v7740_v3  ;;  %11024 = vst [vmem:[#allocation45_spill] sm:$0xff] %v7756_v34 }
 0x3c4   :  { %2153 = vmatpush.msra.mxu0 %v7185_v32  ;;  %2193 = vmatpush.msra.mxu2 %v7188_v11  ;;  %11025 = vst [vmem:[#allocation42_spill] sm:$0xff] %v7761_v59  ;;  %v7764_v32 = vld [vmem:[#allocation8 + $0x308] sm:$0xff]  ;;  %v7772_v11 = vld [vmem:[%s9601_s0 + $0x20] sm:$0xff] }
 0x3c5   :  { %2390 = vmatpush.msra.mxu1 %v7745_v50  ;;  %2430 = vmatpush.msra.mxu3 %v7748_v0  ;;  %11026 = vst [vmem:[#allocation47_spill] sm:$0xff] %v7764_v32 }
 0x3c6   :  { %2154 = vmatpush.msra.mxu0 %v7193_v9  ;;  %2194 = vmatpush.msra.mxu2 %v7196_v52  ;;  %v7774_v9 = vld [vmem:[#allocation8 + $0x2e0] sm:$0xff]  ;;  %v7777_v52 = vld [vmem:[#allocation8 + $0x2e8] sm:$0xff] }
 0x3c7   :  { %2391 = vmatpush.msra.mxu1 %v7753_v49  ;;  %2431 = vmatpush.msra.mxu3 %v7756_v34  ;;  %11027 = vst [vmem:[#allocation44_spill] sm:$0xff] %v7774_v9 }
 0x3c8   :  { %2155 = vmatpush.msra.mxu0 %v7201_v7  ;;  %2195 = vmatpush.msra.mxu2 %v7204_v4  ;;  %11028 = vst [vmem:[#allocation49_spill] sm:$0xff] %v7777_v52  ;;  %v7786_v7 = vld [vmem:[#allocation8 + $0x2c0] sm:$0xff]  ;;  %v7789_v4 = vld [vmem:[#allocation8 + $0x2c8] sm:$0xff] }
 0x3c9   :  { %2392 = vmatpush.msra.mxu1 %v7761_v59  ;;  %2432 = vmatpush.msra.mxu3 %v7764_v32  ;;  %11029 = vst [vmem:[#allocation46_spill] sm:$0xff] %v7786_v7 }
 0x3ca   :  { %2156 = vmatpush.msra.mxu0 %v7209_v12  ;;  %2196 = vmatpush.msra.mxu2 %v7212_v16  ;;  %11030 = vst [vmem:[#allocation48_spill] sm:$0xff] %v7789_v4  ;;  %v11031_v12 = vld [vmem:[#allocation71_spill] sm:$0xff]  ;;  %v11032_v16 = vld [vmem:[#allocation73_spill] sm:$0xff] }
 0x3cb   :  { %2393 = vmatpush.msra.mxu1 %v7774_v9  ;;  %2433 = vmatpush.msra.mxu3 %v7777_v52 }
 0x3cc   :  { %2157 = vmatpush.msra.mxu0 %v7222_v58  ;;  %2197 = vmatpush.msra.mxu2 %v7225_v37  ;;  %v7794_v58 = vld [vmem:[#allocation8 + $0x2a0] sm:$0xff]  ;;  %v7797_v37 = vld [vmem:[#allocation8 + $0x2a8] sm:$0xff] }
 0x3cd   :  { %2158 = vmatmul.f32.vlgmr.msra.gmra.mxu0 %v7772_v11  ;;  %2198 = vmatmul.f32.vlgmr.msra.gmra.mxu2 %v7772_v11  ;;  %11033 = vst [vmem:[#allocation56_spill] sm:$0xff] %v7794_v58 }
 0x3ce   :  { %2222 = vmatpush.msrb.mxu0 %v7230_v35  ;;  %2262 = vmatpush.msrb.mxu2 %v7233_v26  ;;  %11034 = vst [vmem:[#allocation52_spill] sm:$0xff] %v7797_v37  ;;  %v11035_v35 = vld [vmem:[#allocation77_spill] sm:$0xff]  ;;  %v11036_v26 = vld [vmem:[#allocation75_spill] sm:$0xff] }
 0x3cf   :  { %2394 = vmatpush.msra.mxu1 %v7786_v7  ;;  %2434 = vmatpush.msra.mxu3 %v7789_v4 }
 0x3d0   :  { %2223 = vmatpush.msrb.mxu0 %v11031_v12  ;;  %2263 = vmatpush.msrb.mxu2 %v11032_v16  ;;  %v11043_v12 = vld [vmem:[#allocation81_spill] sm:$0xff]  ;;  %v11044_v16 = vld [vmem:[#allocation50_spill] sm:$0xff] }
 0x3d1   :  { %2395 = vmatpush.msra.mxu1 %v7794_v58  ;;  %2435 = vmatpush.msra.mxu3 %v7797_v37 }
 0x3d2   :  { %2224 = vmatpush.msrb.mxu0 %v11035_v35  ;;  %2264 = vmatpush.msrb.mxu2 %v11036_v26  ;;  %v7818_v35 = vld [vmem:[#allocation8 + $0x240] sm:$0xff]  ;;  %v7821_v26 = vld [vmem:[#allocation8 + $0x248] sm:$0xff] }
 0x3d3   :  { %2396 = vmatpush.msra.mxu1 %v7802_v27  ;;  %2436 = vmatpush.msra.mxu3 %v7805_v54  ;;  %11045 = vst [vmem:[#allocation62_spill] sm:$0xff] %v7818_v35  ;;  %v8143_v54 = vld [vmem:[#allocation8 + $0x10] sm:$0xff] }
 0x3d4   :  { %2225 = vmatpush.msrb.mxu0 %v11039_v46  ;;  %2265 = vmatpush.msrb.mxu2 %v11040_v43  ;;  %11046 = vst [vmem:[#allocation59_spill] sm:$0xff] %v7821_v26  ;;  %v11047_v46 = vld [vmem:[#allocation51_spill] sm:$0xff]  ;;  %v11048_v43 = vld [vmem:[#allocation78_spill] sm:$0xff] }
 0x3d5   :  { %2397 = vmatpush.msra.mxu1 %v7810_v40  ;;  %2437 = vmatpush.msra.mxu3 %v7813_v55  ;;  %v7826_v40 = vld [vmem:[#allocation8 + $0x220] sm:$0xff]  ;;  %v7829_v55 = vld [vmem:[#allocation8 + $0x228] sm:$0xff] }
 0x3d6   :  { %2226 = vmatpush.msrb.mxu0 %v11043_v12  ;;  %2266 = vmatpush.msrb.mxu2 %v11044_v16  ;;  %11049 = vst [vmem:[#allocation64_spill] sm:$0xff] %v7826_v40  ;;  %v11051_v12 = vld [vmem:[#allocation53_spill] sm:$0xff]  ;;  %v11052_v16 = vld [vmem:[#allocation82_spill] sm:$0xff] }
 0x3d7   :  { %2398 = vmatpush.msra.mxu1 %v7818_v35  ;;  %2438 = vmatpush.msra.mxu3 %v7821_v26  ;;  %11050 = vst [vmem:[#allocation61_spill] sm:$0xff] %v7829_v55  ;;  %v7834_v35 = vld [vmem:[#allocation8 + $0x200] sm:$0xff]  ;;  %v7837_v26 = vld [vmem:[#allocation8 + $0x208] sm:$0xff] }
 0x3d8   :  { %2227 = vmatpush.msrb.mxu0 %v11047_v46  ;;  %2267 = vmatpush.msrb.mxu2 %v11048_v43  ;;  %11053 = vst [vmem:[#allocation66_spill] sm:$0xff] %v7834_v35  ;;  %v11055_v46 = vld [vmem:[#allocation54_spill] sm:$0xff]  ;;  %v11056_v43 = vld [vmem:[#allocation80_spill] sm:$0xff] }
 0x3d9   :  { %2399 = vmatpush.msra.mxu1 %v7826_v40  ;;  %2439 = vmatpush.msra.mxu3 %v7829_v55  ;;  %11054 = vst [vmem:[#allocation63_spill] sm:$0xff] %v7837_v26  ;;  %v7842_v40 = vld [vmem:[#allocation8 + $0x3f0] sm:$0xff]  ;;  %v7845_v55 = vld [vmem:[#allocation8 + $0x3f8] sm:$0xff] }
 0x3da   :  { %2228 = vmatpush.msrb.mxu0 %v11051_v12  ;;  %2268 = vmatpush.msrb.mxu2 %v11052_v16  ;;  %11057 = vst [vmem:[#allocation68_spill] sm:$0xff] %v7842_v40  ;;  %v11059_v12 = vld [vmem:[#allocation83_spill] sm:$0xff]  ;;  %v11060_v16 = vld [vmem:[#allocation85_spill] sm:$0xff] }
 0x3db   :  { %2400 = vmatpush.msra.mxu1 %v7834_v35  ;;  %2440 = vmatpush.msra.mxu3 %v7837_v26  ;;  %11058 = vst [vmem:[#allocation65_spill] sm:$0xff] %v7845_v55  ;;  %v7850_v35 = vld [vmem:[#allocation8 + $0x3d0] sm:$0xff]  ;;  %v7853_v26 = vld [vmem:[#allocation8 + $0x3d8] sm:$0xff] }
 0x3dc   :  { %2229 = vmatpush.msrb.mxu0 %v11055_v46  ;;  %2269 = vmatpush.msrb.mxu2 %v11056_v43  ;;  %11061 = vst [vmem:[#allocation70_spill] sm:$0xff] %v7850_v35  ;;  %v11063_v46 = vld [vmem:[#allocation84_spill] sm:$0xff]  ;;  %v11064_v43 = vld [vmem:[#allocation86_spill] sm:$0xff] }
 0x3dd   :  { %2465 = vmatpush.msrb.mxu1 %v7842_v40  ;;  %2505 = vmatpush.msrb.mxu3 %v7845_v55  ;;  %11062 = vst [vmem:[#allocation111_spill] sm:$0xff] %v7853_v26  ;;  %v7858_v40 = vld [vmem:[#allocation8 + $0x3b0] sm:$0xff]  ;;  %v7861_v55 = vld [vmem:[#allocation8 + $0x3b8] sm:$0xff] }
 0x3de   :  { %2230 = vmatpush.msrb.mxu0 %v11059_v12  ;;  %2270 = vmatpush.msrb.mxu2 %v11060_v16  ;;  %11065 = vst [vmem:[#allocation112_spill] sm:$0xff] %v7858_v40  ;;  %v11067_v12 = vld [vmem:[#allocation88_spill] sm:$0xff]  ;;  %v11068_v16 = vld [vmem:[#allocation87_spill] sm:$0xff] }
 0x3df   :  { %2466 = vmatpush.msrb.mxu1 %v7850_v35  ;;  %2506 = vmatpush.msrb.mxu3 %v7853_v26  ;;  %11066 = vst [vmem:[#allocation113_spill] sm:$0xff] %v7861_v55  ;;  %v7866_v35 = vld [vmem:[#allocation8 + $0x390] sm:$0xff]  ;;  %v7869_v26 = vld [vmem:[#allocation8 + $0x398] sm:$0xff] }
 0x3e0   :  { %2231 = vmatpush.msrb.mxu0 %v11063_v46  ;;  %2271 = vmatpush.msrb.mxu2 %v11064_v43  ;;  %11069 = vst [vmem:[#allocation114_spill] sm:$0xff] %v7866_v35  ;;  %v11071_v46 = vld [vmem:[#allocation89_spill] sm:$0xff]  ;;  %v11072_v43 = vld [vmem:[#allocation90_spill] sm:$0xff] }
 0x3e1   :  { %2467 = vmatpush.msrb.mxu1 %v7858_v40  ;;  %2507 = vmatpush.msrb.mxu3 %v7861_v55  ;;  %11070 = vst [vmem:[#allocation115_spill] sm:$0xff] %v7869_v26  ;;  %v7874_v40 = vld [vmem:[#allocation8 + $0x370] sm:$0xff]  ;;  %v7877_v55 = vld [vmem:[#allocation8 + $0x378] sm:$0xff] }
 0x3e2   :  { %2232 = vmatpush.msrb.mxu0 %v11067_v12  ;;  %2272 = vmatpush.msrb.mxu2 %v11068_v16  ;;  %11073 = vst [vmem:[#allocation116_spill] sm:$0xff] %v7874_v40  ;;  %v11075_v12 = vld [vmem:[#allocation91_spill] sm:$0xff]  ;;  %v11076_v16 = vld [vmem:[#allocation92_spill] sm:$0xff] }
 0x3e3   :  { %2468 = vmatpush.msrb.mxu1 %v7866_v35  ;;  %2508 = vmatpush.msrb.mxu3 %v7869_v26  ;;  %11074 = vst [vmem:[#allocation117_spill] sm:$0xff] %v7877_v55  ;;  %v7882_v35 = vld [vmem:[#allocation8 + $0x350] sm:$0xff]  ;;  %v7885_v26 = vld [vmem:[#allocation8 + $0x358] sm:$0xff] }
 0x3e4   :  { %2233 = vmatpush.msrb.mxu0 %v11071_v46  ;;  %2273 = vmatpush.msrb.mxu2 %v11072_v43  ;;  %11077 = vst [vmem:[#allocation118_spill] sm:$0xff] %v7882_v35  ;;  %v11079_v46 = vld [vmem:[#allocation93_spill] sm:$0xff]  ;;  %v11080_v43 = vld [vmem:[#allocation94_spill] sm:$0xff] }
 0x3e5   :  { %2469 = vmatpush.msrb.mxu1 %v7874_v40  ;;  %2509 = vmatpush.msrb.mxu3 %v7877_v55  ;;  %11078 = vst [vmem:[#allocation119_spill] sm:$0xff] %v7885_v26  ;;  %v7890_v40 = vld [vmem:[#allocation8 + $0x330] sm:$0xff]  ;;  %v7893_v55 = vld [vmem:[#allocation8 + $0x338] sm:$0xff] }
 0x3e6   :  { %2234 = vmatpush.msrb.mxu0 %v11075_v12  ;;  %2274 = vmatpush.msrb.mxu2 %v11076_v16  ;;  %11081 = vst [vmem:[#allocation120_spill] sm:$0xff] %v7890_v40  ;;  %v11083_v12 = vld [vmem:[#allocation95_spill] sm:$0xff]  ;;  %v11084_v16 = vld [vmem:[#allocation96_spill] sm:$0xff] }
 0x3e7   :  { %2470 = vmatpush.msrb.mxu1 %v7882_v35  ;;  %2510 = vmatpush.msrb.mxu3 %v7885_v26  ;;  %11082 = vst [vmem:[#allocation121_spill] sm:$0xff] %v7893_v55  ;;  %v7898_v35 = vld [vmem:[#allocation8 + $0x310] sm:$0xff]  ;;  %v7901_v26 = vld [vmem:[#allocation8 + $0x318] sm:$0xff] }
 0x3e8   :  { %2235 = vmatpush.msrb.mxu0 %v11079_v46  ;;  %2275 = vmatpush.msrb.mxu2 %v11080_v43  ;;  %11085 = vst [vmem:[#allocation122_spill] sm:$0xff] %v7898_v35  ;;  %v11087_v46 = vld [vmem:[#allocation97_spill] sm:$0xff]  ;;  %v11088_v43 = vld [vmem:[#allocation100_spill] sm:$0xff] }
 0x3e9   :  { %2471 = vmatpush.msrb.mxu1 %v7890_v40  ;;  %2511 = vmatpush.msrb.mxu3 %v7893_v55  ;;  %11086 = vst [vmem:[#allocation123_spill] sm:$0xff] %v7901_v26  ;;  %v7908_v55 = vld [vmem:[#allocation8 + $0x2f0] sm:$0xff] }
 0x3ea   :  { %2236 = vmatpush.msrb.mxu0 %v11083_v12  ;;  %2276 = vmatpush.msrb.mxu2 %v11084_v16  ;;  %11089 = vst [vmem:[#allocation124_spill] sm:$0xff] %v7908_v55  ;;  %v7911_v12 = vld [vmem:[#allocation8 + $0x2f8] sm:$0xff]  ;;  %v7914_v16 = vld [vmem:[#allocation8 + $0x1e0] sm:$0xff]  ;;  %v8137_v40 = vld [vmem:[#allocation8 + $0x30] sm:$0xff] }
 0x3eb   :  { %2472 = vmatpush.msrb.mxu1 %v7898_v35  ;;  %2512 = vmatpush.msrb.mxu3 %v7901_v26  ;;  %11090 = vst [vmem:[#allocation125_spill] sm:$0xff] %v7911_v12  ;;  %v7917_v26 = vld [vmem:[#allocation8 + $0x1e8] sm:$0xff] }
 0x3ec   :  { %2237 = vmatpush.msrb.mxu0 %v11087_v46  ;;  %2277 = vmatpush.msrb.mxu2 %v11088_v43  ;;  %11091 = vst [vmem:[#allocation126_spill] sm:$0xff] %v7914_v16  ;;  %v7920_v46 = vld [vmem:[#allocation8 + $0x2d0] sm:$0xff]  ;;  %v7926_v43 = vld [vmem:[#allocation8 + $0x1c0] sm:$0xff] }
 0x3ed   :  { %2238 = vmatmul.f32.vlgmr.msrb.gmra.mxu0 %v7772_v11  ;;  %2278 = vmatmul.f32.vlgmr.msrb.gmra.mxu2 %v7772_v11  ;;  %11092 = vst [vmem:[#allocation127_spill] sm:$0xff] %v7917_v26  ;;  %v7923_v11 = vld [vmem:[#allocation8 + $0x2d8] sm:$0xff] }
 0x3ee   :  { %2473 = vmatpush.msrb.mxu1 %v7908_v55  ;;  %2513 = vmatpush.msrb.mxu3 %v7911_v12  ;;  %11093 = vst [vmem:[#allocation128_spill] sm:$0xff] %v7920_v46  ;;  %v7929_v12 = vld [vmem:[#allocation8 + $0x1c8] sm:$0xff]  ;;  %v8130_v55 = vld [vmem:[#allocation8 + $0x50] sm:$0xff] }
 0x3ef   :  { %2365 = vmatpush.msra.mxu0 %v7914_v16  ;;  %2405 = vmatpush.msra.mxu2 %v7917_v26  ;;  %11094 = vst [vmem:[#allocation129_spill] sm:$0xff] %v7923_v11  ;;  %v7932_v16 = vld [vmem:[#allocation8 + $0x2b0] sm:$0xff]  ;;  %v7935_v26 = vld [vmem:[#allocation8 + $0x2b8] sm:$0xff] }
 0x3f0   :  { %2474 = vmatpush.msrb.mxu1 %v7920_v46  ;;  %2514 = vmatpush.msrb.mxu3 %v7923_v11  ;;  %11095 = vst [vmem:[#allocation130_spill] sm:$0xff] %v7926_v43  ;;  %v7938_v46 = vld [vmem:[#allocation8 + $0x1a0] sm:$0xff]  ;;  %v7941_v11 = vld [vmem:[#allocation8 + $0x1a8] sm:$0xff] }
 0x3f1   :  { %2366 = vmatpush.msra.mxu0 %v7926_v43  ;;  %11096 = vst [vmem:[#allocation131_spill] sm:$0xff] %v7929_v12  ;;  %2406 = vmatpush.msra.mxu2 %v7929_v12  ;;  %v7944_v43 = vld [vmem:[#allocation8 + $0x290] sm:$0xff]  ;;  %v7947_v12 = vld [vmem:[#allocation8 + $0x298] sm:$0xff] }
 0x3f2   :  { %11097 = vst [vmem:[#allocation132_spill] sm:$0xff] %v7932_v16  ;;  %2475 = vmatpush.msrb.mxu1 %v7932_v16  ;;  %2515 = vmatpush.msrb.mxu3 %v7935_v26  ;;  %v7950_v16 = vld [vmem:[#allocation8 + $0x180] sm:$0xff] }
 0x3f3   :  { %11098 = vst [vmem:[#allocation133_spill] sm:$0xff] %v7935_v26  ;;  %2367 = vmatpush.msra.mxu0 %v7938_v46  ;;  %2407 = vmatpush.msra.mxu2 %v7941_v11  ;;  %v7953_v26 = vld [vmem:[#allocation8 + $0x188] sm:$0xff] }
 0x3f4   :  { %11099 = vst [vmem:[#allocation134_spill] sm:$0xff] %v7938_v46  ;;  %2476 = vmatpush.msrb.mxu1 %v7944_v43  ;;  %2516 = vmatpush.msrb.mxu3 %v7947_v12  ;;  %v7956_v46 = vld [vmem:[#allocation8 + $0x270] sm:$0xff] }
 0x3f5   :  { %11100 = vst [vmem:[#allocation135_spill] sm:$0xff] %v7941_v11  ;;  %2368 = vmatpush.msra.mxu0 %v7950_v16  ;;  %2408 = vmatpush.msra.mxu2 %v7953_v26  ;;  %v7959_v11 = vld [vmem:[#allocation8 + $0x278] sm:$0xff] }
 0x3f6   :  { %11101 = vst [vmem:[#allocation136_spill] sm:$0xff] %v7944_v43  ;;  %2477 = vmatpush.msrb.mxu1 %v7956_v46  ;;  %2517 = vmatpush.msrb.mxu3 %v7959_v11  ;;  %v7962_v43 = vld [vmem:[#allocation8 + $0x160] sm:$0xff] }
 0x3f7   :  { %11102 = vst [vmem:[#allocation137_spill] sm:$0xff] %v7947_v12  ;;  %2369 = vmatpush.msra.mxu0 %v7962_v43  ;;  %v7965_v12 = vld [vmem:[#allocation8 + $0x168] sm:$0xff]  ;;  %v1992_v37 = vpop.f32.mrf.mxu3 }
 0x3f8   :  { %11103 = vst [vmem:[#allocation138_spill] sm:$0xff] %v7950_v16  ;;  %2409 = vmatpush.msra.mxu2 %v7965_v12  ;;  %v7968_v16 = vld [vmem:[#allocation8 + $0x250] sm:$0xff] }
 0x3f9   :  { %11104 = vst [vmem:[#allocation139_spill] sm:$0xff] %v7953_v26  ;;  %2478 = vmatpush.msrb.mxu1 %v7968_v16  ;;  %v7971_v26 = vld [vmem:[#allocation8 + $0x258] sm:$0xff] }
 0x3fa   :  { %11105 = vst [vmem:[#allocation140_spill] sm:$0xff] %v7956_v46  ;;  %2518 = vmatpush.msrb.mxu3 %v7971_v26  ;;  %v7974_v46 = vld [vmem:[#allocation8 + $0x140] sm:$0xff] }
 0x3fb   :  { %11106 = vst [vmem:[#allocation141_spill] sm:$0xff] %v7959_v11  ;;  %2370 = vmatpush.msra.mxu0 %v7974_v46  ;;  %v7977_v11 = vld [vmem:[#allocation8 + $0x148] sm:$0xff] }
 0x3fc   :  { %11107 = vst [vmem:[#allocation142_spill] sm:$0xff] %v7962_v43  ;;  %2410 = vmatpush.msra.mxu2 %v7977_v11  ;;  %v7980_v43 = vld [vmem:[#allocation8 + $0x230] sm:$0xff] }
 0x3fd   :  { %11108 = vst [vmem:[#allocation143_spill] sm:$0xff] %v7965_v12  ;;  %2479 = vmatpush.msrb.mxu1 %v7980_v43  ;;  %v7983_v12 = vld [vmem:[#allocation8 + $0x238] sm:$0xff] }
 0x3fe   :  { %11109 = vst [vmem:[#allocation144_spill] sm:$0xff] %v7968_v16  ;;  %2519 = vmatpush.msrb.mxu3 %v7983_v12  ;;  %v7986_v16 = vld [vmem:[#allocation8 + $0x120] sm:$0xff] }
 0x3ff   :  { %11110 = vst [vmem:[#allocation145_spill] sm:$0xff] %v7971_v26  ;;  %2371 = vmatpush.msra.mxu0 %v7986_v16  ;;  %v7989_v26 = vld [vmem:[#allocation8 + $0x128] sm:$0xff] }
 0x400   :  { %11111 = vst [vmem:[#allocation146_spill] sm:$0xff] %v7974_v46  ;;  %2411 = vmatpush.msra.mxu2 %v7989_v26  ;;  %v7992_v46 = vld [vmem:[#allocation8 + $0x210] sm:$0xff] }
 0x401   :  { %11112 = vst [vmem:[#allocation147_spill] sm:$0xff] %v7977_v11  ;;  %2480 = vmatpush.msrb.mxu1 %v7992_v46  ;;  %v7995_v11 = vld [vmem:[#allocation8 + $0x218] sm:$0xff] }
 0x402   :  { %11113 = vst [vmem:[#allocation148_spill] sm:$0xff] %v7980_v43  ;;  %2520 = vmatpush.msrb.mxu3 %v7995_v11  ;;  %v7998_v43 = vld [vmem:[#allocation8 + $0x100] sm:$0xff] }
 0x403   :  { %11114 = vst [vmem:[#allocation149_spill] sm:$0xff] %v7983_v12  ;;  %2372 = vmatpush.msra.mxu0 %v7998_v43  ;;  %v8001_v12 = vld [vmem:[#allocation8 + $0x108] sm:$0xff] }
 0x404   :  { %11115 = vst [vmem:[#allocation150_spill] sm:$0xff] %v7986_v16  ;;  %2412 = vmatpush.msra.mxu2 %v8001_v12  ;;  %v8004_v16 = vld [vmem:[#allocation8 + $0xe0] sm:$0xff] }
 0x405   :  { %11116 = vst [vmem:[#allocation151_spill] sm:$0xff] %v7989_v26  ;;  %2373 = vmatpush.msra.mxu0 %v8004_v16  ;;  %v8007_v26 = vld [vmem:[#allocation8 + $0xe8] sm:$0xff] }
 0x406   :  { %11117 = vst [vmem:[#allocation152_spill] sm:$0xff] %v7992_v46  ;;  %2413 = vmatpush.msra.mxu2 %v8007_v26  ;;  %v8010_v46 = vld [vmem:[#allocation8 + $0xc0] sm:$0xff] }
 0x407   :  { %11118 = vst [vmem:[#allocation153_spill] sm:$0xff] %v7995_v11  ;;  %2374 = vmatpush.msra.mxu0 %v8010_v46  ;;  %v8013_v11 = vld [vmem:[#allocation8 + $0xc8] sm:$0xff] }
 0x408   :  { %11119 = vst [vmem:[#allocation154_spill] sm:$0xff] %v7998_v43  ;;  %2414 = vmatpush.msra.mxu2 %v8013_v11  ;;  %v8016_v43 = vld [vmem:[#allocation8 + $0xa0] sm:$0xff] }
 0x409   :  { %11120 = vst [vmem:[#allocation155_spill] sm:$0xff] %v8001_v12  ;;  %2375 = vmatpush.msra.mxu0 %v8016_v43  ;;  %v8019_v12 = vld [vmem:[#allocation8 + $0xa8] sm:$0xff] }
 0x40a   :  { %11121 = vst [vmem:[#allocation156_spill] sm:$0xff] %v8004_v16  ;;  %2415 = vmatpush.msra.mxu2 %v8019_v12  ;;  %v8022_v16 = vld [vmem:[#allocation8 + $0x80] sm:$0xff] }
 0x40b   :  { %11122 = vst [vmem:[#allocation157_spill] sm:$0xff] %v8007_v26  ;;  %2376 = vmatpush.msra.mxu0 %v8022_v16  ;;  %v8025_v26 = vld [vmem:[#allocation8 + $0x88] sm:$0xff] }
 0x40c   :  { %11123 = vst [vmem:[#allocation158_spill] sm:$0xff] %v8010_v46  ;;  %2416 = vmatpush.msra.mxu2 %v8025_v26  ;;  %v8028_v46 = vld [vmem:[#allocation8 + $0x60] sm:$0xff] }
 0x40d   :  { %11124 = vst [vmem:[#allocation159_spill] sm:$0xff] %v8013_v11  ;;  %2377 = vmatpush.msra.mxu0 %v8028_v46  ;;  %v8031_v11 = vld [vmem:[#allocation8 + $0x68] sm:$0xff] }
 0x40e   :  { %11125 = vst [vmem:[#allocation160_spill] sm:$0xff] %v8016_v43  ;;  %2417 = vmatpush.msra.mxu2 %v8031_v11  ;;  %v8034_v43 = vld [vmem:[#allocation8 + $0x40] sm:$0xff] }
 0x40f   :  { %11126 = vst [vmem:[#allocation161_spill] sm:$0xff] %v8019_v12  ;;  %2378 = vmatpush.msra.mxu0 %v8034_v43  ;;  %v8037_v12 = vld [vmem:[#allocation8 + $0x48] sm:$0xff] }
 0x410   :  { %11127 = vst [vmem:[#allocation162_spill] sm:$0xff] %v8022_v16  ;;  %2418 = vmatpush.msra.mxu2 %v8037_v12  ;;  %v8040_v16 = vld [vmem:[#allocation8 + $0x20] sm:$0xff] }
 0x411   :  { %11128 = vst [vmem:[#allocation163_spill] sm:$0xff] %v8025_v26  ;;  %2379 = vmatpush.msra.mxu0 %v8040_v16  ;;  %v8043_v26 = vld [vmem:[#allocation8 + $0x28] sm:$0xff] }
 0x412   :  { %11129 = vst [vmem:[#allocation164_spill] sm:$0xff] %v8028_v46  ;;  %2419 = vmatpush.msra.mxu2 %v8043_v26  ;;  %v8046_v46 = vld [vmem:[#allocation8] sm:$0xff] }
 0x413   :  { %11130 = vst [vmem:[#allocation165_spill] sm:$0xff] %v8031_v11  ;;  %2380 = vmatpush.msra.mxu0 %v8046_v46  ;;  %v8049_v11 = vld [vmem:[#allocation8 + $0x8] sm:$0xff] }
 0x414   :  { %11131 = vst [vmem:[#allocation166_spill] sm:$0xff] %v8034_v43  ;;  %2420 = vmatpush.msra.mxu2 %v8049_v11  ;;  %v8052_v43 = vld [vmem:[#allocation8 + $0x1f0] sm:$0xff] }
 0x415   :  { %11132 = vst [vmem:[#allocation167_spill] sm:$0xff] %v8037_v12  ;;  %2445 = vmatpush.msrb.mxu0 %v8052_v43  ;;  %v8055_v12 = vld [vmem:[#allocation8 + $0x1f8] sm:$0xff] }
 0x416   :  { %11133 = vst [vmem:[#allocation168_spill] sm:$0xff] %v8040_v16  ;;  %2485 = vmatpush.msrb.mxu2 %v8055_v12  ;;  %v8058_v16 = vld [vmem:[#allocation8 + $0x1d0] sm:$0xff] }
 0x417   :  { %11134 = vst [vmem:[#allocation169_spill] sm:$0xff] %v8043_v26  ;;  %2446 = vmatpush.msrb.mxu0 %v8058_v16  ;;  %v8061_v26 = vld [vmem:[#allocation8 + $0x1d8] sm:$0xff] }
 0x418   :  { %11135 = vst [vmem:[#allocation170_spill] sm:$0xff] %v8046_v46  ;;  %2486 = vmatpush.msrb.mxu2 %v8061_v26  ;;  %v8064_v46 = vld [vmem:[#allocation8 + $0x1b0] sm:$0xff] }
 0x419   :  { %11136 = vst [vmem:[#allocation171_spill] sm:$0xff] %v8049_v11  ;;  %2447 = vmatpush.msrb.mxu0 %v8064_v46  ;;  %v8067_v11 = vld [vmem:[#allocation8 + $0x1b8] sm:$0xff] }
 0x41a   :  { %11137 = vst [vmem:[#allocation172_spill] sm:$0xff] %v8052_v43  ;;  %2487 = vmatpush.msrb.mxu2 %v8067_v11  ;;  %v8070_v43 = vld [vmem:[#allocation8 + $0x190] sm:$0xff] }
 0x41b   :  { %11138 = vst [vmem:[#allocation173_spill] sm:$0xff] %v8055_v12  ;;  %2448 = vmatpush.msrb.mxu0 %v8070_v43  ;;  %v8073_v12 = vld [vmem:[#allocation8 + $0x198] sm:$0xff] }
 0x41c   :  { %11139 = vst [vmem:[#allocation174_spill] sm:$0xff] %v8058_v16  ;;  %2488 = vmatpush.msrb.mxu2 %v8073_v12  ;;  %v8076_v16 = vld [vmem:[#allocation8 + $0x170] sm:$0xff] }
 0x41d   :  { %11140 = vst [vmem:[#allocation175_spill] sm:$0xff] %v8061_v26  ;;  %2449 = vmatpush.msrb.mxu0 %v8076_v16  ;;  %v8079_v26 = vld [vmem:[#allocation8 + $0x178] sm:$0xff] }
 0x41e   :  { %11141 = vst [vmem:[#allocation71_spill] sm:$0xff] %v8064_v46  ;;  %2489 = vmatpush.msrb.mxu2 %v8079_v26  ;;  %v8082_v46 = vld [vmem:[#allocation8 + $0x150] sm:$0xff] }
 0x41f   :  { %11142 = vst [vmem:[#allocation73_spill] sm:$0xff] %v8067_v11  ;;  %2450 = vmatpush.msrb.mxu0 %v8082_v46  ;;  %v8085_v11 = vld [vmem:[#allocation8 + $0x158] sm:$0xff] }
 0x420   :  { %11143 = vst [vmem:[#allocation77_spill] sm:$0xff] %v8070_v43  ;;  %2490 = vmatpush.msrb.mxu2 %v8085_v11  ;;  %v8088_v43 = vld [vmem:[#allocation8 + $0x130] sm:$0xff] }
 0x421   :  { %11144 = vst [vmem:[#allocation75_spill] sm:$0xff] %v8073_v12  ;;  %2451 = vmatpush.msrb.mxu0 %v8088_v43  ;;  %v8091_v12 = vld [vmem:[#allocation8 + $0x138] sm:$0xff] }
 0x422   :  { %11145 = vst [vmem:[#allocation79_spill] sm:$0xff] %v8076_v16  ;;  %2491 = vmatpush.msrb.mxu2 %v8091_v12  ;;  %v8094_v16 = vld [vmem:[#allocation8 + $0x110] sm:$0xff] }
 0x423   :  { %11146 = vst [vmem:[#allocation76_spill] sm:$0xff] %v8079_v26  ;;  %2452 = vmatpush.msrb.mxu0 %v8094_v16  ;;  %v8097_v26 = vld [vmem:[#allocation8 + $0x118] sm:$0xff] }
 0x424   :  { %11147 = vst [vmem:[#allocation81_spill] sm:$0xff] %v8082_v46  ;;  %2492 = vmatpush.msrb.mxu2 %v8097_v26  ;;  %v8100_v46 = vld [vmem:[#allocation8 + $0xf0] sm:$0xff] }
 0x425   :  { %11148 = vst [vmem:[#allocation50_spill] sm:$0xff] %v8085_v11  ;;  %2453 = vmatpush.msrb.mxu0 %v8100_v46  ;;  %v8103_v11 = vld [vmem:[#allocation8 + $0xf8] sm:$0xff] }
 0x426   :  { %11149 = vst [vmem:[#allocation51_spill] sm:$0xff] %v8088_v43  ;;  %2493 = vmatpush.msrb.mxu2 %v8103_v11  ;;  %v8106_v43 = vld [vmem:[#allocation8 + $0xd0] sm:$0xff] }
 0x427   :  { %11150 = vst [vmem:[#allocation78_spill] sm:$0xff] %v8091_v12  ;;  %2454 = vmatpush.msrb.mxu0 %v8106_v43  ;;  %v8109_v12 = vld [vmem:[#allocation8 + $0xd8] sm:$0xff] }
 0x428   :  { %11151 = vst [vmem:[#allocation53_spill] sm:$0xff] %v8094_v16  ;;  %2494 = vmatpush.msrb.mxu2 %v8109_v12  ;;  %v8112_v16 = vld [vmem:[#allocation8 + $0xb0] sm:$0xff] }
 0x429   :  { %11152 = vst [vmem:[#allocation82_spill] sm:$0xff] %v8097_v26  ;;  %2455 = vmatpush.msrb.mxu0 %v8112_v16  ;;  %v8115_v26 = vld [vmem:[#allocation8 + $0xb8] sm:$0xff] }
 0x42a   :  { %11153 = vst [vmem:[#allocation54_spill] sm:$0xff] %v8100_v46  ;;  %2495 = vmatpush.msrb.mxu2 %v8115_v26  ;;  %v8118_v46 = vld [vmem:[#allocation8 + $0x90] sm:$0xff] }
 0x42b   :  { %11154 = vst [vmem:[#allocation80_spill] sm:$0xff] %v8103_v11  ;;  %2456 = vmatpush.msrb.mxu0 %v8118_v46  ;;  %v8121_v11 = vld [vmem:[#allocation8 + $0x98] sm:$0xff] }
 0x42c   :  { %11155 = vst [vmem:[#allocation83_spill] sm:$0xff] %v8106_v43  ;;  %2496 = vmatpush.msrb.mxu2 %v8121_v11  ;;  %v8124_v43 = vld [vmem:[#allocation8 + $0x70] sm:$0xff] }
 0x42d   :  { %11156 = vst [vmem:[#allocation85_spill] sm:$0xff] %v8109_v12  ;;  %2457 = vmatpush.msrb.mxu0 %v8124_v43  ;;  %v8127_v12 = vld [vmem:[#allocation8 + $0x78] sm:$0xff] }
 0x42e   :  { %11157 = vst [vmem:[#allocation84_spill] sm:$0xff] %v8112_v16  ;;  %2497 = vmatpush.msrb.mxu2 %v8127_v12  ;;  %v1932_v16 = vpop.f32.mrf.mxu0 }
 0x42f   :  { %11158 = vst [vmem:[#allocation86_spill] sm:$0xff] %v8115_v26  ;;  %2458 = vmatpush.msrb.mxu0 %v8130_v55  ;;  %v8133_v26 = vld [vmem:[#allocation8 + $0x58] sm:$0xff] }
 0x430   :  { %11159 = vst [vmem:[#allocation88_spill] sm:$0xff] %v8118_v46  ;;  %2498 = vmatpush.msrb.mxu2 %v8133_v26  ;;  %v11165_v46 = vld [vmem:[#allocation67_spill] sm:$0xff] }
 0x431   :  { %11160 = vst [vmem:[#allocation87_spill] sm:$0xff] %v8121_v11  ;;  %v1933_v35 = vadd.f32 %v1932_v16, %v11165_v46  ;;  %v1952_v11 = vpop.f32.mrf.mxu1  ;;  %2459 = vmatpush.msrb.mxu0 %v8137_v40  ;;  %v1972_v16 = vpop.f32.mrf.mxu2  ;;  %v11170_v46 = vld [vmem:[#allocation72_spill] sm:$0xff] }
 0x432   :  { %11161 = vst [vmem:[#allocation89_spill] sm:$0xff] %v8124_v43  ;;  %v8140_v43 = vld [vmem:[#allocation8 + $0x38] sm:$0xff]  ;;  %v1973_v27 = vadd.f32 %v1972_v16, %v11170_v46  ;;  %v11172_v16 = vld [vmem:[#allocation74_spill] sm:$0xff] }
 0x433   :  { %11162 = vst [vmem:[#allocation90_spill] sm:$0xff] %v8127_v12  ;;  %2499 = vmatpush.msrb.mxu2 %v8140_v43  ;;  %v1953_v12 = vadd.f32 %v1952_v11, %v1933_v35  ;;  %2460 = vmatpush.msrb.mxu0 %v8143_v54  ;;  %v11171_v11 = vld [vmem:[#allocation69_spill] sm:$0xff] }
 0x434   :  { %11163 = vst [vmem:[#allocation91_spill] sm:$0xff] %v8130_v55  ;;  %v8146_v55 = vld [vmem:[#allocation8 + $0x18] sm:$0xff] }
 0x435   :  { %11164 = vst [vmem:[#allocation92_spill] sm:$0xff] %v8133_v26  ;;  %2500 = vmatpush.msrb.mxu2 %v8146_v55  ;;  %v3985_v26 = vmul.f32 -1.442695, %v1953_v12 }
 0x436   :  { %11166 = vst [vmem:[#allocation93_spill] sm:$0xff] %v8137_v40  ;;  %v1993_v40 = vadd.f32 %v1992_v37, %v1973_v27 }
 0x437   :  { %11167 = vst [vmem:[#allocation94_spill] sm:$0xff] %v8140_v43  ;;  %4138 = vpow2.f32 %v3985_v26 }
 0x438   :  { %11168 = vst [vmem:[#allocation95_spill] sm:$0xff] %v8143_v54  ;;  %v3986_v58 = vmul.f32 -1.442695, %v1993_v40  ;;  %v2072_v54 = vpop.f32.mrf.mxu3 }
 0x439   :  { %11169 = vst [vmem:[#allocation96_spill] sm:$0xff] %v8146_v55  ;;  %v2052_v35 = vpop.f32.mrf.mxu2  ;;  %v2012_v55 = vpop.f32.mrf.mxu0 }
 0x43a   :  { %4140 = vpow2.f32 %v3986_v58  ;;  %v2053_v7 = vadd.f32 %v2052_v35, %v11171_v11  ;;  %v2013_v46 = vadd.f32 %v2012_v55, %v11172_v16  ;;  %v2032_v27 = vpop.f32.mrf.mxu1 }
 0x43c   :  { %v2073_v9 = vadd.f32 %v2072_v54, %v2053_v7  ;;  %v2033_v58 = vadd.f32 %v2032_v27, %v2013_v46 }
 0x43d   :  { %v4139_v4 = vpop.eup %4138 }
 0x43e   :  { %v2078_v43 = vadd.f32 1.0, %v4139_v4  ;;  %v3987_v12 = vmul.f32 -1.442695, %v2073_v9 }
 0x440   :  { %4142 = vrcp.f32 %v2078_v43  ;;  %v4141_v52 = vpop.eup %4140  ;;  %v2090_v11 = vand.u32 2147483648, %v2078_v43  ;;  %vm2084_vm5 = vweird.f32 %v2078_v43  ;;  %v2088_v9 = vand.u32 2147483647, %v2078_v43 }
 0x441   :  { %v2097_v32 = vadd.f32 1.0, %v4141_v52 }
 0x442   :  { %v2091_v46 = vor.u32 1.1754944e-38, %v2090_v11  ;;  %vm2089_vm9 = vcmp.eq.f32.partialorder %v2088_v9, 8.507059e+37 }
 0x443   :  { %4144 = vrcp.f32 %v2097_v32  ;;  %v2109_v54 = vand.u32 2147483648, %v2097_v32  ;;  %vm2103_vm8 = vweird.f32 %v2097_v32 }
 0x444   :  { %4146 = vpow2.f32 %v3987_v12 }
 0x445   :  { %4148 = vtanh.f32 %v2033_v58 }
 0x446   :  { %v4143_v59 = vpop.eup %4142 }
 0x447   :  { %v2080_v26 = vmul.f32 %v4143_v59, %v2078_v43  ;;  %vm2085_vm4 = vweird.f32 %v4143_v59  ;;  %v2179_v43 = vpop.f32.mrf.mxu1 }
 0x448   :  { %vm2086_vm6 = vmor %vm2084_vm5, %vm2085_vm4 }
 0x449   :  { %v2081_v37 = vsub.f32 1.0, %v2080_v26  ;;  %v4145_v40 = vpop.eup %4144  ;;  %v2107_v26 = vand.u32 2147483647, %v2097_v32 }
 0x44a   :  { %v4147_v34 = vpop.eup %4146  ;;  %v2099_v49 = vmul.f32 %v4145_v40, %v2097_v32  ;;  %vm2104_vm7 = vweird.f32 %v4145_v40 }
 0x44b   :  { %v2082_v4 = vmul.f32 %v4143_v59, %v2081_v37  ;;  %v2117_v7 = vadd.f32 1.0, %v4147_v34  ;;  %v2159_v37 = vpop.f32.mrf.mxu0  ;;  %vm2105_vm10 = vmor %vm2103_vm8, %vm2104_vm7  ;;  %v2110_v34 = vor.u32 1.1754944e-38, %v2109_v54  ;;  %v4149_v16 = vpop.eup %4148  ;;  %vm2108_vm11 = vcmp.eq.f32.partialorder %v2107_v26, 8.507059e+37 }
 0x44c   :  { %v2100_v52 = vsub.f32 1.0, %v2099_v49 }
 0x44d   :  { %v2083_v35 = vadd.f32 %v4143_v59, %v2082_v4  ;;  %4150 = vrcp.f32 %v2117_v7  ;;  %v2160_v4 = vadd.f32 %v2159_v37, %v10565_v14  ;;  %v2219_v37 = vpop.f32.mrf.mxu3  ;;  %v2129_v54 = vand.u32 2147483648, %v2117_v7 }
 0x44e   :  { %v2101_v55 = vmul.f32 %v4145_v40, %v2100_v52  ;;  %vm2123_vm13 = vweird.f32 %v2117_v7 }
 0x44f   :  { %v2087_v12 = vsel %vm2086_vm6, %v4143_v59, %v2083_v35  ;;  %v2180_v52 = vadd.f32 %v2179_v43, %v2160_v4 }
 0x450   :  { %v2102_v27 = vadd.f32 %v4145_v40, %v2101_v55  ;;  %v2092_v49 = vsel %vm2089_vm9, %v2091_v46, %v2087_v12  ;;  %v2199_v3 = vpop.f32.mrf.mxu2  ;;  %v2127_v46 = vand.u32 2147483647, %v2117_v7 }
 0x451   :  { %v2134_v35 = vmul.f32 %v4149_v16, %v2092_v49  ;;  %v2200_v55 = vadd.f32 %v2199_v3, %v10566_v60  ;;  %v3990_v12 = vmul.f32 -1.442695, %v2180_v52  ;;  %v2130_v16 = vor.u32 1.1754944e-38, %v2129_v54  ;;  %v11174_v52 = vld [vmem:[#allocation102_spill] sm:$0xff]  ;;  %v11184_v54 = vld [vmem:[#allocation15_spill] sm:$0xff] }
 0x452   :  { %v2106_v58 = vsel %vm2105_vm10, %v4145_v40, %v2102_v27  ;;  %vm2128_vm15 = vcmp.eq.f32.partialorder %v2127_v46, 8.507059e+37 }
 0x453   :  { %v4151_v0 = vpop.eup %4150  ;;  %v2111_v50 = vsel %vm2108_vm11, %v2110_v34, %v2106_v58  ;;  %v2220_v26 = vadd.f32 %v2219_v37, %v2200_v55  ;;  %v11173_v58 = vld [vmem:[#allocation101_spill] sm:$0xff]  ;;  %v11182_v55 = vld [vmem:[#allocation98_spill] sm:$0xff]  ;;  %v11183_v37 = vld [vmem:[#allocation99_spill] sm:$0xff] }
 0x454   :  { %v2133_v59 = vmul.f32 %v2111_v50, %v7445_v29  ;;  %v2119_v11 = vmul.f32 %v4151_v0, %v2117_v7  ;;  %vm2124_vm12 = vweird.f32 %v4151_v0 }
 0x455   :  { %v3991_v27 = vmul.f32 -1.442695, %v2220_v26  ;;  %vm2125_vm14 = vmor %vm2123_vm13, %vm2124_vm12 }
 0x456   :  { %v8154_v32 = vadd.f32 %v2134_v35, %v2133_v59  ;;  %v2120_v9 = vsub.f32 1.0, %v2119_v11  ;;  %v11175_v59 = vld [vmem:[#allocation103_spill] sm:$0xff]  ;;  %v11181_v35 = vld [vmem:[#allocation12_spill] sm:$0xff] }
 0x458   :  { %4152 = vtanh.f32 %v8154_v32  ;;  %v2121_v40 = vmul.f32 %v4151_v0, %v2120_v9 }
 0x459   :  { %4154 = vpow2.f32 %v3990_v12  ;;  %v11185_v12 = vld [vmem:[#allocation13_spill] sm:$0xff] }
 0x45a   :  { %v2122_v29 = vadd.f32 %v4151_v0, %v2121_v40  ;;  %4156 = vpow2.f32 %v3991_v27  ;;  %v11186_v27 = vld [vmem:[#allocation14_spill] sm:$0xff] }
 0x45c   :  { %v2126_v50 = vsel %vm2125_vm14, %v4151_v0, %v2122_v29 }
 0x45d   :  { %v2131_v3 = vsel %vm2128_vm15, %v2130_v16, %v2126_v50  ;;  %v11187_v50 = vld [vmem:[#allocation108_spill] sm:$0xff] }
 0x45e   :  { %v4153_v4 = vpop.eup %4152 }
 0x45f   :  { %v2137_v34 = vmul.f32 %v4153_v4, %v2131_v3  ;;  %v4155_v49 = vpop.eup %4154  ;;  %v11188_v4 = vld [vmem:[#allocation109_spill] sm:$0xff] }
 0x460   :  { %v4157_v7 = vpop.eup %4156  ;;  %v8165_v0 = vadd.f32 1.0, %v4155_v49  ;;  %v11190_v49 = vld [vmem:[#allocation19_spill] sm:$0xff] }
 0x461   :  { %3988 = vst [vmem:[%s9606_s5 + $0x18] sm:$0xff] %v2137_v34  ;;  %2401 = vmatmul.f32.vlgmr.msra.gmra.mxu1 %v2137_v34  ;;  %2441 = vmatmul.f32.vlgmr.msra.gmra.mxu3 %v2137_v34  ;;  %v8167_v43 = vadd.f32 1.0, %v4157_v7  ;;  %v2299_v7 = vpop.f32.mrf.mxu3 }
 0x462   :  { %2612 = vmatpush.msra.mxu1 %v7451_v2  ;;  %2652 = vmatpush.msra.mxu3 %v7454_v45  ;;  %4158 = vrcp.f32 %v8165_v0  ;;  %v11176_v2 = vld [vmem:[#allocation104_spill] sm:$0xff]  ;;  %v11177_v45 = vld [vmem:[#allocation105_spill] sm:$0xff]  ;;  %vm2311_vm2 = vweird.f32 %v8165_v0 }
 0x463   :  { %4160 = vrcp.f32 %v8167_v43  ;;  %vm2330_vm3 = vweird.f32 %v8167_v43 }
 0x464   :  { %2613 = vmatpush.msra.mxu1 %v7459_v44  ;;  %2653 = vmatpush.msra.mxu3 %v7462_v42  ;;  %v11178_v44 = vld [vmem:[#allocation106_spill] sm:$0xff]  ;;  %v11179_v42 = vld [vmem:[#allocation107_spill] sm:$0xff] }
 0x466   :  { %2614 = vmatpush.msra.mxu1 %v7467_v17  ;;  %2654 = vmatpush.msra.mxu3 %v11173_v58  ;;  %v11180_v17 = vld [vmem:[#allocation110_spill] sm:$0xff] }
 0x468   :  { %2615 = vmatpush.msra.mxu1 %v11174_v52  ;;  %2655 = vmatpush.msra.mxu3 %v11175_v59  ;;  %v8181_v11 = vpop.eup %4158 }
 0x469   :  { %2481 = vmatmul.f32.vlgmr.msrb.gmra.mxu1 %v2137_v34  ;;  %2521 = vmatmul.f32.vlgmr.msrb.gmra.mxu3 %v2137_v34  ;;  %v8183_v9 = vpop.eup %4160  ;;  %v2307_v40 = vmul.f32 %v8181_v11, %v8165_v0  ;;  %v11189_v34 = vld [vmem:[#allocation16_spill] sm:$0xff]  ;;  %vm2312_vm0 = vweird.f32 %v8181_v11 }
 0x46a   :  { %2616 = vmatpush.msra.mxu1 %v11176_v2  ;;  %2656 = vmatpush.msra.mxu3 %v11177_v45  ;;  %v2326_v26 = vmul.f32 %v8183_v9, %v8167_v43  ;;  %v2239_v46 = vpop.f32.mrf.mxu0  ;;  %v11191_v2 = vld [vmem:[#allocation17_spill] sm:$0xff]  ;;  %vm2331_vm1 = vweird.f32 %v8183_v9  ;;  %vm8219_vm4 = vmor %vm2311_vm2, %vm2312_vm0 }
 0x46b   :  { %v2240_v16 = vadd.f32 %v2239_v46, %v11187_v50  ;;  %v2308_v58 = vsub.f32 1.0, %v2307_v40  ;;  %v11192_v45 = vld [vmem:[#allocation21_spill] sm:$0xff]  ;;  %v11197_v40 = vld [vmem:[#allocation22_spill] sm:$0xff]  ;;  %vm8229_vm5 = vmor %vm2330_vm3, %vm2331_vm1 }
 0x46c   :  { %2617 = vmatpush.msra.mxu1 %v11178_v44  ;;  %2657 = vmatpush.msra.mxu3 %v11179_v42  ;;  %v2327_v52 = vsub.f32 1.0, %v2326_v26  ;;  %v2259_v44 = vpop.f32.mrf.mxu1  ;;  %v11198_v26 = vld [vmem:[#allocation27_spill] sm:$0xff] }
 0x46d   :  { %v2260_v42 = vadd.f32 %v2259_v44, %v2240_v16  ;;  %v2317_v16 = vand.u32 2147483648, %v8165_v0 }
 0x46e   :  { %2618 = vmatpush.msra.mxu1 %v11180_v17  ;;  %2658 = vmatpush.msra.mxu3 %v11181_v35  ;;  %v11193_v17 = vld [vmem:[#allocation18_spill] sm:$0xff]  ;;  %v11194_v35 = vld [vmem:[#allocation23_spill] sm:$0xff] }
 0x470   :  { %2619 = vmatpush.msra.mxu1 %v11182_v55  ;;  %2659 = vmatpush.msra.mxu3 %v11183_v37  ;;  %v2279_v29 = vpop.f32.mrf.mxu2  ;;  %v2328_v55 = vmul.f32 %v8183_v9, %v2327_v52  ;;  %v2309_v37 = vmul.f32 %v8181_v11, %v2308_v58  ;;  %v2334_v58 = vand.u32 2147483647, %v8167_v43  ;;  %v11203_v52 = vld [vmem:[#allocation26_spill] sm:$0xff] }
 0x471   :  { %v2280_v3 = vadd.f32 %v2279_v29, %v11188_v4  ;;  %v2336_v29 = vand.u32 2147483648, %v8167_v43 }
 0x472   :  { %2620 = vmatpush.msra.mxu1 %v11184_v54  ;;  %2660 = vmatpush.msra.mxu3 %v11185_v12  ;;  %v11195_v54 = vld [vmem:[#allocation20_spill] sm:$0xff]  ;;  %v11196_v12 = vld [vmem:[#allocation25_spill] sm:$0xff]  ;;  %v2310_v46 = vadd.f32 %v8181_v11, %v2309_v37  ;;  %vm2335_vm7 = vcmp.eq.f32.partialorder %v2334_v58, 8.507059e+37 }
 0x473   :  { %v2300_v59 = vadd.f32 %v2299_v7, %v2280_v3  ;;  %v11199_v3 = vld [vmem:[#allocation24_spill] sm:$0xff]  ;;  %v2315_v7 = vand.u32 2147483647, %v8165_v0  ;;  %v2337_v44 = vor.u32 1.1754944e-38, %v2336_v29  ;;  %v11208_v37 = vld [vmem:[#allocation33_spill] sm:$0xff] }
 0x474   :  { %2621 = vmatpush.msra.mxu1 %v11186_v27  ;;  %2661 = vmatpush.msra.mxu3 %v7522_v47  ;;  %v2329_v27 = vadd.f32 %v8183_v9, %v2328_v55  ;;  %v11215_v29 = vld [vmem:[#allocation36_spill] sm:$0xff] }
 0x475   :  { %v3992_v47 = vmul.f32 -1.442695, %v2300_v59  ;;  %vm2316_vm6 = vcmp.eq.f32.partialorder %v2315_v7, 8.507059e+37 }
 0x476   :  { %2622 = vmatpush.msra.mxu1 %v11189_v34  ;;  %2662 = vmatpush.msra.mxu3 %v11190_v49  ;;  %v11200_v34 = vld [vmem:[#allocation29_spill] sm:$0xff]  ;;  %v2333_v0 = vsel %vm8229_vm5, %v8183_v9, %v2329_v27  ;;  %v11207_v9 = vld [vmem:[#allocation28_spill] sm:$0xff]  ;;  %v11214_v27 = vld [vmem:[#allocation39_spill] sm:$0xff] }
 0x477   :  { %4162 = vpow2.f32 %v3992_v47  ;;  %v2338_v47 = vsel %vm2335_vm7, %v2337_v44, %v2333_v0  ;;  %v8352_v0 = vld [vmem:[#allocation6 + $0x88] sm:$0xff] }
 0x478   :  { %2623 = vmatpush.msra.mxu1 %v11191_v2  ;;  %2663 = vmatpush.msra.mxu3 %v11192_v45  ;;  %4164 = vtanh.f32 %v2260_v42  ;;  %v2314_v45 = vsel %vm8219_vm4, %v8181_v11, %v2310_v46  ;;  %v2318_v42 = vor.u32 1.1754944e-38, %v2317_v16  ;;  %v8312_v2 = vld [vmem:[#allocation6 + $0x128] sm:$0xff] }
 0x479   :  { %v11220_v44 = vld [vmem:[#allocation45_spill] sm:$0xff] }
 0x47a   :  { %2624 = vmatpush.msra.mxu1 %v11193_v17  ;;  %2664 = vmatpush.msra.mxu3 %v11194_v35  ;;  %v2319_v11 = vsel %vm2316_vm6, %v2318_v42, %v2314_v45  ;;  %v8328_v45 = vld [vmem:[#allocation6 + $0xe8] sm:$0xff]  ;;  %v8365_v42 = vld [vmem:[#allocation6 + $0x40] sm:$0xff] }
 0x47c   :  { %2625 = vmatpush.msra.mxu1 %v11195_v54  ;;  %2665 = vmatpush.msra.mxu3 %v11196_v12  ;;  %v11210_v54 = vld [vmem:[#allocation35_spill] sm:$0xff]  ;;  %v11211_v12 = vld [vmem:[#allocation32_spill] sm:$0xff] }
 0x47d   :  { %v4163_v59 = vpop.eup %4162 }
 0x47e   :  { %2626 = vmatpush.msra.mxu1 %v11197_v40  ;;  %2666 = vmatpush.msra.mxu3 %v11198_v26  ;;  %v2344_v43 = vadd.f32 1.0, %v4163_v59  ;;  %v11213_v40 = vld [vmem:[#allocation34_spill] sm:$0xff]  ;;  %v8309_v59 = vld [vmem:[#allocation6 + $0x120] sm:$0xff] }
 0x480   :  { %2627 = vmatpush.msra.mxu1 %v11199_v3  ;;  %2667 = vmatpush.msra.mxu3 %v11200_v34  ;;  %4166 = vrcp.f32 %v2344_v43  ;;  %v2354_v46 = vand.u32 2147483647, %v2344_v43  ;;  %vm2350_vm9 = vweird.f32 %v2344_v43 }
 0x482   :  { %2692 = vmatpush.msrb.mxu1 %v11203_v52  ;;  %2732 = vmatpush.msrb.mxu3 %v7588_v33  ;;  %v4165_v33 = vpop.eup %4164  ;;  %vm2355_vm11 = vcmp.eq.f32.partialorder %v2354_v46, 8.507059e+37  ;;  %v8265_v52 = vld [vmem:[#allocation6 + $0x1e0] sm:$0xff] }
 0x483   :  { %v2361_v17 = vmul.f32 %v4165_v33, %v2319_v11  ;;  %v8360_v33 = vld [vmem:[#allocation6 + $0x68] sm:$0xff]  ;;  %v11230_v46 = vld [vmem:[#allocation52_spill] sm:$0xff] }
 0x484   :  { %2693 = vmatpush.msrb.mxu1 %v7597_v13  ;;  %2733 = vmatpush.msrb.mxu3 %v7600_v6  ;;  %v2360_v13 = vmul.f32 %v2338_v47, %v7622_v15  ;;  %v11206_v6 = vld [vmem:[#allocation31_spill] sm:$0xff]  ;;  %v11212_v15 = vld [vmem:[#allocation37_spill] sm:$0xff]  ;;  %v11221_v47 = vld [vmem:[#allocation42_spill] sm:$0xff] }
 0x485   :  { %v8368_v11 = vld [vmem:[#allocation6 + $0x48] sm:$0xff] }
 0x486   :  { %2694 = vmatpush.msrb.mxu1 %v7603_v63  ;;  %2734 = vmatpush.msrb.mxu3 %v7606_v22  ;;  %v4167_v35 = vpop.eup %4166  ;;  %v8248_v55 = vadd.f32 %v2361_v17, %v2360_v13  ;;  %v11209_v63 = vld [vmem:[#allocation30_spill] sm:$0xff]  ;;  %v11222_v17 = vld [vmem:[#allocation47_spill] sm:$0xff]  ;;  %v8373_v13 = vld [vmem:[#allocation6 + $0x20] sm:$0xff] }
 0x487   :  { %v2346_v22 = vmul.f32 %v4167_v35, %v2344_v43  ;;  %vm2351_vm8 = vweird.f32 %v4167_v35 }
 0x488   :  { %2695 = vmatpush.msrb.mxu1 %v7609_v31  ;;  %2735 = vmatpush.msrb.mxu3 %v7612_v8  ;;  %4168 = vtanh.f32 %v8248_v55  ;;  %v2356_v8 = vand.u32 2147483648, %v2344_v43  ;;  %vm2352_vm10 = vmor %vm2350_vm9, %vm2351_vm8  ;;  %v8357_v43 = vld [vmem:[#allocation6 + $0x60] sm:$0xff] }
 0x489   :  { %v2347_v31 = vsub.f32 1.0, %v2346_v22  ;;  %v8389_v22 = vld [vmem:[#allocation6 + $0x8] sm:$0xff] }
 0x48a   :  { %2696 = vmatpush.msrb.mxu1 %v11206_v6  ;;  %2736 = vmatpush.msrb.mxu3 %v11207_v9  ;;  %v2357_v3 = vor.u32 1.1754944e-38, %v2356_v8  ;;  %v8376_v6 = vld [vmem:[#allocation6 + $0x28] sm:$0xff]  ;;  %v11226_v8 = vld [vmem:[#allocation48_spill] sm:$0xff] }
 0x48b   :  { %v2348_v26 = vmul.f32 %v4167_v35, %v2347_v31  ;;  %v8382_v9 = vld [vmem:[%s9601_s0 + $0x28] sm:$0xff]  ;;  %v11225_v31 = vld [vmem:[#allocation46_spill] sm:$0xff] }
 0x48c   :  { %2697 = vmatpush.msrb.mxu1 %v11208_v37  ;;  %2737 = vmatpush.msrb.mxu3 %v11209_v63  ;;  %v11224_v37 = vld [vmem:[#allocation49_spill] sm:$0xff]  ;;  %v8386_v63 = vld [vmem:[#allocation6] sm:$0xff] }
 0x48d   :  { %v2349_v16 = vadd.f32 %v4167_v35, %v2348_v26  ;;  %v11229_v26 = vld [vmem:[#allocation56_spill] sm:$0xff] }
 0x48e   :  { %2698 = vmatpush.msrb.mxu1 %v11210_v54  ;;  %2738 = vmatpush.msrb.mxu3 %v11211_v12  ;;  %v4169_v49 = vpop.eup %4168  ;;  %v8394_v54 = vld [vmem:[#allocation6 + $0x1f0] sm:$0xff]  ;;  %v8397_v12 = vld [vmem:[#allocation6 + $0x1f8] sm:$0xff] }
 0x48f   :  { %v2353_v34 = vsel %vm2352_vm10, %v4167_v35, %v2349_v16  ;;  %v11223_v35 = vld [vmem:[#allocation44_spill] sm:$0xff]  ;;  %v11233_v16 = vld [vmem:[#allocation58_spill] sm:$0xff] }
 0x490   :  { %2699 = vmatpush.msrb.mxu1 %v11212_v15  ;;  %2739 = vmatpush.msrb.mxu3 %v11213_v40  ;;  %v2358_v7 = vsel %vm2355_vm11, %v2357_v3, %v2353_v34  ;;  %v8402_v15 = vld [vmem:[#allocation6 + $0x1d0] sm:$0xff]  ;;  %v8405_v40 = vld [vmem:[#allocation6 + $0x1d8] sm:$0xff] }
 0x491   :  { %v2364_v58 = vmul.f32 %v4169_v49, %v2358_v7  ;;  %11227 = vst [vmem:[#allocation97_spill] sm:$0xff] %v8402_v15  ;;  %v11234_v3 = vld [vmem:[#allocation55_spill] sm:$0xff]  ;;  %v8418_v34 = vld [vmem:[#allocation6 + $0x190] sm:$0xff]  ;;  %v11237_v7 = vld [vmem:[#allocation60_spill] sm:$0xff] }
 0x492   :  { %2700 = vmatpush.msrb.mxu1 %v11214_v27  ;;  %2740 = vmatpush.msrb.mxu3 %v11215_v29  ;;  %11228 = vst [vmem:[#allocation100_spill] sm:$0xff] %v8405_v40  ;;  %v8410_v27 = vld [vmem:[#allocation6 + $0x1b0] sm:$0xff]  ;;  %v8413_v29 = vld [vmem:[#allocation6 + $0x1b8] sm:$0xff] }
 0x493   :  { %2381 = vmatmul.f32.vlgmr.msra.gmra.mxu0 %v2364_v58  ;;  %2421 = vmatmul.f32.vlgmr.msra.gmra.mxu2 %v2364_v58  ;;  %11231 = vst [vmem:[#allocation101_spill] sm:$0xff] %v8410_v27  ;;  %v8421_v49 = vld [vmem:[#allocation6 + $0x198] sm:$0xff] }
 0x494   :  { %2701 = vmatpush.msrb.mxu1 %v7649_v19  ;;  %2741 = vmatpush.msrb.mxu3 %v7652_v36  ;;  %v8268_v19 = vld [vmem:[#allocation6 + $0x1e8] sm:$0xff]  ;;  %v8271_v36 = vld [vmem:[#allocation6 + $0x1c0] sm:$0xff]  ;;  %11232 = vst [vmem:[#allocation102_spill] sm:$0xff] %v8413_v29 }
 0x495   :  { %2592 = vmatpush.msra.mxu0 %v8265_v52  ;;  %2628 = vmatmul.f32.vlgmr.msra.gmra.mxu1 %v2364_v58  ;;  %11235 = vst [vmem:[#allocation103_spill] sm:$0xff] %v8418_v34 }
 0x496   :  { %2702 = vmatpush.msrb.mxu1 %v7655_v24  ;;  %2742 = vmatpush.msrb.mxu3 %v7658_v10  ;;  %v8275_v24 = vld [vmem:[#allocation6 + $0x1c8] sm:$0xff]  ;;  %v8279_v10 = vld [vmem:[#allocation6 + $0x1a0] sm:$0xff]  ;;  %11236 = vst [vmem:[#allocation104_spill] sm:$0xff] %v8421_v49 }
 0x497   :  { %2632 = vmatpush.msra.mxu2 %v8268_v19  ;;  %2668 = vmatmul.f32.vlgmr.msra.gmra.mxu3 %v2364_v58 }
 0x498   :  { %2703 = vmatpush.msrb.mxu1 %v7664_v53  ;;  %2743 = vmatpush.msrb.mxu3 %v7668_v20  ;;  %v8283_v53 = vld [vmem:[#allocation6 + $0x1a8] sm:$0xff]  ;;  %v8287_v20 = vld [vmem:[#allocation6 + $0x180] sm:$0xff] }
 0x499   :  { %2593 = vmatpush.msra.mxu0 %v8271_v36  ;;  %2633 = vmatpush.msra.mxu2 %v8275_v24 }
 0x49a   :  { %2704 = vmatpush.msrb.mxu1 %v7672_v61  ;;  %2744 = vmatpush.msrb.mxu3 %v7676_v56  ;;  %v8291_v61 = vld [vmem:[#allocation6 + $0x188] sm:$0xff]  ;;  %v8294_v56 = vld [vmem:[#allocation6 + $0x160] sm:$0xff] }
 0x49b   :  { %2594 = vmatpush.msra.mxu0 %v8279_v10  ;;  %2634 = vmatpush.msra.mxu2 %v8283_v53 }
 0x49c   :  { %2705 = vmatpush.msrb.mxu1 %v7680_v48  ;;  %2745 = vmatpush.msrb.mxu3 %v7684_v21  ;;  %v8297_v48 = vld [vmem:[#allocation6 + $0x168] sm:$0xff]  ;;  %v8301_v21 = vld [vmem:[#allocation6 + $0x140] sm:$0xff] }
 0x49d   :  { %2595 = vmatpush.msra.mxu0 %v8287_v20  ;;  %2635 = vmatpush.msra.mxu2 %v8291_v61 }
 0x49e   :  { %2706 = vmatpush.msrb.mxu1 %v7689_v18  ;;  %2461 = vmatmul.f32.vlgmr.msrb.gmra.mxu0 %v2364_v58  ;;  %v8305_v18 = vld [vmem:[#allocation6 + $0x148] sm:$0xff] }
 0x49f   :  { %2501 = vmatmul.f32.vlgmr.msrb.gmra.mxu2 %v2364_v58  ;;  %2596 = vmatpush.msra.mxu0 %v8294_v56 }
 0x4a0   :  { %2636 = vmatpush.msra.mxu2 %v8297_v48  ;;  %2746 = vmatpush.msrb.mxu3 %v7692_v5  ;;  %v8317_v5 = vld [vmem:[#allocation6 + $0x100] sm:$0xff] }
 0x4a1   :  { %2597 = vmatpush.msra.mxu0 %v8301_v21  ;;  %2707 = vmatpush.msrb.mxu1 %v7697_v38  ;;  %v8320_v38 = vld [vmem:[#allocation6 + $0x108] sm:$0xff] }
 0x4a2   :  { %2637 = vmatpush.msra.mxu2 %v8305_v18  ;;  %2747 = vmatpush.msrb.mxu3 %v7700_v57  ;;  %v8325_v57 = vld [vmem:[#allocation6 + $0xe0] sm:$0xff] }
 0x4a3   :  { %2708 = vmatmul.f32.vlgmr.msrb.gmra.mxu1 %v2364_v58  ;;  %2748 = vmatmul.f32.vlgmr.msrb.gmra.mxu3 %v2364_v58  ;;  %v11238_v58 = vld [vmem:[#allocation57_spill] sm:$0xff] }
 0x4a4   :  { %2598 = vmatpush.msra.mxu0 %v8309_v59  ;;  %2638 = vmatpush.msra.mxu2 %v8312_v2 }
 0x4a5   :  { %2835 = vmatpush.msra.mxu1 %v7705_v25  ;;  %2875 = vmatpush.msra.mxu3 %v7708_v51  ;;  %v8333_v25 = vld [vmem:[#allocation6 + $0xc0] sm:$0xff]  ;;  %v8336_v51 = vld [vmem:[#allocation6 + $0xc8] sm:$0xff] }
 0x4a6   :  { %2599 = vmatpush.msra.mxu0 %v8317_v5  ;;  %2639 = vmatpush.msra.mxu2 %v8320_v38 }
 0x4a7   :  { %2836 = vmatpush.msra.mxu1 %v7713_v30  ;;  %2876 = vmatpush.msra.mxu3 %v7716_v62  ;;  %v8341_v30 = vld [vmem:[#allocation6 + $0xa0] sm:$0xff]  ;;  %v8344_v62 = vld [vmem:[#allocation6 + $0xa8] sm:$0xff] }
 0x4a8   :  { %2600 = vmatpush.msra.mxu0 %v8325_v57  ;;  %2640 = vmatpush.msra.mxu2 %v8328_v45 }
 0x4a9   :  { %2837 = vmatpush.msra.mxu1 %v7721_v39  ;;  %2877 = vmatpush.msra.mxu3 %v7724_v1  ;;  %v11216_v39 = vld [vmem:[#allocation41_spill] sm:$0xff]  ;;  %v8349_v1 = vld [vmem:[#allocation6 + $0x80] sm:$0xff] }
 0x4aa   :  { %2601 = vmatpush.msra.mxu0 %v8333_v25  ;;  %2641 = vmatpush.msra.mxu2 %v8336_v51 }
 0x4ab   :  { %2838 = vmatpush.msra.mxu1 %v7729_v23  ;;  %2878 = vmatpush.msra.mxu3 %v7732_v41  ;;  %v11217_v23 = vld [vmem:[#allocation38_spill] sm:$0xff]  ;;  %v11218_v41 = vld [vmem:[#allocation43_spill] sm:$0xff] }
 0x4ac   :  { %2602 = vmatpush.msra.mxu0 %v8341_v30  ;;  %2642 = vmatpush.msra.mxu2 %v8344_v62 }
 0x4ad   :  { %2839 = vmatpush.msra.mxu1 %v7737_v28  ;;  %2879 = vmatpush.msra.mxu3 %v11216_v39  ;;  %v11219_v28 = vld [vmem:[#allocation40_spill] sm:$0xff]  ;;  %v8426_v39 = vld [vmem:[#allocation6 + $0x170] sm:$0xff] }
 0x4ae   :  { %2603 = vmatpush.msra.mxu0 %v8349_v1  ;;  %2643 = vmatpush.msra.mxu2 %v8352_v0  ;;  %11239 = vst [vmem:[#allocation105_spill] sm:$0xff] %v8426_v39 }
 0x4af   :  { %2840 = vmatpush.msra.mxu1 %v11217_v23  ;;  %2880 = vmatpush.msra.mxu3 %v11218_v41  ;;  %v8429_v23 = vld [vmem:[#allocation6 + $0x178] sm:$0xff]  ;;  %v11241_v41 = vld [vmem:[#allocation62_spill] sm:$0xff] }
 0x4b0   :  { %2604 = vmatpush.msra.mxu0 %v8357_v43  ;;  %2644 = vmatpush.msra.mxu2 %v8360_v33  ;;  %11240 = vst [vmem:[#allocation106_spill] sm:$0xff] %v8429_v23 }
 0x4b1   :  { %2841 = vmatpush.msra.mxu1 %v11219_v28  ;;  %2881 = vmatpush.msra.mxu3 %v11220_v44  ;;  %v11242_v28 = vld [vmem:[#allocation59_spill] sm:$0xff]  ;;  %v8434_v44 = vld [vmem:[#allocation6 + $0x150] sm:$0xff] }
 0x4b2   :  { %2605 = vmatpush.msra.mxu0 %v8365_v42  ;;  %2645 = vmatpush.msra.mxu2 %v8368_v11  ;;  %11243 = vst [vmem:[#allocation107_spill] sm:$0xff] %v8434_v44 }
 0x4b3   :  { %2842 = vmatpush.msra.mxu1 %v11221_v47  ;;  %2882 = vmatpush.msra.mxu3 %v11222_v17  ;;  %v8437_v47 = vld [vmem:[#allocation6 + $0x158] sm:$0xff]  ;;  %v11245_v17 = vld [vmem:[#allocation64_spill] sm:$0xff] }
 0x4b4   :  { %2606 = vmatpush.msra.mxu0 %v8373_v13  ;;  %2646 = vmatpush.msra.mxu2 %v8376_v6  ;;  %11244 = vst [vmem:[#allocation110_spill] sm:$0xff] %v8437_v47 }
 0x4b5   :  { %2843 = vmatpush.msra.mxu1 %v11223_v35  ;;  %2883 = vmatpush.msra.mxu3 %v11224_v37  ;;  %v11246_v35 = vld [vmem:[#allocation61_spill] sm:$0xff]  ;;  %v8442_v37 = vld [vmem:[#allocation6 + $0x130] sm:$0xff] }
 0x4b6   :  { %2607 = vmatpush.msra.mxu0 %v8386_v63  ;;  %2647 = vmatpush.msra.mxu2 %v8389_v22  ;;  %11247 = vst [vmem:[#allocation12_spill] sm:$0xff] %v8442_v37 }
 0x4b7   :  { %2608 = vmatmul.f32.vlgmr.msra.gmra.mxu0 %v8382_v9  ;;  %2648 = vmatmul.f32.vlgmr.msra.gmra.mxu2 %v8382_v9 }
 0x4b8   :  { %2672 = vmatpush.msrb.mxu0 %v8394_v54  ;;  %2712 = vmatpush.msrb.mxu2 %v8397_v12 }
 0x4b9   :  { %2844 = vmatpush.msra.mxu1 %v11225_v31  ;;  %2884 = vmatpush.msra.mxu3 %v11226_v8  ;;  %v8445_v31 = vld [vmem:[#allocation6 + $0x138] sm:$0xff]  ;;  %v11249_v8 = vld [vmem:[#allocation66_spill] sm:$0xff] }
 0x4ba   :  { %2673 = vmatpush.msrb.mxu0 %v8402_v15  ;;  %2713 = vmatpush.msrb.mxu2 %v8405_v40  ;;  %11248 = vst [vmem:[#allocation98_spill] sm:$0xff] %v8445_v31 }
 0x4bb   :  { %2845 = vmatpush.msra.mxu1 %v11229_v26  ;;  %2885 = vmatpush.msra.mxu3 %v11230_v46  ;;  %v11250_v26 = vld [vmem:[#allocation63_spill] sm:$0xff]  ;;  %v8450_v46 = vld [vmem:[#allocation6 + $0x110] sm:$0xff] }
 0x4bc   :  { %2674 = vmatpush.msrb.mxu0 %v8410_v27  ;;  %2714 = vmatpush.msrb.mxu2 %v8413_v29  ;;  %11251 = vst [vmem:[#allocation99_spill] sm:$0xff] %v8450_v46 }
 0x4bd   :  { %2846 = vmatpush.msra.mxu1 %v11233_v16  ;;  %2886 = vmatpush.msra.mxu3 %v11234_v3  ;;  %v8453_v16 = vld [vmem:[#allocation6 + $0x118] sm:$0xff]  ;;  %v11253_v3 = vld [vmem:[#allocation68_spill] sm:$0xff] }
 0x4be   :  { %2675 = vmatpush.msrb.mxu0 %v8418_v34  ;;  %2715 = vmatpush.msrb.mxu2 %v8421_v49  ;;  %11252 = vst [vmem:[#allocation15_spill] sm:$0xff] %v8453_v16 }
 0x4bf   :  { %2847 = vmatpush.msra.mxu1 %v11237_v7  ;;  %2887 = vmatpush.msra.mxu3 %v11238_v58  ;;  %v11254_v7 = vld [vmem:[#allocation65_spill] sm:$0xff]  ;;  %v8458_v58 = vld [vmem:[#allocation6 + $0xf0] sm:$0xff] }
 0x4c0   :  { %2676 = vmatpush.msrb.mxu0 %v8426_v39  ;;  %2716 = vmatpush.msrb.mxu2 %v8429_v23  ;;  %11255 = vst [vmem:[#allocation13_spill] sm:$0xff] %v8458_v58 }
 0x4c1   :  { %2848 = vmatpush.msra.mxu1 %v11241_v41  ;;  %2888 = vmatpush.msra.mxu3 %v11242_v28  ;;  %v8461_v41 = vld [vmem:[#allocation6 + $0xf8] sm:$0xff]  ;;  %v11257_v28 = vld [vmem:[#allocation70_spill] sm:$0xff] }
 0x4c2   :  { %2677 = vmatpush.msrb.mxu0 %v8434_v44  ;;  %2717 = vmatpush.msrb.mxu2 %v8437_v47  ;;  %11256 = vst [vmem:[#allocation14_spill] sm:$0xff] %v8461_v41 }
 0x4c3   :  { %2849 = vmatpush.msra.mxu1 %v11245_v17  ;;  %2889 = vmatpush.msra.mxu3 %v11246_v35  ;;  %v11258_v17 = vld [vmem:[#allocation111_spill] sm:$0xff]  ;;  %v8466_v35 = vld [vmem:[#allocation6 + $0xd0] sm:$0xff] }
 0x4c4   :  { %2678 = vmatpush.msrb.mxu0 %v8442_v37  ;;  %2718 = vmatpush.msrb.mxu2 %v8445_v31  ;;  %11259 = vst [vmem:[#allocation16_spill] sm:$0xff] %v8466_v35 }
 0x4c5   :  { %2850 = vmatpush.msra.mxu1 %v11249_v8  ;;  %2890 = vmatpush.msra.mxu3 %v11250_v26  ;;  %v8469_v8 = vld [vmem:[#allocation6 + $0xd8] sm:$0xff]  ;;  %v11261_v26 = vld [vmem:[#allocation112_spill] sm:$0xff] }
 0x4c6   :  { %2679 = vmatpush.msrb.mxu0 %v8450_v46  ;;  %2719 = vmatpush.msrb.mxu2 %v8453_v16  ;;  %11260 = vst [vmem:[#allocation19_spill] sm:$0xff] %v8469_v8  ;;  %v11294_v16 = vld [vmem:[#allocation133_spill] sm:$0xff] }
 0x4c7   :  { %2915 = vmatpush.msrb.mxu1 %v11253_v3  ;;  %2955 = vmatpush.msrb.mxu3 %v11254_v7  ;;  %v11262_v3 = vld [vmem:[#allocation113_spill] sm:$0xff]  ;;  %v8474_v7 = vld [vmem:[#allocation6 + $0xb0] sm:$0xff] }
 0x4c8   :  { %2680 = vmatpush.msrb.mxu0 %v8458_v58  ;;  %2720 = vmatpush.msrb.mxu2 %v8461_v41  ;;  %11263 = vst [vmem:[#allocation17_spill] sm:$0xff] %v8474_v7  ;;  %v8477_v41 = vld [vmem:[#allocation6 + $0xb8] sm:$0xff] }
 0x4c9   :  { %2916 = vmatpush.msrb.mxu1 %v11257_v28  ;;  %2956 = vmatpush.msrb.mxu3 %v11258_v17  ;;  %11264 = vst [vmem:[#allocation21_spill] sm:$0xff] %v8477_v41  ;;  %v11265_v28 = vld [vmem:[#allocation114_spill] sm:$0xff]  ;;  %v11266_v17 = vld [vmem:[#allocation115_spill] sm:$0xff] }
 0x4ca   :  { %2681 = vmatpush.msrb.mxu0 %v8466_v35  ;;  %2721 = vmatpush.msrb.mxu2 %v8469_v8  ;;  %v8482_v35 = vld [vmem:[#allocation6 + $0x90] sm:$0xff]  ;;  %v8485_v8 = vld [vmem:[#allocation6 + $0x98] sm:$0xff] }
 0x4cb   :  { %2917 = vmatpush.msrb.mxu1 %v11261_v26  ;;  %2957 = vmatpush.msrb.mxu3 %v11262_v3  ;;  %11267 = vst [vmem:[#allocation18_spill] sm:$0xff] %v8482_v35  ;;  %v11269_v26 = vld [vmem:[#allocation116_spill] sm:$0xff]  ;;  %v11270_v3 = vld [vmem:[#allocation117_spill] sm:$0xff]  ;;  %v11292_v58 = vld [vmem:[#allocation131_spill] sm:$0xff] }
 0x4cc   :  { %2682 = vmatpush.msrb.mxu0 %v8474_v7  ;;  %2722 = vmatpush.msrb.mxu2 %v8477_v41  ;;  %11268 = vst [vmem:[#allocation23_spill] sm:$0xff] %v8485_v8  ;;  %v8490_v7 = vld [vmem:[#allocation6 + $0x70] sm:$0xff]  ;;  %v8493_v41 = vld [vmem:[#allocation6 + $0x78] sm:$0xff] }
 0x4cd   :  { %2918 = vmatpush.msrb.mxu1 %v11265_v28  ;;  %2958 = vmatpush.msrb.mxu3 %v11266_v17  ;;  %11271 = vst [vmem:[#allocation20_spill] sm:$0xff] %v8490_v7  ;;  %v11273_v28 = vld [vmem:[#allocation118_spill] sm:$0xff]  ;;  %v11274_v17 = vld [vmem:[#allocation119_spill] sm:$0xff] }
 0x4ce   :  { %2683 = vmatpush.msrb.mxu0 %v8482_v35  ;;  %2723 = vmatpush.msrb.mxu2 %v8485_v8  ;;  %11272 = vst [vmem:[#allocation25_spill] sm:$0xff] %v8493_v41  ;;  %v8498_v35 = vld [vmem:[#allocation6 + $0x50] sm:$0xff]  ;;  %v8501_v8 = vld [vmem:[#allocation6 + $0x58] sm:$0xff] }
 0x4cf   :  { %2919 = vmatpush.msrb.mxu1 %v11269_v26  ;;  %2959 = vmatpush.msrb.mxu3 %v11270_v3  ;;  %11275 = vst [vmem:[#allocation22_spill] sm:$0xff] %v8498_v35  ;;  %v11277_v26 = vld [vmem:[#allocation120_spill] sm:$0xff]  ;;  %v11278_v3 = vld [vmem:[#allocation121_spill] sm:$0xff] }
 0x4d0   :  { %2684 = vmatpush.msrb.mxu0 %v8490_v7  ;;  %2724 = vmatpush.msrb.mxu2 %v8493_v41  ;;  %11276 = vst [vmem:[#allocation27_spill] sm:$0xff] %v8501_v8  ;;  %v8506_v7 = vld [vmem:[#allocation6 + $0x30] sm:$0xff]  ;;  %v8509_v41 = vld [vmem:[#allocation6 + $0x38] sm:$0xff] }
 0x4d1   :  { %2920 = vmatpush.msrb.mxu1 %v11273_v28  ;;  %2960 = vmatpush.msrb.mxu3 %v11274_v17  ;;  %11279 = vst [vmem:[#allocation24_spill] sm:$0xff] %v8506_v7  ;;  %v11281_v28 = vld [vmem:[#allocation122_spill] sm:$0xff]  ;;  %v11282_v17 = vld [vmem:[#allocation123_spill] sm:$0xff] }
 0x4d2   :  { %2685 = vmatpush.msrb.mxu0 %v8498_v35  ;;  %2725 = vmatpush.msrb.mxu2 %v8501_v8  ;;  %11280 = vst [vmem:[#allocation29_spill] sm:$0xff] %v8509_v41  ;;  %v8514_v35 = vld [vmem:[#allocation6 + $0x10] sm:$0xff]  ;;  %v8517_v8 = vld [vmem:[#allocation6 + $0x18] sm:$0xff] }
 0x4d3   :  { %2921 = vmatpush.msrb.mxu1 %v11277_v26  ;;  %2961 = vmatpush.msrb.mxu3 %v11278_v3  ;;  %11283 = vst [vmem:[#allocation26_spill] sm:$0xff] %v8514_v35  ;;  %v11285_v26 = vld [vmem:[#allocation124_spill] sm:$0xff]  ;;  %v11286_v3 = vld [vmem:[#allocation125_spill] sm:$0xff] }
 0x4d4   :  { %2686 = vmatpush.msrb.mxu0 %v8506_v7  ;;  %2726 = vmatpush.msrb.mxu2 %v8509_v41  ;;  %11284 = vst [vmem:[#allocation31_spill] sm:$0xff] %v8517_v8  ;;  %v11287_v41 = vld [vmem:[#allocation126_spill] sm:$0xff]  ;;  %v11290_v7 = vld [vmem:[#allocation129_spill] sm:$0xff] }
 0x4d5   :  { %2922 = vmatpush.msrb.mxu1 %v11281_v28  ;;  %2962 = vmatpush.msrb.mxu3 %v11282_v17  ;;  %v11288_v28 = vld [vmem:[#allocation127_spill] sm:$0xff]  ;;  %v11289_v17 = vld [vmem:[#allocation128_spill] sm:$0xff] }
 0x4d6   :  { %2687 = vmatpush.msrb.mxu0 %v8514_v35  ;;  %2727 = vmatpush.msrb.mxu2 %v8517_v8  ;;  %v11291_v35 = vld [vmem:[#allocation130_spill] sm:$0xff]  ;;  %v11293_v8 = vld [vmem:[#allocation132_spill] sm:$0xff] }
 0x4d7   :  { %2688 = vmatmul.f32.vlgmr.msrb.gmra.mxu0 %v8382_v9  ;;  %2728 = vmatmul.f32.vlgmr.msrb.gmra.mxu2 %v8382_v9  ;;  %v11295_v9 = vld [vmem:[#allocation134_spill] sm:$0xff] }
 0x4d8   :  { %2923 = vmatpush.msrb.mxu1 %v11285_v26  ;;  %2963 = vmatpush.msrb.mxu3 %v11286_v3  ;;  %v11296_v26 = vld [vmem:[#allocation135_spill] sm:$0xff]  ;;  %v11297_v3 = vld [vmem:[#allocation136_spill] sm:$0xff] }
 0x4d9   :  { %2815 = vmatpush.msra.mxu0 %v11287_v41  ;;  %2855 = vmatpush.msra.mxu2 %v11288_v28  ;;  %v11298_v41 = vld [vmem:[#allocation137_spill] sm:$0xff]  ;;  %v11299_v28 = vld [vmem:[#allocation138_spill] sm:$0xff] }
 0x4da   :  { %2924 = vmatpush.msrb.mxu1 %v11289_v17  ;;  %2964 = vmatpush.msrb.mxu3 %v11290_v7  ;;  %v11300_v17 = vld [vmem:[#allocation139_spill] sm:$0xff]  ;;  %v11301_v7 = vld [vmem:[#allocation140_spill] sm:$0xff] }
 0x4db   :  { %2816 = vmatpush.msra.mxu0 %v11291_v35  ;;  %2856 = vmatpush.msra.mxu2 %v11292_v58  ;;  %v11302_v35 = vld [vmem:[#allocation141_spill] sm:$0xff]  ;;  %v11303_v58 = vld [vmem:[#allocation142_spill] sm:$0xff] }
 0x4dc   :  { %2925 = vmatpush.msrb.mxu1 %v11293_v8  ;;  %2965 = vmatpush.msrb.mxu3 %v11294_v16  ;;  %v11304_v8 = vld [vmem:[#allocation143_spill] sm:$0xff]  ;;  %v11305_v16 = vld [vmem:[#allocation144_spill] sm:$0xff] }
 0x4dd   :  { %2817 = vmatpush.msra.mxu0 %v11295_v9  ;;  %2857 = vmatpush.msra.mxu2 %v11296_v26  ;;  %v11306_v9 = vld [vmem:[#allocation145_spill] sm:$0xff]  ;;  %v11307_v26 = vld [vmem:[#allocation146_spill] sm:$0xff] }
 0x4de   :  { %2926 = vmatpush.msrb.mxu1 %v11297_v3  ;;  %2966 = vmatpush.msrb.mxu3 %v11298_v41  ;;  %v11308_v3 = vld [vmem:[#allocation147_spill] sm:$0xff]  ;;  %v11309_v41 = vld [vmem:[#allocation148_spill] sm:$0xff] }
 0x4df   :  { %2818 = vmatpush.msra.mxu0 %v11299_v28  ;;  %2858 = vmatpush.msra.mxu2 %v11300_v17  ;;  %v11310_v28 = vld [vmem:[#allocation149_spill] sm:$0xff]  ;;  %v11311_v17 = vld [vmem:[#allocation150_spill] sm:$0xff] }
 0x4e0   :  { %2927 = vmatpush.msrb.mxu1 %v11301_v7  ;;  %2967 = vmatpush.msrb.mxu3 %v11302_v35  ;;  %v11312_v7 = vld [vmem:[#allocation151_spill] sm:$0xff]  ;;  %v11313_v35 = vld [vmem:[#allocation152_spill] sm:$0xff] }
 0x4e1   :  { %2819 = vmatpush.msra.mxu0 %v11303_v58  ;;  %2859 = vmatpush.msra.mxu2 %v11304_v8  ;;  %v11314_v58 = vld [vmem:[#allocation153_spill] sm:$0xff]  ;;  %v11315_v8 = vld [vmem:[#allocation154_spill] sm:$0xff] }
 0x4e2   :  { %2928 = vmatpush.msrb.mxu1 %v11305_v16  ;;  %2968 = vmatpush.msrb.mxu3 %v11306_v9  ;;  %v11316_v16 = vld [vmem:[#allocation155_spill] sm:$0xff]  ;;  %v11317_v9 = vld [vmem:[#allocation156_spill] sm:$0xff] }
 0x4e3   :  { %2820 = vmatpush.msra.mxu0 %v11307_v26  ;;  %2860 = vmatpush.msra.mxu2 %v11308_v3  ;;  %v11318_v26 = vld [vmem:[#allocation157_spill] sm:$0xff]  ;;  %v11319_v3 = vld [vmem:[#allocation158_spill] sm:$0xff] }
 0x4e4   :  { %2929 = vmatpush.msrb.mxu1 %v11309_v41  ;;  %2969 = vmatpush.msrb.mxu3 %v11310_v28  ;;  %v11320_v41 = vld [vmem:[#allocation159_spill] sm:$0xff]  ;;  %v11321_v28 = vld [vmem:[#allocation160_spill] sm:$0xff]  ;;  %v2442_v47 = vpop.f32.mrf.mxu3 }
 0x4e5   :  { %2821 = vmatpush.msra.mxu0 %v11311_v17  ;;  %2861 = vmatpush.msra.mxu2 %v11312_v7  ;;  %v11322_v17 = vld [vmem:[#allocation161_spill] sm:$0xff]  ;;  %v11323_v7 = vld [vmem:[#allocation162_spill] sm:$0xff] }
 0x4e6   :  { %2930 = vmatpush.msrb.mxu1 %v11313_v35  ;;  %2970 = vmatpush.msrb.mxu3 %v11314_v58  ;;  %v11324_v35 = vld [vmem:[#allocation163_spill] sm:$0xff]  ;;  %v11325_v58 = vld [vmem:[#allocation164_spill] sm:$0xff] }
 0x4e7   :  { %2822 = vmatpush.msra.mxu0 %v11315_v8  ;;  %2862 = vmatpush.msra.mxu2 %v11316_v16  ;;  %v11326_v8 = vld [vmem:[#allocation165_spill] sm:$0xff]  ;;  %v11327_v16 = vld [vmem:[#allocation166_spill] sm:$0xff] }
 0x4e9   :  { %2823 = vmatpush.msra.mxu0 %v11317_v9  ;;  %2863 = vmatpush.msra.mxu2 %v11318_v26  ;;  %v11328_v9 = vld [vmem:[#allocation167_spill] sm:$0xff]  ;;  %v11329_v26 = vld [vmem:[#allocation168_spill] sm:$0xff] }
 0x4eb   :  { %2824 = vmatpush.msra.mxu0 %v11319_v3  ;;  %2864 = vmatpush.msra.mxu2 %v11320_v41  ;;  %v11330_v3 = vld [vmem:[#allocation169_spill] sm:$0xff]  ;;  %v11331_v41 = vld [vmem:[#allocation170_spill] sm:$0xff] }
 0x4ed   :  { %2825 = vmatpush.msra.mxu0 %v11321_v28  ;;  %2865 = vmatpush.msra.mxu2 %v11322_v17  ;;  %v11332_v28 = vld [vmem:[#allocation171_spill] sm:$0xff]  ;;  %v11333_v17 = vld [vmem:[#allocation172_spill] sm:$0xff] }
 0x4ef   :  { %2826 = vmatpush.msra.mxu0 %v11323_v7  ;;  %2866 = vmatpush.msra.mxu2 %v11324_v35  ;;  %v11334_v7 = vld [vmem:[#allocation173_spill] sm:$0xff]  ;;  %v11335_v35 = vld [vmem:[#allocation174_spill] sm:$0xff] }
 0x4f1   :  { %2827 = vmatpush.msra.mxu0 %v11325_v58  ;;  %2867 = vmatpush.msra.mxu2 %v11326_v8  ;;  %v11336_v58 = vld [vmem:[#allocation175_spill] sm:$0xff] }
 0x4f2   :  { %v11337_v8 = vld [vmem:[#allocation71_spill] sm:$0xff] }
 0x4f3   :  { %2828 = vmatpush.msra.mxu0 %v11327_v16  ;;  %2868 = vmatpush.msra.mxu2 %v11328_v9  ;;  %v11338_v16 = vld [vmem:[#allocation73_spill] sm:$0xff] }
 0x4f4   :  { %v11339_v9 = vld [vmem:[#allocation77_spill] sm:$0xff] }
 0x4f5   :  { %2829 = vmatpush.msra.mxu0 %v11329_v26  ;;  %2869 = vmatpush.msra.mxu2 %v11330_v3  ;;  %v11340_v26 = vld [vmem:[#allocation75_spill] sm:$0xff] }
 0x4f6   :  { %v11341_v3 = vld [vmem:[#allocation79_spill] sm:$0xff] }
 0x4f7   :  { %2830 = vmatpush.msra.mxu0 %v11331_v41  ;;  %2870 = vmatpush.msra.mxu2 %v11332_v28  ;;  %v11342_v41 = vld [vmem:[#allocation76_spill] sm:$0xff]  ;;  %v11343_v28 = vld [vmem:[#allocation81_spill] sm:$0xff] }
 0x4f9   :  { %2895 = vmatpush.msrb.mxu0 %v11333_v17  ;;  %2935 = vmatpush.msrb.mxu2 %v11334_v7  ;;  %v11344_v17 = vld [vmem:[#allocation50_spill] sm:$0xff]  ;;  %v11345_v7 = vld [vmem:[#allocation51_spill] sm:$0xff] }
 0x4fb   :  { %2896 = vmatpush.msrb.mxu0 %v11335_v35  ;;  %2936 = vmatpush.msrb.mxu2 %v11336_v58  ;;  %v11346_v35 = vld [vmem:[#allocation78_spill] sm:$0xff]  ;;  %v11347_v58 = vld [vmem:[#allocation53_spill] sm:$0xff] }
 0x4fd   :  { %2897 = vmatpush.msrb.mxu0 %v11337_v8  ;;  %2937 = vmatpush.msrb.mxu2 %v11338_v16  ;;  %v11348_v8 = vld [vmem:[#allocation82_spill] sm:$0xff] }
 0x4fe   :  { %v11349_v16 = vld [vmem:[#allocation54_spill] sm:$0xff] }
 0x4ff   :  { %2898 = vmatpush.msrb.mxu0 %v11339_v9  ;;  %2938 = vmatpush.msrb.mxu2 %v11340_v26  ;;  %v11350_v9 = vld [vmem:[#allocation80_spill] sm:$0xff]  ;;  %v11351_v26 = vld [vmem:[#allocation83_spill] sm:$0xff] }
 0x501   :  { %2899 = vmatpush.msrb.mxu0 %v11341_v3  ;;  %2939 = vmatpush.msrb.mxu2 %v11342_v41  ;;  %v11352_v3 = vld [vmem:[#allocation85_spill] sm:$0xff]  ;;  %v11353_v41 = vld [vmem:[#allocation84_spill] sm:$0xff] }
 0x503   :  { %2900 = vmatpush.msrb.mxu0 %v11343_v28  ;;  %2940 = vmatpush.msrb.mxu2 %v11344_v17  ;;  %v11354_v28 = vld [vmem:[#allocation86_spill] sm:$0xff]  ;;  %v11355_v17 = vld [vmem:[#allocation88_spill] sm:$0xff] }
 0x505   :  { %2901 = vmatpush.msrb.mxu0 %v11345_v7  ;;  %2941 = vmatpush.msrb.mxu2 %v11346_v35  ;;  %v11356_v7 = vld [vmem:[#allocation87_spill] sm:$0xff]  ;;  %v11357_v35 = vld [vmem:[#allocation89_spill] sm:$0xff] }
 0x507   :  { %2902 = vmatpush.msrb.mxu0 %v11347_v58  ;;  %2942 = vmatpush.msrb.mxu2 %v11348_v8  ;;  %v11358_v58 = vld [vmem:[#allocation90_spill] sm:$0xff]  ;;  %v11359_v8 = vld [vmem:[#allocation91_spill] sm:$0xff] }
 0x509   :  { %2903 = vmatpush.msrb.mxu0 %v11349_v16  ;;  %2943 = vmatpush.msrb.mxu2 %v11350_v9  ;;  %v11360_v16 = vld [vmem:[#allocation92_spill] sm:$0xff] }
 0x50b   :  { %2904 = vmatpush.msrb.mxu0 %v11351_v26  ;;  %2944 = vmatpush.msrb.mxu2 %v11352_v3  ;;  %v11361_v26 = vld [vmem:[#allocation67_spill] sm:$0xff]  ;;  %v11362_v3 = vld [vmem:[#allocation93_spill] sm:$0xff] }
 0x50d   :  { %2905 = vmatpush.msrb.mxu0 %v11353_v41  ;;  %2945 = vmatpush.msrb.mxu2 %v11354_v28  ;;  %v11363_v41 = vld [vmem:[#allocation94_spill] sm:$0xff]  ;;  %v2402_v28 = vpop.f32.mrf.mxu1 }
 0x50f   :  { %2906 = vmatpush.msrb.mxu0 %v11355_v17  ;;  %2946 = vmatpush.msrb.mxu2 %v11356_v7  ;;  %v11364_v17 = vld [vmem:[#allocation95_spill] sm:$0xff]  ;;  %v11365_v7 = vld [vmem:[#allocation96_spill] sm:$0xff] }
 0x510   :  { %v2382_v9 = vpop.f32.mrf.mxu0 }
 0x511   :  { %2907 = vmatpush.msrb.mxu0 %v11357_v35  ;;  %2947 = vmatpush.msrb.mxu2 %v11358_v58  ;;  %v2383_v46 = vadd.f32 %v2382_v9, %v11361_v26  ;;  %v11366_v58 = vld [vmem:[#allocation72_spill] sm:$0xff] }
 0x513   :  { %2908 = vmatpush.msrb.mxu0 %v11359_v8  ;;  %2948 = vmatpush.msrb.mxu2 %v11360_v16  ;;  %v2403_v31 = vadd.f32 %v2402_v28, %v2383_v46  ;;  %v2522_v46 = vpop.f32.mrf.mxu3 }
 0x515   :  { %2909 = vmatpush.msrb.mxu0 %v11362_v3  ;;  %2949 = vmatpush.msrb.mxu2 %v11363_v41  ;;  %v3993_v35 = vmul.f32 -1.442695, %v2403_v31  ;;  %v11367_v41 = vld [vmem:[#allocation69_spill] sm:$0xff] }
 0x516   :  { %v2422_v37 = vpop.f32.mrf.mxu2 }
 0x517   :  { %2910 = vmatpush.msrb.mxu0 %v11364_v17  ;;  %2950 = vmatpush.msrb.mxu2 %v11365_v7  ;;  %4170 = vpow2.f32 %v3993_v35  ;;  %v2423_v8 = vadd.f32 %v2422_v37, %v11366_v58  ;;  %v11368_v37 = vld [vmem:[#allocation74_spill] sm:$0xff] }
 0x519   :  { %v2443_v16 = vadd.f32 %v2442_v47, %v2423_v8  ;;  %v2482_v8 = vpop.f32.mrf.mxu1 }
 0x51b   :  { %v3994_v44 = vmul.f32 -1.442695, %v2443_v16  ;;  %v2462_v7 = vpop.f32.mrf.mxu0 }
 0x51c   :  { %v2463_v58 = vadd.f32 %v2462_v7, %v11368_v37 }
 0x51d   :  { %v4171_v23 = vpop.eup %4170  ;;  %4172 = vpow2.f32 %v3994_v44 }
 0x51e   :  { %v2528_v9 = vadd.f32 1.0, %v4171_v23  ;;  %v2483_v44 = vadd.f32 %v2482_v8, %v2463_v58 }
 0x520   :  { %4174 = vrcp.f32 %v2528_v9  ;;  %vm2534_vm13 = vweird.f32 %v2528_v9 }
 0x522   :  { %v2502_v3 = vpop.f32.mrf.mxu2 }
 0x523   :  { %v2503_v26 = vadd.f32 %v2502_v3, %v11367_v41  ;;  %v4173_v28 = vpop.eup %4172  ;;  %v2540_v41 = vand.u32 2147483648, %v2528_v9 }
 0x524   :  { %v2547_v39 = vadd.f32 1.0, %v4173_v28  ;;  %v2538_v28 = vand.u32 2147483647, %v2528_v9 }
 0x525   :  { %v2523_v17 = vadd.f32 %v2522_v46, %v2503_v26 }
 0x526   :  { %v4175_v49 = vpop.eup %4174  ;;  %4176 = vrcp.f32 %v2547_v39  ;;  %vm2553_vm0 = vweird.f32 %v2547_v39  ;;  %vm2539_vm1 = vcmp.eq.f32.partialorder %v2538_v28, 8.507059e+37 }
 0x527   :  { %v3995_v31 = vmul.f32 -1.442695, %v2523_v17  ;;  %v2530_v35 = vmul.f32 %v4175_v49, %v2528_v9  ;;  %vm2535_vm12 = vweird.f32 %v4175_v49  ;;  %v2559_v17 = vand.u32 2147483648, %v2547_v39  ;;  %v2629_v9 = vpop.f32.mrf.mxu1 }
 0x528   :  { %vm2536_vm14 = vmor %vm2534_vm13, %vm2535_vm12 }
 0x529   :  { %4178 = vpow2.f32 %v3995_v31  ;;  %v2531_v47 = vsub.f32 1.0, %v2530_v35  ;;  %v2557_v35 = vand.u32 2147483647, %v2547_v39 }
 0x52a   :  { %4180 = vtanh.f32 %v2483_v44 }
 0x52b   :  { %v2532_v23 = vmul.f32 %v4175_v49, %v2531_v47  ;;  %v2541_v47 = vor.u32 1.1754944e-38, %v2540_v41  ;;  %vm2558_vm3 = vcmp.eq.f32.partialorder %v2557_v35, 8.507059e+37 }
 0x52c   :  { %v4177_v16 = vpop.eup %4176 }
 0x52d   :  { %v2549_v29 = vmul.f32 %v4177_v16, %v2547_v39  ;;  %v2533_v3 = vadd.f32 %v4175_v49, %v2532_v23  ;;  %vm2554_vm15 = vweird.f32 %v4177_v16  ;;  %v2669_v39 = vpop.f32.mrf.mxu3 }
 0x52e   :  { %vm2555_vm2 = vmor %vm2553_vm0, %vm2554_vm15 }
 0x52f   :  { %v4179_v34 = vpop.eup %4178  ;;  %v2550_v46 = vsub.f32 1.0, %v2549_v29  ;;  %v2537_v31 = vsel %vm2536_vm14, %v4175_v49, %v2533_v3 }
 0x530   :  { %v2567_v26 = vadd.f32 1.0, %v4179_v34  ;;  %v2560_v34 = vor.u32 1.1754944e-38, %v2559_v17  ;;  %v2542_v29 = vsel %vm2539_vm1, %v2541_v47, %v2537_v31  ;;  %v4181_v37 = vpop.eup %4180 }
 0x531   :  { %v2551_v7 = vmul.f32 %v4177_v16, %v2550_v46  ;;  %v2584_v3 = vmul.f32 %v4181_v37, %v2542_v29 }
 0x532   :  { %4182 = vrcp.f32 %v2567_v26  ;;  %v2579_v35 = vand.u32 2147483648, %v2567_v26  ;;  %vm2573_vm5 = vweird.f32 %v2567_v26 }
 0x533   :  { %v2552_v23 = vadd.f32 %v4177_v16, %v2551_v7 }
 0x534   :  { %v2609_v58 = vpop.f32.mrf.mxu0  ;;  %v2580_v37 = vor.u32 1.1754944e-38, %v2579_v35  ;;  %v8654_v35 = vld [vmem:[#allocation6 + $0x348] sm:$0xff] }
 0x535   :  { %v2610_v8 = vadd.f32 %v2609_v58, %v10565_v14  ;;  %v2556_v44 = vsel %vm2555_vm2, %v4177_v16, %v2552_v23  ;;  %11375 = vst [vmem:[#allocation34_spill] sm:$0xff] %v8654_v35 }
 0x536   :  { %v2561_v40 = vsel %vm2558_vm3, %v2560_v34, %v2556_v44  ;;  %v8615_v44 = vld [vmem:[#allocation6 + $0x3e0] sm:$0xff] }
 0x537   :  { %v2630_v46 = vadd.f32 %v2629_v9, %v2610_v8  ;;  %v2583_v49 = vmul.f32 %v2561_v40, %v8154_v32  ;;  %v2577_v8 = vand.u32 2147483647, %v2567_v26 }
 0x538   :  { %v4183_v27 = vpop.eup %4182 }
 0x539   :  { %v2569_v15 = vmul.f32 %v4183_v27, %v2567_v26  ;;  %v8609_v28 = vadd.f32 %v2584_v3, %v2583_v49  ;;  %v3998_v17 = vmul.f32 -1.442695, %v2630_v46  ;;  %vm2574_vm4 = vweird.f32 %v4183_v27  ;;  %v8618_v26 = vld [vmem:[#allocation6 + $0x3e8] sm:$0xff]  ;;  %v8623_v46 = vld [vmem:[#allocation6 + $0x3c0] sm:$0xff] }
 0x53a   :  { %v2649_v41 = vpop.f32.mrf.mxu2  ;;  %vm2575_vm6 = vmor %vm2573_vm5, %vm2574_vm4  ;;  %vm2578_vm7 = vcmp.eq.f32.partialorder %v2577_v8, 8.507059e+37  ;;  %v8626_v49 = vld [vmem:[#allocation6 + $0x3c8] sm:$0xff]  ;;  %v8659_v8 = vld [vmem:[#allocation6 + $0x320] sm:$0xff] }
 0x53b   :  { %v2650_v58 = vadd.f32 %v2649_v41, %v10566_v60  ;;  %v2570_v7 = vsub.f32 1.0, %v2569_v15  ;;  %4184 = vtanh.f32 %v8609_v28  ;;  %v8631_v41 = vld [vmem:[#allocation6 + $0x3a0] sm:$0xff]  ;;  %11376 = vst [vmem:[#allocation39_spill] sm:$0xff] %v8659_v8 }
 0x53c   :  { %4186 = vpow2.f32 %v3998_v17  ;;  %v8645_v17 = vld [vmem:[#allocation6 + $0x360] sm:$0xff] }
 0x53d   :  { %v2670_v31 = vadd.f32 %v2669_v39, %v2650_v58  ;;  %v2571_v16 = vmul.f32 %v4183_v27, %v2570_v7  ;;  %v8634_v58 = vld [vmem:[#allocation6 + $0x3a8] sm:$0xff]  ;;  %v8638_v39 = vld [vmem:[#allocation6 + $0x380] sm:$0xff]  ;;  %11372 = vst [vmem:[#allocation35_spill] sm:$0xff] %v8645_v17 }
 0x53e   :  { %11369 = vst [vmem:[#allocation28_spill] sm:$0xff] %v8634_v58  ;;  %v8641_v7 = vld [vmem:[#allocation6 + $0x388] sm:$0xff] }
 0x53f   :  { %v3999_v47 = vmul.f32 -1.442695, %v2670_v31  ;;  %v2572_v32 = vadd.f32 %v4183_v27, %v2571_v16  ;;  %11370 = vst [vmem:[#allocation33_spill] sm:$0xff] %v8638_v39  ;;  %v8648_v31 = vld [vmem:[#allocation6 + $0x368] sm:$0xff]  ;;  %v8651_v16 = vld [vmem:[#allocation6 + $0x340] sm:$0xff] }
 0x540   :  { %11371 = vst [vmem:[#allocation30_spill] sm:$0xff] %v8641_v7 }
 0x541   :  { %4188 = vpow2.f32 %v3999_v47  ;;  %v2576_v40 = vsel %vm2575_vm6, %v4183_v27, %v2572_v32  ;;  %v4185_v23 = vpop.eup %4184  ;;  %11373 = vst [vmem:[#allocation32_spill] sm:$0xff] %v8648_v31  ;;  %v8662_v32 = vld [vmem:[#allocation6 + $0x328] sm:$0xff] }
 0x542   :  { %v2581_v34 = vsel %vm2578_vm7, %v2580_v37, %v2576_v40  ;;  %v4187_v29 = vpop.eup %4186  ;;  %11374 = vst [vmem:[#allocation37_spill] sm:$0xff] %v8651_v16  ;;  %v8667_v37 = vld [vmem:[#allocation6 + $0x300] sm:$0xff] }
 0x543   :  { %v2587_v15 = vmul.f32 %v4185_v23, %v2581_v34  ;;  %v8621_v27 = vadd.f32 1.0, %v4187_v29  ;;  %11377 = vst [vmem:[#allocation36_spill] sm:$0xff] %v8662_v32  ;;  %v8670_v23 = vld [vmem:[#allocation6 + $0x308] sm:$0xff] }
 0x544   :  { %11378 = vst [vmem:[#allocation41_spill] sm:$0xff] %v8667_v37 }
 0x545   :  { %3996 = vst [vmem:[%s9606_s5 + $0x20] sm:$0xff] %v2587_v15  ;;  %2851 = vmatmul.f32.vlgmr.msra.gmra.mxu1 %v2587_v15  ;;  %2891 = vmatmul.f32.vlgmr.msra.gmra.mxu3 %v2587_v15  ;;  %4190 = vrcp.f32 %v8621_v27  ;;  %vm2761_vm10 = vweird.f32 %v8621_v27 }
 0x546   :  { %3062 = vmatpush.msra.mxu1 %v8615_v44  ;;  %3102 = vmatpush.msra.mxu3 %v8618_v26  ;;  %11379 = vst [vmem:[#allocation38_spill] sm:$0xff] %v8670_v23 }
 0x547   :  { %v4189_v9 = vpop.eup %4188 }
 0x548   :  { %3063 = vmatpush.msra.mxu1 %v8623_v46  ;;  %3103 = vmatpush.msra.mxu3 %v8626_v49  ;;  %v8629_v3 = vadd.f32 1.0, %v4189_v9  ;;  %v8677_v9 = vld [vmem:[#allocation6 + $0x2e0] sm:$0xff] }
 0x549   :  { %11380 = vst [vmem:[#allocation43_spill] sm:$0xff] %v8677_v9 }
 0x54a   :  { %3064 = vmatpush.msra.mxu1 %v8631_v41  ;;  %3104 = vmatpush.msra.mxu3 %v8634_v58  ;;  %4192 = vrcp.f32 %v8629_v3  ;;  %v8697_v58 = vld [vmem:[#allocation6 + $0x280] sm:$0xff]  ;;  %vm2780_vm11 = vweird.f32 %v8629_v3 }
 0x54b   :  { %v8657_v47 = vpop.eup %4190  ;;  %11385 = vst [vmem:[#allocation44_spill] sm:$0xff] %v8697_v58 }
 0x54c   :  { %3065 = vmatpush.msra.mxu1 %v8638_v39  ;;  %3105 = vmatpush.msra.mxu3 %v8641_v7  ;;  %v2757_v34 = vmul.f32 %v8657_v47, %v8621_v27  ;;  %v8691_v7 = vld [vmem:[#allocation6 + $0x2a0] sm:$0xff]  ;;  %v2709_v39 = vpop.f32.mrf.mxu1  ;;  %vm2762_vm8 = vweird.f32 %v8657_v47 }
 0x54d   :  { %2931 = vmatmul.f32.vlgmr.msrb.gmra.mxu1 %v2587_v15  ;;  %2971 = vmatmul.f32.vlgmr.msrb.gmra.mxu3 %v2587_v15  ;;  %11383 = vst [vmem:[#allocation42_spill] sm:$0xff] %v8691_v7  ;;  %vm8731_vm12 = vmor %vm2761_vm10, %vm2762_vm8 }
 0x54e   :  { %3066 = vmatpush.msra.mxu1 %v8645_v17  ;;  %3106 = vmatpush.msra.mxu3 %v8648_v31  ;;  %v2749_v31 = vpop.f32.mrf.mxu3  ;;  %v2758_v17 = vsub.f32 1.0, %v2757_v34 }
 0x550   :  { %3067 = vmatpush.msra.mxu1 %v8651_v16  ;;  %3107 = vmatpush.msra.mxu3 %v8654_v35  ;;  %v8665_v40 = vpop.eup %4192 }
 0x551   :  { %v2776_v15 = vmul.f32 %v8665_v40, %v8629_v3  ;;  %vm2781_vm9 = vweird.f32 %v8665_v40 }
 0x552   :  { %3068 = vmatpush.msra.mxu1 %v8659_v8  ;;  %3108 = vmatpush.msra.mxu3 %v8662_v32  ;;  %v8680_v32 = vld [vmem:[#allocation6 + $0x2e8] sm:$0xff]  ;;  %v8683_v8 = vld [vmem:[#allocation6 + $0x2c0] sm:$0xff]  ;;  %vm8745_vm13 = vmor %vm2780_vm11, %vm2781_vm9 }
 0x553   :  { %11381 = vst [vmem:[#allocation40_spill] sm:$0xff] %v8680_v32 }
 0x554   :  { %3069 = vmatpush.msra.mxu1 %v8667_v37  ;;  %3109 = vmatpush.msra.mxu3 %v8670_v23  ;;  %v2689_v29 = vpop.f32.mrf.mxu0  ;;  %11382 = vst [vmem:[#allocation45_spill] sm:$0xff] %v8683_v8  ;;  %v8686_v23 = vld [vmem:[#allocation6 + $0x2c8] sm:$0xff] }
 0x555   :  { %v2690_v35 = vadd.f32 %v2689_v29, %v11187_v50  ;;  %v8700_v29 = vld [vmem:[#allocation6 + $0x288] sm:$0xff]  ;;  %v8761_v50 = vld [vmem:[#allocation6 + $0x3d0] sm:$0xff] }
 0x556   :  { %3070 = vmatpush.msra.mxu1 %v8677_v9  ;;  %3110 = vmatpush.msra.mxu3 %v8680_v32  ;;  %v2777_v9 = vsub.f32 1.0, %v2776_v15  ;;  %v8694_v32 = vld [vmem:[#allocation6 + $0x2a8] sm:$0xff]  ;;  %11386 = vst [vmem:[#allocation49_spill] sm:$0xff] %v8700_v29 }
 0x557   :  { %11384 = vst [vmem:[#allocation47_spill] sm:$0xff] %v8694_v32 }
 0x558   :  { %3071 = vmatpush.msra.mxu1 %v8683_v8  ;;  %3111 = vmatpush.msra.mxu3 %v8686_v23  ;;  %v2778_v15 = vmul.f32 %v8665_v40, %v2777_v9  ;;  %v2786_v9 = vand.u32 2147483648, %v8629_v3 }
 0x55a   :  { %v2729_v37 = vpop.f32.mrf.mxu2  ;;  %3072 = vmatpush.msra.mxu1 %v8691_v7  ;;  %3112 = vmatpush.msra.mxu3 %v8694_v32  ;;  %v2759_v7 = vmul.f32 %v8657_v47, %v2758_v17  ;;  %v2779_v17 = vadd.f32 %v8665_v40, %v2778_v15  ;;  %v2784_v15 = vand.u32 2147483647, %v8629_v3 }
 0x55b   :  { %v2730_v16 = vadd.f32 %v2729_v37, %v11188_v4  ;;  %v2710_v37 = vadd.f32 %v2709_v39, %v2690_v35  ;;  %v8705_v4 = vld [vmem:[#allocation6 + $0x260] sm:$0xff] }
 0x55c   :  { %3073 = vmatpush.msra.mxu1 %v8697_v58  ;;  %3113 = vmatpush.msra.mxu3 %v8700_v29  ;;  %11387 = vst [vmem:[#allocation46_spill] sm:$0xff] %v8705_v4  ;;  %v8714_v29 = vld [vmem:[#allocation6 + $0x248] sm:$0xff]  ;;  %v2760_v39 = vadd.f32 %v8657_v47, %v2759_v7  ;;  %v8721_v35 = vld [vmem:[#allocation6 + $0x220] sm:$0xff]  ;;  %v2787_v58 = vor.u32 1.1754944e-38, %v2786_v9  ;;  %vm2785_vm15 = vcmp.eq.f32.partialorder %v2784_v15, 8.507059e+37  ;;  %v8767_v7 = vld [vmem:[#allocation6 + $0x3b0] sm:$0xff] }
 0x55d   :  { %v2750_v8 = vadd.f32 %v2749_v31, %v2730_v16  ;;  %v8708_v31 = vld [vmem:[#allocation6 + $0x268] sm:$0xff]  ;;  %v8711_v16 = vld [vmem:[#allocation6 + $0x240] sm:$0xff]  ;;  %11390 = vst [vmem:[#allocation52_spill] sm:$0xff] %v8714_v29  ;;  %v8791_v15 = vld [vmem:[#allocation6 + $0x358] sm:$0xff] }
 0x55e   :  { %3074 = vmatpush.msra.mxu1 %v8705_v4  ;;  %11388 = vst [vmem:[#allocation48_spill] sm:$0xff] %v8708_v31  ;;  %3114 = vmatpush.msra.mxu3 %v8708_v31  ;;  %v8749_v31 = vld [vmem:[#allocation6 + $0x3f0] sm:$0xff]  ;;  %v2764_v3 = vsel %vm8731_vm12, %v8657_v47, %v2760_v39 }
 0x55f   :  { %v4000_v34 = vmul.f32 -1.442695, %v2750_v8  ;;  %11389 = vst [vmem:[#allocation56_spill] sm:$0xff] %v8711_v16  ;;  %v8724_v8 = vld [vmem:[#allocation6 + $0x228] sm:$0xff] }
 0x560   :  { %3075 = vmatpush.msra.mxu1 %v8711_v16  ;;  %3115 = vmatpush.msra.mxu3 %v8714_v29  ;;  %11391 = vst [vmem:[#allocation58_spill] sm:$0xff] %v8721_v35  ;;  %v8773_v16 = vld [vmem:[#allocation6 + $0x390] sm:$0xff] }
 0x561   :  { %4194 = vpow2.f32 %v4000_v34  ;;  %11392 = vst [vmem:[#allocation55_spill] sm:$0xff] %v8724_v8  ;;  %v2765_v34 = vand.u32 2147483647, %v8621_v27 }
 0x562   :  { %4196 = vtanh.f32 %v2710_v37  ;;  %3076 = vmatpush.msra.mxu1 %v8721_v35  ;;  %3116 = vmatpush.msra.mxu3 %v8724_v8  ;;  %v2767_v37 = vand.u32 2147483648, %v8621_v27  ;;  %v8737_v35 = vld [vmem:[#allocation6 + $0x200] sm:$0xff]  ;;  %v8740_v8 = vld [vmem:[#allocation6 + $0x208] sm:$0xff]  ;;  %11399 = vst [vmem:[#allocation62_spill] sm:$0xff] %v8749_v31  ;;  %v8752_v27 = vld [vmem:[#allocation6 + $0x3f8] sm:$0xff] }
 0x563   :  { %11395 = vst [vmem:[#allocation60_spill] sm:$0xff] %v8737_v35  ;;  %vm2766_vm14 = vcmp.eq.f32.partialorder %v2765_v34, 8.507059e+37  ;;  %v8788_v34 = vld [vmem:[#allocation6 + $0x350] sm:$0xff] }
 0x564   :  { %3077 = vmatpush.msra.mxu1 %v8737_v35  ;;  %11396 = vst [vmem:[#allocation57_spill] sm:$0xff] %v8740_v8  ;;  %3117 = vmatpush.msra.mxu3 %v8740_v8  ;;  %v2783_v8 = vsel %vm8745_vm13, %v8665_v40, %v2779_v17  ;;  %v2768_v32 = vor.u32 1.1754944e-38, %v2767_v37  ;;  %v8770_v40 = vld [vmem:[#allocation6 + $0x3b8] sm:$0xff] }
 0x565   :  { %v2788_v39 = vsel %vm2785_vm15, %v2787_v58, %v2783_v8  ;;  %v8776_v17 = vld [vmem:[#allocation6 + $0x398] sm:$0xff]  ;;  %v8780_v58 = vld [vmem:[#allocation6 + $0x370] sm:$0xff]  ;;  %11402 = vst [vmem:[#allocation61_spill] sm:$0xff] %v8788_v34 }
 0x566   :  { %3142 = vmatpush.msrb.mxu1 %v8749_v31  ;;  %3182 = vmatpush.msrb.mxu3 %v8752_v27  ;;  %v8764_v31 = vld [vmem:[#allocation6 + $0x3d8] sm:$0xff]  ;;  %v2769_v47 = vsel %vm2766_vm14, %v2768_v32, %v2764_v3  ;;  %v2810_v32 = vmul.f32 %v2788_v39, %v8248_v55  ;;  %11400 = vst [vmem:[#allocation59_spill] sm:$0xff] %v8780_v58  ;;  %v8794_v3 = vld [vmem:[#allocation6 + $0x330] sm:$0xff] }
 0x567   :  { %v4195_v29 = vpop.eup %4194  ;;  %v8783_v8 = vld [vmem:[#allocation6 + $0x378] sm:$0xff]  ;;  %11403 = vst [vmem:[#allocation66_spill] sm:$0xff] %v8791_v15 }
 0x568   :  { %v2794_v35 = vadd.f32 1.0, %v4195_v29  ;;  %v4197_v4 = vpop.eup %4196  ;;  %3143 = vmatpush.msrb.mxu1 %v8761_v50  ;;  %3183 = vmatpush.msrb.mxu3 %v8764_v31  ;;  %11401 = vst [vmem:[#allocation64_spill] sm:$0xff] %v8783_v8 }
 0x569   :  { %v2811_v29 = vmul.f32 %v4197_v4, %v2769_v47  ;;  %11404 = vst [vmem:[#allocation63_spill] sm:$0xff] %v8794_v3  ;;  %v8797_v47 = vld [vmem:[#allocation6 + $0x338] sm:$0xff] }
 0x56a   :  { %4198 = vrcp.f32 %v2794_v35  ;;  %3144 = vmatpush.msrb.mxu1 %v8767_v7  ;;  %3184 = vmatpush.msrb.mxu3 %v8770_v40  ;;  %11405 = vst [vmem:[#allocation68_spill] sm:$0xff] %v8797_v47  ;;  %v2806_v39 = vand.u32 2147483648, %v2794_v35  ;;  %vm2800_vm1 = vweird.f32 %v2794_v35 }
 0x56b   :  { %v8786_v4 = vadd.f32 %v2811_v29, %v2810_v32  ;;  %v2804_v32 = vand.u32 2147483647, %v2794_v35 }
 0x56c   :  { %3145 = vmatpush.msrb.mxu1 %v8773_v16  ;;  %3185 = vmatpush.msrb.mxu3 %v8776_v17 }
 0x56d   :  { %4200 = vtanh.f32 %v8786_v4  ;;  %vm2805_vm3 = vcmp.eq.f32.partialorder %v2804_v32, 8.507059e+37  ;;  %v8969_v32 = vld [vmem:[#allocation8 + $0x288] sm:$0xff] }
 0x56e   :  { %3146 = vmatpush.msrb.mxu1 %v8780_v58  ;;  %3186 = vmatpush.msrb.mxu3 %v8783_v8  ;;  %v8813_v58 = vld [vmem:[#allocation6 + $0x2d0] sm:$0xff]  ;;  %11428 = vst [vmem:[#allocation127_spill] sm:$0xff] %v8969_v32 }
 0x570   :  { %v4199_v9 = vpop.eup %4198  ;;  %3147 = vmatpush.msrb.mxu1 %v8788_v34  ;;  %3187 = vmatpush.msrb.mxu3 %v8791_v15  ;;  %v8801_v34 = vld [vmem:[#allocation6 + $0x310] sm:$0xff]  ;;  %v8804_v15 = vld [vmem:[#allocation6 + $0x318] sm:$0xff] }
 0x571   :  { %v2796_v37 = vmul.f32 %v4199_v9, %v2794_v35  ;;  %vm2801_vm0 = vweird.f32 %v4199_v9  ;;  %11406 = vst [vmem:[#allocation65_spill] sm:$0xff] %v8801_v34 }
 0x572   :  { %3148 = vmatpush.msrb.mxu1 %v8794_v3  ;;  %3188 = vmatpush.msrb.mxu3 %v8797_v47  ;;  %11407 = vst [vmem:[#allocation70_spill] sm:$0xff] %v8804_v15  ;;  %v8807_v3 = vld [vmem:[#allocation6 + $0x2f0] sm:$0xff]  ;;  %v8810_v47 = vld [vmem:[#allocation6 + $0x2f8] sm:$0xff]  ;;  %vm2802_vm2 = vmor %vm2800_vm1, %vm2801_vm0 }
 0x573   :  { %v2797_v55 = vsub.f32 1.0, %v2796_v37  ;;  %11408 = vst [vmem:[#allocation111_spill] sm:$0xff] %v8807_v3  ;;  %v4201_v35 = vpop.eup %4200 }
 0x574   :  { %3149 = vmatpush.msrb.mxu1 %v8801_v34  ;;  %3189 = vmatpush.msrb.mxu3 %v8804_v15  ;;  %11409 = vst [vmem:[#allocation112_spill] sm:$0xff] %v8810_v47  ;;  %v8816_v34 = vld [vmem:[#allocation6 + $0x2d8] sm:$0xff] }
 0x575   :  { %v2798_v29 = vmul.f32 %v4199_v9, %v2797_v55  ;;  %v2807_v55 = vor.u32 1.1754944e-38, %v2806_v39  ;;  %v8836_v39 = vld [vmem:[#allocation6 + $0x270] sm:$0xff] }
 0x576   :  { %3150 = vmatpush.msrb.mxu1 %v8807_v3  ;;  %3190 = vmatpush.msrb.mxu3 %v8810_v47  ;;  %v8819_v3 = vld [vmem:[#allocation6 + $0x2b0] sm:$0xff]  ;;  %v8822_v47 = vld [vmem:[#allocation6 + $0x2b8] sm:$0xff] }
 0x577   :  { %v2799_v37 = vadd.f32 %v4199_v9, %v2798_v29 }
 0x578   :  { %3151 = vmatpush.msrb.mxu1 %v8813_v58  ;;  %3191 = vmatpush.msrb.mxu3 %v8816_v34 }
 0x579   :  { %v2803_v8 = vsel %vm2802_vm2, %v4199_v9, %v2799_v37  ;;  %v8832_v9 = vld [vmem:[#allocation6 + $0x298] sm:$0xff] }
 0x57a   :  { %v2808_v29 = vsel %vm2805_vm3, %v2807_v55, %v2803_v8  ;;  %3152 = vmatpush.msrb.mxu1 %v8819_v3  ;;  %3192 = vmatpush.msrb.mxu3 %v8822_v47  ;;  %v8828_v8 = vld [vmem:[#allocation6 + $0x290] sm:$0xff]  ;;  %v11429_v37 = vld [vmem:[#allocation103_spill] sm:$0xff]  ;;  %v11430_v55 = vld [vmem:[#allocation104_spill] sm:$0xff] }
 0x57b   :  { %v2814_v15 = vmul.f32 %v4201_v35, %v2808_v29  ;;  %v8974_v35 = vld [vmem:[#allocation8 + $0x260] sm:$0xff]  ;;  %v8977_v29 = vld [vmem:[#allocation8 + $0x268] sm:$0xff] }
 0x57c   :  { %3153 = vmatpush.msrb.mxu1 %v8828_v8  ;;  %3193 = vmatpush.msrb.mxu3 %v8832_v9  ;;  %11431 = vst [vmem:[#allocation128_spill] sm:$0xff] %v8974_v35 }
 0x57d   :  { %2831 = vmatmul.f32.vlgmr.msra.gmra.mxu0 %v2814_v15  ;;  %2871 = vmatmul.f32.vlgmr.msra.gmra.mxu2 %v2814_v15  ;;  %11432 = vst [vmem:[#allocation129_spill] sm:$0xff] %v8977_v29 }
 0x57e   :  { %3042 = vmatpush.msra.mxu0 %v8265_v52  ;;  %3078 = vmatmul.f32.vlgmr.msra.gmra.mxu1 %v2814_v15  ;;  %v8840_v52 = vld [vmem:[#allocation6 + $0x278] sm:$0xff] }
 0x57f   :  { %3082 = vmatpush.msra.mxu2 %v8268_v19  ;;  %3118 = vmatmul.f32.vlgmr.msra.gmra.mxu3 %v2814_v15  ;;  %v8844_v19 = vld [vmem:[#allocation6 + $0x250] sm:$0xff] }
 0x580   :  { %3043 = vmatpush.msra.mxu0 %v8271_v36  ;;  %3154 = vmatpush.msrb.mxu1 %v8836_v39  ;;  %v8848_v36 = vld [vmem:[#allocation6 + $0x258] sm:$0xff] }
 0x581   :  { %3083 = vmatpush.msra.mxu2 %v8275_v24  ;;  %3194 = vmatpush.msrb.mxu3 %v8840_v52  ;;  %v8853_v24 = vld [vmem:[#allocation6 + $0x230] sm:$0xff] }
 0x582   :  { %3044 = vmatpush.msra.mxu0 %v8279_v10  ;;  %3155 = vmatpush.msrb.mxu1 %v8844_v19  ;;  %v8856_v10 = vld [vmem:[#allocation6 + $0x238] sm:$0xff] }
 0x583   :  { %3084 = vmatpush.msra.mxu2 %v8283_v53  ;;  %3195 = vmatpush.msrb.mxu3 %v8848_v36  ;;  %v8861_v53 = vld [vmem:[#allocation6 + $0x210] sm:$0xff] }
 0x584   :  { %3045 = vmatpush.msra.mxu0 %v8287_v20  ;;  %3156 = vmatpush.msrb.mxu1 %v8853_v24  ;;  %v8864_v20 = vld [vmem:[#allocation6 + $0x218] sm:$0xff] }
 0x585   :  { %3085 = vmatpush.msra.mxu2 %v8291_v61  ;;  %2911 = vmatmul.f32.vlgmr.msrb.gmra.mxu0 %v2814_v15  ;;  %v8869_v61 = vld [vmem:[#allocation8 + $0x3e0] sm:$0xff] }
 0x586   :  { %2951 = vmatmul.f32.vlgmr.msrb.gmra.mxu2 %v2814_v15  ;;  %3046 = vmatpush.msra.mxu0 %v8294_v56  ;;  %v8872_v56 = vld [vmem:[#allocation8 + $0x3e8] sm:$0xff] }
 0x587   :  { %3086 = vmatpush.msra.mxu2 %v8297_v48  ;;  %3196 = vmatpush.msrb.mxu3 %v8856_v10  ;;  %v8877_v48 = vld [vmem:[#allocation8 + $0x3c0] sm:$0xff] }
 0x588   :  { %3047 = vmatpush.msra.mxu0 %v8301_v21  ;;  %3157 = vmatpush.msrb.mxu1 %v8861_v53  ;;  %v8880_v21 = vld [vmem:[#allocation8 + $0x3c8] sm:$0xff] }
 0x589   :  { %3087 = vmatpush.msra.mxu2 %v8305_v18  ;;  %3197 = vmatpush.msrb.mxu3 %v8864_v20  ;;  %v8885_v18 = vld [vmem:[#allocation8 + $0x3a0] sm:$0xff] }
 0x58a   :  { %3158 = vmatmul.f32.vlgmr.msrb.gmra.mxu1 %v2814_v15  ;;  %3198 = vmatmul.f32.vlgmr.msrb.gmra.mxu3 %v2814_v15  ;;  %v8966_v15 = vld [vmem:[#allocation8 + $0x280] sm:$0xff] }
 0x58b   :  { %3048 = vmatpush.msra.mxu0 %v8309_v59  ;;  %3088 = vmatpush.msra.mxu2 %v8312_v2  ;;  %v8888_v59 = vld [vmem:[#allocation8 + $0x3a8] sm:$0xff]  ;;  %v8893_v2 = vld [vmem:[#allocation8 + $0x380] sm:$0xff]  ;;  %11427 = vst [vmem:[#allocation126_spill] sm:$0xff] %v8966_v15 }
 0x58c   :  { %3285 = vmatpush.msra.mxu1 %v8869_v61  ;;  %3325 = vmatpush.msra.mxu3 %v8872_v56 }
 0x58d   :  { %3049 = vmatpush.msra.mxu0 %v8317_v5  ;;  %3089 = vmatpush.msra.mxu2 %v8320_v38  ;;  %v8896_v5 = vld [vmem:[#allocation8 + $0x388] sm:$0xff]  ;;  %v8901_v38 = vld [vmem:[#allocation8 + $0x360] sm:$0xff] }
 0x58e   :  { %3286 = vmatpush.msra.mxu1 %v8877_v48  ;;  %3326 = vmatpush.msra.mxu3 %v8880_v21 }
 0x58f   :  { %3050 = vmatpush.msra.mxu0 %v8325_v57  ;;  %3090 = vmatpush.msra.mxu2 %v8328_v45  ;;  %v8904_v57 = vld [vmem:[#allocation8 + $0x368] sm:$0xff]  ;;  %v8909_v45 = vld [vmem:[#allocation8 + $0x340] sm:$0xff] }
 0x590   :  { %3287 = vmatpush.msra.mxu1 %v8885_v18  ;;  %3327 = vmatpush.msra.mxu3 %v8888_v59  ;;  %11410 = vst [vmem:[#allocation113_spill] sm:$0xff] %v8904_v57 }
 0x591   :  { %3051 = vmatpush.msra.mxu0 %v8333_v25  ;;  %3091 = vmatpush.msra.mxu2 %v8336_v51  ;;  %11411 = vst [vmem:[#allocation114_spill] sm:$0xff] %v8909_v45  ;;  %v8912_v25 = vld [vmem:[#allocation8 + $0x348] sm:$0xff]  ;;  %v8917_v51 = vld [vmem:[#allocation8 + $0x320] sm:$0xff] }
 0x592   :  { %3288 = vmatpush.msra.mxu1 %v8893_v2  ;;  %3328 = vmatpush.msra.mxu3 %v8896_v5  ;;  %11412 = vst [vmem:[#allocation115_spill] sm:$0xff] %v8912_v25 }
 0x593   :  { %3052 = vmatpush.msra.mxu0 %v8341_v30  ;;  %3092 = vmatpush.msra.mxu2 %v8344_v62  ;;  %11413 = vst [vmem:[#allocation116_spill] sm:$0xff] %v8917_v51  ;;  %v8920_v30 = vld [vmem:[#allocation8 + $0x328] sm:$0xff]  ;;  %v8925_v62 = vld [vmem:[#allocation8 + $0x300] sm:$0xff] }
 0x594   :  { %3289 = vmatpush.msra.mxu1 %v8901_v38  ;;  %3329 = vmatpush.msra.mxu3 %v8904_v57  ;;  %11414 = vst [vmem:[#allocation117_spill] sm:$0xff] %v8920_v30 }
 0x595   :  { %3053 = vmatpush.msra.mxu0 %v8349_v1  ;;  %3093 = vmatpush.msra.mxu2 %v8352_v0  ;;  %11415 = vst [vmem:[#allocation118_spill] sm:$0xff] %v8925_v62  ;;  %v8928_v1 = vld [vmem:[#allocation8 + $0x308] sm:$0xff]  ;;  %v8936_v0 = vld [vmem:[%s9601_s0 + $0x30] sm:$0xff] }
 0x596   :  { %3290 = vmatpush.msra.mxu1 %v8909_v45  ;;  %3330 = vmatpush.msra.mxu3 %v8912_v25  ;;  %11416 = vst [vmem:[#allocation119_spill] sm:$0xff] %v8928_v1 }
 0x597   :  { %3054 = vmatpush.msra.mxu0 %v8357_v43  ;;  %3094 = vmatpush.msra.mxu2 %v8360_v33  ;;  %v8938_v43 = vld [vmem:[#allocation8 + $0x2e0] sm:$0xff]  ;;  %v8941_v33 = vld [vmem:[#allocation8 + $0x2e8] sm:$0xff] }
 0x598   :  { %3291 = vmatpush.msra.mxu1 %v8917_v51  ;;  %3331 = vmatpush.msra.mxu3 %v8920_v30  ;;  %11417 = vst [vmem:[#allocation120_spill] sm:$0xff] %v8938_v43 }
 0x599   :  { %3055 = vmatpush.msra.mxu0 %v8365_v42  ;;  %3095 = vmatpush.msra.mxu2 %v8368_v11  ;;  %11418 = vst [vmem:[#allocation121_spill] sm:$0xff] %v8941_v33  ;;  %v8950_v42 = vld [vmem:[#allocation8 + $0x2c0] sm:$0xff]  ;;  %v8953_v11 = vld [vmem:[#allocation8 + $0x2c8] sm:$0xff] }
 0x59a   :  { %3292 = vmatpush.msra.mxu1 %v8925_v62  ;;  %3332 = vmatpush.msra.mxu3 %v8928_v1  ;;  %11419 = vst [vmem:[#allocation122_spill] sm:$0xff] %v8950_v42 }
 0x59b   :  { %3056 = vmatpush.msra.mxu0 %v8373_v13  ;;  %3096 = vmatpush.msra.mxu2 %v8376_v6  ;;  %11420 = vst [vmem:[#allocation123_spill] sm:$0xff] %v8953_v11  ;;  %v11421_v13 = vld [vmem:[#allocation97_spill] sm:$0xff]  ;;  %v11422_v6 = vld [vmem:[#allocation100_spill] sm:$0xff] }
 0x59c   :  { %3293 = vmatpush.msra.mxu1 %v8938_v43  ;;  %3333 = vmatpush.msra.mxu3 %v8941_v33 }
 0x59d   :  { %3057 = vmatpush.msra.mxu0 %v8386_v63  ;;  %3097 = vmatpush.msra.mxu2 %v8389_v22  ;;  %v8958_v63 = vld [vmem:[#allocation8 + $0x2a0] sm:$0xff]  ;;  %v8961_v22 = vld [vmem:[#allocation8 + $0x2a8] sm:$0xff] }
 0x59e   :  { %3058 = vmatmul.f32.vlgmr.msra.gmra.mxu0 %v8936_v0  ;;  %3098 = vmatmul.f32.vlgmr.msra.gmra.mxu2 %v8936_v0  ;;  %11423 = vst [vmem:[#allocation124_spill] sm:$0xff] %v8958_v63 }
 0x59f   :  { %3122 = vmatpush.msrb.mxu0 %v8394_v54  ;;  %3162 = vmatpush.msrb.mxu2 %v8397_v12  ;;  %11424 = vst [vmem:[#allocation125_spill] sm:$0xff] %v8961_v22  ;;  %v11425_v54 = vld [vmem:[#allocation101_spill] sm:$0xff]  ;;  %v11426_v12 = vld [vmem:[#allocation102_spill] sm:$0xff] }
 0x5a0   :  { %3294 = vmatpush.msra.mxu1 %v8950_v42  ;;  %3334 = vmatpush.msra.mxu3 %v8953_v11 }
 0x5a1   :  { %3123 = vmatpush.msrb.mxu0 %v11421_v13  ;;  %3163 = vmatpush.msrb.mxu2 %v11422_v6  ;;  %v11433_v13 = vld [vmem:[#allocation105_spill] sm:$0xff]  ;;  %v11434_v6 = vld [vmem:[#allocation106_spill] sm:$0xff] }
 0x5a2   :  { %3295 = vmatpush.msra.mxu1 %v8958_v63  ;;  %3335 = vmatpush.msra.mxu3 %v8961_v22 }
 0x5a3   :  { %3124 = vmatpush.msrb.mxu0 %v11425_v54  ;;  %3164 = vmatpush.msrb.mxu2 %v11426_v12  ;;  %v8982_v54 = vld [vmem:[#allocation8 + $0x240] sm:$0xff]  ;;  %v8985_v12 = vld [vmem:[#allocation8 + $0x248] sm:$0xff] }
 0x5a4   :  { %3296 = vmatpush.msra.mxu1 %v8966_v15  ;;  %3336 = vmatpush.msra.mxu3 %v8969_v32  ;;  %11435 = vst [vmem:[#allocation130_spill] sm:$0xff] %v8982_v54  ;;  %v9307_v32 = vld [vmem:[#allocation8 + $0x10] sm:$0xff] }
 0x5a5   :  { %3125 = vmatpush.msrb.mxu0 %v11429_v37  ;;  %3165 = vmatpush.msrb.mxu2 %v11430_v55  ;;  %11436 = vst [vmem:[#allocation131_spill] sm:$0xff] %v8985_v12  ;;  %v11437_v37 = vld [vmem:[#allocation107_spill] sm:$0xff]  ;;  %v11438_v55 = vld [vmem:[#allocation110_spill] sm:$0xff] }
 0x5a6   :  { %3297 = vmatpush.msra.mxu1 %v8974_v35  ;;  %3337 = vmatpush.msra.mxu3 %v8977_v29  ;;  %v8990_v35 = vld [vmem:[#allocation8 + $0x220] sm:$0xff]  ;;  %v8993_v29 = vld [vmem:[#allocation8 + $0x228] sm:$0xff] }
 0x5a7   :  { %3126 = vmatpush.msrb.mxu0 %v11433_v13  ;;  %3166 = vmatpush.msrb.mxu2 %v11434_v6  ;;  %11439 = vst [vmem:[#allocation132_spill] sm:$0xff] %v8990_v35  ;;  %v11441_v13 = vld [vmem:[#allocation12_spill] sm:$0xff]  ;;  %v11442_v6 = vld [vmem:[#allocation98_spill] sm:$0xff] }
 0x5a8   :  { %3298 = vmatpush.msra.mxu1 %v8982_v54  ;;  %3338 = vmatpush.msra.mxu3 %v8985_v12  ;;  %11440 = vst [vmem:[#allocation133_spill] sm:$0xff] %v8993_v29  ;;  %v8998_v54 = vld [vmem:[#allocation8 + $0x200] sm:$0xff]  ;;  %v9001_v12 = vld [vmem:[#allocation8 + $0x208] sm:$0xff] }
 0x5a9   :  { %3127 = vmatpush.msrb.mxu0 %v11437_v37  ;;  %3167 = vmatpush.msrb.mxu2 %v11438_v55  ;;  %11443 = vst [vmem:[#allocation134_spill] sm:$0xff] %v8998_v54  ;;  %v11445_v37 = vld [vmem:[#allocation99_spill] sm:$0xff] }
 0x5aa   :  { %3299 = vmatpush.msra.mxu1 %v8990_v35  ;;  %3339 = vmatpush.msra.mxu3 %v8993_v29  ;;  %11444 = vst [vmem:[#allocation135_spill] sm:$0xff] %v9001_v12  ;;  %v11446_v55 = vld [vmem:[#allocation15_spill] sm:$0xff]  ;;  %v9006_v35 = vld [vmem:[#allocation8 + $0x3f0] sm:$0xff] }
 0x5ab   :  { %3128 = vmatpush.msrb.mxu0 %v11441_v13  ;;  %3168 = vmatpush.msrb.mxu2 %v11442_v6  ;;  %11447 = vst [vmem:[#allocation136_spill] sm:$0xff] %v9006_v35  ;;  %v9009_v29 = vld [vmem:[#allocation8 + $0x3f8] sm:$0xff]  ;;  %v11449_v13 = vld [vmem:[#allocation13_spill] sm:$0xff]  ;;  %v11450_v6 = vld [vmem:[#allocation14_spill] sm:$0xff] }
 0x5ac   :  { %3300 = vmatpush.msra.mxu1 %v8998_v54  ;;  %3340 = vmatpush.msra.mxu3 %v9001_v12  ;;  %11448 = vst [vmem:[#allocation137_spill] sm:$0xff] %v9009_v29  ;;  %v9014_v54 = vld [vmem:[#allocation8 + $0x3d0] sm:$0xff]  ;;  %v9017_v12 = vld [vmem:[#allocation8 + $0x3d8] sm:$0xff] }
 0x5ad   :  { %3129 = vmatpush.msrb.mxu0 %v11445_v37  ;;  %3169 = vmatpush.msrb.mxu2 %v11446_v55  ;;  %11451 = vst [vmem:[#allocation138_spill] sm:$0xff] %v9014_v54  ;;  %v11453_v37 = vld [vmem:[#allocation16_spill] sm:$0xff]  ;;  %v11454_v55 = vld [vmem:[#allocation19_spill] sm:$0xff] }
 0x5ae   :  { %3365 = vmatpush.msrb.mxu1 %v9006_v35  ;;  %3405 = vmatpush.msrb.mxu3 %v9009_v29  ;;  %11452 = vst [vmem:[#allocation139_spill] sm:$0xff] %v9017_v12  ;;  %v9022_v35 = vld [vmem:[#allocation8 + $0x3b0] sm:$0xff]  ;;  %v9025_v29 = vld [vmem:[#allocation8 + $0x3b8] sm:$0xff] }
 0x5af   :  { %3130 = vmatpush.msrb.mxu0 %v11449_v13  ;;  %3170 = vmatpush.msrb.mxu2 %v11450_v6  ;;  %11455 = vst [vmem:[#allocation140_spill] sm:$0xff] %v9022_v35  ;;  %v11457_v13 = vld [vmem:[#allocation17_spill] sm:$0xff] }
 0x5b0   :  { %3366 = vmatpush.msrb.mxu1 %v9014_v54  ;;  %3406 = vmatpush.msrb.mxu3 %v9017_v12  ;;  %11456 = vst [vmem:[#allocation141_spill] sm:$0xff] %v9025_v29  ;;  %v11458_v6 = vld [vmem:[#allocation21_spill] sm:$0xff]  ;;  %v9030_v54 = vld [vmem:[#allocation8 + $0x390] sm:$0xff]  ;;  %v9033_v12 = vld [vmem:[#allocation8 + $0x398] sm:$0xff] }
 0x5b1   :  { %3131 = vmatpush.msrb.mxu0 %v11453_v37  ;;  %3171 = vmatpush.msrb.mxu2 %v11454_v55  ;;  %11459 = vst [vmem:[#allocation142_spill] sm:$0xff] %v9030_v54  ;;  %v11461_v37 = vld [vmem:[#allocation18_spill] sm:$0xff]  ;;  %v11462_v55 = vld [vmem:[#allocation23_spill] sm:$0xff] }
 0x5b2   :  { %3367 = vmatpush.msrb.mxu1 %v9022_v35  ;;  %3407 = vmatpush.msrb.mxu3 %v9025_v29  ;;  %11460 = vst [vmem:[#allocation143_spill] sm:$0xff] %v9033_v12  ;;  %v9038_v35 = vld [vmem:[#allocation8 + $0x370] sm:$0xff]  ;;  %v9041_v29 = vld [vmem:[#allocation8 + $0x378] sm:$0xff] }
 0x5b3   :  { %3132 = vmatpush.msrb.mxu0 %v11457_v13  ;;  %3172 = vmatpush.msrb.mxu2 %v11458_v6  ;;  %11463 = vst [vmem:[#allocation144_spill] sm:$0xff] %v9038_v35  ;;  %v11465_v13 = vld [vmem:[#allocation20_spill] sm:$0xff]  ;;  %v11466_v6 = vld [vmem:[#allocation25_spill] sm:$0xff] }
 0x5b4   :  { %3368 = vmatpush.msrb.mxu1 %v9030_v54  ;;  %3408 = vmatpush.msrb.mxu3 %v9033_v12  ;;  %11464 = vst [vmem:[#allocation145_spill] sm:$0xff] %v9041_v29  ;;  %v9046_v54 = vld [vmem:[#allocation8 + $0x350] sm:$0xff]  ;;  %v9049_v12 = vld [vmem:[#allocation8 + $0x358] sm:$0xff] }
 0x5b5   :  { %3133 = vmatpush.msrb.mxu0 %v11461_v37  ;;  %3173 = vmatpush.msrb.mxu2 %v11462_v55  ;;  %11467 = vst [vmem:[#allocation146_spill] sm:$0xff] %v9046_v54  ;;  %v11469_v37 = vld [vmem:[#allocation22_spill] sm:$0xff]  ;;  %v11470_v55 = vld [vmem:[#allocation27_spill] sm:$0xff] }
 0x5b6   :  { %3369 = vmatpush.msrb.mxu1 %v9038_v35  ;;  %3409 = vmatpush.msrb.mxu3 %v9041_v29  ;;  %11468 = vst [vmem:[#allocation147_spill] sm:$0xff] %v9049_v12  ;;  %v9054_v35 = vld [vmem:[#allocation8 + $0x330] sm:$0xff]  ;;  %v9057_v29 = vld [vmem:[#allocation8 + $0x338] sm:$0xff] }
 0x5b7   :  { %3134 = vmatpush.msrb.mxu0 %v11465_v13  ;;  %3174 = vmatpush.msrb.mxu2 %v11466_v6  ;;  %11471 = vst [vmem:[#allocation148_spill] sm:$0xff] %v9054_v35  ;;  %v11473_v13 = vld [vmem:[#allocation24_spill] sm:$0xff]  ;;  %v11474_v6 = vld [vmem:[#allocation29_spill] sm:$0xff] }
 0x5b8   :  { %3370 = vmatpush.msrb.mxu1 %v9046_v54  ;;  %3410 = vmatpush.msrb.mxu3 %v9049_v12  ;;  %11472 = vst [vmem:[#allocation149_spill] sm:$0xff] %v9057_v29  ;;  %v9062_v54 = vld [vmem:[#allocation8 + $0x310] sm:$0xff]  ;;  %v9065_v12 = vld [vmem:[#allocation8 + $0x318] sm:$0xff] }
 0x5b9   :  { %3135 = vmatpush.msrb.mxu0 %v11469_v37  ;;  %3175 = vmatpush.msrb.mxu2 %v11470_v55  ;;  %11475 = vst [vmem:[#allocation150_spill] sm:$0xff] %v9062_v54  ;;  %v11477_v37 = vld [vmem:[#allocation26_spill] sm:$0xff]  ;;  %v11478_v55 = vld [vmem:[#allocation31_spill] sm:$0xff] }
 0x5ba   :  { %3371 = vmatpush.msrb.mxu1 %v9054_v35  ;;  %3411 = vmatpush.msrb.mxu3 %v9057_v29  ;;  %11476 = vst [vmem:[#allocation151_spill] sm:$0xff] %v9065_v12  ;;  %v9072_v29 = vld [vmem:[#allocation8 + $0x2f0] sm:$0xff] }
 0x5bb   :  { %3136 = vmatpush.msrb.mxu0 %v11473_v13  ;;  %3176 = vmatpush.msrb.mxu2 %v11474_v6  ;;  %11479 = vst [vmem:[#allocation152_spill] sm:$0xff] %v9072_v29  ;;  %v9075_v13 = vld [vmem:[#allocation8 + $0x2f8] sm:$0xff]  ;;  %v9078_v6 = vld [vmem:[#allocation8 + $0x1e0] sm:$0xff]  ;;  %v9301_v35 = vld [vmem:[#allocation8 + $0x30] sm:$0xff] }
 0x5bc   :  { %3372 = vmatpush.msrb.mxu1 %v9062_v54  ;;  %3412 = vmatpush.msrb.mxu3 %v9065_v12  ;;  %11480 = vst [vmem:[#allocation153_spill] sm:$0xff] %v9075_v13  ;;  %v9081_v12 = vld [vmem:[#allocation8 + $0x1e8] sm:$0xff] }
 0x5bd   :  { %3137 = vmatpush.msrb.mxu0 %v11477_v37  ;;  %3177 = vmatpush.msrb.mxu2 %v11478_v55  ;;  %11481 = vst [vmem:[#allocation154_spill] sm:$0xff] %v9078_v6  ;;  %v9084_v37 = vld [vmem:[#allocation8 + $0x2d0] sm:$0xff]  ;;  %v9090_v55 = vld [vmem:[#allocation8 + $0x1c0] sm:$0xff] }
 0x5be   :  { %3138 = vmatmul.f32.vlgmr.msrb.gmra.mxu0 %v8936_v0  ;;  %3178 = vmatmul.f32.vlgmr.msrb.gmra.mxu2 %v8936_v0  ;;  %11482 = vst [vmem:[#allocation155_spill] sm:$0xff] %v9081_v12  ;;  %v9087_v0 = vld [vmem:[#allocation8 + $0x2d8] sm:$0xff] }
 0x5bf   :  { %3373 = vmatpush.msrb.mxu1 %v9072_v29  ;;  %3413 = vmatpush.msrb.mxu3 %v9075_v13  ;;  %11483 = vst [vmem:[#allocation156_spill] sm:$0xff] %v9084_v37  ;;  %v9093_v13 = vld [vmem:[#allocation8 + $0x1c8] sm:$0xff]  ;;  %v9294_v29 = vld [vmem:[#allocation8 + $0x50] sm:$0xff] }
 0x5c0   :  { %3265 = vmatpush.msra.mxu0 %v9078_v6  ;;  %3305 = vmatpush.msra.mxu2 %v9081_v12  ;;  %11484 = vst [vmem:[#allocation157_spill] sm:$0xff] %v9087_v0  ;;  %v9096_v6 = vld [vmem:[#allocation8 + $0x2b0] sm:$0xff]  ;;  %v9099_v12 = vld [vmem:[#allocation8 + $0x2b8] sm:$0xff] }
 0x5c1   :  { %3374 = vmatpush.msrb.mxu1 %v9084_v37  ;;  %3414 = vmatpush.msrb.mxu3 %v9087_v0  ;;  %11485 = vst [vmem:[#allocation158_spill] sm:$0xff] %v9090_v55  ;;  %v9102_v37 = vld [vmem:[#allocation8 + $0x1a0] sm:$0xff]  ;;  %v9105_v0 = vld [vmem:[#allocation8 + $0x1a8] sm:$0xff] }
 0x5c2   :  { %3266 = vmatpush.msra.mxu0 %v9090_v55  ;;  %11486 = vst [vmem:[#allocation159_spill] sm:$0xff] %v9093_v13  ;;  %3306 = vmatpush.msra.mxu2 %v9093_v13  ;;  %v9108_v55 = vld [vmem:[#allocation8 + $0x290] sm:$0xff]  ;;  %v9111_v13 = vld [vmem:[#allocation8 + $0x298] sm:$0xff] }
 0x5c3   :  { %11487 = vst [vmem:[#allocation160_spill] sm:$0xff] %v9096_v6  ;;  %3375 = vmatpush.msrb.mxu1 %v9096_v6  ;;  %3415 = vmatpush.msrb.mxu3 %v9099_v12  ;;  %v9114_v6 = vld [vmem:[#allocation8 + $0x180] sm:$0xff] }
 0x5c4   :  { %11488 = vst [vmem:[#allocation161_spill] sm:$0xff] %v9099_v12  ;;  %3267 = vmatpush.msra.mxu0 %v9102_v37  ;;  %3307 = vmatpush.msra.mxu2 %v9105_v0  ;;  %v9117_v12 = vld [vmem:[#allocation8 + $0x188] sm:$0xff] }
 0x5c5   :  { %11489 = vst [vmem:[#allocation162_spill] sm:$0xff] %v9102_v37  ;;  %3376 = vmatpush.msrb.mxu1 %v9108_v55  ;;  %3416 = vmatpush.msrb.mxu3 %v9111_v13  ;;  %v9120_v37 = vld [vmem:[#allocation8 + $0x270] sm:$0xff] }
 0x5c6   :  { %11490 = vst [vmem:[#allocation163_spill] sm:$0xff] %v9105_v0  ;;  %3268 = vmatpush.msra.mxu0 %v9114_v6  ;;  %3308 = vmatpush.msra.mxu2 %v9117_v12  ;;  %v9123_v0 = vld [vmem:[#allocation8 + $0x278] sm:$0xff] }
 0x5c7   :  { %11491 = vst [vmem:[#allocation164_spill] sm:$0xff] %v9108_v55  ;;  %3377 = vmatpush.msrb.mxu1 %v9120_v37  ;;  %3417 = vmatpush.msrb.mxu3 %v9123_v0  ;;  %v9126_v55 = vld [vmem:[#allocation8 + $0x160] sm:$0xff] }
 0x5c8   :  { %11492 = vst [vmem:[#allocation165_spill] sm:$0xff] %v9111_v13  ;;  %3269 = vmatpush.msra.mxu0 %v9126_v55  ;;  %v9129_v13 = vld [vmem:[#allocation8 + $0x168] sm:$0xff]  ;;  %v2892_v22 = vpop.f32.mrf.mxu3 }
 0x5c9   :  { %11493 = vst [vmem:[#allocation166_spill] sm:$0xff] %v9114_v6  ;;  %3309 = vmatpush.msra.mxu2 %v9129_v13  ;;  %v9132_v6 = vld [vmem:[#allocation8 + $0x250] sm:$0xff] }
 0x5ca   :  { %11494 = vst [vmem:[#allocation167_spill] sm:$0xff] %v9117_v12  ;;  %3378 = vmatpush.msrb.mxu1 %v9132_v6  ;;  %v9135_v12 = vld [vmem:[#allocation8 + $0x258] sm:$0xff] }
 0x5cb   :  { %11495 = vst [vmem:[#allocation168_spill] sm:$0xff] %v9120_v37  ;;  %3418 = vmatpush.msrb.mxu3 %v9135_v12  ;;  %v9138_v37 = vld [vmem:[#allocation8 + $0x140] sm:$0xff] }
 0x5cc   :  { %11496 = vst [vmem:[#allocation169_spill] sm:$0xff] %v9123_v0  ;;  %3270 = vmatpush.msra.mxu0 %v9138_v37  ;;  %v9141_v0 = vld [vmem:[#allocation8 + $0x148] sm:$0xff] }
 0x5cd   :  { %11497 = vst [vmem:[#allocation170_spill] sm:$0xff] %v9126_v55  ;;  %3310 = vmatpush.msra.mxu2 %v9141_v0  ;;  %v9144_v55 = vld [vmem:[#allocation8 + $0x230] sm:$0xff] }
 0x5ce   :  { %11498 = vst [vmem:[#allocation171_spill] sm:$0xff] %v9129_v13  ;;  %3379 = vmatpush.msrb.mxu1 %v9144_v55  ;;  %v9147_v13 = vld [vmem:[#allocation8 + $0x238] sm:$0xff] }
 0x5cf   :  { %11499 = vst [vmem:[#allocation172_spill] sm:$0xff] %v9132_v6  ;;  %3419 = vmatpush.msrb.mxu3 %v9147_v13  ;;  %v9150_v6 = vld [vmem:[#allocation8 + $0x120] sm:$0xff] }
 0x5d0   :  { %11500 = vst [vmem:[#allocation173_spill] sm:$0xff] %v9135_v12  ;;  %3271 = vmatpush.msra.mxu0 %v9150_v6  ;;  %v9153_v12 = vld [vmem:[#allocation8 + $0x128] sm:$0xff] }
 0x5d1   :  { %11501 = vst [vmem:[#allocation174_spill] sm:$0xff] %v9138_v37  ;;  %3311 = vmatpush.msra.mxu2 %v9153_v12  ;;  %v9156_v37 = vld [vmem:[#allocation8 + $0x210] sm:$0xff] }
 0x5d2   :  { %11502 = vst [vmem:[#allocation175_spill] sm:$0xff] %v9141_v0  ;;  %3380 = vmatpush.msrb.mxu1 %v9156_v37  ;;  %v9159_v0 = vld [vmem:[#allocation8 + $0x218] sm:$0xff] }
 0x5d3   :  { %11503 = vst [vmem:[#allocation71_spill] sm:$0xff] %v9144_v55  ;;  %3420 = vmatpush.msrb.mxu3 %v9159_v0  ;;  %v9162_v55 = vld [vmem:[#allocation8 + $0x100] sm:$0xff] }
 0x5d4   :  { %11504 = vst [vmem:[#allocation73_spill] sm:$0xff] %v9147_v13  ;;  %3272 = vmatpush.msra.mxu0 %v9162_v55  ;;  %v9165_v13 = vld [vmem:[#allocation8 + $0x108] sm:$0xff] }
 0x5d5   :  { %11505 = vst [vmem:[#allocation77_spill] sm:$0xff] %v9150_v6  ;;  %3312 = vmatpush.msra.mxu2 %v9165_v13  ;;  %v9168_v6 = vld [vmem:[#allocation8 + $0xe0] sm:$0xff] }
 0x5d6   :  { %11506 = vst [vmem:[#allocation75_spill] sm:$0xff] %v9153_v12  ;;  %3273 = vmatpush.msra.mxu0 %v9168_v6  ;;  %v9171_v12 = vld [vmem:[#allocation8 + $0xe8] sm:$0xff] }
 0x5d7   :  { %11507 = vst [vmem:[#allocation79_spill] sm:$0xff] %v9156_v37  ;;  %3313 = vmatpush.msra.mxu2 %v9171_v12  ;;  %v9174_v37 = vld [vmem:[#allocation8 + $0xc0] sm:$0xff] }
 0x5d8   :  { %11508 = vst [vmem:[#allocation76_spill] sm:$0xff] %v9159_v0  ;;  %3274 = vmatpush.msra.mxu0 %v9174_v37  ;;  %v9177_v0 = vld [vmem:[#allocation8 + $0xc8] sm:$0xff] }
 0x5d9   :  { %11509 = vst [vmem:[#allocation81_spill] sm:$0xff] %v9162_v55  ;;  %3314 = vmatpush.msra.mxu2 %v9177_v0  ;;  %v9180_v55 = vld [vmem:[#allocation8 + $0xa0] sm:$0xff] }
 0x5da   :  { %11510 = vst [vmem:[#allocation50_spill] sm:$0xff] %v9165_v13  ;;  %3275 = vmatpush.msra.mxu0 %v9180_v55  ;;  %v9183_v13 = vld [vmem:[#allocation8 + $0xa8] sm:$0xff] }
 0x5db   :  { %11511 = vst [vmem:[#allocation51_spill] sm:$0xff] %v9168_v6  ;;  %3315 = vmatpush.msra.mxu2 %v9183_v13  ;;  %v9186_v6 = vld [vmem:[#allocation8 + $0x80] sm:$0xff] }
 0x5dc   :  { %11512 = vst [vmem:[#allocation78_spill] sm:$0xff] %v9171_v12  ;;  %3276 = vmatpush.msra.mxu0 %v9186_v6  ;;  %v9189_v12 = vld [vmem:[#allocation8 + $0x88] sm:$0xff] }
 0x5dd   :  { %11513 = vst [vmem:[#allocation53_spill] sm:$0xff] %v9174_v37  ;;  %3316 = vmatpush.msra.mxu2 %v9189_v12  ;;  %v9192_v37 = vld [vmem:[#allocation8 + $0x60] sm:$0xff] }
 0x5de   :  { %11514 = vst [vmem:[#allocation82_spill] sm:$0xff] %v9177_v0  ;;  %3277 = vmatpush.msra.mxu0 %v9192_v37  ;;  %v9195_v0 = vld [vmem:[#allocation8 + $0x68] sm:$0xff] }
 0x5df   :  { %11515 = vst [vmem:[#allocation54_spill] sm:$0xff] %v9180_v55  ;;  %3317 = vmatpush.msra.mxu2 %v9195_v0  ;;  %v9198_v55 = vld [vmem:[#allocation8 + $0x40] sm:$0xff] }
 0x5e0   :  { %11516 = vst [vmem:[#allocation80_spill] sm:$0xff] %v9183_v13  ;;  %3278 = vmatpush.msra.mxu0 %v9198_v55  ;;  %v9201_v13 = vld [vmem:[#allocation8 + $0x48] sm:$0xff] }
 0x5e1   :  { %11517 = vst [vmem:[#allocation83_spill] sm:$0xff] %v9186_v6  ;;  %3318 = vmatpush.msra.mxu2 %v9201_v13  ;;  %v9204_v6 = vld [vmem:[#allocation8 + $0x20] sm:$0xff] }
 0x5e2   :  { %11518 = vst [vmem:[#allocation85_spill] sm:$0xff] %v9189_v12  ;;  %3279 = vmatpush.msra.mxu0 %v9204_v6  ;;  %v9207_v12 = vld [vmem:[#allocation8 + $0x28] sm:$0xff] }
 0x5e3   :  { %11519 = vst [vmem:[#allocation84_spill] sm:$0xff] %v9192_v37  ;;  %3319 = vmatpush.msra.mxu2 %v9207_v12  ;;  %v9210_v37 = vld [vmem:[#allocation8] sm:$0xff] }
 0x5e4   :  { %11520 = vst [vmem:[#allocation86_spill] sm:$0xff] %v9195_v0  ;;  %3280 = vmatpush.msra.mxu0 %v9210_v37  ;;  %v9213_v0 = vld [vmem:[#allocation8 + $0x8] sm:$0xff] }
 0x5e5   :  { %11521 = vst [vmem:[#allocation88_spill] sm:$0xff] %v9198_v55  ;;  %3320 = vmatpush.msra.mxu2 %v9213_v0  ;;  %v9216_v55 = vld [vmem:[#allocation8 + $0x1f0] sm:$0xff] }
 0x5e6   :  { %11522 = vst [vmem:[#allocation87_spill] sm:$0xff] %v9201_v13  ;;  %3345 = vmatpush.msrb.mxu0 %v9216_v55  ;;  %v9219_v13 = vld [vmem:[#allocation8 + $0x1f8] sm:$0xff] }
 0x5e7   :  { %11523 = vst [vmem:[#allocation89_spill] sm:$0xff] %v9204_v6  ;;  %3385 = vmatpush.msrb.mxu2 %v9219_v13  ;;  %v9222_v6 = vld [vmem:[#allocation8 + $0x1d0] sm:$0xff] }
 0x5e8   :  { %11524 = vst [vmem:[#allocation90_spill] sm:$0xff] %v9207_v12  ;;  %3346 = vmatpush.msrb.mxu0 %v9222_v6  ;;  %v9225_v12 = vld [vmem:[#allocation8 + $0x1d8] sm:$0xff] }
 0x5e9   :  { %11525 = vst [vmem:[#allocation91_spill] sm:$0xff] %v9210_v37  ;;  %3386 = vmatpush.msrb.mxu2 %v9225_v12  ;;  %v9228_v37 = vld [vmem:[#allocation8 + $0x1b0] sm:$0xff] }
 0x5ea   :  { %11526 = vst [vmem:[#allocation92_spill] sm:$0xff] %v9213_v0  ;;  %3347 = vmatpush.msrb.mxu0 %v9228_v37  ;;  %v9231_v0 = vld [vmem:[#allocation8 + $0x1b8] sm:$0xff] }
 0x5eb   :  { %11527 = vst [vmem:[#allocation93_spill] sm:$0xff] %v9216_v55  ;;  %3387 = vmatpush.msrb.mxu2 %v9231_v0  ;;  %v9234_v55 = vld [vmem:[#allocation8 + $0x190] sm:$0xff] }
 0x5ec   :  { %11528 = vst [vmem:[#allocation94_spill] sm:$0xff] %v9219_v13  ;;  %3348 = vmatpush.msrb.mxu0 %v9234_v55  ;;  %v9237_v13 = vld [vmem:[#allocation8 + $0x198] sm:$0xff] }
 0x5ed   :  { %11529 = vst [vmem:[#allocation95_spill] sm:$0xff] %v9222_v6  ;;  %3388 = vmatpush.msrb.mxu2 %v9237_v13  ;;  %v9240_v6 = vld [vmem:[#allocation8 + $0x170] sm:$0xff] }
 0x5ee   :  { %11530 = vst [vmem:[#allocation96_spill] sm:$0xff] %v9225_v12  ;;  %3349 = vmatpush.msrb.mxu0 %v9240_v6  ;;  %v9243_v12 = vld [vmem:[#allocation8 + $0x178] sm:$0xff] }
 0x5ef   :  { %11531 = vst [vmem:[#allocation97_spill] sm:$0xff] %v9228_v37  ;;  %3389 = vmatpush.msrb.mxu2 %v9243_v12  ;;  %v9246_v37 = vld [vmem:[#allocation8 + $0x150] sm:$0xff] }
 0x5f0   :  { %11532 = vst [vmem:[#allocation100_spill] sm:$0xff] %v9231_v0  ;;  %3350 = vmatpush.msrb.mxu0 %v9246_v37  ;;  %v9249_v0 = vld [vmem:[#allocation8 + $0x158] sm:$0xff] }
 0x5f1   :  { %11533 = vst [vmem:[#allocation101_spill] sm:$0xff] %v9234_v55  ;;  %3390 = vmatpush.msrb.mxu2 %v9249_v0  ;;  %v9252_v55 = vld [vmem:[#allocation8 + $0x130] sm:$0xff] }
 0x5f2   :  { %11534 = vst [vmem:[#allocation102_spill] sm:$0xff] %v9237_v13  ;;  %3351 = vmatpush.msrb.mxu0 %v9252_v55  ;;  %v9255_v13 = vld [vmem:[#allocation8 + $0x138] sm:$0xff] }
 0x5f3   :  { %11535 = vst [vmem:[#allocation103_spill] sm:$0xff] %v9240_v6  ;;  %3391 = vmatpush.msrb.mxu2 %v9255_v13  ;;  %v9258_v6 = vld [vmem:[#allocation8 + $0x110] sm:$0xff] }
 0x5f4   :  { %11536 = vst [vmem:[#allocation104_spill] sm:$0xff] %v9243_v12  ;;  %3352 = vmatpush.msrb.mxu0 %v9258_v6  ;;  %v9261_v12 = vld [vmem:[#allocation8 + $0x118] sm:$0xff] }
 0x5f5   :  { %11537 = vst [vmem:[#allocation105_spill] sm:$0xff] %v9246_v37  ;;  %3392 = vmatpush.msrb.mxu2 %v9261_v12  ;;  %v9264_v37 = vld [vmem:[#allocation8 + $0xf0] sm:$0xff] }
 0x5f6   :  { %11538 = vst [vmem:[#allocation106_spill] sm:$0xff] %v9249_v0  ;;  %3353 = vmatpush.msrb.mxu0 %v9264_v37  ;;  %v9267_v0 = vld [vmem:[#allocation8 + $0xf8] sm:$0xff] }
 0x5f7   :  { %11539 = vst [vmem:[#allocation107_spill] sm:$0xff] %v9252_v55  ;;  %3393 = vmatpush.msrb.mxu2 %v9267_v0  ;;  %v9270_v55 = vld [vmem:[#allocation8 + $0xd0] sm:$0xff] }
 0x5f8   :  { %11540 = vst [vmem:[#allocation110_spill] sm:$0xff] %v9255_v13  ;;  %3354 = vmatpush.msrb.mxu0 %v9270_v55  ;;  %v9273_v13 = vld [vmem:[#allocation8 + $0xd8] sm:$0xff] }
 0x5f9   :  { %11541 = vst [vmem:[#allocation12_spill] sm:$0xff] %v9258_v6  ;;  %3394 = vmatpush.msrb.mxu2 %v9273_v13  ;;  %v9276_v6 = vld [vmem:[#allocation8 + $0xb0] sm:$0xff] }
 0x5fa   :  { %11542 = vst [vmem:[#allocation98_spill] sm:$0xff] %v9261_v12  ;;  %3355 = vmatpush.msrb.mxu0 %v9276_v6  ;;  %v9279_v12 = vld [vmem:[#allocation8 + $0xb8] sm:$0xff] }
 0x5fb   :  { %11543 = vst [vmem:[#allocation99_spill] sm:$0xff] %v9264_v37  ;;  %3395 = vmatpush.msrb.mxu2 %v9279_v12  ;;  %v9282_v37 = vld [vmem:[#allocation8 + $0x90] sm:$0xff] }
 0x5fc   :  { %11544 = vst [vmem:[#allocation15_spill] sm:$0xff] %v9267_v0  ;;  %3356 = vmatpush.msrb.mxu0 %v9282_v37  ;;  %v9285_v0 = vld [vmem:[#allocation8 + $0x98] sm:$0xff] }
 0x5fd   :  { %11545 = vst [vmem:[#allocation13_spill] sm:$0xff] %v9270_v55  ;;  %3396 = vmatpush.msrb.mxu2 %v9285_v0  ;;  %v9288_v55 = vld [vmem:[#allocation8 + $0x70] sm:$0xff] }
 0x5fe   :  { %11546 = vst [vmem:[#allocation14_spill] sm:$0xff] %v9273_v13  ;;  %3357 = vmatpush.msrb.mxu0 %v9288_v55  ;;  %v9291_v13 = vld [vmem:[#allocation8 + $0x78] sm:$0xff] }
 0x5ff   :  { %11547 = vst [vmem:[#allocation16_spill] sm:$0xff] %v9276_v6  ;;  %3397 = vmatpush.msrb.mxu2 %v9291_v13  ;;  %v2832_v6 = vpop.f32.mrf.mxu0 }
 0x600   :  { %11548 = vst [vmem:[#allocation19_spill] sm:$0xff] %v9279_v12  ;;  %3358 = vmatpush.msrb.mxu0 %v9294_v29  ;;  %v9297_v12 = vld [vmem:[#allocation8 + $0x58] sm:$0xff] }
 0x601   :  { %11549 = vst [vmem:[#allocation17_spill] sm:$0xff] %v9282_v37  ;;  %3398 = vmatpush.msrb.mxu2 %v9297_v12  ;;  %v11555_v37 = vld [vmem:[#allocation67_spill] sm:$0xff] }
 0x602   :  { %11550 = vst [vmem:[#allocation21_spill] sm:$0xff] %v9285_v0  ;;  %v2833_v54 = vadd.f32 %v2832_v6, %v11555_v37  ;;  %v2852_v0 = vpop.f32.mrf.mxu1  ;;  %3359 = vmatpush.msrb.mxu0 %v9301_v35  ;;  %v2872_v6 = vpop.f32.mrf.mxu2  ;;  %v11560_v37 = vld [vmem:[#allocation72_spill] sm:$0xff] }
 0x603   :  { %11551 = vst [vmem:[#allocation18_spill] sm:$0xff] %v9288_v55  ;;  %v9304_v55 = vld [vmem:[#allocation8 + $0x38] sm:$0xff]  ;;  %v2873_v15 = vadd.f32 %v2872_v6, %v11560_v37  ;;  %v11562_v6 = vld [vmem:[#allocation74_spill] sm:$0xff] }
 0x604   :  { %11552 = vst [vmem:[#allocation23_spill] sm:$0xff] %v9291_v13  ;;  %3399 = vmatpush.msrb.mxu2 %v9304_v55  ;;  %v2853_v13 = vadd.f32 %v2852_v0, %v2833_v54  ;;  %3360 = vmatpush.msrb.mxu0 %v9307_v32  ;;  %v11561_v0 = vld [vmem:[#allocation69_spill] sm:$0xff] }
 0x605   :  { %11553 = vst [vmem:[#allocation20_spill] sm:$0xff] %v9294_v29  ;;  %v9310_v29 = vld [vmem:[#allocation8 + $0x18] sm:$0xff] }
 0x606   :  { %11554 = vst [vmem:[#allocation25_spill] sm:$0xff] %v9297_v12  ;;  %3400 = vmatpush.msrb.mxu2 %v9310_v29  ;;  %v4001_v12 = vmul.f32 -1.442695, %v2853_v13 }
 0x607   :  { %11556 = vst [vmem:[#allocation22_spill] sm:$0xff] %v9301_v35  ;;  %v2893_v35 = vadd.f32 %v2892_v22, %v2873_v15 }
 0x608   :  { %11557 = vst [vmem:[#allocation27_spill] sm:$0xff] %v9304_v55  ;;  %4202 = vpow2.f32 %v4001_v12 }
 0x609   :  { %11558 = vst [vmem:[#allocation24_spill] sm:$0xff] %v9307_v32  ;;  %v4002_v63 = vmul.f32 -1.442695, %v2893_v35  ;;  %v2972_v32 = vpop.f32.mrf.mxu3 }
 0x60a   :  { %11559 = vst [vmem:[#allocation29_spill] sm:$0xff] %v9310_v29  ;;  %v2952_v54 = vpop.f32.mrf.mxu2  ;;  %v2912_v29 = vpop.f32.mrf.mxu0 }
 0x60b   :  { %4204 = vpow2.f32 %v4002_v63  ;;  %v2953_v42 = vadd.f32 %v2952_v54, %v11561_v0  ;;  %v2913_v37 = vadd.f32 %v2912_v29, %v11562_v6  ;;  %v2932_v15 = vpop.f32.mrf.mxu1 }
 0x60d   :  { %v2973_v43 = vadd.f32 %v2972_v32, %v2953_v42  ;;  %v2933_v63 = vadd.f32 %v2932_v15, %v2913_v37 }
 0x60e   :  { %v4203_v11 = vpop.eup %4202 }
 0x60f   :  { %v2978_v55 = vadd.f32 1.0, %v4203_v11  ;;  %v4003_v13 = vmul.f32 -1.442695, %v2973_v43 }
 0x611   :  { %4206 = vrcp.f32 %v2978_v55  ;;  %v4205_v33 = vpop.eup %4204  ;;  %v2990_v0 = vand.u32 2147483648, %v2978_v55  ;;  %vm2984_vm5 = vweird.f32 %v2978_v55  ;;  %v2988_v43 = vand.u32 2147483647, %v2978_v55 }
 0x612   :  { %v2997_v1 = vadd.f32 1.0, %v4205_v33 }
 0x613   :  { %v2991_v37 = vor.u32 1.1754944e-38, %v2990_v0  ;;  %vm2989_vm9 = vcmp.eq.f32.partialorder %v2988_v43, 8.507059e+37 }
 0x614   :  { %4208 = vrcp.f32 %v2997_v1  ;;  %v3009_v32 = vand.u32 2147483648, %v2997_v1  ;;  %vm3003_vm8 = vweird.f32 %v2997_v1 }
 0x615   :  { %4210 = vpow2.f32 %v4003_v13 }
 0x616   :  { %4212 = vtanh.f32 %v2933_v63 }
 0x617   :  { %v4207_v62 = vpop.eup %4206 }
 0x618   :  { %v2980_v12 = vmul.f32 %v4207_v62, %v2978_v55  ;;  %vm2985_vm4 = vweird.f32 %v4207_v62  ;;  %v3079_v55 = vpop.f32.mrf.mxu1 }
 0x619   :  { %vm2986_vm6 = vmor %vm2984_vm5, %vm2985_vm4 }
 0x61a   :  { %v2981_v22 = vsub.f32 1.0, %v2980_v12  ;;  %v4209_v35 = vpop.eup %4208  ;;  %v3007_v12 = vand.u32 2147483647, %v2997_v1 }
 0x61b   :  { %v4211_v30 = vpop.eup %4210  ;;  %v2999_v51 = vmul.f32 %v4209_v35, %v2997_v1  ;;  %vm3004_vm7 = vweird.f32 %v4209_v35 }
 0x61c   :  { %v2982_v11 = vmul.f32 %v4207_v62, %v2981_v22  ;;  %v3017_v42 = vadd.f32 1.0, %v4211_v30  ;;  %v3059_v22 = vpop.f32.mrf.mxu0  ;;  %vm3005_vm10 = vmor %vm3003_vm8, %vm3004_vm7  ;;  %v3010_v30 = vor.u32 1.1754944e-38, %v3009_v32  ;;  %v4213_v6 = vpop.eup %4212  ;;  %vm3008_vm11 = vcmp.eq.f32.partialorder %v3007_v12, 8.507059e+37 }
 0x61d   :  { %v3000_v33 = vsub.f32 1.0, %v2999_v51 }
 0x61e   :  { %v2983_v54 = vadd.f32 %v4207_v62, %v2982_v11  ;;  %4214 = vrcp.f32 %v3017_v42  ;;  %v3060_v11 = vadd.f32 %v3059_v22, %v10565_v14  ;;  %v3119_v22 = vpop.f32.mrf.mxu3  ;;  %v3029_v32 = vand.u32 2147483648, %v3017_v42 }
 0x61f   :  { %v3001_v29 = vmul.f32 %v4209_v35, %v3000_v33  ;;  %vm3023_vm13 = vweird.f32 %v3017_v42 }
 0x620   :  { %v2987_v13 = vsel %vm2986_vm6, %v4207_v62, %v2983_v54  ;;  %v3080_v33 = vadd.f32 %v3079_v55, %v3060_v11 }
 0x621   :  { %v3002_v15 = vadd.f32 %v4209_v35, %v3001_v29  ;;  %v2992_v51 = vsel %vm2989_vm9, %v2991_v37, %v2987_v13  ;;  %v3099_v57 = vpop.f32.mrf.mxu2  ;;  %v3027_v37 = vand.u32 2147483647, %v3017_v42 }
 0x622   :  { %v3034_v54 = vmul.f32 %v4213_v6, %v2992_v51  ;;  %v3100_v29 = vadd.f32 %v3099_v57, %v10566_v60  ;;  %v4006_v13 = vmul.f32 -1.442695, %v3080_v33  ;;  %v3030_v6 = vor.u32 1.1754944e-38, %v3029_v32  ;;  %v11564_v33 = vld [vmem:[#allocation33_spill] sm:$0xff]  ;;  %v11574_v32 = vld [vmem:[#allocation43_spill] sm:$0xff] }
 0x623   :  { %v3006_v63 = vsel %vm3005_vm10, %v4209_v35, %v3002_v15  ;;  %vm3028_vm15 = vcmp.eq.f32.partialorder %v3027_v37, 8.507059e+37 }
 0x624   :  { %v4215_v25 = vpop.eup %4214  ;;  %v3011_v45 = vsel %vm3008_vm11, %v3010_v30, %v3006_v63  ;;  %v3120_v12 = vadd.f32 %v3119_v22, %v3100_v29  ;;  %v11563_v63 = vld [vmem:[#allocation28_spill] sm:$0xff]  ;;  %v11572_v29 = vld [vmem:[#allocation41_spill] sm:$0xff]  ;;  %v11573_v22 = vld [vmem:[#allocation38_spill] sm:$0xff] }
 0x625   :  { %v3033_v62 = vmul.f32 %v3011_v45, %v8609_v28  ;;  %v3019_v0 = vmul.f32 %v4215_v25, %v3017_v42  ;;  %vm3024_vm12 = vweird.f32 %v4215_v25 }
 0x626   :  { %v4007_v15 = vmul.f32 -1.442695, %v3120_v12  ;;  %vm3025_vm14 = vmor %vm3023_vm13, %vm3024_vm12 }
 0x627   :  { %v9318_v1 = vadd.f32 %v3034_v54, %v3033_v62  ;;  %v3020_v43 = vsub.f32 1.0, %v3019_v0  ;;  %v11565_v62 = vld [vmem:[#allocation30_spill] sm:$0xff]  ;;  %v11571_v54 = vld [vmem:[#allocation36_spill] sm:$0xff] }
 0x629   :  { %4216 = vtanh.f32 %v9318_v1  ;;  %v3021_v35 = vmul.f32 %v4215_v25, %v3020_v43 }
 0x62a   :  { %4218 = vpow2.f32 %v4006_v13  ;;  %v11575_v13 = vld [vmem:[#allocation40_spill] sm:$0xff] }
 0x62b   :  { %v3022_v28 = vadd.f32 %v4215_v25, %v3021_v35  ;;  %4220 = vpow2.f32 %v4007_v15  ;;  %v11576_v15 = vld [vmem:[#allocation45_spill] sm:$0xff] }
 0x62d   :  { %v3026_v45 = vsel %vm3025_vm14, %v4215_v25, %v3022_v28 }
 0x62e   :  { %v3031_v57 = vsel %vm3028_vm15, %v3030_v6, %v3026_v45  ;;  %v11577_v45 = vld [vmem:[#allocation108_spill] sm:$0xff] }
 0x62f   :  { %v4217_v11 = vpop.eup %4216 }
 0x630   :  { %v3037_v30 = vmul.f32 %v4217_v11, %v3031_v57  ;;  %v4219_v51 = vpop.eup %4218  ;;  %v11578_v11 = vld [vmem:[#allocation109_spill] sm:$0xff] }
 0x631   :  { %v4221_v42 = vpop.eup %4220  ;;  %v9329_v25 = vadd.f32 1.0, %v4219_v51  ;;  %v11580_v51 = vld [vmem:[#allocation47_spill] sm:$0xff] }
 0x632   :  { %4004 = vst [vmem:[%s9606_s5 + $0x28] sm:$0xff] %v3037_v30  ;;  %3301 = vmatmul.f32.vlgmr.msra.gmra.mxu1 %v3037_v30  ;;  %3341 = vmatmul.f32.vlgmr.msra.gmra.mxu3 %v3037_v30  ;;  %v9331_v55 = vadd.f32 1.0, %v4221_v42  ;;  %v3199_v42 = vpop.f32.mrf.mxu3 }
 0x633   :  { %3512 = vmatpush.msra.mxu1 %v8615_v44  ;;  %3552 = vmatpush.msra.mxu3 %v8618_v26  ;;  %4222 = vrcp.f32 %v9329_v25  ;;  %v11566_v44 = vld [vmem:[#allocation35_spill] sm:$0xff]  ;;  %v11567_v26 = vld [vmem:[#allocation32_spill] sm:$0xff]  ;;  %vm3211_vm2 = vweird.f32 %v9329_v25 }
 0x634   :  { %4224 = vrcp.f32 %v9331_v55  ;;  %vm3230_vm3 = vweird.f32 %v9331_v55 }
 0x635   :  { %3513 = vmatpush.msra.mxu1 %v8623_v46  ;;  %3553 = vmatpush.msra.mxu3 %v8626_v49  ;;  %v11568_v46 = vld [vmem:[#allocation37_spill] sm:$0xff]  ;;  %v11569_v49 = vld [vmem:[#allocation34_spill] sm:$0xff] }
 0x637   :  { %3514 = vmatpush.msra.mxu1 %v8631_v41  ;;  %3554 = vmatpush.msra.mxu3 %v11563_v63  ;;  %v11570_v41 = vld [vmem:[#allocation39_spill] sm:$0xff] }
 0x639   :  { %3515 = vmatpush.msra.mxu1 %v11564_v33  ;;  %3555 = vmatpush.msra.mxu3 %v11565_v62  ;;  %v9345_v0 = vpop.eup %4222 }
 0x63a   :  { %3381 = vmatmul.f32.vlgmr.msrb.gmra.mxu1 %v3037_v30  ;;  %3421 = vmatmul.f32.vlgmr.msrb.gmra.mxu3 %v3037_v30  ;;  %v9347_v43 = vpop.eup %4224  ;;  %v3207_v35 = vmul.f32 %v9345_v0, %v9329_v25  ;;  %v11579_v30 = vld [vmem:[#allocation42_spill] sm:$0xff]  ;;  %vm3212_vm0 = vweird.f32 %v9345_v0 }
 0x63b   :  { %3516 = vmatpush.msra.mxu1 %v11566_v44  ;;  %3556 = vmatpush.msra.mxu3 %v11567_v26  ;;  %v3226_v12 = vmul.f32 %v9347_v43, %v9331_v55  ;;  %v3139_v37 = vpop.f32.mrf.mxu0  ;;  %v11581_v44 = vld [vmem:[#allocation44_spill] sm:$0xff]  ;;  %v11582_v26 = vld [vmem:[#allocation49_spill] sm:$0xff]  ;;  %vm3231_vm1 = vweird.f32 %v9347_v43  ;;  %vm9383_vm4 = vmor %vm3211_vm2, %vm3212_vm0 }
 0x63c   :  { %v3140_v6 = vadd.f32 %v3139_v37, %v11577_v45  ;;  %v3208_v63 = vsub.f32 1.0, %v3207_v35  ;;  %v11587_v35 = vld [vmem:[#allocation58_spill] sm:$0xff]  ;;  %vm9393_vm5 = vmor %vm3230_vm3, %vm3231_vm1 }
 0x63d   :  { %3517 = vmatpush.msra.mxu1 %v11568_v46  ;;  %3557 = vmatpush.msra.mxu3 %v11569_v49  ;;  %v3227_v33 = vsub.f32 1.0, %v3226_v12  ;;  %v3159_v46 = vpop.f32.mrf.mxu1  ;;  %v11588_v12 = vld [vmem:[#allocation55_spill] sm:$0xff] }
 0x63e   :  { %v3160_v49 = vadd.f32 %v3159_v46, %v3140_v6  ;;  %v3217_v6 = vand.u32 2147483648, %v9329_v25 }
 0x63f   :  { %3518 = vmatpush.msra.mxu1 %v11570_v41  ;;  %3558 = vmatpush.msra.mxu3 %v11571_v54  ;;  %v11583_v41 = vld [vmem:[#allocation46_spill] sm:$0xff]  ;;  %v11584_v54 = vld [vmem:[#allocation48_spill] sm:$0xff] }
 0x641   :  { %3519 = vmatpush.msra.mxu1 %v11572_v29  ;;  %3559 = vmatpush.msra.mxu3 %v11573_v22  ;;  %v3179_v28 = vpop.f32.mrf.mxu2  ;;  %v3228_v29 = vmul.f32 %v9347_v43, %v3227_v33  ;;  %v3209_v22 = vmul.f32 %v9345_v0, %v3208_v63  ;;  %v3234_v63 = vand.u32 2147483647, %v9331_v55  ;;  %v11593_v33 = vld [vmem:[#allocation62_spill] sm:$0xff] }
 0x642   :  { %v3180_v57 = vadd.f32 %v3179_v28, %v11578_v11  ;;  %v3236_v28 = vand.u32 2147483648, %v9331_v55 }
 0x643   :  { %3520 = vmatpush.msra.mxu1 %v11574_v32  ;;  %3560 = vmatpush.msra.mxu3 %v11575_v13  ;;  %v11585_v32 = vld [vmem:[#allocation56_spill] sm:$0xff]  ;;  %v3210_v37 = vadd.f32 %v9345_v0, %v3209_v22  ;;  %vm3235_vm7 = vcmp.eq.f32.partialorder %v3234_v63, 8.507059e+37  ;;  %v11598_v22 = vld [vmem:[#allocation61_spill] sm:$0xff] }
 0x644   :  { %v3200_v62 = vadd.f32 %v3199_v42, %v3180_v57  ;;  %v11586_v13 = vld [vmem:[#allocation52_spill] sm:$0xff]  ;;  %v3215_v42 = vand.u32 2147483647, %v9329_v25  ;;  %v3237_v46 = vor.u32 1.1754944e-38, %v3236_v28 }
 0x645   :  { %3521 = vmatpush.msra.mxu1 %v11576_v15  ;;  %3561 = vmatpush.msra.mxu3 %v8686_v23  ;;  %v3229_v15 = vadd.f32 %v9347_v43, %v3228_v29  ;;  %v11589_v57 = vld [vmem:[#allocation60_spill] sm:$0xff] }
 0x646   :  { %v4008_v23 = vmul.f32 -1.442695, %v3200_v62  ;;  %vm3216_vm6 = vcmp.eq.f32.partialorder %v3215_v42, 8.507059e+37  ;;  %v11605_v28 = vld [vmem:[#allocation112_spill] sm:$0xff] }
 0x647   :  { %3522 = vmatpush.msra.mxu1 %v11579_v30  ;;  %3562 = vmatpush.msra.mxu3 %v11580_v51  ;;  %v11590_v30 = vld [vmem:[#allocation57_spill] sm:$0xff]  ;;  %v3233_v25 = vsel %vm9393_vm5, %v9347_v43, %v3229_v15  ;;  %v11597_v43 = vld [vmem:[#allocation64_spill] sm:$0xff]  ;;  %v11604_v15 = vld [vmem:[#allocation111_spill] sm:$0xff] }
 0x648   :  { %4226 = vpow2.f32 %v4008_v23  ;;  %v3238_v23 = vsel %vm3235_vm7, %v3237_v46, %v3233_v25  ;;  %v5068_v25 = vld [vmem:[#allocation6 + $0xc0] sm:$0xff] }
 0x649   :  { %3523 = vmatpush.msra.mxu1 %v11581_v44  ;;  %3563 = vmatpush.msra.mxu3 %v11582_v26  ;;  %4228 = vtanh.f32 %v3160_v49  ;;  %v3214_v26 = vsel %vm9383_vm4, %v9345_v0, %v3210_v37  ;;  %v3218_v49 = vor.u32 1.1754944e-38, %v3217_v6  ;;  %v5059_v44 = vld [vmem:[#allocation6 + $0x168] sm:$0xff]  ;;  %v5074_v46 = vld [vmem:[#allocation6 + $0x60] sm:$0xff] }
 0x64b   :  { %3524 = vmatpush.msra.mxu1 %v11583_v41  ;;  %3564 = vmatpush.msra.mxu3 %v11584_v54  ;;  %v3219_v0 = vsel %vm3216_vm6, %v3218_v49, %v3214_v26  ;;  %v5064_v26 = vld [vmem:[#allocation6 + $0x100] sm:$0xff]  ;;  %v11610_v49 = vld [vmem:[#allocation117_spill] sm:$0xff] }
 0x64d   :  { %3525 = vmatpush.msra.mxu1 %v11585_v32  ;;  %3565 = vmatpush.msra.mxu3 %v11586_v13  ;;  %v11600_v32 = vld [vmem:[#allocation63_spill] sm:$0xff]  ;;  %v11601_v13 = vld [vmem:[#allocation68_spill] sm:$0xff] }
 0x64e   :  { %v4227_v62 = vpop.eup %4226 }
 0x64f   :  { %3526 = vmatpush.msra.mxu1 %v11587_v35  ;;  %3566 = vmatpush.msra.mxu3 %v11588_v12  ;;  %v3244_v55 = vadd.f32 1.0, %v4227_v62  ;;  %v11603_v35 = vld [vmem:[#allocation70_spill] sm:$0xff]  ;;  %v5057_v62 = vld [vmem:[#allocation6 + $0x188] sm:$0xff] }
 0x651   :  { %3527 = vmatpush.msra.mxu1 %v11589_v57  ;;  %3567 = vmatpush.msra.mxu3 %v11590_v30  ;;  %4230 = vrcp.f32 %v3244_v55  ;;  %v3254_v37 = vand.u32 2147483647, %v3244_v55  ;;  %vm3250_vm9 = vweird.f32 %v3244_v55 }
 0x653   :  { %3592 = vmatpush.msrb.mxu1 %v11593_v33  ;;  %3632 = vmatpush.msrb.mxu3 %v8752_v27  ;;  %v4229_v27 = vpop.eup %4228  ;;  %vm3255_vm11 = vcmp.eq.f32.partialorder %v3254_v37, 8.507059e+37  ;;  %v5050_v33 = vld [vmem:[#allocation6 + $0x1e0] sm:$0xff]  ;;  %v11618_v37 = vld [vmem:[#allocation125_spill] sm:$0xff] }
 0x654   :  { %v3261_v41 = vmul.f32 %v4229_v27, %v3219_v0  ;;  %v11608_v27 = vld [vmem:[#allocation115_spill] sm:$0xff]  ;;  %v5076_v0 = vld [vmem:[#allocation6 + $0x40] sm:$0xff] }
 0x655   :  { %3593 = vmatpush.msrb.mxu1 %v8761_v50  ;;  %3633 = vmatpush.msrb.mxu3 %v8764_v31  ;;  %v3260_v50 = vmul.f32 %v3238_v23, %v8786_v4  ;;  %v11596_v31 = vld [vmem:[#allocation59_spill] sm:$0xff]  ;;  %v11602_v4 = vld [vmem:[#allocation65_spill] sm:$0xff]  ;;  %v11611_v23 = vld [vmem:[#allocation118_spill] sm:$0xff] }
 0x657   :  { %3594 = vmatpush.msrb.mxu1 %v8767_v7  ;;  %3634 = vmatpush.msrb.mxu3 %v8770_v40  ;;  %v4231_v54 = vpop.eup %4230  ;;  %v9412_v29 = vadd.f32 %v3261_v41, %v3260_v50  ;;  %v11599_v7 = vld [vmem:[#allocation66_spill] sm:$0xff]  ;;  %v11612_v41 = vld [vmem:[#allocation119_spill] sm:$0xff]  ;;  %v5078_v50 = vld [vmem:[#allocation6 + $0x20] sm:$0xff] }
 0x658   :  { %v3246_v40 = vmul.f32 %v4231_v54, %v3244_v55  ;;  %vm3251_vm8 = vweird.f32 %v4231_v54 }
 0x659   :  { %3595 = vmatpush.msrb.mxu1 %v8773_v16  ;;  %3635 = vmatpush.msrb.mxu3 %v8776_v17  ;;  %4232 = vtanh.f32 %v9412_v29  ;;  %v3256_v17 = vand.u32 2147483648, %v3244_v55  ;;  %vm3252_vm10 = vmor %vm3250_vm9, %vm3251_vm8  ;;  %v5072_v55 = vld [vmem:[#allocation6 + $0x80] sm:$0xff] }
 0x65a   :  { %v3247_v16 = vsub.f32 1.0, %v3246_v40  ;;  %v5081_v40 = vld [vmem:[#allocation6 + $0x8] sm:$0xff] }
 0x65b   :  { %3596 = vmatpush.msrb.mxu1 %v11596_v31  ;;  %3636 = vmatpush.msrb.mxu3 %v11597_v43  ;;  %v3257_v57 = vor.u32 1.1754944e-38, %v3256_v17  ;;  %v5079_v31 = vld [vmem:[#allocation6 + $0x28] sm:$0xff]  ;;  %v9456_v43 = vld [vmem:[%s9601_s0 + $0x38] sm:$0xff] }
 0x65c   :  { %v3248_v12 = vmul.f32 %v4231_v54, %v3247_v16  ;;  %v11615_v16 = vld [vmem:[#allocation122_spill] sm:$0xff]  ;;  %v11616_v17 = vld [vmem:[#allocation123_spill] sm:$0xff] }
 0x65d   :  { %3597 = vmatpush.msrb.mxu1 %v11598_v22  ;;  %3637 = vmatpush.msrb.mxu3 %v11599_v7  ;;  %v11614_v22 = vld [vmem:[#allocation121_spill] sm:$0xff]  ;;  %v5080_v7 = vld [vmem:[#allocation6] sm:$0xff] }
 0x65e   :  { %v3249_v6 = vadd.f32 %v4231_v54, %v3248_v12  ;;  %v11617_v12 = vld [vmem:[#allocation124_spill] sm:$0xff] }
 0x65f   :  { %3598 = vmatpush.msrb.mxu1 %v11600_v32  ;;  %3638 = vmatpush.msrb.mxu3 %v11601_v13  ;;  %v4233_v51 = vpop.eup %4232  ;;  %v5082_v32 = vld [vmem:[#allocation6 + $0x1f0] sm:$0xff]  ;;  %v5083_v13 = vld [vmem:[#allocation6 + $0x1f8] sm:$0xff] }
 0x660   :  { %v3253_v30 = vsel %vm3252_vm10, %v4231_v54, %v3249_v6  ;;  %v11613_v54 = vld [vmem:[#allocation120_spill] sm:$0xff]  ;;  %v11619_v6 = vld [vmem:[#allocation126_spill] sm:$0xff] }
 0x661   :  { %3599 = vmatpush.msrb.mxu1 %v11602_v4  ;;  %3639 = vmatpush.msrb.mxu3 %v11603_v35  ;;  %v3258_v42 = vsel %vm3255_vm11, %v3257_v57, %v3253_v30  ;;  %v5084_v4 = vld [vmem:[#allocation6 + $0x1d0] sm:$0xff]  ;;  %v5085_v35 = vld [vmem:[#allocation6 + $0x1d8] sm:$0xff] }
 0x662   :  { %v3264_v63 = vmul.f32 %v4233_v51, %v3258_v42  ;;  %v11620_v57 = vld [vmem:[#allocation127_spill] sm:$0xff]  ;;  %v5088_v30 = vld [vmem:[#allocation6 + $0x190] sm:$0xff]  ;;  %v11621_v42 = vld [vmem:[#allocation128_spill] sm:$0xff] }
 0x663   :  { %3600 = vmatpush.msrb.mxu1 %v11604_v15  ;;  %3640 = vmatpush.msrb.mxu3 %v11605_v28  ;;  %v5086_v15 = vld [vmem:[#allocation6 + $0x1b0] sm:$0xff]  ;;  %v5087_v28 = vld [vmem:[#allocation6 + $0x1b8] sm:$0xff] }
 0x664   :  { %3281 = vmatmul.f32.vlgmr.msra.gmra.mxu0 %v3264_v63  ;;  %3321 = vmatmul.f32.vlgmr.msra.gmra.mxu2 %v3264_v63  ;;  %v5089_v51 = vld [vmem:[#allocation6 + $0x198] sm:$0xff] }
 0x665   :  { %3601 = vmatpush.msrb.mxu1 %v8813_v58  ;;  %3641 = vmatpush.msrb.mxu3 %v8816_v34  ;;  %v5051_v58 = vld [vmem:[#allocation6 + $0x1e8] sm:$0xff]  ;;  %v5052_v34 = vld [vmem:[#allocation6 + $0x1c0] sm:$0xff] }
 0x666   :  { %3492 = vmatpush.msra.mxu0 %v5050_v33  ;;  %3528 = vmatmul.f32.vlgmr.msra.gmra.mxu1 %v3264_v63  ;;  %v5090_v33 = vld [vmem:[#allocation6 + $0x170] sm:$0xff] }
 0x667   :  { %3602 = vmatpush.msrb.mxu1 %v8819_v3  ;;  %3642 = vmatpush.msrb.mxu3 %v8822_v47  ;;  %v5053_v3 = vld [vmem:[#allocation6 + $0x1c8] sm:$0xff]  ;;  %v5054_v47 = vld [vmem:[#allocation6 + $0x1a0] sm:$0xff] }
 0x668   :  { %3532 = vmatpush.msra.mxu2 %v5051_v58  ;;  %3568 = vmatmul.f32.vlgmr.msra.gmra.mxu3 %v3264_v63  ;;  %v5091_v58 = vld [vmem:[#allocation6 + $0x178] sm:$0xff] }
 0x669   :  { %3603 = vmatpush.msrb.mxu1 %v8828_v8  ;;  %3643 = vmatpush.msrb.mxu3 %v8832_v9  ;;  %v5055_v8 = vld [vmem:[#allocation6 + $0x1a8] sm:$0xff]  ;;  %v5056_v9 = vld [vmem:[#allocation6 + $0x180] sm:$0xff] }
 0x66a   :  { %3493 = vmatpush.msra.mxu0 %v5052_v34  ;;  %3533 = vmatpush.msra.mxu2 %v5053_v3  ;;  %v11623_v34 = vld [vmem:[#allocation130_spill] sm:$0xff]  ;;  %v11624_v3 = vld [vmem:[#allocation131_spill] sm:$0xff] }
 0x66b   :  { %3604 = vmatpush.msrb.mxu1 %v8836_v39  ;;  %3644 = vmatpush.msrb.mxu3 %v8840_v52  ;;  %v5058_v39 = vld [vmem:[#allocation6 + $0x160] sm:$0xff] }
 0x66c   :  { %3494 = vmatpush.msra.mxu0 %v5054_v47  ;;  %3534 = vmatpush.msra.mxu2 %v5055_v8  ;;  %v5060_v52 = vld [vmem:[#allocation6 + $0x140] sm:$0xff]  ;;  %v5092_v47 = vld [vmem:[#allocation6 + $0x150] sm:$0xff]  ;;  %v5093_v8 = vld [vmem:[#allocation6 + $0x158] sm:$0xff] }
 0x66d   :  { %3605 = vmatpush.msrb.mxu1 %v8844_v19  ;;  %3645 = vmatpush.msrb.mxu3 %v8848_v36  ;;  %v5061_v19 = vld [vmem:[#allocation6 + $0x148] sm:$0xff]  ;;  %v5062_v36 = vld [vmem:[#allocation6 + $0x120] sm:$0xff] }
 0x66e   :  { %3495 = vmatpush.msra.mxu0 %v5056_v9  ;;  %3535 = vmatpush.msra.mxu2 %v5057_v62  ;;  %v11625_v9 = vld [vmem:[#allocation132_spill] sm:$0xff]  ;;  %v11626_v62 = vld [vmem:[#allocation133_spill] sm:$0xff] }
 0x66f   :  { %3606 = vmatpush.msrb.mxu1 %v8853_v24  ;;  %3361 = vmatmul.f32.vlgmr.msrb.gmra.mxu0 %v3264_v63  ;;  %v5063_v24 = vld [vmem:[#allocation6 + $0x128] sm:$0xff] }
 0x670   :  { %3401 = vmatmul.f32.vlgmr.msrb.gmra.mxu2 %v3264_v63  ;;  %3496 = vmatpush.msra.mxu0 %v5058_v39  ;;  %v5094_v39 = vld [vmem:[#allocation6 + $0x130] sm:$0xff] }
 0x671   :  { %3536 = vmatpush.msra.mxu2 %v5059_v44  ;;  %3646 = vmatpush.msrb.mxu3 %v8856_v10  ;;  %v5065_v10 = vld [vmem:[#allocation6 + $0x108] sm:$0xff]  ;;  %v5095_v44 = vld [vmem:[#allocation6 + $0x138] sm:$0xff] }
 0x672   :  { %3497 = vmatpush.msra.mxu0 %v5060_v52  ;;  %3607 = vmatpush.msrb.mxu1 %v8861_v53  ;;  %v5066_v53 = vld [vmem:[#allocation6 + $0xe0] sm:$0xff]  ;;  %v11627_v52 = vld [vmem:[#allocation134_spill] sm:$0xff] }
 0x673   :  { %3537 = vmatpush.msra.mxu2 %v5061_v19  ;;  %3647 = vmatpush.msrb.mxu3 %v8864_v20  ;;  %v5067_v20 = vld [vmem:[#allocation6 + $0xe8] sm:$0xff]  ;;  %v11628_v19 = vld [vmem:[#allocation135_spill] sm:$0xff] }
 0x674   :  { %3608 = vmatmul.f32.vlgmr.msrb.gmra.mxu1 %v3264_v63  ;;  %3648 = vmatmul.f32.vlgmr.msrb.gmra.mxu3 %v3264_v63  ;;  %v11622_v63 = vld [vmem:[#allocation129_spill] sm:$0xff] }
 0x675   :  { %3498 = vmatpush.msra.mxu0 %v5062_v36  ;;  %3538 = vmatpush.msra.mxu2 %v5063_v24  ;;  %v5096_v36 = vld [vmem:[#allocation6 + $0x110] sm:$0xff]  ;;  %v5097_v24 = vld [vmem:[#allocation6 + $0x118] sm:$0xff] }
 0x676   :  { %3735 = vmatpush.msra.mxu1 %v8869_v61  ;;  %3775 = vmatpush.msra.mxu3 %v8872_v56  ;;  %v5069_v61 = vld [vmem:[#allocation6 + $0xc8] sm:$0xff]  ;;  %v5070_v56 = vld [vmem:[#allocation6 + $0xa0] sm:$0xff] }
 0x677   :  { %3499 = vmatpush.msra.mxu0 %v5064_v26  ;;  %3539 = vmatpush.msra.mxu2 %v5065_v10  ;;  %v11629_v26 = vld [vmem:[#allocation136_spill] sm:$0xff]  ;;  %v11630_v10 = vld [vmem:[#allocation137_spill] sm:$0xff] }
 0x678   :  { %3736 = vmatpush.msra.mxu1 %v8877_v48  ;;  %3776 = vmatpush.msra.mxu3 %v8880_v21  ;;  %v5071_v48 = vld [vmem:[#allocation6 + $0xa8] sm:$0xff] }
 0x679   :  { %3500 = vmatpush.msra.mxu0 %v5066_v53  ;;  %3540 = vmatpush.msra.mxu2 %v5067_v20  ;;  %v11606_v21 = vld [vmem:[#allocation113_spill] sm:$0xff]  ;;  %v5098_v53 = vld [vmem:[#allocation6 + $0xf0] sm:$0xff]  ;;  %v5099_v20 = vld [vmem:[#allocation6 + $0xf8] sm:$0xff] }
 0x67a   :  { %3737 = vmatpush.msra.mxu1 %v8885_v18  ;;  %3777 = vmatpush.msra.mxu3 %v8888_v59  ;;  %v5073_v18 = vld [vmem:[#allocation6 + $0x88] sm:$0xff]  ;;  %v11607_v59 = vld [vmem:[#allocation114_spill] sm:$0xff] }
 0x67b   :  { %3501 = vmatpush.msra.mxu0 %v5068_v25  ;;  %3541 = vmatpush.msra.mxu2 %v5069_v61  ;;  %v11631_v25 = vld [vmem:[#allocation138_spill] sm:$0xff]  ;;  %v11632_v61 = vld [vmem:[#allocation139_spill] sm:$0xff] }
 0x67c   :  { %3738 = vmatpush.msra.mxu1 %v8893_v2  ;;  %3778 = vmatpush.msra.mxu3 %v8896_v5  ;;  %v5075_v2 = vld [vmem:[#allocation6 + $0x68] sm:$0xff]  ;;  %v11609_v5 = vld [vmem:[#allocation116_spill] sm:$0xff] }
 0x67d   :  { %3502 = vmatpush.msra.mxu0 %v5070_v56  ;;  %3542 = vmatpush.msra.mxu2 %v5071_v48  ;;  %v5100_v56 = vld [vmem:[#allocation6 + $0xd0] sm:$0xff]  ;;  %v5101_v48 = vld [vmem:[#allocation6 + $0xd8] sm:$0xff] }
 0x67e   :  { %3739 = vmatpush.msra.mxu1 %v8901_v38  ;;  %3779 = vmatpush.msra.mxu3 %v11606_v21  ;;  %v5077_v38 = vld [vmem:[#allocation6 + $0x48] sm:$0xff]  ;;  %v11633_v21 = vld [vmem:[#allocation140_spill] sm:$0xff] }
 0x67f   :  { %3503 = vmatpush.msra.mxu0 %v5072_v55  ;;  %3543 = vmatpush.msra.mxu2 %v5073_v18  ;;  %v11634_v55 = vld [vmem:[#allocation141_spill] sm:$0xff]  ;;  %v5102_v18 = vld [vmem:[#allocation6 + $0xb0] sm:$0xff] }
 0x680   :  { %3740 = vmatpush.msra.mxu1 %v11607_v59  ;;  %3780 = vmatpush.msra.mxu3 %v11608_v27  ;;  %v5103_v59 = vld [vmem:[#allocation6 + $0xb8] sm:$0xff]  ;;  %v11635_v27 = vld [vmem:[#allocation142_spill] sm:$0xff] }
 0x681   :  { %3504 = vmatpush.msra.mxu0 %v5074_v46  ;;  %3544 = vmatpush.msra.mxu2 %v5075_v2  ;;  %v11636_v46 = vld [vmem:[#allocation143_spill] sm:$0xff]  ;;  %v5104_v2 = vld [vmem:[#allocation6 + $0x90] sm:$0xff] }
 0x682   :  { %3741 = vmatpush.msra.mxu1 %v11609_v5  ;;  %3781 = vmatpush.msra.mxu3 %v11610_v49  ;;  %v5105_v5 = vld [vmem:[#allocation6 + $0x98] sm:$0xff]  ;;  %v11637_v49 = vld [vmem:[#allocation144_spill] sm:$0xff] }
 0x683   :  { %3505 = vmatpush.msra.mxu0 %v5076_v0  ;;  %3545 = vmatpush.msra.mxu2 %v5077_v38  ;;  %v11638_v0 = vld [vmem:[#allocation145_spill] sm:$0xff]  ;;  %v5106_v38 = vld [vmem:[#allocation6 + $0x70] sm:$0xff] }
 0x684   :  { %3742 = vmatpush.msra.mxu1 %v11611_v23  ;;  %3782 = vmatpush.msra.mxu3 %v11612_v41  ;;  %v5107_v23 = vld [vmem:[#allocation6 + $0x78] sm:$0xff]  ;;  %v11639_v41 = vld [vmem:[#allocation146_spill] sm:$0xff] }
 0x685   :  { %3506 = vmatpush.msra.mxu0 %v5078_v50  ;;  %3546 = vmatpush.msra.mxu2 %v5079_v31  ;;  %v11640_v50 = vld [vmem:[#allocation147_spill] sm:$0xff]  ;;  %v5108_v31 = vld [vmem:[#allocation6 + $0x50] sm:$0xff] }
 0x686   :  { %3743 = vmatpush.msra.mxu1 %v11613_v54  ;;  %3783 = vmatpush.msra.mxu3 %v11614_v22  ;;  %v5109_v54 = vld [vmem:[#allocation6 + $0x58] sm:$0xff]  ;;  %v11641_v22 = vld [vmem:[#allocation148_spill] sm:$0xff] }
 0x687   :  { %3507 = vmatpush.msra.mxu0 %v5080_v7  ;;  %3547 = vmatpush.msra.mxu2 %v5081_v40  ;;  %v11642_v7 = vld [vmem:[#allocation149_spill] sm:$0xff]  ;;  %v5110_v40 = vld [vmem:[#allocation6 + $0x30] sm:$0xff] }
 0x688   :  { %3508 = vmatmul.f32.vlgmr.msra.gmra.mxu0 %v9456_v43  ;;  %3548 = vmatmul.f32.vlgmr.msra.gmra.mxu2 %v9456_v43 }
 0x689   :  { %3572 = vmatpush.msrb.mxu0 %v5082_v32  ;;  %3612 = vmatpush.msrb.mxu2 %v5083_v13  ;;  %v5111_v32 = vld [vmem:[#allocation6 + $0x38] sm:$0xff]  ;;  %v11643_v13 = vld [vmem:[#allocation150_spill] sm:$0xff] }
 0x68a   :  { %3744 = vmatpush.msra.mxu1 %v11615_v16  ;;  %3784 = vmatpush.msra.mxu3 %v11616_v17  ;;  %v11644_v16 = vld [vmem:[#allocation151_spill] sm:$0xff]  ;;  %v5112_v17 = vld [vmem:[#allocation6 + $0x10] sm:$0xff] }
 0x68b   :  { %3573 = vmatpush.msrb.mxu0 %v5084_v4  ;;  %3613 = vmatpush.msrb.mxu2 %v5085_v35  ;;  %v5113_v4 = vld [vmem:[#allocation6 + $0x18] sm:$0xff]  ;;  %v11645_v35 = vld [vmem:[#allocation152_spill] sm:$0xff] }
 0x68c   :  { %3745 = vmatpush.msra.mxu1 %v11617_v12  ;;  %3785 = vmatpush.msra.mxu3 %v11618_v37  ;;  %v11646_v12 = vld [vmem:[#allocation153_spill] sm:$0xff]  ;;  %v11647_v37 = vld [vmem:[#allocation154_spill] sm:$0xff] }
 0x68d   :  { %3574 = vmatpush.msrb.mxu0 %v5086_v15  ;;  %3614 = vmatpush.msrb.mxu2 %v5087_v28  ;;  %v11648_v15 = vld [vmem:[#allocation155_spill] sm:$0xff]  ;;  %v11649_v28 = vld [vmem:[#allocation156_spill] sm:$0xff] }
 0x68e   :  { %3746 = vmatpush.msra.mxu1 %v11619_v6  ;;  %3786 = vmatpush.msra.mxu3 %v11620_v57  ;;  %v11650_v6 = vld [vmem:[#allocation157_spill] sm:$0xff]  ;;  %v11651_v57 = vld [vmem:[#allocation158_spill] sm:$0xff] }
 0x68f   :  { %3575 = vmatpush.msrb.mxu0 %v5088_v30  ;;  %3615 = vmatpush.msrb.mxu2 %v5089_v51  ;;  %v11652_v30 = vld [vmem:[#allocation159_spill] sm:$0xff]  ;;  %v11653_v51 = vld [vmem:[#allocation160_spill] sm:$0xff] }
 0x690   :  { %3747 = vmatpush.msra.mxu1 %v11621_v42  ;;  %3787 = vmatpush.msra.mxu3 %v11622_v63  ;;  %v11654_v42 = vld [vmem:[#allocation161_spill] sm:$0xff]  ;;  %v11656_v63 = vld [vmem:[#allocation163_spill] sm:$0xff] }
 0x691   :  { %3576 = vmatpush.msrb.mxu0 %v5090_v33  ;;  %3616 = vmatpush.msrb.mxu2 %v5091_v58  ;;  %v11657_v33 = vld [vmem:[#allocation164_spill] sm:$0xff]  ;;  %v11658_v58 = vld [vmem:[#allocation165_spill] sm:$0xff] }
 0x692   :  { %3748 = vmatpush.msra.mxu1 %v11623_v34  ;;  %3788 = vmatpush.msra.mxu3 %v11624_v3  ;;  %v11659_v34 = vld [vmem:[#allocation166_spill] sm:$0xff]  ;;  %v11660_v3 = vld [vmem:[#allocation167_spill] sm:$0xff] }
 0x693   :  { %3577 = vmatpush.msrb.mxu0 %v5092_v47  ;;  %3617 = vmatpush.msrb.mxu2 %v5093_v8  ;;  %v11661_v47 = vld [vmem:[#allocation168_spill] sm:$0xff]  ;;  %v11662_v8 = vld [vmem:[#allocation169_spill] sm:$0xff] }
 0x694   :  { %3749 = vmatpush.msra.mxu1 %v11625_v9  ;;  %3789 = vmatpush.msra.mxu3 %v11626_v62  ;;  %v11663_v9 = vld [vmem:[#allocation170_spill] sm:$0xff]  ;;  %v11664_v62 = vld [vmem:[#allocation171_spill] sm:$0xff] }
 0x695   :  { %3578 = vmatpush.msrb.mxu0 %v5094_v39  ;;  %3618 = vmatpush.msrb.mxu2 %v5095_v44  ;;  %v11665_v39 = vld [vmem:[#allocation172_spill] sm:$0xff]  ;;  %v11666_v44 = vld [vmem:[#allocation173_spill] sm:$0xff] }
 0x696   :  { %3750 = vmatpush.msra.mxu1 %v11627_v52  ;;  %3790 = vmatpush.msra.mxu3 %v11628_v19  ;;  %v11667_v52 = vld [vmem:[#allocation174_spill] sm:$0xff]  ;;  %v11668_v19 = vld [vmem:[#allocation175_spill] sm:$0xff] }
 0x697   :  { %3579 = vmatpush.msrb.mxu0 %v5096_v36  ;;  %3619 = vmatpush.msrb.mxu2 %v5097_v24  ;;  %v11669_v36 = vld [vmem:[#allocation71_spill] sm:$0xff]  ;;  %v11670_v24 = vld [vmem:[#allocation73_spill] sm:$0xff] }
 0x698   :  { %3815 = vmatpush.msrb.mxu1 %v11629_v26  ;;  %3855 = vmatpush.msrb.mxu3 %v11630_v10  ;;  %v11671_v26 = vld [vmem:[#allocation77_spill] sm:$0xff]  ;;  %v11672_v10 = vld [vmem:[#allocation75_spill] sm:$0xff] }
 0x699   :  { %3580 = vmatpush.msrb.mxu0 %v5098_v53  ;;  %3620 = vmatpush.msrb.mxu2 %v5099_v20  ;;  %v11673_v53 = vld [vmem:[#allocation79_spill] sm:$0xff]  ;;  %v11674_v20 = vld [vmem:[#allocation76_spill] sm:$0xff] }
 0x69a   :  { %3816 = vmatpush.msrb.mxu1 %v11631_v25  ;;  %3856 = vmatpush.msrb.mxu3 %v11632_v61  ;;  %v11675_v25 = vld [vmem:[#allocation81_spill] sm:$0xff]  ;;  %v11676_v61 = vld [vmem:[#allocation50_spill] sm:$0xff] }
 0x69b   :  { %3581 = vmatpush.msrb.mxu0 %v5100_v56  ;;  %3621 = vmatpush.msrb.mxu2 %v5101_v48  ;;  %v11677_v56 = vld [vmem:[#allocation51_spill] sm:$0xff]  ;;  %v11678_v48 = vld [vmem:[#allocation78_spill] sm:$0xff] }
 0x69c   :  { %3817 = vmatpush.msrb.mxu1 %v11633_v21  ;;  %3857 = vmatpush.msrb.mxu3 %v11634_v55  ;;  %v11679_v21 = vld [vmem:[#allocation53_spill] sm:$0xff]  ;;  %v11680_v55 = vld [vmem:[#allocation82_spill] sm:$0xff] }
 0x69d   :  { %3582 = vmatpush.msrb.mxu0 %v5102_v18  ;;  %3622 = vmatpush.msrb.mxu2 %v5103_v59  ;;  %v11681_v18 = vld [vmem:[#allocation54_spill] sm:$0xff]  ;;  %v11682_v59 = vld [vmem:[#allocation80_spill] sm:$0xff] }
 0x69e   :  { %3818 = vmatpush.msrb.mxu1 %v11635_v27  ;;  %3858 = vmatpush.msrb.mxu3 %v11636_v46  ;;  %v11683_v27 = vld [vmem:[#allocation83_spill] sm:$0xff]  ;;  %v11684_v46 = vld [vmem:[#allocation85_spill] sm:$0xff] }
 0x69f   :  { %3583 = vmatpush.msrb.mxu0 %v5104_v2  ;;  %3623 = vmatpush.msrb.mxu2 %v5105_v5  ;;  %v11685_v2 = vld [vmem:[#allocation84_spill] sm:$0xff]  ;;  %v11686_v5 = vld [vmem:[#allocation86_spill] sm:$0xff] }
 0x6a0   :  { %3819 = vmatpush.msrb.mxu1 %v11637_v49  ;;  %3859 = vmatpush.msrb.mxu3 %v11638_v0  ;;  %v11687_v49 = vld [vmem:[#allocation88_spill] sm:$0xff]  ;;  %v11688_v0 = vld [vmem:[#allocation87_spill] sm:$0xff] }
 0x6a1   :  { %3584 = vmatpush.msrb.mxu0 %v5106_v38  ;;  %3624 = vmatpush.msrb.mxu2 %v5107_v23  ;;  %v11689_v38 = vld [vmem:[#allocation89_spill] sm:$0xff]  ;;  %v11690_v23 = vld [vmem:[#allocation90_spill] sm:$0xff] }
 0x6a2   :  { %3820 = vmatpush.msrb.mxu1 %v11639_v41  ;;  %3860 = vmatpush.msrb.mxu3 %v11640_v50  ;;  %v11691_v41 = vld [vmem:[#allocation91_spill] sm:$0xff]  ;;  %v11692_v50 = vld [vmem:[#allocation92_spill] sm:$0xff] }
 0x6a3   :  { %3585 = vmatpush.msrb.mxu0 %v5108_v31  ;;  %3625 = vmatpush.msrb.mxu2 %v5109_v54  ;;  %v11693_v31 = vld [vmem:[#allocation93_spill] sm:$0xff]  ;;  %v11694_v54 = vld [vmem:[#allocation94_spill] sm:$0xff] }
 0x6a4   :  { %3821 = vmatpush.msrb.mxu1 %v11641_v22  ;;  %3861 = vmatpush.msrb.mxu3 %v11642_v7  ;;  %v11695_v22 = vld [vmem:[#allocation95_spill] sm:$0xff]  ;;  %v11696_v7 = vld [vmem:[#allocation96_spill] sm:$0xff] }
 0x6a5   :  { %3586 = vmatpush.msrb.mxu0 %v5110_v40  ;;  %3626 = vmatpush.msrb.mxu2 %v5111_v32  ;;  %v11697_v40 = vld [vmem:[#allocation97_spill] sm:$0xff]  ;;  %v11698_v32 = vld [vmem:[#allocation100_spill] sm:$0xff] }
 0x6a6   :  { %3822 = vmatpush.msrb.mxu1 %v11643_v13  ;;  %3862 = vmatpush.msrb.mxu3 %v11644_v16  ;;  %v11699_v13 = vld [vmem:[#allocation101_spill] sm:$0xff]  ;;  %v11700_v16 = vld [vmem:[#allocation102_spill] sm:$0xff] }
 0x6a7   :  { %3587 = vmatpush.msrb.mxu0 %v5112_v17  ;;  %3627 = vmatpush.msrb.mxu2 %v5113_v4  ;;  %v11701_v17 = vld [vmem:[#allocation103_spill] sm:$0xff]  ;;  %v11702_v4 = vld [vmem:[#allocation104_spill] sm:$0xff] }
 0x6a8   :  { %3588 = vmatmul.f32.vlgmr.msrb.gmra.mxu0 %v9456_v43  ;;  %3628 = vmatmul.f32.vlgmr.msrb.gmra.mxu2 %v9456_v43  ;;  %v11655_v43 = vld [vmem:[#allocation162_spill] sm:$0xff] }
 0x6a9   :  { %3823 = vmatpush.msrb.mxu1 %v11645_v35  ;;  %3863 = vmatpush.msrb.mxu3 %v11646_v12  ;;  %v11703_v35 = vld [vmem:[#allocation105_spill] sm:$0xff]  ;;  %v11704_v12 = vld [vmem:[#allocation106_spill] sm:$0xff] }
 0x6aa   :  { %3715 = vmatpush.msra.mxu0 %v11647_v37  ;;  %3755 = vmatpush.msra.mxu2 %v11648_v15  ;;  %v11705_v37 = vld [vmem:[#allocation107_spill] sm:$0xff]  ;;  %v11706_v15 = vld [vmem:[#allocation110_spill] sm:$0xff] }
 0x6ab   :  { %3824 = vmatpush.msrb.mxu1 %v11649_v28  ;;  %3864 = vmatpush.msrb.mxu3 %v11650_v6  ;;  %v11707_v28 = vld [vmem:[#allocation12_spill] sm:$0xff]  ;;  %v11708_v6 = vld [vmem:[#allocation98_spill] sm:$0xff] }
 0x6ac   :  { %3716 = vmatpush.msra.mxu0 %v11651_v57  ;;  %3756 = vmatpush.msra.mxu2 %v11652_v30  ;;  %v11709_v57 = vld [vmem:[#allocation99_spill] sm:$0xff] }
 0x6ad   :  { %3825 = vmatpush.msrb.mxu1 %v11653_v51  ;;  %3865 = vmatpush.msrb.mxu3 %v11654_v42  ;;  %v11710_v30 = vld [vmem:[#allocation15_spill] sm:$0xff]  ;;  %v11711_v51 = vld [vmem:[#allocation13_spill] sm:$0xff]  ;;  %v11712_v42 = vld [vmem:[#allocation14_spill] sm:$0xff] }
 0x6ae   :  { %3717 = vmatpush.msra.mxu0 %v11655_v43  ;;  %3757 = vmatpush.msra.mxu2 %v11656_v63  ;;  %v11713_v43 = vld [vmem:[#allocation16_spill] sm:$0xff]  ;;  %v11714_v63 = vld [vmem:[#allocation19_spill] sm:$0xff] }
 0x6af   :  { %3826 = vmatpush.msrb.mxu1 %v11657_v33  ;;  %3866 = vmatpush.msrb.mxu3 %v11658_v58  ;;  %v11715_v33 = vld [vmem:[#allocation17_spill] sm:$0xff] }
 0x6b0   :  { %3718 = vmatpush.msra.mxu0 %v11659_v34  ;;  %3758 = vmatpush.msra.mxu2 %v11660_v3  ;;  %v11716_v58 = vld [vmem:[#allocation21_spill] sm:$0xff]  ;;  %v11717_v34 = vld [vmem:[#allocation18_spill] sm:$0xff]  ;;  %v11718_v3 = vld [vmem:[#allocation23_spill] sm:$0xff] }
 0x6b1   :  { %3827 = vmatpush.msrb.mxu1 %v11661_v47  ;;  %3867 = vmatpush.msrb.mxu3 %v11662_v8  ;;  %v11719_v47 = vld [vmem:[#allocation20_spill] sm:$0xff]  ;;  %v11720_v8 = vld [vmem:[#allocation25_spill] sm:$0xff] }
 0x6b2   :  { %3719 = vmatpush.msra.mxu0 %v11663_v9  ;;  %3759 = vmatpush.msra.mxu2 %v11664_v62  ;;  %v11721_v62 = vld [vmem:[#allocation67_spill] sm:$0xff] }
 0x6b3   :  { %3828 = vmatpush.msrb.mxu1 %v11665_v39  ;;  %3868 = vmatpush.msrb.mxu3 %v11666_v44  ;;  %v11722_v44 = vld [vmem:[#allocation22_spill] sm:$0xff] }
 0x6b4   :  { %3720 = vmatpush.msra.mxu0 %v11667_v52  ;;  %3760 = vmatpush.msra.mxu2 %v11668_v19  ;;  %v11723_v52 = vld [vmem:[#allocation27_spill] sm:$0xff]  ;;  %v3302_v19 = vpop.f32.mrf.mxu1 }
 0x6b5   :  { %3829 = vmatpush.msrb.mxu1 %v11669_v36  ;;  %3869 = vmatpush.msrb.mxu3 %v11670_v24  ;;  %v11724_v24 = vld [vmem:[#allocation24_spill] sm:$0xff] }
 0x6b6   :  { %3721 = vmatpush.msra.mxu0 %v11671_v26  ;;  %3761 = vmatpush.msra.mxu2 %v11672_v10  ;;  %v11725_v26 = vld [vmem:[#allocation29_spill] sm:$0xff] }
 0x6b7   :  { %3830 = vmatpush.msrb.mxu1 %v11673_v53  ;;  %3870 = vmatpush.msrb.mxu3 %v11674_v20  ;;  %v11726_v20 = vld [vmem:[#allocation72_spill] sm:$0xff] }
 0x6b8   :  { %3722 = vmatpush.msra.mxu0 %v11675_v25  ;;  %3762 = vmatpush.msra.mxu2 %v11676_v61  ;;  %v3342_v61 = vpop.f32.mrf.mxu3 }
 0x6ba   :  { %3723 = vmatpush.msra.mxu0 %v11677_v56  ;;  %3763 = vmatpush.msra.mxu2 %v11678_v48 }
 0x6bc   :  { %3724 = vmatpush.msra.mxu0 %v11679_v21  ;;  %3764 = vmatpush.msra.mxu2 %v11680_v55 }
 0x6be   :  { %3725 = vmatpush.msra.mxu0 %v11681_v18  ;;  %3765 = vmatpush.msra.mxu2 %v11682_v59  ;;  %v11727_v59 = vld [vmem:[#allocation69_spill] sm:$0xff] }
 0x6c0   :  { %3726 = vmatpush.msra.mxu0 %v11683_v27  ;;  %3766 = vmatpush.msra.mxu2 %v11684_v46  ;;  %v3422_v46 = vpop.f32.mrf.mxu3 }
 0x6c2   :  { %3727 = vmatpush.msra.mxu0 %v11685_v2  ;;  %3767 = vmatpush.msra.mxu2 %v11686_v5 }
 0x6c4   :  { %3728 = vmatpush.msra.mxu0 %v11687_v49  ;;  %3768 = vmatpush.msra.mxu2 %v11688_v0 }
 0x6c6   :  { %3729 = vmatpush.msra.mxu0 %v11689_v38  ;;  %3769 = vmatpush.msra.mxu2 %v11690_v23 }
 0x6c8   :  { %3730 = vmatpush.msra.mxu0 %v11691_v41  ;;  %3770 = vmatpush.msra.mxu2 %v11692_v50  ;;  %v11728_v50 = vld [vmem:[#allocation74_spill] sm:$0xff] }
 0x6ca   :  { %3795 = vmatpush.msrb.mxu0 %v11693_v31  ;;  %3835 = vmatpush.msrb.mxu2 %v11694_v54 }
 0x6cc   :  { %3796 = vmatpush.msrb.mxu0 %v11695_v22  ;;  %3836 = vmatpush.msrb.mxu2 %v11696_v7  ;;  %v3382_v22 = vpop.f32.mrf.mxu1 }
 0x6ce   :  { %3797 = vmatpush.msrb.mxu0 %v11697_v40  ;;  %3837 = vmatpush.msrb.mxu2 %v11698_v32 }
 0x6d0   :  { %3798 = vmatpush.msrb.mxu0 %v11699_v13  ;;  %3838 = vmatpush.msrb.mxu2 %v11700_v16 }
 0x6d2   :  { %3799 = vmatpush.msrb.mxu0 %v11701_v17  ;;  %3839 = vmatpush.msrb.mxu2 %v11702_v4 }
 0x6d4   :  { %3800 = vmatpush.msrb.mxu0 %v11703_v35  ;;  %3840 = vmatpush.msrb.mxu2 %v11704_v12 }
 0x6d6   :  { %3801 = vmatpush.msrb.mxu0 %v11705_v37  ;;  %3841 = vmatpush.msrb.mxu2 %v11706_v15 }
 0x6d8   :  { %3802 = vmatpush.msrb.mxu0 %v11707_v28  ;;  %3842 = vmatpush.msrb.mxu2 %v11708_v6 }
 0x6da   :  { %3803 = vmatpush.msrb.mxu0 %v11709_v57  ;;  %3843 = vmatpush.msrb.mxu2 %v11710_v30 }
 0x6dc   :  { %3804 = vmatpush.msrb.mxu0 %v11711_v51  ;;  %3844 = vmatpush.msrb.mxu2 %v11712_v42 }
 0x6de   :  { %3805 = vmatpush.msrb.mxu0 %v11713_v43  ;;  %3845 = vmatpush.msrb.mxu2 %v11714_v63 }
 0x6e0   :  { %3806 = vmatpush.msrb.mxu0 %v11715_v33  ;;  %3846 = vmatpush.msrb.mxu2 %v11716_v58 }
 0x6e1   :  { %v3282_v9 = vpop.f32.mrf.mxu0 }
 0x6e2   :  { %3807 = vmatpush.msrb.mxu0 %v11717_v34  ;;  %3847 = vmatpush.msrb.mxu2 %v11718_v3  ;;  %v3283_v39 = vadd.f32 %v3282_v9, %v11721_v62 }
 0x6e3   :  { %v3529_v34 = vpop.f32.mrf.mxu1 }
 0x6e4   :  { %3808 = vmatpush.msrb.mxu0 %v11719_v47  ;;  %3848 = vmatpush.msrb.mxu2 %v11720_v8  ;;  %v3303_v36 = vadd.f32 %v3302_v19, %v3283_v39 }
 0x6e6   :  { %3809 = vmatpush.msrb.mxu0 %v11722_v44  ;;  %3849 = vmatpush.msrb.mxu2 %v11723_v52  ;;  %v4009_v10 = vmul.f32 -1.442695, %v3303_v36 }
 0x6e7   :  { %v3322_v53 = vpop.f32.mrf.mxu2 }
 0x6e8   :  { %3810 = vmatpush.msrb.mxu0 %v11724_v24  ;;  %3850 = vmatpush.msrb.mxu2 %v11725_v26  ;;  %4234 = vpow2.f32 %v4009_v10  ;;  %v3323_v25 = vadd.f32 %v3322_v53, %v11726_v20 }
 0x6ea   :  { %v3343_v56 = vadd.f32 %v3342_v61, %v3323_v25 }
 0x6eb   :  { %v3569_v36 = vpop.f32.mrf.mxu3 }
 0x6ec   :  { %v4010_v48 = vmul.f32 -1.442695, %v3343_v56  ;;  %v3362_v0 = vpop.f32.mrf.mxu0 }
 0x6ed   :  { %v3363_v31 = vadd.f32 %v3362_v0, %v11728_v50 }
 0x6ee   :  { %v4235_v21 = vpop.eup %4234  ;;  %4236 = vpow2.f32 %v4010_v48 }
 0x6ef   :  { %v3428_v55 = vadd.f32 1.0, %v4235_v21  ;;  %v3383_v7 = vadd.f32 %v3382_v22, %v3363_v31 }
 0x6f1   :  { %4238 = vrcp.f32 %v3428_v55  ;;  %v3440_v4 = vand.u32 2147483648, %v3428_v55  ;;  %vm3434_vm13 = vweird.f32 %v3428_v55  ;;  %v3438_v37 = vand.u32 2147483647, %v3428_v55 }
 0x6f3   :  { %v3402_v18 = vpop.f32.mrf.mxu2  ;;  %v3441_v51 = vor.u32 1.1754944e-38, %v3440_v4  ;;  %vm3439_vm1 = vcmp.eq.f32.partialorder %v3438_v37, 8.507059e+37 }
 0x6f4   :  { %v3403_v27 = vadd.f32 %v3402_v18, %v11727_v59  ;;  %v4237_v2 = vpop.eup %4236 }
 0x6f5   :  { %v3447_v49 = vadd.f32 1.0, %v4237_v2 }
 0x6f6   :  { %v3423_v5 = vadd.f32 %v3422_v46, %v3403_v27 }
 0x6f7   :  { %v4239_v23 = vpop.eup %4238  ;;  %4240 = vrcp.f32 %v3447_v49  ;;  %v3459_v15 = vand.u32 2147483648, %v3447_v49  ;;  %v3457_v57 = vand.u32 2147483647, %v3447_v49  ;;  %vm3453_vm0 = vweird.f32 %v3447_v49 }
 0x6f8   :  { %v4011_v38 = vmul.f32 -1.442695, %v3423_v5  ;;  %v3430_v41 = vmul.f32 %v4239_v23, %v3428_v55  ;;  %vm3435_vm12 = vweird.f32 %v4239_v23 }
 0x6f9   :  { %vm3436_vm14 = vmor %vm3434_vm13, %vm3435_vm12  ;;  %v3460_v63 = vor.u32 1.1754944e-38, %v3459_v15  ;;  %vm3458_vm3 = vcmp.eq.f32.partialorder %v3457_v57, 8.507059e+37 }
 0x6fa   :  { %4242 = vpow2.f32 %v4011_v38  ;;  %v3431_v54 = vsub.f32 1.0, %v3430_v41 }
 0x6fb   :  { %4244 = vtanh.f32 %v3383_v7 }
 0x6fc   :  { %v3432_v40 = vmul.f32 %v4239_v23, %v3431_v54 }
 0x6fd   :  { %v4241_v32 = vpop.eup %4240 }
 0x6fe   :  { %v3449_v16 = vmul.f32 %v4241_v32, %v3447_v49  ;;  %v3433_v17 = vadd.f32 %v4239_v23, %v3432_v40  ;;  %vm3454_vm15 = vweird.f32 %v4241_v32  ;;  %v3649_v40 = vpop.f32.mrf.mxu3 }
 0x6ff   :  { %vm3455_vm2 = vmor %vm3453_vm0, %vm3454_vm15 }
 0x700   :  { %v4243_v13 = vpop.eup %4242  ;;  %v3450_v12 = vsub.f32 1.0, %v3449_v16  ;;  %v3437_v6 = vsel %vm3436_vm14, %v4239_v23, %v3433_v17  ;;  %v3609_v17 = vpop.f32.mrf.mxu1 }
 0x701   :  { %v3467_v35 = vadd.f32 1.0, %v4243_v13  ;;  %v3442_v33 = vsel %vm3439_vm1, %v3441_v51, %v3437_v6  ;;  %v4245_v58 = vpop.eup %4244 }
 0x702   :  { %v3451_v28 = vmul.f32 %v4241_v32, %v3450_v12  ;;  %v3484_v44 = vmul.f32 %v4245_v58, %v3442_v33 }
 0x703   :  { %4246 = vrcp.f32 %v3467_v35  ;;  %v3479_v61 = vand.u32 2147483648, %v3467_v35  ;;  %v3477_v48 = vand.u32 2147483647, %v3467_v35  ;;  %vm3473_vm5 = vweird.f32 %v3467_v35 }
 0x704   :  { %v3452_v43 = vadd.f32 %v4241_v32, %v3451_v28 }
 0x705   :  { %v3509_v30 = vpop.f32.mrf.mxu0  ;;  %vm3478_vm7 = vcmp.eq.f32.partialorder %v3477_v48, 8.507059e+37 }
 0x706   :  { %v3510_v42 = vadd.f32 %v3509_v30, %v10565_v14  ;;  %v3456_v3 = vsel %vm3455_vm2, %v4241_v32, %v3452_v43 }
 0x707   :  { %v3461_v8 = vsel %vm3458_vm3, %v3460_v63, %v3456_v3 }
 0x708   :  { %v3530_v9 = vadd.f32 %v3529_v34, %v3510_v42  ;;  %v3483_v39 = vmul.f32 %v3461_v8, %v9318_v1 }
 0x709   :  { %v4247_v47 = vpop.eup %4246 }
 0x70a   :  { %v3469_v52 = vmul.f32 %v4247_v47, %v3467_v35  ;;  %v9581_v24 = vadd.f32 %v3484_v44, %v3483_v39  ;;  %v4014_v10 = vmul.f32 -1.442695, %v3530_v9  ;;  %vm3474_vm4 = vweird.f32 %v4247_v47 }
 0x70b   :  { %v3549_v19 = vpop.f32.mrf.mxu2  ;;  %vm3475_vm6 = vmor %vm3473_vm5, %vm3474_vm4 }
 0x70c   :  { %v3550_v14 = vadd.f32 %v3549_v19, %v10566_v60  ;;  %v3470_v26 = vsub.f32 1.0, %v3469_v52  ;;  %4248 = vtanh.f32 %v9581_v24  ;;  %v3480_v60 = vor.u32 1.1754944e-38, %v3479_v61 }
 0x70d   :  { %4250 = vpow2.f32 %v4014_v10 }
 0x70e   :  { %v3570_v53 = vadd.f32 %v3569_v36, %v3550_v14  ;;  %v3471_v25 = vmul.f32 %v4247_v47, %v3470_v26 }
 0x710   :  { %v4015_v56 = vmul.f32 -1.442695, %v3570_v53  ;;  %v3472_v1 = vadd.f32 %v4247_v47, %v3471_v25 }
 0x712   :  { %4252 = vpow2.f32 %v4015_v56  ;;  %v3476_v21 = vsel %vm3475_vm6, %v4247_v47, %v3472_v1  ;;  %v4249_v55 = vpop.eup %4248 }
 0x713   :  { %v3481_v18 = vsel %vm3478_vm7, %v3480_v60, %v3476_v21  ;;  %v4251_v46 = vpop.eup %4250 }
 0x714   :  { %v3487_v27 = vmul.f32 %v4249_v55, %v3481_v18  ;;  %v3655_v5 = vadd.f32 1.0, %v4251_v46 }
 0x716   :  { %4012 = vst [vmem:[%s9606_s5 + $0x30] sm:$0xff] %v3487_v27  ;;  %3751 = vmatmul.f32.vlgmr.msra.gmra.mxu1 %v3487_v27  ;;  %3791 = vmatmul.f32.vlgmr.msra.gmra.mxu3 %v3487_v27  ;;  %4254 = vrcp.f32 %v3655_v5  ;;  %vm3661_vm10 = vweird.f32 %v3655_v5 }
 0x718   :  { %v4253_v2 = vpop.eup %4252 }
 0x719   :  { %v3674_v49 = vadd.f32 1.0, %v4253_v2 }
 0x71b   :  { %4256 = vrcp.f32 %v3674_v49  ;;  %v3686_v6 = vand.u32 2147483648, %v3674_v49  ;;  %vm3680_vm11 = vweird.f32 %v3674_v49  ;;  %v3684_v57 = vand.u32 2147483647, %v3674_v49 }
 0x71c   :  { %v4255_v0 = vpop.eup %4254 }
 0x71d   :  { %v3657_v23 = vmul.f32 %v4255_v0, %v3655_v5  ;;  %vm3662_vm8 = vweird.f32 %v4255_v0  ;;  %v3687_v33 = vor.u32 1.1754944e-38, %v3686_v6  ;;  %vm3685_vm15 = vcmp.eq.f32.partialorder %v3684_v57, 8.507059e+37 }
 0x71e   :  { %3831 = vmatmul.f32.vlgmr.msrb.gmra.mxu1 %v3487_v27  ;;  %3871 = vmatmul.f32.vlgmr.msrb.gmra.mxu3 %v3487_v27  ;;  %vm3663_vm12 = vmor %vm3661_vm10, %vm3662_vm8 }
 0x71f   :  { %v3658_v32 = vsub.f32 1.0, %v3657_v23 }
 0x721   :  { %v4257_v38 = vpop.eup %4256  ;;  %v3659_v37 = vmul.f32 %v4255_v0, %v3658_v32 }
 0x722   :  { %v3676_v41 = vmul.f32 %v4257_v38, %v3674_v49  ;;  %vm3681_vm9 = vweird.f32 %v4257_v38 }
 0x723   :  { %v3660_v15 = vadd.f32 %v4255_v0, %v3659_v37  ;;  %vm3682_vm13 = vmor %vm3680_vm11, %vm3681_vm9 }
 0x724   :  { %v3677_v13 = vsub.f32 1.0, %v3676_v41 }
 0x725   :  { %v3589_v31 = vpop.f32.mrf.mxu0  ;;  %v3664_v51 = vsel %vm3663_vm12, %v4255_v0, %v3660_v15 }
 0x726   :  { %v3590_v22 = vadd.f32 %v3589_v31, %v11577_v45  ;;  %v3678_v12 = vmul.f32 %v4257_v38, %v3677_v13  ;;  %v3667_v45 = vand.u32 2147483648, %v3655_v5 }
 0x728   :  { %v3610_v4 = vadd.f32 %v3609_v17, %v3590_v22  ;;  %v3679_v28 = vadd.f32 %v4257_v38, %v3678_v12  ;;  %v3668_v58 = vor.u32 1.1754944e-38, %v3667_v45 }
 0x72a   :  { %v3683_v42 = vsel %vm3682_vm13, %v4257_v38, %v3679_v28 }
 0x72b   :  { %v3629_v54 = vpop.f32.mrf.mxu2  ;;  %v3688_v3 = vsel %vm3685_vm15, %v3687_v33, %v3683_v42 }
 0x72c   :  { %v3630_v7 = vadd.f32 %v3629_v54, %v11578_v11  ;;  %v3665_v11 = vand.u32 2147483647, %v3655_v5  ;;  %v3710_v8 = vmul.f32 %v3688_v3, %v9412_v29 }
 0x72e   :  { %v3650_v16 = vadd.f32 %v3649_v40, %v3630_v7  ;;  %vm3666_vm14 = vcmp.eq.f32.partialorder %v3665_v11, 8.507059e+37 }
 0x72f   :  { %v3669_v34 = vsel %vm3666_vm14, %v3668_v58, %v3664_v51 }
 0x730   :  { %v4016_v35 = vmul.f32 -1.442695, %v3650_v16 }
 0x732   :  { %4258 = vpow2.f32 %v4016_v35 }
 0x733   :  { %4260 = vtanh.f32 %v3610_v4 }
 0x738   :  { %v4259_v30 = vpop.eup %4258 }
 0x739   :  { %v3694_v43 = vadd.f32 1.0, %v4259_v30  ;;  %v4261_v63 = vpop.eup %4260 }
 0x73a   :  { %v3711_v47 = vmul.f32 %v4261_v63, %v3669_v34 }
 0x73b   :  { %4262 = vrcp.f32 %v3694_v43  ;;  %v3706_v19 = vand.u32 2147483648, %v3694_v43  ;;  %v3704_v36 = vand.u32 2147483647, %v3694_v43  ;;  %vm3700_vm1 = vweird.f32 %v3694_v43 }
 0x73c   :  { %v3712_v39 = vadd.f32 %v3711_v47, %v3710_v8 }
 0x73d   :  { %v3707_v10 = vor.u32 1.1754944e-38, %v3706_v19  ;;  %vm3705_vm3 = vcmp.eq.f32.partialorder %v3704_v36, 8.507059e+37 }
 0x73e   :  { %4264 = vtanh.f32 %v3712_v39 }
 0x741   :  { %v4263_v9 = vpop.eup %4262 }
 0x742   :  { %v3696_v44 = vmul.f32 %v4263_v9, %v3694_v43  ;;  %vm3701_vm0 = vweird.f32 %v4263_v9 }
 0x743   :  { %vm3702_vm2 = vmor %vm3700_vm1, %vm3701_vm0 }
 0x744   :  { %v3697_v52 = vsub.f32 1.0, %v3696_v44  ;;  %v4265_v25 = vpop.eup %4264 }
 0x746   :  { %v3698_v14 = vmul.f32 %v4263_v9, %v3697_v52 }
 0x748   :  { %v3699_v26 = vadd.f32 %v4263_v9, %v3698_v14 }
 0x74a   :  { %v3703_v53 = vsel %vm3702_vm2, %v4263_v9, %v3699_v26 }
 0x74b   :  { %v3708_v61 = vsel %vm3705_vm3, %v3707_v10, %v3703_v53 }
 0x74c   :  { %v3714_v56 = vmul.f32 %v4265_v25, %v3708_v61 }
 0x74e   :  { %3731 = vmatmul.f32.vlgmr.msra.gmra.mxu0 %v3714_v56  ;;  %3948 = vst [vmem:[%s9607_s6] sm:$0xff] %v3714_v56  ;;  %3771 = vmatmul.f32.vlgmr.msra.gmra.mxu2 %v3714_v56 }
 0x756   :  { %3811 = vmatmul.f32.vlgmr.msrb.gmra.mxu0 %v3714_v56  ;;  %3851 = vmatmul.f32.vlgmr.msrb.gmra.mxu2 %v3714_v56 }
 0x793   :  { %v3752_v1 = vpop.f32.mrf.mxu1 }
 0x799   :  { %v3792_v55 = vpop.f32.mrf.mxu3 }
 0x79b   :  { %v3832_v16 = vpop.f32.mrf.mxu1 }
 0x7a1   :  { %v3872_v23 = vpop.f32.mrf.mxu3 }
 0x7cb   :  { %v3732_v29 = vpop.f32.mrf.mxu0 }
 0x7cc   :  { %v3733_v48 = vadd.f32 %v3732_v29, %v11721_v62 }
 0x7ce   :  { %v3753_v21 = vadd.f32 %v3752_v1, %v3733_v48 }
 0x7d0   :  { %v4017_v60 = vmul.f32 -1.442695, %v3753_v21 }
 0x7d1   :  { %v3772_v18 = vpop.f32.mrf.mxu2 }
 0x7d2   :  { %4266 = vpow2.f32 %v4017_v60  ;;  %v3773_v27 = vadd.f32 %v3772_v18, %v11726_v20 }
 0x7d3   :  { %v3812_v22 = vpop.f32.mrf.mxu0 }
 0x7d4   :  { %v3793_v46 = vadd.f32 %v3792_v55, %v3773_v27  ;;  %v3813_v20 = vadd.f32 %v3812_v22, %v11728_v50 }
 0x7d6   :  { %v4018_v2 = vmul.f32 -1.442695, %v3793_v46  ;;  %v3833_v35 = vadd.f32 %v3832_v16, %v3813_v20 }
 0x7d8   :  { %v4267_v5 = vpop.eup %4266  ;;  %4268 = vpow2.f32 %v4018_v2 }
 0x7d9   :  { %v3878_v49 = vadd.f32 1.0, %v4267_v5  ;;  %v3852_v0 = vpop.f32.mrf.mxu2 }
 0x7da   :  { %v3853_v38 = vadd.f32 %v3852_v0, %v11727_v59 }
 0x7db   :  { %4270 = vrcp.f32 %v3878_v49  ;;  %v3890_v15 = vand.u32 2147483648, %v3878_v49  ;;  %vm3884_vm5 = vweird.f32 %v3878_v49  ;;  %v3888_v6 = vand.u32 2147483647, %v3878_v49 }
 0x7dc   :  { %v3873_v41 = vadd.f32 %v3872_v23, %v3853_v38 }
 0x7dd   :  { %v3891_v30 = vor.u32 1.1754944e-38, %v3890_v15  ;;  %vm3889_vm9 = vcmp.eq.f32.partialorder %v3888_v6, 8.507059e+37 }
 0x7de   :  { %v4269_v62 = vpop.eup %4268  ;;  %v4019_v31 = vmul.f32 -1.442695, %v3873_v41 }
 0x7df   :  { %v3897_v54 = vadd.f32 1.0, %v4269_v62 }
 0x7e0   :  { %4272 = vpow2.f32 %v4019_v31 }
 0x7e1   :  { %v4271_v7 = vpop.eup %4270  ;;  %4274 = vrcp.f32 %v3897_v54  ;;  %v3909_v45 = vand.u32 2147483648, %v3897_v54  ;;  %v3907_v57 = vand.u32 2147483647, %v3897_v54  ;;  %vm3903_vm8 = vweird.f32 %v3897_v54 }
 0x7e2   :  { %v3880_v40 = vmul.f32 %v4271_v7, %v3878_v49  ;;  %vm3885_vm4 = vweird.f32 %v4271_v7 }
 0x7e3   :  { %vm3886_vm6 = vmor %vm3884_vm5, %vm3885_vm4  ;;  %v3910_v43 = vor.u32 1.1754944e-38, %v3909_v45  ;;  %vm3908_vm11 = vcmp.eq.f32.partialorder %v3907_v57, 8.507059e+37 }
 0x7e4   :  { %v3881_v32 = vsub.f32 1.0, %v3880_v40 }
 0x7e6   :  { %v4273_v13 = vpop.eup %4272  ;;  %v3882_v17 = vmul.f32 %v4271_v7, %v3881_v32 }
 0x7e7   :  { %v4275_v4 = vpop.eup %4274  ;;  %v3917_v59 = vadd.f32 1.0, %v4273_v13 }
 0x7e8   :  { %v3899_v12 = vmul.f32 %v4275_v4, %v3897_v54  ;;  %v3883_v37 = vadd.f32 %v4271_v7, %v3882_v17  ;;  %vm3904_vm7 = vweird.f32 %v4275_v4 }
 0x7e9   :  { %4276 = vrcp.f32 %v3917_v59  ;;  %vm3905_vm10 = vmor %vm3903_vm8, %vm3904_vm7  ;;  %v3929_v19 = vand.u32 2147483648, %v3917_v59  ;;  %vm3923_vm13 = vweird.f32 %v3917_v59  ;;  %v3927_v14 = vand.u32 2147483647, %v3917_v59 }
 0x7ea   :  { %v3900_v28 = vsub.f32 1.0, %v3899_v12  ;;  %4278 = vtanh.f32 %v3833_v35  ;;  %v3887_v50 = vsel %vm3886_vm6, %v4271_v7, %v3883_v37 }
 0x7eb   :  { %v3892_v63 = vsel %vm3889_vm9, %v3891_v30, %v3887_v50  ;;  %v3930_v26 = vor.u32 1.1754944e-38, %v3929_v19  ;;  %vm3928_vm15 = vcmp.eq.f32.partialorder %v3927_v14, 8.507059e+37 }
 0x7ec   :  { %v3901_v11 = vmul.f32 %v4275_v4, %v3900_v28 }
 0x7ee   :  { %v3902_v51 = vadd.f32 %v4275_v4, %v3901_v11 }
 0x7ef   :  { %v4277_v42 = vpop.eup %4276 }
 0x7f0   :  { %v3906_v33 = vsel %vm3905_vm10, %v4275_v4, %v3902_v51  ;;  %v3919_v58 = vmul.f32 %v4277_v42, %v3917_v59  ;;  %v4279_v34 = vpop.eup %4278  ;;  %vm3924_vm12 = vweird.f32 %v4277_v42 }
 0x7f1   :  { %v3911_v3 = vsel %vm3908_vm11, %v3910_v43, %v3906_v33  ;;  %v3934_v8 = vmul.f32 %v4279_v34, %v3892_v63  ;;  %vm3925_vm14 = vmor %vm3923_vm13, %vm3924_vm12 }
 0x7f2   :  { %v3933_v47 = vmul.f32 %v3911_v3, %v9581_v24  ;;  %v3920_v9 = vsub.f32 1.0, %v3919_v58 }
 0x7f4   :  { %v3935_v39 = vadd.f32 %v3934_v8, %v3933_v47  ;;  %v3921_v44 = vmul.f32 %v4277_v42, %v3920_v9 }
 0x7f6   :  { %4280 = vtanh.f32 %v3935_v39  ;;  %v3922_v52 = vadd.f32 %v4277_v42, %v3921_v44 }
 0x7f8   :  { %v3926_v36 = vsel %vm3925_vm14, %v4277_v42, %v3922_v52 }
 0x7f9   :  { %v3931_v53 = vsel %vm3928_vm15, %v3930_v26, %v3926_v36 }
 0x7fc   :  { %v4281_v10 = vpop.eup %4280 }
 0x7fd   :  { %v3937_v25 = vmul.f32 %v4281_v10, %v3931_v53 }
 0x7ff   :  { %4020 = vst [vmem:[%s9606_s5 + $0x38] sm:$0xff] %v3937_v25 }
 0x800   :  { %3957 = vsyncpa [#allocation7], 1 }
 0x801   :  { %3958 = vsyncpa [#allocation9], 1 }

</bundles_post_ra>
